<compile_context>
chip_gen: v5e
topology: v5e:2x2
jax: 0.10.0
libtpu: 0.0.40
codegen_flags: <defaults>
</compile_context>

<pallas_src>
import math
import functools

import jax
import jax.numpy as jnp
from jax import lax
from jax.experimental import pallas as pl
from jax.experimental.pallas import tpu as pltpu

S = 64.0
M = 0.5
COS_M = math.cos(M)
SIN_M = math.sin(M)
MM = SIN_M * M * S
TH = math.cos(math.pi - M) * S
EPS = 1e-12  # F.normalize default eps


def _round_up(a, b):
    return (a + b - 1) // b * b


def _arcface_kernel(xs_ref, w_ref, lab_ref, o_ref, *, tn):
    # xs_ref : (tb, D)  matmul dtype, already L2-normalized and scaled by s.
    # w_ref  : (tn, D)  raw streamed weight tile (bf16 or f32).
    # lab_ref: (tb, 1)  int32.
    # o_ref  : (tb, tn) output logits tile.
    j = pl.program_id(0)  # class-tile index (outer grid axis)

    xs = xs_ref[...]
    w = w_ref[...]

    # Per-class inverse L2 norm, applied post-matmul.  rsqrt goes to the EUP;
    # the only full-weight-tile VALU work is one square per element.
    wf = w.astype(jnp.float32)
    inv_wn = lax.rsqrt(jnp.maximum(jnp.sum(wf * wf, axis=1), EPS * EPS))  # (tn,)

    # cosine = (x_hat * s) @ w_hat.T, transpose-free contraction (dim 1 of both
    # operands), f32 accumulation on the MXU.
    raw = lax.dot_general(
        xs, w,
        dimension_numbers=(((1,), (1,)), ((), ())),
        preferred_element_type=jnp.float32,
    )
    cosine = jnp.clip(raw * inv_wn[None, :], -S, S)  # (tb, tn)

    # ArcFace margin only affects the label column of each row.
    lab = lab_ref[...]                                         # (tb, 1)
    local_ids = lax.broadcasted_iota(jnp.int32, cosine.shape, 1)
    mask = local_ids == (lab - j * tn)                         # (tb, tn)

    cos_lab = jnp.sum(jnp.where(mask, cosine, 0.0), axis=1, keepdims=True)  # (tb, 1)
    # NOTE: the module literally computes (s*s - cosine^2).clamp(0, s) -- the
    # upper bound is s (=64), not s*s.  Kept verbatim to preserve semantics.
    sine = jnp.sqrt(jnp.clip(S * S - cos_lab * cos_lab, 0.0, S))
    phi = cos_lab * COS_M - sine * SIN_M
    phi = jnp.where(cos_lab >= TH, phi, cos_lab - MM)          # (tb, 1)

    o_ref[...] = jnp.where(mask, phi, cosine).astype(o_ref.dtype)


def _auto_tile_and_vmem(C, D, tb, tn, mm_itemsize, out_itemsize, vmem_limit_bytes):
    """Pick a class-tile width and (if needed) a scoped-VMEM limit."""
    vmem_cap = None
    try:
        vmem_cap = int(pltpu.get_tpu_info().vmem_capacity_bytes)
    except Exception:
        pass
    if tn is None:
        if vmem_cap is None:
            tn = 2048                   # unknown target (e.g. interpret): safe
        elif vmem_cap <= (64 << 20):    # v7x: 64 MiB per TensorCore
            tn = 4096
        else:                           # v5e / v6e: 128 MiB
            tn = 8192
    tn = _round_up(max(128, min(tn, _round_up(C, 128))), 128)

    if vmem_limit_bytes is None:
        # Double-buffered live VMEM estimate for the auto-pipelined tiles.
        est = (2 * tn * D * mm_itemsize        # weight tiles
               + 2 * tb * tn * out_itemsize    # output tiles
               + 2 * tb * D * mm_itemsize      # xs tiles
               + 2 * tb * 4)                   # label tiles
        if est > (12 << 20):
            vmem_limit_bytes = est + (24 << 20)  # generous headroom
            cap = (vmem_cap - (8 << 20)) if vmem_cap else (64 << 20)
            vmem_limit_bytes = min(vmem_limit_bytes, cap)
    return tn, vmem_limit_bytes


def arcface_forward(x, weight, label, *, tb=None, tn=None,
                    out_dtype=jnp.float32, vmem_limit_bytes=None):
    """x: [B, D] float, weight: [C, D] (f32 or bf16 stream), label: [B] int
    -> [B, C] logits (out_dtype)."""
    B, D = x.shape
    C, D2 = weight.shape
    assert D == D2
    assert D % 128 == 0, "feature dim must be a multiple of 128 (it is 256 here)"

    # Hoist x = F.normalize(x, p=2, dim=1) * s (B x D is tiny; done once, f32).
    x32 = x.astype(jnp.float32)
    inv_xn = lax.rsqrt(jnp.maximum(jnp.sum(x32 * x32, axis=1, keepdims=True),
                                   EPS * EPS))
    xs = x32 * inv_xn * S

    # Matmul runs in the weight's streamed dtype (bf16 recommended); f32 acc.
    mm_dtype = jnp.bfloat16 if weight.dtype == jnp.bfloat16 else jnp.float32
    xs = xs.astype(mm_dtype)
    w = weight.astype(mm_dtype)

    lab = label.astype(jnp.int32).reshape(B, 1)

    if tb is None:
        tb = B if B <= 256 else 256
    assert B % tb == 0, (B, tb)

    tn, vmem_limit_bytes = _auto_tile_and_vmem(
        C, D, tb, tn,
        jnp.dtype(mm_dtype).itemsize, jnp.dtype(out_dtype).itemsize,
        vmem_limit_bytes)

    # Zero-pad the class dim so C is a multiple of tn (padded logits sliced off).
    C_pad = _round_up(C, tn)
    if C_pad != C:
        w = jnp.pad(w, ((0, C_pad - C), (0, 0)))

    kernel = functools.partial(_arcface_kernel, tn=tn)
    out = pl.pallas_call(
        kernel,
        out_shape=jax.ShapeDtypeStruct((B, C_pad), out_dtype),
        grid_spec=pltpu.PrefetchScalarGridSpec(
            num_scalar_prefetch=0,
            # Class axis OUTER: v7x megacore shards it across both TCs, and the
            # weight index depends only on it (each tile fetched once total).
            grid=(C_pad // tn, B // tb),
            in_specs=[
                pl.BlockSpec((tb, D), lambda j, i: (i, 0)),   # normalized x * s
                pl.BlockSpec((tn, D), lambda j, i: (j, 0)),   # raw weight tile
                pl.BlockSpec((tb, 1), lambda j, i: (i, 0)),   # labels
            ],
            out_specs=pl.BlockSpec((tb, tn), lambda j, i: (i, j)),
        ),
        compiler_params=pltpu.CompilerParams(
            dimension_semantics=("parallel", "parallel"),
            vmem_limit_bytes=vmem_limit_bytes,
        ),
    )(xs, w, lab)

    return out if C_pad == C else out[:, :C]


def _reference(x, weight, label):
    """Pure-JAX port of the PyTorch module forward (post-backbone)."""
    x = x.astype(jnp.float32)
    w = weight.astype(jnp.float32)
    xs = x / jnp.maximum(jnp.linalg.norm(x, axis=1, keepdims=True), EPS) * S
    wn = w / jnp.maximum(jnp.linalg.norm(w, axis=1, keepdims=True), EPS)
    cosine = jnp.clip(jnp.dot(xs, wn.T, precision=lax.Precision.HIGHEST), -S, S)
    sine = jnp.sqrt(jnp.clip(S * S - cosine ** 2, 0.0, S))
    phi = cosine * COS_M - sine * SIN_M
    phi = jnp.where(cosine >= TH, phi, cosine - MM)
    one_hot = jax.nn.one_hot(label, cosine.shape[1], dtype=jnp.float32)
    return one_hot * phi + (1.0 - one_hot) * cosine


if __name__ == "__main__":
    key = jax.random.PRNGKey(0)
    kx, kw, kl = jax.random.split(key, 3)

    # Small stand-in shapes for the real (B, 256) x (360576, 256) problem.
    B, D, C = 8, 256, 4096
    x = jax.random.normal(kx, (B, D), dtype=jnp.float32)
    # kaiming_uniform_(a=sqrt(5)) on [C, D]: bound = 1/sqrt(fan_in) = 1/sqrt(D)
    bound = 1.0 / math.sqrt(D)
    weight = jax.random.uniform(kw, (C, D), minval=-bound, maxval=bound,
                                dtype=jnp.float32)
    label = jax.random.randint(kl, (B,), 0, C, dtype=jnp.int32)

    # 1) f32 weight path
    out = arcface_forward(x, weight, label)
    jax.block_until_ready(out)
    ref = _reference(x, weight, label)
    assert out.shape == (B, C)
    assert jnp.allclose(out, ref, atol=1e-2, rtol=1e-3), "f32 path mismatch"

    # 2) bf16 weight-streaming path (recommended default for the real head):
    #    compare against a reference built from the same bf16-rounded weight.
    w_bf16 = weight.astype(jnp.bfloat16)
    out_bf = arcface_forward(x, w_bf16, label)
    jax.block_until_ready(out_bf)
    ref_bf = _reference(x, w_bf16.astype(jnp.float32), label)
    assert jnp.allclose(out_bf, ref_bf, atol=0.5, rtol=5e-2), "bf16 path mismatch"

    # 3) class count that is NOT a multiple of the tile width (exercises the
    #    zero-padding path needed for the real C = 360576) with >1 class tile.
    C3 = 1000
    w3 = weight[:C3]
    label3 = jax.random.randint(jax.random.PRNGKey(1), (B,), 0, C3,
                                dtype=jnp.int32)
    out3 = arcface_forward(x, w3, label3, tn=512)
    jax.block_until_ready(out3)
    ref3 = _reference(x, w3, label3)
    assert out3.shape == (B, C3)
    assert jnp.allclose(out3, ref3, atol=1e-2, rtol=1e-3), "padded-C path mismatch"

    print("KERNEL_OK")
</pallas_src>

<mosaic_0001>
module attributes {stable_mosaic.version = 11 : i64} {
  func.func @_arcface_kernel(%arg0: i32, %arg1: i32, %arg2: memref<8x256xf32, #tpu.memory_space<vmem>>, %arg3: memref<2048x256xf32, #tpu.memory_space<vmem>>, %arg4: memref<8x1xi32, #tpu.memory_space<vmem>>, %arg5: memref<8x2048xf32, #tpu.memory_space<vmem>>) attributes {dimension_semantics = [#tpu.dimension_semantics<parallel>, #tpu.dimension_semantics<parallel>], iteration_bounds = array<i64: 2, 1>, scalar_prefetch = 0 : i64, scratch_operands = 0 : i64, tpu.core_type = #tpu.core_type<tc>, window_params = [{transform_indices = @transform_0, window_bounds = array<i64: 8, 256>}, {transform_indices = @transform_1, window_bounds = array<i64: 2048, 256>}, {transform_indices = @transform_2, window_bounds = array<i64: 8, 1>}, {transform_indices = @transform_3, window_bounds = array<i64: 8, 2048>}]} {
    %c0 = arith.constant 0 : index
    %c0_0 = arith.constant 0 : index
    %0 = vector.load %arg2[%c0, %c0_0] : memref<8x256xf32, #tpu.memory_space<vmem>>, vector<8x256xf32>
    %c0_1 = arith.constant 0 : index
    %c0_2 = arith.constant 0 : index
    %1 = vector.load %arg3[%c0_1, %c0_2] : memref<2048x256xf32, #tpu.memory_space<vmem>>, vector<2048x256xf32>
    %2 = arith.mulf %1, %1 : vector<2048x256xf32>
    %cst = arith.constant dense<0.000000e+00> : vector<2048xf32>
    %3 = vector.multi_reduction <add>, %2, %cst [1] : vector<2048x256xf32> to vector<2048xf32>
    %cst_3 = arith.constant 1.000000e-24 : f32
    %4 = vector.broadcast %cst_3 : f32 to vector<2048xf32>
    %5 = arith.maximumf %3, %4 : vector<2048xf32>
    %6 = math.rsqrt %5 : vector<2048xf32>
    %cst_4 = arith.constant dense<0.000000e+00> : vector<8x2048xf32>
    %7 = tpu.matmul %0, %1, %cst_4 {dimension_numbers = #tpu.dot_dimension_numbers<[1], [1], [0], [0], [0, 0, 1, 0], [], []>} : vector<8x256xf32>, vector<2048x256xf32>, vector<8x2048xf32> -> vector<8x2048xf32>
    %8 = vector.shape_cast %6 : vector<2048xf32> to vector<1x2048xf32>
    %9 = vector.broadcast %8 : vector<1x2048xf32> to vector<8x2048xf32>
    %10 = arith.mulf %7, %9 : vector<8x2048xf32>
    %cst_5 = arith.constant -6.400000e+01 : f32
    %cst_6 = arith.constant 6.400000e+01 : f32
    %11 = vector.broadcast %cst_5 : f32 to vector<8x2048xf32>
    %12 = arith.maximumf %11, %10 : vector<8x2048xf32>
    %13 = vector.broadcast %cst_6 : f32 to vector<8x2048xf32>
    %14 = arith.minimumf %13, %12 : vector<8x2048xf32>
    %c0_7 = arith.constant 0 : index
    %c0_8 = arith.constant 0 : index
    %15 = vector.load %arg4[%c0_7, %c0_8] : memref<8x1xi32, #tpu.memory_space<vmem>>, vector<8x1xi32>
    %16 = tpu.iota {dimensions = array<i32: 1>} : vector<8x2048xi32>
    %c2048_i32 = arith.constant 2048 : i32
    %17 = arith.muli %arg0, %c2048_i32 : i32
    %18 = vector.broadcast %17 : i32 to vector<8x1xi32>
    %19 = arith.subi %15, %18 : vector<8x1xi32>
    %20 = vector.broadcast %19 : vector<8x1xi32> to vector<8x2048xi32>
    %21 = arith.cmpi eq, %16, %20 : vector<8x2048xi32>
    %cst_9 = arith.constant 0.000000e+00 : f32
    %22 = vector.broadcast %cst_9 : f32 to vector<8x2048xf32>
    %23 = arith.select %21, %14, %22 : vector<8x2048xi1>, vector<8x2048xf32>
    %cst_10 = arith.constant dense<0.000000e+00> : vector<8xf32>
    %24 = vector.multi_reduction <add>, %23, %cst_10 [1] : vector<8x2048xf32> to vector<8xf32>
    %25 = vector.shape_cast %24 : vector<8xf32> to vector<8x1xf32>
    %26 = arith.mulf %25, %25 : vector<8x1xf32>
    %cst_11 = arith.constant 4.096000e+03 : f32
    %27 = vector.broadcast %cst_11 : f32 to vector<8x1xf32>
    %28 = arith.subf %27, %26 : vector<8x1xf32>
    %cst_12 = arith.constant 0.000000e+00 : f32
    %cst_13 = arith.constant 6.400000e+01 : f32
    %29 = vector.broadcast %cst_12 : f32 to vector<8x1xf32>
    %30 = arith.maximumf %29, %28 : vector<8x1xf32>
    %31 = vector.broadcast %cst_13 : f32 to vector<8x1xf32>
    %32 = arith.minimumf %31, %30 : vector<8x1xf32>
    %33 = math.sqrt %32 : vector<8x1xf32>
    %cst_14 = arith.constant 0.87758255 : f32
    %34 = vector.broadcast %cst_14 : f32 to vector<8x1xf32>
    %35 = arith.mulf %25, %34 : vector<8x1xf32>
    %cst_15 = arith.constant 0.47942555 : f32
    %36 = vector.broadcast %cst_15 : f32 to vector<8x1xf32>
    %37 = arith.mulf %33, %36 : vector<8x1xf32>
    %38 = arith.subf %35, %37 : vector<8x1xf32>
    %cst_16 = arith.constant -56.1652832 : f32
    %39 = vector.broadcast %cst_16 : f32 to vector<8x1xf32>
    %40 = arith.cmpf oge, %25, %39 : vector<8x1xf32>
    %cst_17 = arith.constant 15.3416176 : f32
    %41 = vector.broadcast %cst_17 : f32 to vector<8x1xf32>
    %42 = arith.subf %25, %41 : vector<8x1xf32>
    %43 = arith.select %40, %38, %42 : vector<8x1xi1>, vector<8x1xf32>
    %44 = vector.shape_cast %43 : vector<8x1xf32> to vector<8x1xf32>
    %45 = vector.broadcast %44 : vector<8x1xf32> to vector<8x2048xf32>
    %46 = arith.select %21, %45, %14 : vector<8x2048xi1>, vector<8x2048xf32>
    %c0_18 = arith.constant 0 : index
    %c0_19 = arith.constant 0 : index
    %47 = vector.load %arg5[%c0_18, %c0_19] : memref<8x2048xf32, #tpu.memory_space<vmem>>, vector<8x2048xf32>
    tpu.vector_store %arg5[%c0_18, %c0_19], %46 {strides = array<i32>} : memref<8x2048xf32, #tpu.memory_space<vmem>>, vector<8x2048xf32>,
    return
  }
  func.func @transform_0(%arg0: i32, %arg1: i32) -> (i32, i32) {
    %c0_i32 = arith.constant 0 : i32
    %c0_i32_0 = arith.constant 0 : i32
    return %arg1, %c0_i32 : i32, i32
  }
  func.func @transform_1(%arg0: i32, %arg1: i32) -> (i32, i32) {
    %c0_i32 = arith.constant 0 : i32
    %c0_i32_0 = arith.constant 0 : i32
    return %arg0, %c0_i32 : i32, i32
  }
  func.func @transform_2(%arg0: i32, %arg1: i32) -> (i32, i32) {
    %c0_i32 = arith.constant 0 : i32
    %c0_i32_0 = arith.constant 0 : i32
    return %arg1, %c0_i32 : i32, i32
  }
  func.func @transform_3(%arg0: i32, %arg1: i32) -> (i32, i32) {
    %c0_i32 = arith.constant 0 : i32
    return %arg1, %arg0 : i32, i32
  }
}

</mosaic_0001>

<bundles_post_ra>
// kernel: tpu_custom_call.1
= control target key start
LH: loop header
LB: loop body
LE: loop exit
PB: predicated region body
PF: predicated region fallthrough
CT: control target
= control target key end

     0   :  { %s17666_s0 = inlined_call_operand.hbm [shape: f32[8,256], index: 0, kind: input, shape index: {}]   ;;  %s17667_s1 = inlined_call_operand.hbm [shape: f32[4096,256], index: 1, kind: input, shape index: {}]   ;;  %s17668_s2 = inlined_call_operand.vmem [shape: s32[8,1], index: 2, kind: input, shape index: {}]   ;;  %s17669_s3 = inlined_call_operand.hbm [shape: f32[8,4096], index: 3, kind: output, shape index: {}]  }
   0x1   :  { %17909 = sst [smem:[#allocation89_spill]] %s17666_s0 }
   0x2   :  { %8 = vsyncpa [#allocation3], 0 }
   0x3   :  { %9 = vsyncpa [#allocation6], 0 }
   0x4   :  { %11 = vsyncpa [#allocation6 + $0x1], 0 }
   0x5   :  { %12 = vsyncpa [#allocation4], 0 }
   0x6   :  { %14 = vsyncpa [#allocation4 + $0x1], 0  ;;  %s7563_s12 = smov 0   ;;  %s7565_s13 = smov 0  }
   0x7   :  { %s7567_s14 = smov 0   ;;  %s7569_s15 = smov 0  }
   0x8   :  { %s7571_s16 = smov 0   ;;  %s7573_s17 = smov 0  }
   0x9 LB: > { %s6702_s18 = sadd.s32 4294967295, %s7537_s17   ;;  %s6703_s19 = sadd.s32 4294967294, %s7537_s17   ;;  %s7537_s17 = sphi %s7573_s17, %s20_s17   ;;  %s7533_s16 = sphi %s7571_s16, %s19095_s16   ;;  %s7529_s15 = sphi %s7569_s15, %s19094_s15   ;;  %s7525_s14 = sphi %s7567_s14, %s19093_s14   ;;  %s7521_s13 = sphi %s7565_s13, %s19092_s13   ;;  %s7517_s12 = sphi %s7563_s12, %s19091_s12  }
   0xa   : > { %s65_s20 = sadd.s32 1, %s7525_s14  ;;  %p72_p0 = scmp.ne.s32.totalorder %s7525_s14, %s7521_s13 }
   0xb   : > { %p73_p1 = scmp.eq.s32.totalorder %s7537_s17, 0  ;;  %p78_p2 = scmp.ne.s32.totalorder %s7521_s13, %s7517_s12 }
   0xc   : > { %p7601_p3 = scmp.eq.s32.totalorder %s6702_s18, 0  ;;  %p130_p4 = scmp.eq.s32.totalorder %s6702_s18, 1 }
   0xd   : > { %p7605_p5 = por %p73_p1, %p72_p0  ;;  %p136_p6 = scmp.eq.s32.totalorder %s6703_s19, 1 }
   0xe   : > { %p7611_p7 = por %p7601_p3, %p78_p2  ;;  %p7615_p8 = por %p130_p4, %p72_p0 }
   0xf   : > { %p7619_p9 = por %p136_p6, %p78_p2  ;;  %p6704_p10 = scmp.ge.s32.totalorder %s7537_s17, 1 }
  0x10   : > { %p143_p11 = scmp.lt.s32.totalorder %s7537_s17, 3  ;;  %s17915_s0 = sld [smem:[#allocation89_spill]] }
  0x11   : > { %s7539_s30 = smov [#allocation2]   ;;  %p6707_p13 = scmp.ge.s32.totalorder %s7537_s17, 2 }
  0x12   : > { %p7628_p12 = pnand %p6704_p10, %p143_p11  ;;  %s160_s4 = sshll.u32 %s7539_s30, 4  ;;  %s161_s4 = int_to_ptr.vmem [resolvable:$true] %s160_s4 }
  0x13   : > { %p6763_p1 = scmp.lt.s32.totalorder %s7537_s17, 2  ;;  %s32_s6 = sadd.s32 1, %s7533_s16 }
  0x14   : > { %p6750_p0 = pneg %p7628_p12  ;;  %p34_p6 = scmp.ge.s32.totalorder %s32_s6, 2 }
  0x15   : > { %p7640_p4 = pnand %p6763_p1, %p7605_p5  ;;  %s178_s7 = sand.u32 1, %s7525_s14  }
  0x16   : > { %s158_s28 = sshll.u32 %s17915_s0, 4  ;;  %p6751_p2 = pnand %p6750_p0, %p7601_p3  ;;  %s159_s28 = int_to_ptr.hbm [resolvable:$true] %s158_s28 }
  0x17   : > { %s19097_s6 = smov (%p34_p6, %s32_s6), 0  ;;  %s6708_s8 = sshll.u32 %s178_s7, 12 }
  0x18   : > { %6753 = dma.hbm_to_vmem [thread:$0]  (!%p6751_p2), %s159_s28, 256, %s161_s4, [#allocation3]  }
  0x19   : > { %s62_s9 = ssub.s32 %s7533_s16, %s19097_s6  ;;  %s6740_s10 = sshll.u32 %s7533_s16, 12 }
  0x1a   : > { %p63_p10 = scmp.eq.s32.totalorder %s62_s9, 0  ;;  %s188_s19 = scalar_lea.hbm %s17667_s1, %s6740_s10 }
  0x1b   : > { %s182_s22 = scalar_lea.vmem [#allocation5], %s6708_s8  ;;  %s189_s30 = sshll.u32 %s188_s19, 4  ;;  %s190_s30 = int_to_ptr.hbm [resolvable:$true] %s189_s30 }
  0x1c   : > { %s191_s26 = sshll.u32 %s182_s22, 4  ;;  %s179_s28 = scalar_lea.sflag [#allocation6], %s178_s7  ;;  %s192_s26 = int_to_ptr.vmem [resolvable:$true] %s191_s26 }
  0x1d   : > { %s7657_s27 = scalar_select %p63_p10, %s7525_s14, %s65_s20  }
  0x1e   : > { %s7540_s4 = smov 256   ;;  %s7541_s0 = smov 16  }
  0x1f   : > { %6757 = dma.hbm_to_vmem [thread:$0]  (!%p7640_p4), %s190_s30, 65536, %s192_s26, %s179_s28, %s7540_s4, %s7540_s4, %s7541_s0  }
  0x20   : > { %203 = sbr.rel (%p7628_p12) target bundleno = 1360 (0x550), region = 32 }
  0x25   : > { %7504 = dma.done.wait (%p7601_p3), [#allocation3], 256  }
  0x26   : > { %7506 = vsyncadd (%p7601_p3), [#allocation3], 4294967040  ;;  %s7668_s20 = sand.u32 1, %s7521_s13  }
  0x27   : > { %s6714_s7 = sshll.u32 %s7668_s20, 12  ;;  %s211_s8 = scalar_lea.sflag [#allocation6], %s7668_s20 }
  0x28   : > { %s7672_s9 = scalar_lea.vmem [#allocation5], %s6714_s7 }
  0x29   : > { %7508 = dma.done.wait (%p7611_p7), %s211_s8, 65536  }
  0x2a   : > { %7510 = vsyncadd (%p7611_p7), %s211_s8, 4294901760  ;;  %v7679_v0 = vld [vmem:[%s7672_s9 + $0xf0] sm:$0xff]  ;;  %v7682_v1 = vld [vmem:[%s7672_s9 + $0xf8] sm:$0xff]  ;;  %s6732_s0 = sshll.u32 %s7529_s15, 11  ;;  %s6715_s29 = sshll.u32 %s7668_s20, 7 }
  0x2b   : > { %v7685_v2 = vld [vmem:[%s7672_s9 + $0xe0] sm:$0xff]  ;;  %4858 = vmatpush.xpose.msra.mxu0 %v7679_v0  ;;  %4878 = vmatpush.xpose.msra.mxu1 %v7682_v1  ;;  %v7690_v3 = vld [vmem:[%s7672_s9 + $0xe8] sm:$0xff]  ;;  %v7723_v17 = vld [vmem:[%s7672_s9 + $0xd0] sm:$0xff]  ;;  %s17549_s5 = scalar_lea.vmem [#allocation7], %s6715_s29  ;;  %s6741_s10 = sshll.u32 %s7529_s15, 7 }
  0x2c   : > { %v7693_v4 = vld [vmem:[%s7672_s9 + $0x40] sm:$0xff]  ;;  %v7696_v5 = vld [vmem:[%s7672_s9 + $0x48] sm:$0xff]  ;;  %v7726_v18 = vld [vmem:[%s7672_s9 + $0x50] sm:$0xff]  ;;  %s6587_s18 = scalar_lea.hbm %s17669_s3, %s6741_s10  ;;  %s6589_s19 = sshll.u32 %s17549_s5, 4  ;;  %s6590_s19 = int_to_ptr.vmem [resolvable:$true] %s6589_s19 }
  0x2d   : > { %v770_v6 = vmul.f32 %v7693_v4, %v7693_v4  ;;  %v771_v7 = vmul.f32 %v7696_v5, %v7696_v5  ;;  %v7703_v8 = vld [vmem:[%s7672_s9 + $0x20] sm:$0xff]  ;;  %v7706_v9 = vld [vmem:[%s7672_s9 + $0x28] sm:$0xff]  ;;  %v7731_v20 = vld [vmem:[%s7672_s9 + $0x58] sm:$0xff]  ;;  %v772_v25 = vmul.f32 %v7726_v18, %v7726_v18  ;;  %s6591_s22 = sshll.u32 %s6587_s18, 4  ;;  %s6574_s26 = scalar_lea.sflag [#allocation4], %s7668_s20  ;;  %s6592_s22 = int_to_ptr.hbm [resolvable:$true] %s6591_s22 }
  0x2e   : > { %v7709_v10 = vld [vmem:[%s7672_s9] sm:$0xff]  ;;  %v766_v11 = vmul.f32 %v7703_v8, %v7703_v8  ;;  %v767_v12 = vmul.f32 %v7706_v9, %v7706_v9  ;;  %v7716_v13 = vld [vmem:[%s7672_s9 + $0x8] sm:$0xff]  ;;  %v7734_v21 = vld [vmem:[%s7672_s9 + $0x30] sm:$0xff]  ;;  %v773_v26 = vmul.f32 %v7731_v20, %v7731_v20  ;;  %s7465_s30 = sshra.s32 %s6592_s22, 4  ;;  %s7471_s8 = scalar_lea.hbm %s17669_s3, 256  ;;  %s7466_s30 = int_to_ptr.hbm [resolvable:$true] %s7465_s30 }
  0x2f   : > { %v762_v14 = vmul.f32 %v7709_v10, %v7709_v10  ;;  %v1286_v15 = vadd.f32 %v771_v7, %v770_v6  ;;  %v763_v16 = vmul.f32 %v7716_v13, %v7716_v13  ;;  %4859 = vmatpush.xpose.msra.mxu0 %v7685_v2  ;;  %4879 = vmatpush.xpose.msra.mxu1 %v7690_v3  ;;  %v7737_v22 = vld [vmem:[%s7672_s9 + $0x38] sm:$0xff]  ;;  %v7747_v27 = vld [vmem:[%s7672_s9 + $0x10] sm:$0xff]  ;;  %v7763_v33 = vld [vmem:[%s7672_s9 + $0xc0] sm:$0xff]  ;;  %s7467_s28 = scalar_lea.hbm %s7466_s30, 128  ;;  %p7472_p11 = scmp.lt.s32.totalorder %s7466_s30, %s17669_s3 }
  0x30   : > { %v1280_v19 = vadd.f32 %v767_v12, %v766_v11  ;;  %v7740_v24 = vld [vmem:[%s7672_s9 + $0xd8] sm:$0xff]  ;;  %v768_v29 = vmul.f32 %v7734_v21, %v7734_v21  ;;  %v769_v30 = vmul.f32 %v7737_v22, %v7737_v22  ;;  %v764_v31 = vmul.f32 %v7747_v27, %v7747_v27  ;;  %v7766_v34 = vld [vmem:[%s7672_s9 + $0xc8] sm:$0xff]  ;;  %v7769_v36 = vld [vmem:[%s7672_s9 + $0x1f0] sm:$0xff]  ;;  %p7468_p3 = scmp.ne.s32.totalorder %s7466_s30, %s7467_s28  ;;  %p7473_p12 = scmp.lt.s32.totalorder %s7471_s8, %s7467_s28 }
  0x31   : > { %1287 = vadd.xlane.f32.xlu2 %v1286_v15  ;;  %v1274_v23 = vadd.f32 %v763_v16, %v762_v14  ;;  %v7750_v28 = vld [vmem:[%s7672_s9 + $0x18] sm:$0xff]  ;;  %v1289_v35 = vadd.f32 %v773_v26, %v772_v25  ;;  %v7772_v38 = vld [vmem:[%s7672_s9 + $0x80] sm:$0xff]  ;;  %v7775_v39 = vld [vmem:[%s7672_s9 + $0x88] sm:$0xff]  ;;  %4898 = vmatpush.xpose.msra.mxu2 %v7769_v36 }
  0x32   : > { %1281 = vadd.xlane.f32.xlu1 %v1280_v19  ;;  %v765_v32 = vmul.f32 %v7750_v28, %v7750_v28  ;;  %v1283_v37 = vadd.f32 %v769_v30, %v768_v29  ;;  %v7779_v40 = vld [vmem:[%s7672_s9 + $0x1f8] sm:$0xff]  ;;  %v7782_v42 = vld [vmem:[%s7672_s9 + $0x70] sm:$0xff]  ;;  %v7789_v44 = vld [vmem:[%s7672_s9 + $0x1e0] sm:$0xff]  ;;  %v778_v50 = vmul.f32 %v7772_v38, %v7772_v38  ;;  %v779_v51 = vmul.f32 %v7775_v39, %v7775_v39  ;;  %p7469_p5 = pnand %p7468_p3, %p7615_p8  ;;  %p7474_p0 = por %p7473_p12, %p7472_p11 }
  0x33   : > { %1275 = vadd.xlane.f32.xlu0 %v1274_v23  ;;  %4860 = vmatpush.xpose.msra.mxu0 %v7723_v17  ;;  %v7785_v43 = vld [vmem:[%s7672_s9 + $0x78] sm:$0xff]  ;;  %v7794_v45 = vld [vmem:[%s7672_s9 + $0x60] sm:$0xff]  ;;  %v7797_v46 = vld [vmem:[%s7672_s9 + $0x68] sm:$0xff]  ;;  %v776_v52 = vmul.f32 %v7782_v42, %v7782_v42 }
  0x34   : > { %4880 = vmatpush.xpose.msra.mxu1 %v7740_v24  ;;  %v1277_v41 = vadd.f32 %v765_v32, %v764_v31  ;;  %4918 = vmatpush.xpose.msra.mxu3 %v7779_v40  ;;  %v7800_v47 = vld [vmem:[%s7672_s9 + $0x1e8] sm:$0xff]  ;;  %v272_v48 = vld [vmem:[%s7672_s9 + $0xb0] sm:$0xff]  ;;  %v273_v49 = vld [vmem:[%s7672_s9 + $0xb8] sm:$0xff]  ;;  %v777_v53 = vmul.f32 %v7785_v43, %v7785_v43  ;;  %v774_v54 = vmul.f32 %v7794_v45, %v7794_v45  ;;  %p7470_p7 = pneg %p7469_p5 }
  0x35   : > { %4899 = vmatpush.xpose.msra.mxu2 %v7789_v44  ;;  %v775_v55 = vmul.f32 %v7797_v46, %v7797_v46  ;;  %v7819_v56 = vld [vmem:[%s7672_s9 + $0x1d0] sm:$0xff]  ;;  %v7822_v57 = vld [vmem:[%s7672_s9 + $0x1d8] sm:$0xff]  ;;  %v270_v58 = vld [vmem:[%s7672_s9 + $0xa0] sm:$0xff]  ;;  %v1298_v60 = vadd.f32 %v779_v51, %v778_v50  ;;  %v784_v12 = vmul.f32 %v272_v48, %v272_v48  ;;  %v785_v14 = vmul.f32 %v273_v49, %v273_v49 }
  0x36   : > { %v271_v59 = vld [vmem:[%s7672_s9 + $0xa8] sm:$0xff]  ;;  %v1295_v61 = vadd.f32 %v777_v53, %v776_v52  ;;  %v7829_v63 = vld [vmem:[%s7672_s9 + $0x1c0] sm:$0xff]  ;;  %v268_v6 = vld [vmem:[%s7672_s9 + $0x90] sm:$0xff]  ;;  %v782_v15 = vmul.f32 %v270_v58, %v270_v58  ;;  %p7475_p1 = pnand %p7474_p0, %p7470_p7 }
  0x37   : > { %4861 = vmatpush.xpose.msra.mxu0 %v7763_v33  ;;  %v1292_v62 = vadd.f32 %v775_v55, %v774_v54  ;;  %v269_v7 = vld [vmem:[%s7672_s9 + $0x98] sm:$0xff]  ;;  %v7834_v11 = vld [vmem:[%s7672_s9 + $0x1c8] sm:$0xff]  ;;  %v783_v16 = vmul.f32 %v271_v59, %v271_v59  ;;  %v780_v19 = vmul.f32 %v268_v6, %v268_v6  ;;  %v7839_v25 = vld [vmem:[%s7672_s9 + $0x1b0] sm:$0xff]  ;;  %v1307_v29 = vadd.f32 %v785_v14, %v784_v12 }
  0x38   : > { %4881 = vmatpush.xpose.msra.mxu1 %v7766_v34  ;;  %4919 = vmatpush.xpose.msra.mxu3 %v7800_v47  ;;  %v781_v23 = vmul.f32 %v269_v7, %v269_v7  ;;  %v7842_v26 = vld [vmem:[%s7672_s9 + $0x1b8] sm:$0xff]  ;;  %v7847_v32 = vld [vmem:[%s7672_s9 + $0x1a0] sm:$0xff]  ;;  %v7877_v50 = vld [vmem:[%s7672_s9 + $0x110] sm:$0xff] }
  0x39   : > { %1290 = vadd.xlane.f32.xlu2 %v1289_v35  ;;  %4900 = vmatpush.xpose.msra.mxu2 %v7819_v56  ;;  %v1304_v30 = vadd.f32 %v783_v16, %v782_v15  ;;  %v7852_v35 = vld [vmem:[%s7672_s9 + $0x1a8] sm:$0xff]  ;;  %v7884_v51 = vld [vmem:[%s7672_s9 + $0x100] sm:$0xff]  ;;  %v796_v53 = vmul.f32 %v7877_v50, %v7877_v50  ;;  %v289_v12 = vld [vmem:[%s7672_s9 + $0x138] sm:$0xff] }
  0x3a   : > { %1284 = vadd.xlane.f32.xlu1 %v1283_v37  ;;  %v1301_v31 = vadd.f32 %v781_v23, %v780_v19  ;;  %v790_v37 = vmul.f32 %v7685_v2, %v7685_v2  ;;  %v786_v2 = vmul.f32 %v7763_v33, %v7763_v33  ;;  %v7880_v33 = vld [vmem:[%s7672_s9 + $0x118] sm:$0xff]  ;;  %v7887_v52 = vld [vmem:[%s7672_s9 + $0x108] sm:$0xff]  ;;  %v794_v55 = vmul.f32 %v7884_v51, %v7884_v51  ;;  %v294_v16 = vld [vmem:[%s7672_s9 + $0x160] sm:$0xff] }
  0x3b   : > { %1278 = vadd.xlane.f32.xlu0 %v1277_v41  ;;  %4862 = vmatpush.xpose.msra.mxu0 %v272_v48  ;;  %v791_v41 = vmul.f32 %v7690_v3, %v7690_v3  ;;  %v788_v48 = vmul.f32 %v7723_v17, %v7723_v17  ;;  %v787_v3 = vmul.f32 %v7766_v34, %v7766_v34  ;;  %v7874_v17 = vld [vmem:[%s7672_s9 + $0x198] sm:$0xff] }
  0x3c   : > { %4882 = vmatpush.xpose.msra.mxu1 %v273_v49  ;;  %4920 = vmatpush.xpose.msra.mxu3 %v7822_v57  ;;  %v797_v54 = vmul.f32 %v7880_v33, %v7880_v33  ;;  %v801_v23 = vmul.f32 %v289_v12, %v289_v12 }
  0x3d   : > { %4901 = vmatpush.xpose.msra.mxu2 %v7829_v63  ;;  %v1310_v34 = vadd.f32 %v787_v3, %v786_v2  ;;  %v293_v3 = vld [vmem:[%s7672_s9 + $0x158] sm:$0xff] }
  0x3f   : > { %4863 = vmatpush.xpose.msra.mxu0 %v270_v58  ;;  %v793_v58 = vmul.f32 %v7682_v1, %v7682_v1  ;;  %v288_v1 = vld [vmem:[%s7672_s9 + $0x130] sm:$0xff] }
  0x40   : > { %4883 = vmatpush.xpose.msra.mxu1 %v271_v59  ;;  %4921 = vmatpush.xpose.msra.mxu3 %v7834_v11  ;;  %v1325_v59 = vadd.f32 %v797_v54, %v796_v53  ;;  %v800_v19 = vmul.f32 %v288_v1, %v288_v1  ;;  %v7955_v53 = vld [vmem:[%s7672_s9 + $0x2f0] sm:$0xff] }
  0x41   : > { %1299 = vadd.xlane.f32.xlu2 %v1298_v60  ;;  %4902 = vmatpush.xpose.msra.mxu2 %v7839_v25  ;;  %v296_v60 = vld [vmem:[%s7672_s9 + $0x170] sm:$0xff] }
  0x42   : > { %1296 = vadd.xlane.f32.xlu1 %v1295_v61  ;;  %v1331_v2 = vadd.f32 %v801_v23, %v800_v19  ;;  %v8060_v19 = vld [vmem:[%s7672_s9 + $0x230] sm:$0xff]  ;;  %v8063_v23 = vld [vmem:[%s7672_s9 + $0x238] sm:$0xff] }
  0x43   : > { %1293 = vadd.xlane.f32.xlu0 %v1292_v62  ;;  %4864 = vmatpush.xpose.msra.mxu0 %v268_v6  ;;  %v290_v62 = vld [vmem:[%s7672_s9 + $0x140] sm:$0xff]  ;;  %v291_v6 = vld [vmem:[%s7672_s9 + $0x148] sm:$0xff] }
  0x44   : > { %4884 = vmatpush.xpose.msra.mxu1 %v269_v7  ;;  %4922 = vmatpush.xpose.msra.mxu3 %v7842_v26  ;;  %v802_v14 = vmul.f32 %v290_v62, %v290_v62  ;;  %v803_v15 = vmul.f32 %v291_v6, %v291_v6 }
  0x45   : > { %4903 = vmatpush.xpose.msra.mxu2 %v7847_v32 }
  0x47   : > { %4865 = vmatpush.xpose.msra.mxu0 %v7772_v38  ;;  %v789_v38 = vmul.f32 %v7740_v24, %v7740_v24  ;;  %v1316_v24 = vadd.f32 %v791_v41, %v790_v37  ;;  %v822_v37 = vmul.f32 %v7789_v44, %v7789_v44  ;;  %v823_v41 = vmul.f32 %v7800_v47, %v7800_v47 }
  0x48   : > { %4885 = vmatpush.xpose.msra.mxu1 %v7775_v39  ;;  %4923 = vmatpush.xpose.msra.mxu3 %v7852_v35  ;;  %v7869_v39 = vld [vmem:[%s7672_s9 + $0x190] sm:$0xff]  ;;  %v806_v44 = vmul.f32 %v294_v16, %v294_v16 }
  0x49   : > { %1308 = vadd.xlane.f32.xlu2 %v1307_v29  ;;  %v1313_v49 = vadd.f32 %v789_v38, %v788_v48  ;;  %4904 = vmatpush.xpose.msra.mxu2 %v7869_v39  ;;  %v295_v29 = vld [vmem:[%s7672_s9 + $0x168] sm:$0xff]  ;;  %v1334_v48 = vadd.f32 %v803_v15, %v802_v14  ;;  %v292_v38 = vld [vmem:[%s7672_s9 + $0x150] sm:$0xff]  ;;  %v8051_v14 = vld [vmem:[%s7672_s9 + $0x3f8] sm:$0xff] }
  0x4a   : > { %1305 = vadd.xlane.f32.xlu1 %v1304_v30  ;;  %v824_v30 = vmul.f32 %v7769_v36, %v7769_v36  ;;  %v807_v47 = vmul.f32 %v295_v29, %v295_v29  ;;  %v8054_v15 = vld [vmem:[%s7672_s9 + $0x2a8] sm:$0xff] }
  0x4b   : > { %1302 = vadd.xlane.f32.xlu0 %v1301_v31  ;;  %4866 = vmatpush.xpose.msra.mxu0 %v7782_v42  ;;  %v7891_v42 = vld [vmem:[%s7672_s9 + $0x180] sm:$0xff]  ;;  %v825_v31 = vmul.f32 %v7779_v40, %v7779_v40  ;;  %v7950_v40 = vadd.f32 %v823_v41, %v822_v37  ;;  %v333_v37 = vld [vmem:[%s7672_s9 + $0x298] sm:$0xff]  ;;  %v832_v41 = vmul.f32 %v8060_v19, %v8060_v19 }
  0x4c   : > { %4886 = vmatpush.xpose.msra.mxu1 %v7785_v43  ;;  %4924 = vmatpush.xpose.msra.mxu3 %v7874_v17  ;;  %v7896_v43 = vld [vmem:[%s7672_s9 + $0x188] sm:$0xff] }
  0x4d   : > { %4905 = vmatpush.xpose.msra.mxu2 %v7891_v42  ;;  %v7948_v36 = vadd.f32 %v825_v31, %v824_v30  ;;  %v8074_v30 = vld [vmem:[%s7672_s9 + $0x210] sm:$0xff]  ;;  %v8077_v31 = vld [vmem:[%s7672_s9 + $0x218] sm:$0xff] }
  0x4f   : > { %4867 = vmatpush.xpose.msra.mxu0 %v7794_v45  ;;  %v795_v45 = vmul.f32 %v7887_v52, %v7887_v52 }
  0x50   : > { %4887 = vmatpush.xpose.msra.mxu1 %v7797_v46  ;;  %v792_v46 = vmul.f32 %v7679_v0, %v7679_v0  ;;  %4925 = vmatpush.xpose.msra.mxu3 %v7896_v43  ;;  %v297_v0 = vld [vmem:[%s7672_s9 + $0x178] sm:$0xff] }
  0x51   : > { %1317 = vadd.xlane.f32.xlu2 %v1316_v24  ;;  %v1322_v61 = vadd.f32 %v795_v45, %v794_v55  ;;  %4906 = vmatpush.xpose.msra.mxu2 %v296_v60  ;;  %v7958_v55 = vld [vmem:[%s7672_s9 + $0x2f8] sm:$0xff]  ;;  %v7962_v45 = vld [vmem:[#allocation2] sm:$0xff] }
  0x52   : > { %1314 = vadd.xlane.f32.xlu1 %v1313_v49  ;;  %v1319_v7 = vadd.f32 %v793_v58, %v792_v46  ;;  %v804_v49 = vmul.f32 %v292_v38, %v292_v38  ;;  %v7968_v46 = vld [vmem:[#allocation2 + $0x8] sm:$0xff]  ;;  %v812_v58 = vmul.f32 %v7869_v39, %v7869_v39  ;;  %v7985_v39 = vld [vmem:[%s7672_s9 + $0x2e8] sm:$0xff] }
  0x53   : > { %1311 = vadd.xlane.f32.xlu0 %v1310_v34  ;;  %4868 = vmatpush.xpose.msra.mxu0 %v7726_v18  ;;  %v7923_v18 = vld [vmem:[%s7672_s9 + $0x120] sm:$0xff]  ;;  %v805_v34 = vmul.f32 %v293_v3, %v293_v3 }
  0x54   : > { %4888 = vmatpush.xpose.msra.mxu1 %v7731_v20  ;;  %4926 = vmatpush.xpose.msra.mxu3 %v297_v0  ;;  %v7926_v20 = vld [vmem:[%s7672_s9 + $0x128] sm:$0xff] }
  0x55   : > { %4907 = vmatpush.xpose.msra.mxu2 %v294_v16  ;;  %v1337_v54 = vadd.f32 %v805_v34, %v804_v49  ;;  %v326_v49 = vld [vmem:[%s7672_s9 + $0x260] sm:$0xff]  ;;  %v327_v34 = vld [vmem:[%s7672_s9 + $0x268] sm:$0xff] }
  0x57   : > { %4869 = vmatpush.xpose.msra.mxu0 %v7693_v4  ;;  %v798_v4 = vmul.f32 %v7923_v18, %v7923_v18 }
  0x58   : > { %4889 = vmatpush.xpose.msra.mxu1 %v7696_v5  ;;  %v799_v5 = vmul.f32 %v7926_v20, %v7926_v20  ;;  %4927 = vmatpush.xpose.msra.mxu3 %v295_v29  ;;  %v332_v29 = vld [vmem:[%s7672_s9 + $0x290] sm:$0xff] }
  0x59   : > { %1326 = vadd.xlane.f32.xlu2 %v1325_v59  ;;  %4908 = vmatpush.xpose.msra.mxu2 %v292_v38 }
  0x5a   : > { %1323 = vadd.xlane.f32.xlu1 %v1322_v61  ;;  %v1328_v24 = vadd.f32 %v799_v5, %v798_v4  ;;  %v820_v61 = vmul.f32 %v7819_v56, %v7819_v56  ;;  %v816_v56 = vmul.f32 %v7839_v25, %v7839_v25  ;;  %v8030_v25 = vld [vmem:[%s7672_s9 + $0x2b0] sm:$0xff]  ;;  %v8067_v4 = vld [vmem:[%s7672_s9 + $0x220] sm:$0xff]  ;;  %v8070_v5 = vld [vmem:[%s7672_s9 + $0x228] sm:$0xff] }
  0x5b   : > { %1320 = vadd.xlane.f32.xlu0 %v1319_v7  ;;  %4870 = vmatpush.xpose.msra.mxu0 %v7734_v21  ;;  %v808_v21 = vmul.f32 %v296_v60, %v296_v60  ;;  %v7996_v60 = vld [vmem:[%s7672_s9 + $0x2d8] sm:$0xff]  ;;  %v830_v38 = vmul.f32 %v8067_v4, %v8067_v4 }
  0x5c   : > { %4890 = vmatpush.xpose.msra.mxu1 %v7737_v22  ;;  %4928 = vmatpush.xpose.msra.mxu3 %v293_v3  ;;  %v809_v22 = vmul.f32 %v297_v0, %v297_v0  ;;  %v819_v0 = vmul.f32 %v7834_v11, %v7834_v11  ;;  %v330_v3 = vld [vmem:[%s7672_s9 + $0x280] sm:$0xff] }
  0x5d   : > { %4909 = vmatpush.xpose.msra.mxu2 %v290_v62  ;;  %v821_v62 = vmul.f32 %v7822_v57, %v7822_v57  ;;  %v817_v57 = vmul.f32 %v7842_v26, %v7842_v26 }
  0x5f   : > { %4871 = vmatpush.xpose.msra.mxu0 %v7703_v8  ;;  %v1343_v8 = vadd.f32 %v809_v22, %v808_v21  ;;  %v1361_v11 = vadd.f32 %v821_v62, %v820_v61  ;;  %v1355_v26 = vadd.f32 %v817_v57, %v816_v56  ;;  %v829_v21 = vmul.f32 %v8077_v31, %v8077_v31  ;;  %v8096_v22 = vld [vmem:[%s7672_s9 + $0x3e0] sm:$0xff]  ;;  %v329_v61 = vld [vmem:[%s7672_s9 + $0x278] sm:$0xff]  ;;  %v8124_v57 = vld [vmem:[%s7672_s9 + $0x3c8] sm:$0xff] }
  0x60   : > { %4891 = vmatpush.xpose.msra.mxu1 %v7706_v9  ;;  %4929 = vmatpush.xpose.msra.mxu3 %v291_v6  ;;  %v1340_v9 = vadd.f32 %v807_v47, %v806_v44  ;;  %v818_v6 = vmul.f32 %v7829_v63, %v7829_v63  ;;  %v8018_v63 = vld [vmem:[%s7672_s9 + $0x2c8] sm:$0xff] }
  0x61   : > { %1335 = vadd.xlane.f32.xlu2 %v1334_v48  ;;  %4910 = vmatpush.xpose.msra.mxu2 %v288_v1  ;;  %v8023_v1 = vld [vmem:[%s7672_s9 + $0x200] sm:$0xff]  ;;  %v833_v48 = vmul.f32 %v8063_v23, %v8063_v23  ;;  %v331_v44 = vld [vmem:[%s7672_s9 + $0x288] sm:$0xff] }
  0x62   : > { %1332 = vadd.xlane.f32.xlu1 %v1331_v2  ;;  %v1358_v7 = vadd.f32 %v819_v0, %v818_v6  ;;  %v831_v2 = vmul.f32 %v8070_v5, %v8070_v5  ;;  %v8121_v0 = vld [vmem:[%s7672_s9 + $0x3c0] sm:$0xff] }
  0x63   : > { %1329 = vadd.xlane.f32.xlu0 %v1328_v24  ;;  %4872 = vmatpush.xpose.msra.mxu0 %v7747_v27  ;;  %v814_v27 = vmul.f32 %v7847_v32, %v7847_v32  ;;  %v810_v32 = vmul.f32 %v7891_v42, %v7891_v42  ;;  %v7993_v42 = vld [vmem:[%s7672_s9 + $0x2d0] sm:$0xff]  ;;  %v828_v24 = vmul.f32 %v8074_v30, %v8074_v30 }
  0x64   : > { %4892 = vmatpush.xpose.msra.mxu1 %v7750_v28  ;;  %4930 = vmatpush.xpose.msra.mxu3 %v289_v12  ;;  %v815_v28 = vmul.f32 %v7852_v35, %v7852_v35  ;;  %v811_v35 = vmul.f32 %v7896_v43, %v7896_v43  ;;  %v8026_v12 = vld [vmem:[%s7672_s9 + $0x208] sm:$0xff]  ;;  %v1376_v47 = vadd.f32 %v831_v2, %v830_v38  ;;  %v8129_v38 = vld [vmem:[%s7672_s9 + $0x3b0] sm:$0xff]  ;;  %v8132_v2 = vld [vmem:[%s7672_s9 + $0x3b8] sm:$0xff] }
  0x65   : > { %4911 = vmatpush.xpose.msra.mxu2 %v7923_v18  ;;  %v827_v18 = vmul.f32 %v8026_v12, %v8026_v12 }
  0x66   : > { %v1346_v43 = vadd.f32 %v811_v35, %v810_v32  ;;  %v838_v32 = vmul.f32 %v326_v49, %v326_v49  ;;  %v839_v35 = vmul.f32 %v327_v34, %v327_v34 }
  0x67   : > { %4873 = vmatpush.xpose.msra.mxu0 %v7709_v10  ;;  %v813_v10 = vmul.f32 %v7874_v17, %v7874_v17  ;;  %v1352_v17 = vadd.f32 %v815_v28, %v814_v27  ;;  %v322_v27 = vld [vmem:[%s7672_s9 + $0x240] sm:$0xff]  ;;  %v323_v28 = vld [vmem:[%s7672_s9 + $0x248] sm:$0xff] }
  0x68   : > { %4893 = vmatpush.xpose.msra.mxu1 %v7716_v13  ;;  %v7977_v13 = vld [vmem:[%s7672_s9 + $0x2e0] sm:$0xff]  ;;  %4931 = vmatpush.xpose.msra.mxu3 %v7926_v20  ;;  %v8048_v20 = vld [vmem:[%s7672_s9 + $0x3f0] sm:$0xff]  ;;  %v834_v62 = vmul.f32 %v322_v27, %v322_v27  ;;  %v835_v6 = vmul.f32 %v323_v28, %v323_v28  ;;  %v1388_v56 = vadd.f32 %v839_v35, %v838_v32 }
  0x69   : > { %1344 = vadd.xlane.f32.xlu2 %v1343_v8  ;;  %v1349_v59 = vadd.f32 %v813_v10, %v812_v58  ;;  %4912 = vmatpush.xpose.msra.mxu2 %v7877_v50  ;;  %v8010_v50 = vld [vmem:[%s7672_s9 + $0x2c0] sm:$0xff]  ;;  %v1373_v8 = vadd.f32 %v829_v21, %v828_v24  ;;  %v328_v58 = vld [vmem:[%s7672_s9 + $0x270] sm:$0xff]  ;;  %v8140_v21 = vld [vmem:[%s7672_s9 + $0x3a8] sm:$0xff] }
  0x6a   : > { %1341 = vadd.xlane.f32.xlu1 %v1340_v9  ;;  %4874 = vmatmul.f32.vlgmr.msra.gmra.mxu0 %v7962_v45  ;;  %v324_v9 = vld [vmem:[%s7672_s9 + $0x250] sm:$0xff] }
  0x6b   : > { %4938 = vmatpush.xpose.msrb.mxu0 %v7955_v53  ;;  %1338 = vadd.xlane.f32.xlu0 %v1337_v54  ;;  %v325_v54 = vld [vmem:[%s7672_s9 + $0x258] sm:$0xff]  ;;  %v8112_v10 = vld [vmem:[%s7672_s9 + $0x3d0] sm:$0xff] }
  0x6c   : > { %4958 = vmatpush.xpose.msrb.mxu1 %v7958_v55  ;;  %4932 = vmatpush.xpose.msra.mxu3 %v7880_v33  ;;  %v8035_v33 = vld [vmem:[%s7672_s9 + $0x2b8] sm:$0xff] }
  0x6d   : > { %4894 = vmatmul.f32.vlgmr.msra.gmra.mxu1 %v7968_v46  ;;  %4913 = vmatpush.xpose.msra.mxu2 %v7884_v51  ;;  %v826_v51 = vmul.f32 %v8023_v1, %v8023_v1 }
  0x6f   : > { %4939 = vmatpush.xpose.msrb.mxu0 %v7977_v13  ;;  %v1370_v16 = vadd.f32 %v827_v18, %v826_v51  ;;  %v845_v51 = vmul.f32 %v333_v37, %v333_v37  ;;  %v842_v18 = vmul.f32 %v330_v3, %v330_v3 }
  0x70   : > { %4959 = vmatpush.xpose.msrb.mxu1 %v7985_v39  ;;  %4933 = vmatpush.xpose.msra.mxu3 %v7887_v52  ;;  %v8044_v52 = vld [vmem:[%s7672_s9 + $0x2a0] sm:$0xff] }
  0x71   : > { %1353 = vadd.xlane.f32.xlu2 %v1352_v17  ;;  %4914 = vmatmul.f32.vlgmr.msra.gmra.mxu2 %v7962_v45  ;;  %v8115_v17 = vld [vmem:[%s7672_s9 + $0x3d8] sm:$0xff] }
  0x72   : > { %1350 = vadd.xlane.f32.xlu1 %v1349_v59  ;;  %4978 = vmatpush.xpose.msrb.mxu2 %v8048_v20  ;;  %v836_v59 = vmul.f32 %v324_v9, %v324_v9 }
  0x73   : > { %4940 = vmatpush.xpose.msrb.mxu0 %v7993_v42  ;;  %1347 = vadd.xlane.f32.xlu0 %v1346_v43  ;;  %v837_v43 = vmul.f32 %v325_v54, %v325_v54 }
  0x74   : > { %4960 = vmatpush.xpose.msrb.mxu1 %v7996_v60  ;;  %4934 = vmatmul.f32.vlgmr.msra.gmra.mxu3 %v7968_v46 }
  0x75   : > { %4998 = vmatpush.xpose.msrb.mxu3 %v8051_v14 }
  0x76   : > { %4979 = vmatpush.xpose.msrb.mxu2 %v8096_v22 }
  0x77   : > { %4941 = vmatpush.xpose.msrb.mxu0 %v8010_v50 }
  0x78   : > { %4961 = vmatpush.xpose.msrb.mxu1 %v8018_v63 }
  0x79   : > { %1362 = vadd.xlane.f32.xlu2 %v1361_v11  ;;  %v1385_v11 = vadd.f32 %v837_v43, %v836_v59 }
  0x7a   : > { %1359 = vadd.xlane.f32.xlu1 %v1358_v7  ;;  %4980 = vmatpush.xpose.msrb.mxu2 %v8112_v10  ;;  %v1382_v7 = vadd.f32 %v835_v6, %v834_v62  ;;  %v358_v62 = vld [vmem:[%s7672_s9 + $0x360] sm:$0xff]  ;;  %v359_v6 = vld [vmem:[%s7672_s9 + $0x368] sm:$0xff] }
  0x7b   : > { %4942 = vmatpush.xpose.msrb.mxu0 %v8030_v25  ;;  %1356 = vadd.xlane.f32.xlu0 %v1355_v26  ;;  %v844_v26 = vmul.f32 %v332_v29, %v332_v29 }
  0x7c   : > { %4962 = vmatpush.xpose.msrb.mxu1 %v8035_v33 }
  0x7e   : > { %4981 = vmatpush.xpose.msrb.mxu2 %v8121_v0 }
  0x7f   : > { %4943 = vmatpush.xpose.msrb.mxu0 %v8044_v52 }
  0x80   : > { %4963 = vmatpush.xpose.msrb.mxu1 %v8054_v15 }
  0x81   : > { %1371 = vadd.xlane.f32.xlu2 %v1370_v16  ;;  %v843_v16 = vmul.f32 %v331_v44, %v331_v44 }
  0x82   : > { %1368 = vadd.xlane.f32.xlu1 %v7948_v36  ;;  %v8099_v36 = vld [vmem:[%s7672_s9 + $0x3e8] sm:$0xff]  ;;  %4982 = vmatpush.xpose.msrb.mxu2 %v8129_v38 }
  0x83   : > { %4944 = vmatpush.xpose.msrb.mxu0 %v332_v29  ;;  %1365 = vadd.xlane.f32.xlu0 %v7950_v40  ;;  %v1379_v40 = vadd.f32 %v833_v48, %v832_v41  ;;  %v840_v41 = vmul.f32 %v328_v58, %v328_v58  ;;  %v841_v48 = vmul.f32 %v329_v61, %v329_v61 }
  0x84   : > { %4964 = vmatpush.xpose.msrb.mxu1 %v333_v37  ;;  %4999 = vmatpush.xpose.msrb.mxu3 %v8099_v36  ;;  %v1397_v29 = vadd.f32 %v845_v51, %v844_v26  ;;  %v1394_v37 = vadd.f32 %v843_v16, %v842_v18  ;;  %v357_v26 = vld [vmem:[%s7672_s9 + $0x358] sm:$0xff]  ;;  %v354_v18 = vld [vmem:[%s7672_s9 + $0x340] sm:$0xff]  ;;  %v355_v16 = vld [vmem:[%s7672_s9 + $0x348] sm:$0xff] }
  0x85   : > { %v1391_v24 = vadd.f32 %v841_v48, %v840_v41  ;;  %v352_v41 = vld [vmem:[%s7672_s9 + $0x330] sm:$0xff]  ;;  %v353_v48 = vld [vmem:[%s7672_s9 + $0x338] sm:$0xff] }
  0x87   : > { %4945 = vmatpush.xpose.msrb.mxu0 %v330_v3  ;;  %v8137_v3 = vld [vmem:[%s7672_s9 + $0x3a0] sm:$0xff] }
  0x88   : > { %4965 = vmatpush.xpose.msrb.mxu1 %v331_v44  ;;  %5000 = vmatpush.xpose.msrb.mxu3 %v8115_v17  ;;  %v850_v44 = vmul.f32 %v8010_v50, %v8010_v50 }
  0x89   : > { %1380 = vadd.xlane.f32.xlu2 %v1379_v40  ;;  %4983 = vmatpush.xpose.msrb.mxu2 %v8137_v3  ;;  %v851_v40 = vmul.f32 %v8018_v63, %v8018_v63 }
  0x8a   : > { %1377 = vadd.xlane.f32.xlu1 %v1376_v47  ;;  %v848_v47 = vmul.f32 %v8030_v25, %v8030_v25  ;;  %v8160_v25 = vld [vmem:[%s7672_s9 + $0x390] sm:$0xff] }
  0x8b   : > { %4946 = vmatpush.xpose.msrb.mxu0 %v328_v58  ;;  %1374 = vadd.xlane.f32.xlu0 %v1373_v8  ;;  %v847_v8 = vmul.f32 %v8054_v15, %v8054_v15  ;;  %v1406_v50 = vadd.f32 %v851_v40, %v850_v44  ;;  %v857_v15 = vmul.f32 %v7958_v55, %v7958_v55  ;;  %v8209_v58 = vld [vmem:[%s7672_s9 + $0x308] sm:$0xff] }
  0x8c   : > { %4966 = vmatpush.xpose.msrb.mxu1 %v329_v61  ;;  %5001 = vmatpush.xpose.msrb.mxu3 %v8124_v57  ;;  %v852_v55 = vmul.f32 %v7993_v42, %v7993_v42  ;;  %v8195_v42 = vld [vmem:[%s7672_s9 + $0x328] sm:$0xff]  ;;  %v859_v61 = vmul.f32 %v8209_v58, %v8209_v58  ;;  %v867_v44 = vmul.f32 %v355_v16, %v355_v16 }
  0x8d   : > { %4984 = vmatpush.xpose.msrb.mxu2 %v8160_v25  ;;  %v863_v35 = vmul.f32 %v8195_v42, %v8195_v42  ;;  %v864_v40 = vmul.f32 %v352_v41, %v352_v41 }
  0x8f   : > { %4947 = vmatpush.xpose.msrb.mxu0 %v326_v49  ;;  %v849_v49 = vmul.f32 %v8035_v33, %v8035_v33 }
  0x90   : > { %4967 = vmatpush.xpose.msrb.mxu1 %v327_v34  ;;  %5002 = vmatpush.xpose.msrb.mxu3 %v8132_v2  ;;  %v846_v34 = vmul.f32 %v8044_v52, %v8044_v52  ;;  %v856_v52 = vmul.f32 %v7955_v53, %v7955_v53  ;;  %v8181_v53 = vld [vmem:[%s7672_s9 + $0x388] sm:$0xff] }
  0x91   : > { %1389 = vadd.xlane.f32.xlu2 %v1388_v56  ;;  %v1403_v63 = vadd.f32 %v849_v49, %v848_v47  ;;  %v865_v47 = vmul.f32 %v353_v48, %v353_v48 }
  0x92   : > { %1386 = vadd.xlane.f32.xlu1 %v1385_v11  ;;  %v1400_v33 = vadd.f32 %v847_v8, %v846_v34 }
  0x93   : > { %4948 = vmatpush.xpose.msrb.mxu0 %v324_v9  ;;  %1383 = vadd.xlane.f32.xlu0 %v1382_v7  ;;  %v8192_v9 = vld [vmem:[%s7672_s9 + $0x320] sm:$0xff]  ;;  %v356_v7 = vld [vmem:[%s7672_s9 + $0x350] sm:$0xff]  ;;  %v1427_v8 = vadd.f32 %v865_v47, %v864_v40 }
  0x94   : > { %4968 = vmatpush.xpose.msrb.mxu1 %v325_v54  ;;  %5003 = vmatpush.xpose.msrb.mxu3 %v8140_v21  ;;  %v862_v32 = vmul.f32 %v8192_v9, %v8192_v9 }
  0x96   : > { %v1424_v56 = vadd.f32 %v863_v35, %v862_v32  ;;  %v407_v32 = vld [vmem:[%s7672_s9 + $0x4e8] sm:$0xff]  ;;  %v8250_v35 = vld [vmem:[%s7672_s9 + $0x4d0] sm:$0xff] }
  0x97   : > { %4949 = vmatpush.xpose.msrb.mxu0 %v322_v27  ;;  %v8198_v27 = vld [vmem:[%s7672_s9 + $0x310] sm:$0xff] }
  0x98   : > { %4969 = vmatpush.xpose.msrb.mxu1 %v323_v28  ;;  %v8206_v28 = vld [vmem:[%s7672_s9 + $0x300] sm:$0xff] }
  0x99   : > { %1398 = vadd.xlane.f32.xlu2 %v1397_v29  ;;  %v858_v43 = vmul.f32 %v8206_v28, %v8206_v28  ;;  %v868_v29 = vmul.f32 %v356_v7, %v356_v7 }
  0x9a   : > { %1395 = vadd.xlane.f32.xlu1 %v1394_v37  ;;  %v869_v37 = vmul.f32 %v357_v26, %v357_v26 }
  0x9b   : > { %4950 = vmatpush.xpose.msrb.mxu0 %v8060_v19  ;;  %1392 = vadd.xlane.f32.xlu0 %v1391_v24  ;;  %v8163_v19 = vld [vmem:[%s7672_s9 + $0x398] sm:$0xff]  ;;  %v1418_v51 = vadd.f32 %v859_v61, %v858_v43  ;;  %v866_v24 = vmul.f32 %v354_v18, %v354_v18 }
  0x9c   : > { %4970 = vmatpush.xpose.msrb.mxu1 %v8063_v23  ;;  %5004 = vmatpush.xpose.msrb.mxu3 %v8163_v19  ;;  %v854_v23 = vmul.f32 %v7977_v13, %v7977_v13  ;;  %v1415_v13 = vadd.f32 %v857_v15, %v856_v52  ;;  %v1433_v49 = vadd.f32 %v869_v37, %v868_v29  ;;  %v408_v52 = vld [vmem:[%s7672_s9 + $0x4f0] sm:$0xff]  ;;  %v409_v15 = vld [vmem:[%s7672_s9 + $0x4f8] sm:$0xff]  ;;  %v5754_v37 = vlaneseq }
  0x9d   : > { %v1430_v34 = vadd.f32 %v867_v44, %v866_v24  ;;  %v886_v24 = vmul.f32 %v8096_v22, %v8096_v22  ;;  %v887_v44 = vmul.f32 %v8099_v36, %v8099_v36  ;;  %v885_v22 = vmul.f32 %v8115_v17, %v8115_v17 }
  0x9e   : > { %v882_v36 = vmul.f32 %v8121_v0, %v8121_v0 }
  0x9f   : > { %4951 = vmatpush.xpose.msrb.mxu0 %v8067_v4  ;;  %v855_v4 = vmul.f32 %v7985_v39, %v7985_v39 }
  0xa0   : > { %4971 = vmatpush.xpose.msrb.mxu1 %v8070_v5  ;;  %v8178_v5 = vld [vmem:[%s7672_s9 + $0x380] sm:$0xff]  ;;  %5005 = vmatpush.xpose.msrb.mxu3 %v8181_v53 }
  0xa1   : > { %1407 = vadd.xlane.f32.xlu2 %v1406_v50  ;;  %4985 = vmatpush.xpose.msrb.mxu2 %v8178_v5  ;;  %v1412_v39 = vadd.f32 %v855_v4, %v854_v23 }
  0xa2   : > { %1404 = vadd.xlane.f32.xlu1 %v1403_v63  ;;  %v874_v63 = vmul.f32 %v8178_v5, %v8178_v5 }
  0xa3   : > { %4952 = vmatpush.xpose.msrb.mxu0 %v8074_v30  ;;  %v853_v30 = vmul.f32 %v7996_v60, %v7996_v60  ;;  %1401 = vadd.xlane.f32.xlu0 %v1400_v33  ;;  %v8201_v60 = vld [vmem:[%s7672_s9 + $0x318] sm:$0xff]  ;;  %v875_v33 = vmul.f32 %v8181_v53, %v8181_v53 }
  0xa4   : > { %4972 = vmatpush.xpose.msrb.mxu1 %v8077_v31  ;;  %v360_v31 = vld [vmem:[%s7672_s9 + $0x370] sm:$0xff]  ;;  %v861_v59 = vmul.f32 %v8201_v60, %v8201_v60  ;;  %v1288_v53 = vpop.xlane.xlu2 %1287 }
  0xa5   : > { %v1409_v54 = vadd.f32 %v853_v30, %v852_v55  ;;  %4986 = vmatpush.xpose.msrb.mxu2 %v360_v31  ;;  %v872_v23 = vmul.f32 %v360_v31, %v360_v31  ;;  %v870_v55 = vmul.f32 %v358_v62, %v358_v62  ;;  %v871_v30 = vmul.f32 %v359_v6, %v359_v6  ;;  %v1282_v5 = vpop.xlane.xlu1 %1281 }
  0xa6   : > { %v1276_v50 = vpop.xlane.xlu0 %1275  ;;  %v8271_v61 = vmax.f32 %v1282_v5, 1e-24 }
  0xa7   : > { %4953 = vmatpush.xpose.msrb.mxu0 %v8023_v1  ;;  %v361_v1 = vld [vmem:[%s7672_s9 + $0x378] sm:$0xff]  ;;  %v1436_v31 = vadd.f32 %v871_v30, %v870_v55  ;;  %v8268_v43 = vmax.f32 %v1276_v50, 1e-24  ;;  %v883_v50 = vmul.f32 %v8124_v57, %v8124_v57  ;;  %v1460_v57 = vadd.f32 %v887_v44, %v886_v24  ;;  %v8405_v24 = vld [vmem:[%s7672_s9 + $0x410] sm:$0xff] }
  0xa8   : > { %4973 = vmatpush.xpose.msrb.mxu1 %v8026_v12  ;;  %5006 = vmatpush.xpose.msrb.mxu3 %v361_v1  ;;  %v860_v12 = vmul.f32 %v8198_v27, %v8198_v27  ;;  %v873_v4 = vmul.f32 %v361_v1, %v361_v1  ;;  %v880_v1 = vmul.f32 %v8129_v38, %v8129_v38  ;;  %vm2324_vm1 = vweird.f32 %v8271_v61  ;;  %v8408_v44 = vld [vmem:[%s7672_s9 + $0x418] sm:$0xff] }
  0xa9   : > { %1416 = vadd.xlane.f32.xlu2 %v1415_v13  ;;  %4987 = vmatpush.xpose.msrb.mxu2 %v358_v62  ;;  %v1442_v13 = vadd.f32 %v875_v33, %v874_v63  ;;  %v8336_v33 = vld [vmem:[%s7672_s9 + $0x4a0] sm:$0xff]  ;;  %vm2304_vm3 = vweird.f32 %v8268_v43  ;;  %17927 = vst [vmem:[#allocation20_spill] sm:$0xff] %v8405_v24 }
  0xaa   : > { %4954 = vmatmul.f32.vlgmr.msrb.gmra.mxu0 %v7962_v45  ;;  %1413 = vadd.xlane.f32.xlu1 %v1412_v39  ;;  %v1421_v11 = vadd.f32 %v861_v59, %v860_v12  ;;  %v406_v39 = vld [vmem:[%s7672_s9 + $0x4e0] sm:$0xff]  ;;  %v8253_v12 = vld [vmem:[%s7672_s9 + $0x4d8] sm:$0xff]  ;;  %v878_v59 = vmul.f32 %v8137_v3, %v8137_v3  ;;  %17928 = vst [vmem:[#allocation21_spill] sm:$0xff] %v8408_v44 }
  0xab   : > { %4974 = vmatmul.f32.vlgmr.msrb.gmra.mxu1 %v7968_v46  ;;  %1410 = vadd.xlane.f32.xlu0 %v1409_v54  ;;  %v1439_v54 = vadd.f32 %v873_v4, %v872_v23  ;;  %v8343_v23 = vand.u32 127, %v5754_v37 }
  0xac   : > { %5007 = vmatpush.xpose.msrb.mxu3 %v359_v6  ;;  %5018 = vmatpush.xpose.msra.mxu0 %v408_v52  ;;  %v1291_v62 = vpop.xlane.xlu2 %1290  ;;  %v876_v6 = vmul.f32 %v8160_v25, %v8160_v25  ;;  %v8339_v52 = vld [vmem:[%s7672_s9 + $0x4a8] sm:$0xff] }
  0xad   : > { %4988 = vmatpush.xpose.msrb.mxu2 %v356_v7  ;;  %5038 = vmatpush.xpose.msra.mxu1 %v409_v15  ;;  %17921 = vst [vmem:[#allocation14_spill] sm:$0xff] %v8343_v23 }
  0xb0   : > { %5008 = vmatpush.xpose.msrb.mxu3 %v357_v26  ;;  %5019 = vmatpush.xpose.msra.mxu0 %v406_v39  ;;  %v8298_v26 = vld [vmem:[%s7672_s9 + $0x4b0] sm:$0xff] }
  0xb1   : > { %1425 = vadd.xlane.f32.xlu2 %v1424_v56  ;;  %4989 = vmatpush.xpose.msrb.mxu2 %v354_v18  ;;  %v877_v56 = vmul.f32 %v8163_v19, %v8163_v19  ;;  %17919 = vst [vmem:[#allocation12_spill] sm:$0xff] %v8298_v26 }
  0xb2   : > { %1422 = vadd.xlane.f32.xlu1 %v1421_v11  ;;  %5039 = vmatpush.xpose.msra.mxu1 %v407_v32  ;;  %v8363_v32 = vld [vmem:[%s7672_s9 + $0x490] sm:$0xff] }
  0xb3   : > { %1419 = vadd.xlane.f32.xlu0 %v1418_v51  ;;  %v8301_v51 = vld [vmem:[%s7672_s9 + $0x4b8] sm:$0xff]  ;;  %v1445_v19 = vadd.f32 %v877_v56, %v876_v6  ;;  %v8391_v56 = vadd.s32 4294967288, %v8343_v23 }
  0xb4   : > { %5009 = vmatpush.xpose.msrb.mxu3 %v355_v16  ;;  %5020 = vmatpush.xpose.msra.mxu0 %v8250_v35  ;;  %17920 = vst [vmem:[#allocation13_spill] sm:$0xff] %v8301_v51  ;;  %v1300_v29 = vpop.xlane.xlu2 %1299 }
  0xb5   : > { %4990 = vmatpush.xpose.msrb.mxu2 %v352_v41  ;;  %v8356_v30 = vmax.f32 %v1300_v29, 1e-24  ;;  %17926 = vst [vmem:[#allocation19_spill] sm:$0xff] %v8391_v56 }
  0xb6   : > { %5040 = vmatpush.xpose.msra.mxu1 %v8253_v12 }
  0xb8   : > { %5010 = vmatpush.xpose.msrb.mxu3 %v353_v48 }
  0xb9   : > { %1434 = vadd.xlane.f32.xlu2 %v1433_v49  ;;  %4991 = vmatpush.xpose.msrb.mxu2 %v8192_v9  ;;  %v881_v9 = vmul.f32 %v8132_v2, %v8132_v2 }
  0xba   : > { %1431 = vadd.xlane.f32.xlu1 %v1430_v34 }
  0xbb   : > { %1428 = vadd.xlane.f32.xlu0 %v1427_v8  ;;  %v1451_v2 = vadd.f32 %v881_v9, %v880_v1  ;;  %v884_v8 = vmul.f32 %v8112_v10, %v8112_v10  ;;  %v8349_v10 = vmul.f32 %v8048_v20, %v8048_v20  ;;  %v8370_v1 = vmul.f32 %v8051_v14, %v8051_v14 }
  0xbc   : > { %5011 = vmatpush.xpose.msrb.mxu3 %v8195_v42  ;;  %v1279_v42 = vpop.xlane.xlu0 %1278  ;;  %v8373_v9 = vadd.s32 4294967264, %v8343_v23  ;;  %v8386_v14 = vadd.s32 4294967272, %v8343_v23 }
  0xbd   : > { %4992 = vmatpush.xpose.msrb.mxu2 %v8198_v27  ;;  %v879_v27 = vmul.f32 %v8140_v21, %v8140_v21  ;;  %v8263_v38 = vmax.f32 %v1279_v42, 1e-24  ;;  %v1285_v21 = vpop.xlane.xlu1 %1284  ;;  %v8376_v42 = vadd.s32 4294967280, %v8343_v23 }
  0xbe   : > { %17922 = vst [vmem:[#allocation15_spill] sm:$0xff] %v8373_v9 }
  0xbf   : > { %v1448_v3 = vadd.f32 %v879_v27, %v878_v59  ;;  %6819 = vrsqrt.f32 %v8263_v38  ;;  %17923 = vst [vmem:[#allocation16_spill] sm:$0xff] %v8376_v42  ;;  %vm2314_vm9 = vweird.f32 %v8263_v38 }
  0xc0   : > { %5012 = vmatpush.xpose.msrb.mxu3 %v8201_v60  ;;  %v8266_v60 = vmax.f32 %v1288_v53, 1e-24  ;;  %v1457_v53 = vadd.f32 %v885_v22, %v884_v8  ;;  %17925 = vst [vmem:[#allocation18_spill] sm:$0xff] %v8386_v14 }
  0xc1   : > { %1443 = vadd.xlane.f32.xlu2 %v1442_v13  ;;  %4993 = vmatpush.xpose.msrb.mxu2 %v8206_v28  ;;  %v8277_v28 = vmax.f32 %v1285_v21, 1e-24 }
  0xc2   : > { %1440 = vadd.xlane.f32.xlu1 %v1439_v54  ;;  %6821 = vrsqrt.f32 %v8266_v60  ;;  %v1454_v54 = vadd.f32 %v883_v50, %v882_v36  ;;  %vm2344_vm0 = vweird.f32 %v8266_v60  ;;  %v8420_v50 = vld [vmem:[%s7672_s9 + $0x408] sm:$0xff] }
  0xc3   : > { %1437 = vadd.xlane.f32.xlu0 %v1436_v31  ;;  %6823 = vrsqrt.f32 %v8268_v43  ;;  %v8366_v31 = vld [vmem:[%s7672_s9 + $0x498] sm:$0xff]  ;;  %vm2334_vm7 = vweird.f32 %v8277_v28  ;;  %17930 = vst [vmem:[#allocation23_spill] sm:$0xff] %v8420_v50 }
  0xc4   : > { %5013 = vmatpush.xpose.msrb.mxu3 %v8209_v58  ;;  %4994 = vmatmul.f32.vlgmr.msrb.gmra.mxu2 %v7962_v45  ;;  %v8280_v58 = vld [vmem:[%s7672_s9 + $0x4c0] sm:$0xff]  ;;  %v8283_v45 = vld [vmem:[%s7672_s9 + $0x4c8] sm:$0xff]  ;;  %6825 = vrsqrt.f32 %v8271_v61  ;;  %v1294_v7 = vpop.xlane.xlu0 %1293 }
  0xc5   : > { %17918 = vst [vmem:[#allocation11_spill] sm:$0xff] %v8283_v45  ;;  %5021 = vmatpush.xpose.msra.mxu0 %v8280_v58  ;;  %5041 = vmatpush.xpose.msra.mxu1 %v8283_v45  ;;  %v8294_v11 = vpop.eup %6819  ;;  %6827 = vrsqrt.f32 %v8277_v28  ;;  %v1297_v25 = vpop.xlane.xlu1 %1296  ;;  %v8358_v5 = vmax.f32 %v1294_v7, 1e-24 }
  0xc6   : > { %v2309_v48 = vmul.f32 %v8294_v11, %v8263_v38  ;;  %v8378_v59 = vmax.f32 %v1297_v25, 1e-24  ;;  %vm2315_vm8 = vweird.f32 %v8294_v11  ;;  %v891_v38 = vmul.f32 %v8420_v50, %v8420_v50 }
  0xc7   : > { %5014 = vmatmul.f32.vlgmr.msrb.gmra.mxu3 %v7968_v46  ;;  %v8288_v46 = vmax.f32 %v1291_v62, 1e-24  ;;  %v1309_v62 = vpop.xlane.xlu2 %1308  ;;  %vm8444_vm10 = vmor %vm2314_vm9, %vm2315_vm8  ;;  %vm2384_vm8 = vweird.f32 %v8356_v30 }
  0xc8   : > { %v8303_v18 = vpop.eup %6821  ;;  %v2310_v63 = vmul.f32 %v8294_v11, %v2309_v48  ;;  %v8400_v48 = vmax.f32 %v1309_v62, 1e-24 }
  0xc9   : > { %1452 = vadd.xlane.f32.xlu2 %v1451_v2  ;;  %5022 = vmatpush.xpose.msra.mxu0 %v8298_v26  ;;  %v8307_v16 = vpop.eup %6823  ;;  %6829 = vrsqrt.f32 %v8288_v46  ;;  %v2339_v49 = vmul.f32 %v8303_v18, %v8266_v60  ;;  %vm2345_vm2 = vweird.f32 %v8303_v18  ;;  %vm2354_vm5 = vweird.f32 %v8288_v46  ;;  %v392_v26 = vld [vmem:[%s7672_s9 + $0x470] sm:$0xff] }
  0xca   : > { %1449 = vadd.xlane.f32.xlu1 %v1448_v3  ;;  %5042 = vmatpush.xpose.msra.mxu1 %v8301_v51  ;;  %v8310_v41 = vpop.eup %6825  ;;  %v2299_v40 = vmul.f32 %v8307_v16, %v8268_v43  ;;  %v2311_v20 = vmul.f32 0.5, %v2310_v63  ;;  %v8383_v3 = vadd.s32 4294967256, %v8343_v23  ;;  %6831 = vrsqrt.f32 %v8358_v5  ;;  %vm8457_vm11 = vmor %vm2344_vm0, %vm2345_vm2 }
  0xcb   : > { %1446 = vadd.xlane.f32.xlu0 %v1445_v19  ;;  %v8320_v47 = vpop.eup %6827  ;;  %v2319_v34 = vmul.f32 %v8310_v41, %v8271_v61  ;;  %v2340_v4 = vmul.f32 %v8303_v18, %v2339_v49  ;;  %6833 = vrsqrt.f32 %v8356_v30  ;;  %vm2325_vm4 = vweird.f32 %v8310_v41 }
  0xcc   : > { %v2300_v17 = vmul.f32 %v8307_v16, %v2299_v40  ;;  %v2329_v0 = vmul.f32 %v8320_v47, %v8277_v28  ;;  %v1303_v13 = vpop.xlane.xlu0 %1302  ;;  %17924 = vst [vmem:[#allocation17_spill] sm:$0xff] %v8383_v3  ;;  %v2312_v19 = vsub.f32 1.5, %v2311_v20  ;;  %6835 = vrsqrt.f32 %v8378_v59  ;;  %v8411_v40 = vld [vmem:[%s7672_s9 + $0x400] sm:$0xff]  ;;  %vm8492_vm15 = vmor %vm2324_vm1, %vm2325_vm4 }
  0xcd   : > { %5023 = vmatpush.xpose.msra.mxu0 %v8336_v33  ;;  %v2320_v55 = vmul.f32 %v8310_v41, %v2319_v34  ;;  %v1306_v27 = vpop.xlane.xlu1 %1305  ;;  %v2341_v6 = vmul.f32 0.5, %v2340_v4  ;;  %17929 = vst [vmem:[#allocation22_spill] sm:$0xff] %v8411_v40  ;;  %vm2305_vm6 = vweird.f32 %v8307_v16  ;;  %6837 = vrsqrt.f32 %v8400_v48 }
  0xce   : > { %5043 = vmatpush.xpose.msra.mxu1 %v8339_v52  ;;  %v2301_v2 = vmul.f32 0.5, %v2300_v17  ;;  %v2330_v21 = vmul.f32 %v8320_v47, %v2329_v0  ;;  %v8415_v34 = vmax.f32 %v1306_v27, 1e-24  ;;  %v2313_v36 = vmul.f32 %v8294_v11, %v2312_v19  ;;  %vm8472_vm13 = vmor %vm2304_vm3, %vm2305_vm6 }
  0xcf   : > { %v8341_v15 = vpop.eup %6829  ;;  %v2321_v7 = vmul.f32 0.5, %v2320_v55  ;;  %v2342_v49 = vsub.f32 1.5, %v2341_v6  ;;  %v892_v0 = vmul.f32 %v8405_v24, %v8405_v24  ;;  %v890_v4 = vmul.f32 %v8411_v40, %v8411_v40  ;;  %v1318_v19 = vpop.xlane.xlu2 %1317 }
  0xd0   : > { %v2349_v39 = vmul.f32 %v8341_v15, %v8288_v46  ;;  %v2302_v29 = vsub.f32 1.5, %v2301_v2  ;;  %v2331_v37 = vmul.f32 0.5, %v2330_v21  ;;  %v8422_v63 = vpop.eup %6831  ;;  %6839 = vrsqrt.f32 %v8415_v34 }
  0xd1   : > { %1461 = vadd.xlane.f32.xlu2 %v1460_v57  ;;  %5024 = vmatpush.xpose.msra.mxu0 %v8363_v32  ;;  %v2322_v8 = vsub.f32 1.5, %v2321_v7  ;;  %v893_v57 = vmul.f32 %v8408_v44, %v8408_v44  ;;  %v8433_v55 = vpop.eup %6833  ;;  %v2343_v27 = vmul.f32 %v8303_v18, %v2342_v49  ;;  %vm2355_vm12 = vweird.f32 %v8341_v15 }
  0xd2   : > { %5044 = vmatpush.xpose.msra.mxu1 %v8366_v31  ;;  %1458 = vadd.xlane.f32.xlu1 %v1457_v53  ;;  %v2350_v25 = vmul.f32 %v8341_v15, %v2349_v39  ;;  %v2303_v39 = vmul.f32 %v8307_v16, %v2302_v29  ;;  %v2332_v20 = vsub.f32 1.5, %v2331_v37  ;;  %v8437_v53 = vmax.f32 %v1303_v13, 1e-24  ;;  %vm8509_vm1 = vmor %vm2354_vm5, %vm2355_vm12 }
  0xd3   : > { %1455 = vadd.xlane.f32.xlu0 %v1454_v54  ;;  %v8439_v54 = vpop.eup %6835  ;;  %v1469_v62 = vadd.f32 %v893_v57, %v892_v0  ;;  %v2317_v7 = vsel %vm8444_vm10, %v8294_v11, %v2313_v36  ;;  %v2323_v29 = vmul.f32 %v8310_v41, %v2322_v8  ;;  %vm2335_vm14 = vweird.f32 %v8320_v47  ;;  %v8572_v36 = vld [vmem:[%s7672_s9 + $0x438] sm:$0xff] }
  0xd4   : > { %v2351_v22 = vmul.f32 0.5, %v2350_v25  ;;  %v8425_v17 = vpop.xlane.xlu0 %1311  ;;  %v2359_v25 = vmul.f32 %v8422_v63, %v8358_v5  ;;  %v2379_v37 = vmul.f32 %v8433_v55, %v8356_v30  ;;  %v1466_v11 = vadd.f32 %v891_v38, %v890_v4  ;;  %vm8524_vm4 = vmor %vm2334_vm7, %vm2335_vm14  ;;  %v8542_v38 = vld [vmem:[%s7672_s9 + $0x440] sm:$0xff] }
  0xd5   : > { %v8449_v21 = vpop.xlane.xlu1 %1314  ;;  %v2307_v49 = vsel %vm8472_vm13, %v8307_v16, %v2303_v39  ;;  %v2333_v8 = vmul.f32 %v8320_v47, %v2332_v20  ;;  %v2369_v43 = vmul.f32 %v8439_v54, %v8378_v59  ;;  %6841 = vrsqrt.f32 %v8437_v53 }
  0xd6   : > { %v2352_v6 = vsub.f32 1.5, %v2351_v22  ;;  %v8486_v22 = vpop.eup %6837  ;;  %vm17892_vm0 = vcmask 130112   ;;  %vm17748_vm2 = vcmask 195712   ;;  %v5758_v16 = vperm.slane %v2317_v7, %v8391_v56 }
  0xd7   : > { %v1463_v0 = vadd.f32 %v8370_v1, %v8349_v10  ;;  %v2347_v57 = vsel %vm8457_vm11, %v8303_v18, %v2343_v27  ;;  %vm17685_vm3 = vcmask 261312   ;;  %v2360_v39 = vmul.f32 %v8422_v63, %v2359_v25  ;;  %v8514_v10 = vpop.eup %6839 }
  0xd8   : > { %v8503_v4 = vmul.f32 %v8341_v15, %v2352_v6  ;;  %v2327_v18 = vsel %vm8492_vm15, %v8310_v41, %v2323_v29  ;;  %v5756_v1 = vperm.slane %v2307_v49, %v8343_v23  ;;  %v8529_v20 = vadd.s32 4294967232, %v8343_v23  ;;  %v8557_v29 = vld [vmem:[%s7672_s9 + $0x448] sm:$0xff] }
  0xd9   : > { %1470 = vadd.xlane.f32.xlu2 %v1469_v62  ;;  %v2380_v27 = vmul.f32 %v8433_v55, %v2379_v37  ;;  %v2337_v41 = vsel %vm8524_vm4, %v8320_v47, %v2333_v8  ;;  %v8536_v2 = vadd.s32 4294967240, %v8343_v23  ;;  %v2370_v28 = vmul.f32 %v8439_v54, %v2369_v43  ;;  %v8569_v43 = vld [vmem:[%s7672_s9 + $0x430] sm:$0xff] }
  0xda   : > { %1467 = vadd.xlane.f32.xlu1 %v1466_v11  ;;  %17943 = vst [vmem:[#allocation24_spill] sm:$0xff] %v8529_v20  ;;  %v2409_v62 = vmul.f32 %v8486_v22, %v8400_v48  ;;  %v8545_v13 = vperm.slane %v2347_v57, %v8373_v9  ;;  %v5760_v6 = vsel %vm17892_vm0, %v5758_v16, %v5756_v1  ;;  %vm17686_vm5 = vcmask 326912   ;;  %v8575_v16 = vld [vmem:[%s7672_s9 + $0x420] sm:$0xff] }
  0xdb   : > { %1464 = vadd.xlane.f32.xlu0 %v1463_v0  ;;  %17944 = vst [vmem:[#allocation25_spill] sm:$0xff] %v8536_v2  ;;  %v8549_v47 = vadd.s32 4294967248, %v8343_v23  ;;  %v8552_v7 = vadd.s32 4294967208, %v8343_v23  ;;  %v8559_v60 = vpop.eup %6841  ;;  %v5762_v37 = vperm.slane %v2327_v18, %v8376_v42  ;;  %v2357_v11 = vsel %vm8509_vm1, %v8341_v15, %v8503_v4  ;;  %v8583_v15 = vld [vmem:[%s7672_s9 + $0x428] sm:$0xff]  ;;  %v8586_v4 = vld [vmem:[%s7672_s9 + $0x480] sm:$0xff] }
  0xdc   : > { %v8554_v25 = vpop.xlane.xlu0 %1320  ;;  %v2361_v49 = vmul.f32 0.5, %v2360_v39  ;;  %v2399_v8 = vmul.f32 %v8514_v10, %v8415_v34  ;;  %v5766_v0 = vperm.slane %v2337_v41, %v8386_v14  ;;  %v2381_v57 = vmul.f32 0.5, %v2380_v27  ;;  %v8589_v39 = vld [vmem:[%s7672_s9 + $0x488] sm:$0xff]  ;;  %v1327_v27 = vpop.xlane.xlu2 %1326  ;;  %5025 = vmatpush.xpose.msra.mxu0 %v8586_v4 }
  0xdd   : > { %17945 = vst [vmem:[#allocation26_spill] sm:$0xff] %v8549_v47  ;;  %v8578_v1 = vmax.f32 %v1318_v19, 1e-24  ;;  %v1324_v18 = vpop.xlane.xlu1 %1323  ;;  %v898_v61 = vmul.f32 %v8542_v38, %v8542_v38  ;;  %v5764_v46 = vsel %vm17748_vm2, %v5762_v37, %v5760_v6  ;;  %v2371_v9 = vmul.f32 0.5, %v2370_v28  ;;  %5045 = vmatpush.xpose.msra.mxu1 %v8589_v39 }
  0xde   : > { %17946 = vst [vmem:[#allocation27_spill] sm:$0xff] %v8552_v7  ;;  %vm2374_vm6 = vweird.f32 %v8378_v59  ;;  %vm2364_vm7 = vweird.f32 %v8358_v5  ;;  %v2410_v19 = vmul.f32 %v8486_v22, %v2409_v62  ;;  %v899_v41 = vmul.f32 %v8557_v29, %v8557_v29 }
  0xdf   : > { %vm2385_vm9 = vweird.f32 %v8433_v55  ;;  %v2389_v28 = vmul.f32 %v8559_v60, %v8437_v53  ;;  %v896_v6 = vmul.f32 %v8569_v43, %v8569_v43  ;;  %v897_v62 = vmul.f32 %v8572_v36, %v8572_v36 }
  0xe0   : > { %v894_v37 = vmul.f32 %v8575_v16, %v8575_v16  ;;  %v2362_v14 = vsub.f32 1.5, %v2361_v49  ;;  %v2400_v42 = vmul.f32 %v8514_v10, %v2399_v8  ;;  %v1478_v56 = vadd.f32 %v899_v41, %v898_v61  ;;  %v393_v61 = vld [vmem:[%s7672_s9 + $0x478] sm:$0xff]  ;;  %5026 = vmatpush.xpose.msra.mxu0 %v392_v26 }
  0xe1   : > { %v895_v50 = vmul.f32 %v8583_v15, %v8583_v15  ;;  %v2382_v40 = vsub.f32 1.5, %v2381_v57  ;;  %vm2414_vm10 = vweird.f32 %v8400_v48  ;;  %6843 = vrsqrt.f32 %v8578_v1  ;;  %5046 = vmatpush.xpose.msra.mxu1 %v393_v61 }
  0xe2   : > { %v8615_v44 = vmax.f32 %v8449_v21, 1e-24  ;;  %v1475_v51 = vadd.f32 %v897_v62, %v896_v6  ;;  %v8619_v24 = vperm.slane %v2357_v11, %v8383_v3  ;;  %v2372_v49 = vsub.f32 1.5, %v2371_v9  ;;  %1479 = vadd.xlane.f32.xlu2 %v1478_v56 }
  0xe3   : > { %v2411_v45 = vmul.f32 0.5, %v2410_v19  ;;  %v1472_v8 = vadd.f32 %v895_v50, %v894_v37  ;;  %v5768_v57 = vsel %vm17685_vm3, %v5766_v0, %v5764_v46  ;;  %vm2375_vm11 = vweird.f32 %v8439_v54  ;;  %v390_v0 = vld [vmem:[%s7672_s9 + $0x460] sm:$0xff]  ;;  %v391_v46 = vld [vmem:[%s7672_s9 + $0x468] sm:$0xff] }
  0xe4   : > { %vm17699_vm12 = vcmask 392512   ;;  %v2390_v21 = vmul.f32 %v8559_v60, %v2389_v28  ;;  %v8625_v41 = vmax.f32 %v1327_v27, 1e-24  ;;  %1476 = vadd.xlane.f32.xlu1 %v1475_v51  ;;  %v2363_v11 = vmul.f32 %v8422_v63, %v2362_v14  ;;  %v1330_v51 = vpop.xlane.xlu0 %1329  ;;  %5027 = vmatpush.xpose.msra.mxu0 %v390_v0  ;;  %v1336_v62 = vpop.xlane.xlu2 %1335 }
  0xe5   : > { %vm2365_vm13 = vweird.f32 %v8422_v63  ;;  %v2401_v9 = vmul.f32 0.5, %v2400_v42  ;;  %v8629_v56 = vmax.f32 %v1324_v18, 1e-24  ;;  %1473 = vadd.xlane.f32.xlu0 %v1472_v8  ;;  %v8632_v50 = vmul.f32 %v8433_v55, %v2382_v40  ;;  %5047 = vmatpush.xpose.msra.mxu1 %v391_v46 }
  0xe6   : > { %vm17698_vm14 = vcmask 458112   ;;  %vm2415_vm15 = vweird.f32 %v8486_v22  ;;  %vm2404_vm1 = vweird.f32 %v8415_v34  ;;  %6845 = vrsqrt.f32 %v8615_v44  ;;  %vm8649_vm3 = vmor %vm2364_vm7, %vm2365_vm13 }
  0xe7   : > { %v2373_v14 = vmul.f32 %v8439_v54, %v2372_v49  ;;  %v5772_v42 = vsel %vm17686_vm5, %v8545_v13, %v5768_v57  ;;  %v2412_v18 = vsub.f32 1.5, %v2411_v45  ;;  %vm2405_vm4 = vweird.f32 %v8514_v10  ;;  %v8643_v40 = vpop.eup %6843  ;;  %v1333_v45 = vpop.xlane.xlu1 %1332  ;;  %v388_v49 = vld [vmem:[%s7672_s9 + $0x450] sm:$0xff]  ;;  %vm8668_vm7 = vmor %vm2374_vm6, %vm2375_vm11 }
  0xe8   : > { %v2391_v27 = vmul.f32 0.5, %v2390_v21  ;;  %v8654_v28 = vmax.f32 %v8425_v17, 1e-24  ;;  %6847 = vrsqrt.f32 %v8625_v41  ;;  %v904_v13 = vmul.f32 %v392_v26, %v392_v26  ;;  %5028 = vmatpush.xpose.msra.mxu0 %v388_v49  ;;  %vm8701_vm6 = vmor %vm2414_vm10, %vm2415_vm15 }
  0xe9   : > { %vm17695_vm5 = vcmask 523712   ;;  %v2367_v6 = vsel %vm8649_vm3, %v8422_v63, %v2363_v11  ;;  %v2402_v5 = vsub.f32 1.5, %v2401_v9  ;;  %6849 = vrsqrt.f32 %v8629_v56  ;;  %vm8678_vm3 = vmor %vm2384_vm8, %vm2385_vm9 }
  0xea   : > { %v8661_v37 = vmax.f32 %v1330_v51, 1e-24  ;;  %v8672_v17 = vmax.f32 %v1336_v62, 1e-24  ;;  %v905_v8 = vmul.f32 %v393_v61, %v393_v61  ;;  %v902_v63 = vmul.f32 %v390_v0, %v390_v0  ;;  %v389_v51 = vld [vmem:[%s7672_s9 + $0x458] sm:$0xff]  ;;  %vm8736_vm8 = vmor %vm2404_vm1, %vm2405_vm4 }
  0xeb   : > { %v903_v57 = vmul.f32 %v391_v46, %v391_v46  ;;  %v2377_v59 = vsel %vm8668_vm7, %v8439_v54, %v2373_v14  ;;  %v8686_v11 = vmul.f32 %v8486_v22, %v2412_v18  ;;  %v2439_v61 = vmul.f32 %v8643_v40, %v8578_v1  ;;  %5048 = vmatpush.xpose.msra.mxu1 %v389_v51  ;;  %v8776_v14 = vld [vmem:[%s7672_s9 + $0x5e0] sm:$0xff] }
  0xec   : > { %v8690_v9 = vmax.f32 %v1333_v45, 1e-24  ;;  %v8693_v0 = vpop.eup %6845  ;;  %6851 = vrsqrt.f32 %v8654_v28  ;;  %v1487_v30 = vadd.f32 %v905_v8, %v904_v13  ;;  %v900_v19 = vmul.f32 %v388_v49, %v388_v49  ;;  %5029 = vmatpush.xpose.msra.mxu0 %v8542_v38 }
  0xed   : > { %v1484_v46 = vadd.f32 %v903_v57, %v902_v63  ;;  %v5778_v54 = vperm.slane %v2367_v6, %v8549_v47  ;;  %v2403_v18 = vmul.f32 %v8514_v10, %v2402_v5  ;;  %v2392_v45 = vsub.f32 1.5, %v2391_v27 }
  0xee   : > { %6853 = vrsqrt.f32 %v8661_v37  ;;  %v8707_v13 = vpop.eup %6847  ;;  %v2387_v6 = vsel %vm8678_vm3, %v8433_v55, %v8632_v50  ;;  %v8714_v48 = vadd.s32 4294967216, %v8343_v23  ;;  %1488 = vadd.xlane.f32.xlu2 %v1487_v30  ;;  %v901_v62 = vmul.f32 %v389_v51, %v389_v51  ;;  %v440_v55 = vld [vmem:[%s7672_s9 + $0x5f0] sm:$0xff]  ;;  %v441_v50 = vld [vmem:[%s7672_s9 + $0x5f8] sm:$0xff] }
  0xef   : > { %6855 = vrsqrt.f32 %v8672_v17  ;;  %1485 = vadd.xlane.f32.xlu1 %v1484_v46  ;;  %v8717_v5 = vpop.eup %6849  ;;  %v5782_v27 = vperm.slane %v2377_v59, %v8536_v2  ;;  %v5776_v49 = vsel %vm17699_vm12, %v8619_v24, %v5772_v42  ;;  %v2429_v26 = vmul.f32 %v8693_v0, %v8615_v44  ;;  %5058 = vmatpush.xpose.msra.mxu2 %v440_v55 }
  0xf0   : > { %17955 = vst [vmem:[#allocation28_spill] sm:$0xff] %v8714_v48  ;;  %6857 = vrsqrt.f32 %v8690_v9  ;;  %v2417_v8 = vsel %vm8701_vm6, %v8486_v22, %v8686_v11  ;;  %vm2395_vm9 = vweird.f32 %v8559_v60  ;;  %v2440_v42 = vmul.f32 %v8643_v40, %v2439_v61  ;;  %5078 = vmatpush.xpose.msra.mxu3 %v441_v50  ;;  %5049 = vmatpush.xpose.msra.mxu1 %v8557_v29  ;;  %v1342_v61 = vpop.xlane.xlu1 %1341 }
  0xf1   : > { %v1481_v63 = vadd.f32 %v901_v62, %v900_v19  ;;  %v5780_v38 = vsel %vm17698_vm14, %v5778_v54, %v5776_v49  ;;  %v2407_v22 = vsel %vm8736_vm8, %v8514_v10, %v2403_v18  ;;  %v8747_v57 = vmul.f32 %v8559_v60, %v2392_v45  ;;  %v1339_v54 = vpop.xlane.xlu0 %1338  ;;  %v8779_v18 = vld [vmem:[%s7672_s9 + $0x5e8] sm:$0xff]  ;;  %5030 = vmatpush.xpose.msra.mxu0 %v8569_v43 }
  0xf2   : > { %v2469_v34 = vmul.f32 %v8707_v13, %v8625_v41  ;;  %v8752_v21 = vpop.eup %6851  ;;  %v8755_v59 = vadd.s32 4294967224, %v8343_v23  ;;  %vm2394_vm10 = vweird.f32 %v8437_v53  ;;  %v8759_v11 = vadd.s32 4294967192, %v8343_v23  ;;  %17961 = vst [vmem:[#allocation32_spill] sm:$0xff] %v8779_v18 }
  0xf3   : > { %v8762_v10 = vadd.s32 4294967200, %v8343_v23  ;;  %1482 = vadd.xlane.f32.xlu0 %v1481_v63  ;;  %v8767_v29 = vperm.slane %v2387_v6, %v8529_v20  ;;  %vm17693_vm11 = vcmask 589312   ;;  %v2430_v30 = vmul.f32 %v8693_v0, %v2429_v26  ;;  %vm8795_vm13 = vmor %vm2394_vm10, %vm2395_vm9  ;;  %5059 = vmatpush.xpose.msra.mxu2 %v8776_v14 }
  0xf4   : > { %17958 = vst [vmem:[#allocation29_spill] sm:$0xff] %v8755_v59  ;;  %v8764_v51 = vpop.eup %6853  ;;  %v2459_v46 = vmul.f32 %v8717_v5, %v8629_v56  ;;  %v8773_v19 = vmax.f32 %v8554_v25, 1e-24  ;;  %v5784_v6 = vsel %vm17695_vm5, %v5782_v27, %v5780_v38  ;;  %v8786_v62 = vperm.slane %v2417_v8, %v8552_v7  ;;  %5079 = vmatpush.xpose.msra.mxu3 %v8779_v18  ;;  %v8815_v8 = vld [vmem:[%s7672_s9 + $0x5d0] sm:$0xff] }
  0xf5   : > { %17959 = vst [vmem:[#allocation30_spill] sm:$0xff] %v8759_v11  ;;  %v8782_v45 = vpop.eup %6855  ;;  %v8789_v49 = vperm.slane %v2407_v22, %v8714_v48  ;;  %v8799_v43 = vmul.f32 0.5, %v2440_v42  ;;  %v2397_v26 = vsel %vm8795_vm13, %v8559_v60, %v8747_v57  ;;  %v2419_v53 = vmul.f32 %v8752_v21, %v8654_v28  ;;  %5050 = vmatpush.xpose.msra.mxu1 %v8572_v36  ;;  %v1345_v42 = vpop.xlane.xlu2 %1344  ;;  %v8827_v22 = vld [vmem:[%s7672_s9 + $0x5d8] sm:$0xff]  ;;  %v17972_v18 = vld [vmem:[#allocation21_spill] sm:$0xff] }
  0xf6   : > { %17960 = vst [vmem:[#allocation31_spill] sm:$0xff] %v8762_v10  ;;  %v8803_v27 = vpop.eup %6857  ;;  %v2470_v55 = vmul.f32 %v8707_v13, %v2469_v34  ;;  %v8812_v50 = vmax.f32 %v1342_v61, 1e-24  ;;  %v2479_v24 = vmul.f32 %v8764_v51, %v8661_v37  ;;  %v8820_v63 = vmax.f32 %v1339_v54, 1e-24  ;;  %5031 = vmatpush.xpose.msra.mxu0 %v8575_v16 }
  0xf7   : > { %17964 = vst [vmem:[#allocation33_spill] sm:$0xff] %v8815_v8  ;;  %v910_v60 = vmul.f32 %v8336_v33, %v8336_v33  ;;  %v911_v38 = vmul.f32 %v8339_v52, %v8339_v52  ;;  %v8829_v57 = vmul.f32 0.5, %v2430_v30  ;;  %v2460_v34 = vmul.f32 %v8717_v5, %v2459_v46  ;;  %5060 = vmatpush.xpose.msra.mxu2 %v8815_v8 }
  0xf8   : > { %17965 = vst [vmem:[#allocation34_spill] sm:$0xff] %v8827_v22  ;;  %6859 = vrsqrt.f32 %v8773_v19  ;;  %v916_v36 = vmul.f32 %v8250_v35, %v8250_v35  ;;  %v2499_v61 = vmul.f32 %v8782_v45, %v8672_v17  ;;  %v2489_v33 = vmul.f32 %v8803_v27, %v8690_v9  ;;  %5080 = vmatpush.xpose.msra.mxu3 %v8827_v22  ;;  %v8867_v22 = vld [vmem:[%s7672_s9 + $0x5c0] sm:$0xff] }
  0xf9   : > { %v8840_v52 = vmax.f32 %v1345_v42, 1e-24  ;;  %v908_v30 = vmul.f32 %v8363_v32, %v8363_v32  ;;  %6861 = vrsqrt.f32 %v8812_v50  ;;  %v909_v35 = vmul.f32 %v8366_v31, %v8366_v31  ;;  %5051 = vmatpush.xpose.msra.mxu1 %v8583_v15  ;;  %v8870_v15 = vld [vmem:[%s7672_s9 + $0x5c8] sm:$0xff] }
  0xfa   : > { %v906_v16 = vmul.f32 %v8586_v4, %v8586_v4  ;;  %v907_v46 = vmul.f32 %v8589_v39, %v8589_v39  ;;  %v8854_v32 = vmul.f32 0.5, %v2470_v55  ;;  %v2480_v54 = vmul.f32 %v8764_v51, %v2479_v24  ;;  %v17966_v39 = vld [vmem:[#allocation11_spill] sm:$0xff]  ;;  %17968 = vst [vmem:[#allocation35_spill] sm:$0xff] %v8870_v15  ;;  %v17969_v55 = vld [vmem:[#allocation20_spill] sm:$0xff] }
  0xfb   : > { %6863 = vrsqrt.f32 %v8820_v63  ;;  %v1496_v25 = vadd.f32 %v911_v38, %v910_v60  ;;  %v8858_v42 = vmul.f32 0.5, %v2460_v34  ;;  %v917_v31 = vmul.f32 %v8253_v12, %v8253_v12  ;;  %17967 = vst [vmem:[#allocation11_spill] sm:$0xff] %v8867_v22  ;;  %5032 = vmatpush.xpose.msra.mxu0 %v17969_v55  ;;  %v17970_v60 = vld [vmem:[#allocation12_spill] sm:$0xff]  ;;  %v17971_v38 = vld [vmem:[#allocation13_spill] sm:$0xff]  ;;  %5061 = vmatpush.xpose.msra.mxu2 %v8867_v22 }
  0xfc   : > { %v914_v4 = vmul.f32 %v8280_v58, %v8280_v58  ;;  %v915_v7 = vmul.f32 %v17966_v39, %v17966_v39  ;;  %v2500_v24 = vmul.f32 %v8782_v45, %v2499_v61  ;;  %6865 = vrsqrt.f32 %v8840_v52  ;;  %5081 = vmatpush.xpose.msra.mxu3 %v8870_v15  ;;  %v8895_v39 = vld [vmem:[%s7672_s9 + $0x5b0] sm:$0xff] }
  0xfd   : > { %v912_v12 = vmul.f32 %v17970_v60, %v17970_v60  ;;  %v913_v58 = vmul.f32 %v17971_v38, %v17971_v38  ;;  %1497 = vadd.xlane.f32.xlu2 %v1496_v25  ;;  %v2490_v55 = vmul.f32 %v8803_v27, %v2489_v33  ;;  %v1493_v8 = vadd.f32 %v909_v35, %v908_v30  ;;  %v1348_v30 = vpop.xlane.xlu0 %1347 }
  0xfe   : > { %v8880_v34 = vpop.eup %6859  ;;  %v1490_v61 = vadd.f32 %v907_v46, %v906_v16  ;;  %5052 = vmatpush.xpose.msra.mxu1 %v17972_v18  ;;  %v8888_v60 = vsel %vm17693_vm11, %v8767_v29, %v5784_v6  ;;  %v8891_v25 = vperm.slane %v2397_v26, %v8755_v59  ;;  %v2420_v38 = vmul.f32 %v8752_v21, %v2419_v53  ;;  %v8902_v6 = vld [vmem:[%s7672_s9 + $0x5b8] sm:$0xff]  ;;  %v1354_v46 = vpop.xlane.xlu2 %1353 }
  0xff   : > { %v2481_v22 = vmul.f32 0.5, %v2480_v54  ;;  %17973 = vst [vmem:[#allocation20_spill] sm:$0xff] %v8895_v39  ;;  %v8897_v33 = vpop.eup %6861  ;;  %vm2474_vm15 = vweird.f32 %v8625_v41  ;;  %vm2464_vm1 = vweird.f32 %v8629_v56  ;;  %1494 = vadd.xlane.f32.xlu1 %v1493_v8  ;;  %v1505_v18 = vadd.f32 %v917_v31, %v916_v36  ;;  %5062 = vmatpush.xpose.msra.mxu2 %v8895_v39  ;;  %v17975_v8 = vld [vmem:[#allocation22_spill] sm:$0xff] }
 0x100   : > { %1491 = vadd.xlane.f32.xlu0 %v1490_v61  ;;  %v1502_v29 = vadd.f32 %v915_v7, %v914_v4  ;;  %17974 = vst [vmem:[#allocation12_spill] sm:$0xff] %v8902_v6  ;;  %vm2434_vm4 = vweird.f32 %v8615_v44  ;;  %vm2435_vm7 = vweird.f32 %v8693_v0  ;;  %v2472_v35 = vsub.f32 1.5, %v8854_v32  ;;  %5033 = vmatpush.xpose.msra.mxu0 %v17975_v8  ;;  %v1351_v4 = vpop.xlane.xlu1 %1350  ;;  %v17976_v32 = vld [vmem:[#allocation23_spill] sm:$0xff] }
 0x101   : > { %v8904_v26 = vpop.eup %6863  ;;  %v2462_v16 = vsub.f32 1.5, %v8858_v42  ;;  %v1499_v54 = vadd.f32 %v913_v58, %v912_v12  ;;  %vm17891_vm3 = vcmask 654912   ;;  %vm2475_vm6 = vweird.f32 %v8707_v13  ;;  %5082 = vmatpush.xpose.msra.mxu3 %v8902_v6  ;;  %v8932_v8 = vld [vmem:[%s7672_s9 + $0x5a0] sm:$0xff] }
 0x102   : > { %v2501_v7 = vmul.f32 0.5, %v2500_v24  ;;  %v2491_v36 = vmul.f32 0.5, %v2490_v55  ;;  %v8914_v31 = vmax.f32 %v1354_v46, 1e-24  ;;  %5053 = vmatpush.xpose.msra.mxu1 %v17976_v32  ;;  %v8918_v42 = vpop.eup %6865  ;;  %v2421_v12 = vmul.f32 0.5, %v2420_v38  ;;  %17977 = vst [vmem:[#allocation13_spill] sm:$0xff] %v8932_v8  ;;  %vm8951_vm5 = vmor %vm2474_vm15, %vm2475_vm6 }
 0x103   : > { %vm2425_vm8 = vweird.f32 %v8752_v21  ;;  %v2449_v58 = vmul.f32 %v8880_v34, %v8773_v19  ;;  %vm2504_vm9 = vweird.f32 %v8672_v17  ;;  %v2482_v24 = vsub.f32 1.5, %v2481_v22  ;;  %v8935_v38 = vld [vmem:[%s7672_s9 + $0x5a8] sm:$0xff]  ;;  %v8937_v32 = vld [vmem:[#allocation2] sm:$0xff]  ;;  %5063 = vmatpush.xpose.msra.mxu2 %v8932_v8  ;;  %v7335_v44 = vld [vmem:[%s7672_s9 + $0x4e0] sm:$0xff] }
 0x104   : > { %vm2494_vm10 = vweird.f32 %v8690_v9  ;;  %v2519_v55 = vmul.f32 %v8897_v33, %v8812_v50  ;;  %v2509_v61 = vmul.f32 %v8904_v26, %v8820_v63  ;;  %v8929_v46 = vmax.f32 %v1348_v30, 1e-24  ;;  %17978 = vst [vmem:[#allocation21_spill] sm:$0xff] %v8935_v38  ;;  %5034 = vmatmul.f32.vlgmr.msra.gmra.mxu0 %v8937_v32  ;;  %v7336_v8 = vld [vmem:[%s7672_s9 + $0x4e8] sm:$0xff] }
 0x105   : > { %17979 = vst [vmem:[#allocation22_spill] sm:$0xff] %v8937_v32  ;;  %vm2424_vm13 = vweird.f32 %v8654_v28  ;;  %v2473_v22 = vmul.f32 %v8707_v13, %v2472_v35  ;;  %v2463_v53 = vmul.f32 %v8717_v5, %v2462_v16  ;;  %vm2465_vm11 = vweird.f32 %v8717_v5  ;;  %1506 = vadd.xlane.f32.xlu2 %v1505_v18  ;;  %5083 = vmatpush.xpose.msra.mxu3 %v8935_v38  ;;  %v8959_v18 = vld [vmem:[#allocation2 + $0x8] sm:$0xff] }
 0x106   : > { %v8944_v6 = vmax.f32 %v1351_v4, 1e-24  ;;  %v2502_v39 = vsub.f32 1.5, %v2501_v7  ;;  %v2492_v15 = vsub.f32 1.5, %v2491_v36  ;;  %v2529_v35 = vmul.f32 %v8918_v42, %v8840_v52  ;;  %17982 = vst [vmem:[#allocation23_spill] sm:$0xff] %v8959_v18  ;;  %5054 = vmatmul.f32.vlgmr.msra.gmra.mxu1 %v8959_v18  ;;  %vm8969_vm6 = vmor %vm2464_vm1, %vm2465_vm11 }
 0x107   : > { %6867 = vrsqrt.f32 %v8914_v31  ;;  %v2422_v41 = vsub.f32 1.5, %v2421_v12  ;;  %v2450_v16 = vmul.f32 %v8880_v34, %v2449_v58  ;;  %v2483_v4 = vmul.f32 %v8764_v51, %v2482_v24  ;;  %1503 = vadd.xlane.f32.xlu1 %v1502_v29  ;;  %v8978_v58 = vld [vmem:[%s7672_s9 + $0x590] sm:$0xff]  ;;  %v8981_v24 = vld [vmem:[%s7672_s9 + $0x598] sm:$0xff] }
 0x108   : > { %vm2485_vm15 = vweird.f32 %v8764_v51  ;;  %vm2505_vm14 = vweird.f32 %v8782_v45  ;;  %v2520_v36 = vmul.f32 %v8897_v33, %v2519_v55  ;;  %v2510_v12 = vmul.f32 %v8904_v26, %v2509_v61  ;;  %1500 = vadd.xlane.f32.xlu0 %v1499_v54  ;;  %5064 = vmatpush.xpose.msra.mxu2 %v8978_v58 }
 0x109   : > { %6869 = vrsqrt.f32 %v8929_v46  ;;  %v2477_v56 = vsel %vm8951_vm5, %v8707_v13, %v2473_v22  ;;  %v2467_v55 = vsel %vm8969_vm6, %v8717_v5, %v2463_v53  ;;  %vm2484_vm1 = vweird.f32 %v8661_v37  ;;  %v9004_v37 = vpop.xlane.xlu0 %1356  ;;  %5084 = vmatpush.xpose.msra.mxu3 %v8981_v24  ;;  %vm9021_vm5 = vmor %vm2504_vm9, %vm2505_vm14 }
 0x10a   : > { %6871 = vrsqrt.f32 %v8944_v6  ;;  %v2503_v29 = vmul.f32 %v8782_v45, %v2502_v39  ;;  %v2493_v54 = vmul.f32 %v8803_v27, %v2492_v15  ;;  %vm2495_vm12 = vweird.f32 %v8803_v27  ;;  %vm8999_vm11 = vmor %vm2484_vm1, %vm2485_vm15 }
 0x10b   : > { %v2530_v5 = vmul.f32 %v8918_v42, %v2529_v35  ;;  %v17987_v53 = vsub.f32 1.5, %v8829_v57  ;;  %v9013_v39 = vmul.f32 %v8752_v21, %v2422_v41  ;;  %v9015_v61 = vmul.f32 0.5, %v2450_v16  ;;  %vm9034_vm15 = vmor %vm2434_vm4, %vm2435_vm7  ;;  %v17992_v41 = vld [vmem:[#allocation19_spill] sm:$0xff] }
 0x10c   : > { %v2487_v57 = vsel %vm8999_vm11, %v8764_v51, %v2483_v4  ;;  %v5818_v17 = vperm.slane %v2477_v56, %v17992_v41  ;;  %v5817_v16 = vperm.slane %v2467_v55, %v8343_v23  ;;  %v2521_v7 = vmul.f32 0.5, %v2520_v36  ;;  %vm9056_vm14 = vmor %vm2494_vm10, %vm2495_vm12  ;;  %v9077_v55 = vpop.xlane.xlu1 %1359  ;;  %v18000_v35 = vld [vmem:[#allocation15_spill] sm:$0xff]  ;;  %v9143_v41 = vld [vmem:[%s7672_s9 + $0x578] sm:$0xff] }
 0x10d   : > { %v9010_v15 = vmul.f32 %v8693_v0, %v17987_v53  ;;  %v9028_v30 = vpop.eup %6867  ;;  %v2511_v53 = vmul.f32 0.5, %v2510_v12  ;;  %v9043_v51 = vsel %vm17891_vm3, %v8891_v25, %v8888_v60  ;;  %v17993_v4 = vsub.f32 1.5, %v8799_v43  ;;  %vm9066_vm4 = vmor %vm2424_vm13, %vm2425_vm8  ;;  %v17998_v25 = vld [vmem:[#allocation16_spill] sm:$0xff]  ;;  %18008 = vst [vmem:[#allocation39_spill] sm:$0xff] %v9143_v41 }
 0x10e   : > { %v918_v38 = vmul.f32 %v7335_v44, %v7335_v44  ;;  %v919_v18 = vmul.f32 %v7336_v8, %v7336_v8  ;;  %v2507_v9 = vsel %vm9021_vm5, %v8782_v45, %v2503_v29  ;;  %v2497_v60 = vsel %vm9056_vm14, %v8803_v27, %v2493_v54 }
 0x10f   : > { %v9048_v13 = vmul.f32 %v8643_v40, %v17993_v4  ;;  %v9060_v12 = vpop.eup %6869  ;;  %v5820_v8 = vperm.slane %v2487_v57, %v17998_v25  ;;  %v2531_v56 = vmul.f32 0.5, %v2530_v5  ;;  %v2437_v4 = vsel %vm9034_vm15, %v8693_v0, %v9010_v15  ;;  %v9095_v57 = vld [vmem:[%s7672_s9 + $0x500] sm:$0xff]  ;;  %v9101_v15 = vld [vmem:[%s7672_s9 + $0x588] sm:$0xff]  ;;  %v9140_v25 = vld [vmem:[%s7672_s9 + $0x570] sm:$0xff] }
 0x110   : > { %v9079_v28 = vpop.eup %6871  ;;  %v2427_v45 = vsel %vm9066_vm4, %v8752_v21, %v9013_v39  ;;  %v2452_v27 = vsub.f32 1.5, %v9015_v61  ;;  %v2559_v29 = vmul.f32 %v9028_v30, %v8914_v31  ;;  %v5819_v54 = vsel %vm17892_vm0, %v5818_v17, %v5817_v16  ;;  %17999 = vst [vmem:[#allocation36_spill] sm:$0xff] %v9095_v57  ;;  %v9098_v0 = vld [vmem:[%s7672_s9 + $0x580] sm:$0xff]  ;;  %v18001_v21 = vld [vmem:[#allocation18_spill] sm:$0xff]  ;;  %v9108_v17 = vpop.xlane.xlu2 %1362  ;;  %v9111_v16 = vld [vmem:[%s7672_s9 + $0x508] sm:$0xff]  ;;  %5085 = vmatpush.xpose.msra.mxu3 %v9101_v15 }
 0x111   : > { %vm2534_vm12 = vweird.f32 %v8840_v52  ;;  %v2522_v5 = vsub.f32 1.5, %v2521_v7  ;;  %v2512_v22 = vsub.f32 1.5, %v2511_v53  ;;  %v5824_v44 = vperm.slane %v2507_v9, %v18000_v35  ;;  %18002 = vst [vmem:[#allocation37_spill] sm:$0xff] %v9111_v16  ;;  %5065 = vmatpush.xpose.msra.mxu2 %v9098_v0  ;;  %v7337_v35 = vld [vmem:[%s7672_s9 + $0x4f0] sm:$0xff] }
 0x112   : > { %v5822_v39 = vperm.slane %v2497_v60, %v18001_v21  ;;  %vm2524_vm7 = vweird.f32 %v8812_v50  ;;  %v2539_v61 = vmul.f32 %v9060_v12, %v8929_v46  ;;  %v5821_v7 = vsel %vm17748_vm2, %v5820_v8, %v5819_v54  ;;  %v9134_v54 = vpop.xlane.xlu0 %1365  ;;  %18007 = vst [vmem:[#allocation38_spill] sm:$0xff] %v9140_v25  ;;  %v9247_v50 = vld [vmem:[%s7672_s9 + $0x550] sm:$0xff] }
 0x113   : > { %v2532_v53 = vsub.f32 1.5, %v2531_v56  ;;  %vm2535_vm8 = vweird.f32 %v8918_v42  ;;  %v2549_v36 = vmul.f32 %v9079_v28, %v8944_v6  ;;  %vm2525_vm9 = vweird.f32 %v8897_v33 }
 0x114   : > { %vm2515_vm10 = vweird.f32 %v8904_v26  ;;  %v2560_v43 = vmul.f32 %v9028_v30, %v2559_v29  ;;  %v922_v9 = vmul.f32 %v9095_v57, %v9095_v57  ;;  %vm18003_vm13 = vweird.f32 %v8643_v40  ;;  %vm9149_vm1 = vmor %vm2534_vm12, %vm2535_vm8  ;;  %5086 = vmatpush.xpose.msra.mxu3 %v9143_v41 }
 0x115   : > { %vm18004_vm6 = vweird.f32 %v8578_v1  ;;  %v2523_v8 = vmul.f32 %v8897_v33, %v2522_v5  ;;  %v2513_v56 = vmul.f32 %v8904_v26, %v2512_v22  ;;  %v923_v29 = vmul.f32 %v9111_v16, %v9111_v16  ;;  %v7338_v22 = vld [vmem:[%s7672_s9 + $0x4f8] sm:$0xff]  ;;  %5066 = vmatpush.xpose.msra.mxu2 %v9140_v25  ;;  %vm9166_vm14 = vmor %vm2524_vm7, %vm2525_vm9 }
 0x116   : > { %vm9128_vm11 = vmor %vm18004_vm6, %vm18003_vm13  ;;  %v920_v21 = vmul.f32 %v7337_v35, %v7337_v35  ;;  %vm2514_vm5 = vweird.f32 %v8820_v63  ;;  %v2540_v5 = vmul.f32 %v9060_v12, %v2539_v61  ;;  %v921_v32 = vmul.f32 %v7338_v22, %v7338_v22 }
 0x117   : > { %v1508_v16 = vadd.f32 %v919_v18, %v918_v38  ;;  %vm18011_vm15 = vcmask 261312   ;;  %v9160_v57 = vmul.f32 %v8918_v42, %v2532_v53  ;;  %v2550_v52 = vmul.f32 %v9079_v28, %v2549_v36  ;;  %vm9180_vm4 = vmor %vm2514_vm5, %vm2515_vm10 }
 0x118   : > { %v5823_v35 = vsel %vm18011_vm15, %v5822_v39, %v5821_v7  ;;  %v1514_v38 = vadd.f32 %v923_v29, %v922_v9  ;;  %v9176_v39 = vperm.slane %v2437_v4, %v8759_v11  ;;  %v2561_v61 = vmul.f32 0.5, %v2560_v43  ;;  %v9194_v9 = vpop.xlane.xlu1 %1368  ;;  %v9211_v43 = vld [vmem:[%s7672_s9 + $0x520] sm:$0xff]  ;;  %v9228_v29 = vld [vmem:[%s7672_s9 + $0x510] sm:$0xff] }
 0x119   : > { %v1511_v7 = vadd.f32 %v921_v32, %v920_v21  ;;  %1509 = vadd.xlane.f32.xlu0 %v1508_v16  ;;  %v9185_v53 = vperm.slane %v2427_v45, %v8762_v10  ;;  %vm2455_vm12 = vweird.f32 %v8880_v34  ;;  %v2527_v4 = vsel %vm9166_vm14, %v8897_v33, %v2523_v8  ;;  %v9197_v32 = vld [vmem:[%s7672_s9 + $0x530] sm:$0xff]  ;;  %v9200_v21 = vld [vmem:[%s7672_s9 + $0x560] sm:$0xff]  ;;  %v9214_v8 = vld [vmem:[%s7672_s9 + $0x568] sm:$0xff] }
 0x11a   : > { %v2517_v36 = vsel %vm9180_vm4, %v8904_v26, %v2513_v56  ;;  %1515 = vadd.xlane.f32.xlu2 %v1514_v38  ;;  %v9203_v45 = vmul.f32 %v8880_v34, %v2452_v27  ;;  %vm18016_vm7 = vcmask 326912   ;;  %vm2564_vm8 = vweird.f32 %v8914_v31  ;;  %v9208_v26 = vld [vmem:[%s7672_s9 + $0x538] sm:$0xff]  ;;  %5067 = vmatpush.xpose.msra.mxu2 %v9200_v21  ;;  %v9225_v56 = vld [vmem:[%s7672_s9 + $0x528] sm:$0xff] }
 0x11b   : > { %v5825_v16 = vsel %vm18016_vm7, %v5824_v44, %v5823_v35  ;;  %v2541_v33 = vmul.f32 0.5, %v2540_v5  ;;  %1512 = vadd.xlane.f32.xlu1 %v1511_v7  ;;  %vm2454_vm9 = vweird.f32 %v8773_v19  ;;  %v2537_v27 = vsel %vm9149_vm1, %v8918_v42, %v9160_v57  ;;  %v9231_v5 = vld [vmem:[%s7672_s9 + $0x518] sm:$0xff]  ;;  %5087 = vmatpush.xpose.msra.mxu3 %v9214_v8  ;;  %v1372_v57 = vpop.xlane.xlu2 %1371  ;;  %v471_v19 = vld [vmem:[%s7672_s9 + $0x6e8] sm:$0xff] }
 0x11c   : > { %vm2565_vm10 = vweird.f32 %v9028_v30  ;;  %v2551_v44 = vmul.f32 0.5, %v2550_v52  ;;  %vm2554_vm13 = vweird.f32 %v8944_v6  ;;  %v5828_v22 = vperm.slane %v2527_v4, %v8549_v47 }
 0x11d   : > { %v5826_v1 = vperm.slane %v2517_v36, %v8383_v3  ;;  %v2562_v42 = vsub.f32 1.5, %v2561_v61  ;;  %vm2544_vm6 = vweird.f32 %v8929_v46  ;;  %vm17770_vm1 = vcmask 720512   ;;  %v9256_v36 = vld [vmem:[%s7672_s9 + $0x558] sm:$0xff]  ;;  %vm9288_vm7 = vmor %vm2564_vm8, %vm2565_vm10 }
 0x11e   : > { %v9238_v35 = vmax.f32 %v9108_v17, 1e-24  ;;  %v928_v63 = vmul.f32 %v9197_v32, %v9197_v32  ;;  %v929_v52 = vmul.f32 %v9208_v26, %v9208_v26  ;;  %v926_v38 = vmul.f32 %v9211_v43, %v9211_v43  ;;  %5068 = vmatpush.xpose.msra.mxu2 %v9247_v50  ;;  %vm9305_vm8 = vmor %vm2454_vm9, %vm2455_vm12 }
 0x11f   : > { %v2542_v7 = vsub.f32 1.5, %v2541_v33  ;;  %v927_v61 = vmul.f32 %v9225_v56, %v9225_v56  ;;  %v924_v4 = vmul.f32 %v9228_v29, %v9228_v29  ;;  %v925_v17 = vmul.f32 %v9231_v5, %v9231_v5  ;;  %v1375_v33 = vpop.xlane.xlu0 %1374  ;;  %5088 = vmatpush.xpose.msra.mxu3 %v9256_v36 }
 0x120   : > { %v2552_v18 = vsub.f32 1.5, %v2551_v44  ;;  %v5796_v47 = vsel %vm17770_vm1, %v8789_v49, %v9043_v51  ;;  %vm17720_vm5 = vcmask 786112   ;;  %v1523_v3 = vadd.f32 %v929_v52, %v928_v63  ;;  %v4875_v52 = vpop.f32.mrf.mxu0 }
 0x121   : > { %vm17716_vm15 = vcmask 851712   ;;  %v9264_v10 = vmax.f32 %v9077_v55, 1e-24  ;;  %v1520_v11 = vadd.f32 %v927_v61, %v926_v38  ;;  %v1517_v41 = vadd.f32 %v925_v17, %v924_v4  ;;  %v472_v17 = vld [vmem:[%s7672_s9 + $0x6f0] sm:$0xff] }
 0x122   : > { %vm18017_vm14 = vcmask 392512   ;;  %vm2545_vm4 = vweird.f32 %v9060_v12  ;;  %6873 = vrsqrt.f32 %v9238_v35  ;;  %v9270_v49 = vmax.f32 %v9004_v37, 1e-24  ;;  %1524 = vadd.xlane.f32.xlu2 %v1523_v3  ;;  %5098 = vmatpush.xpose.msrb.mxu0 %v472_v17 }
 0x123   : > { %v5827_v25 = vsel %vm18017_vm14, %v5826_v1, %v5825_v16  ;;  %v2563_v51 = vmul.f32 %v9028_v30, %v2562_v42  ;;  %v2543_v44 = vmul.f32 %v9060_v12, %v2542_v7  ;;  %v5800_v55 = vsel %vm17720_vm5, %v8786_v62, %v5796_v47  ;;  %1521 = vadd.xlane.f32.xlu1 %v1520_v11  ;;  %v9279_v16 = vld [vmem:[%s7672_s9 + $0x540] sm:$0xff]  ;;  %v9282_v1 = vld [vmem:[%s7672_s9 + $0x548] sm:$0xff]  ;;  %v1378_v62 = vpop.xlane.xlu1 %1377  ;;  %vm9321_vm12 = vmor %vm2544_vm6, %vm2545_vm4 }
 0x124   : > { %v9276_v63 = vmax.f32 %v1375_v33, 1e-24  ;;  %1518 = vadd.xlane.f32.xlu0 %v1517_v41  ;;  %v2553_v37 = vmul.f32 %v9079_v28, %v2552_v18  ;;  %vm2555_vm14 = vweird.f32 %v9079_v28  ;;  %v5804_v47 = vsel %vm17716_vm15, %v9185_v53, %v5800_v55  ;;  %5069 = vmatpush.xpose.msra.mxu2 %v9279_v16 }
 0x125   : > { %v9297_v11 = vadd.s32 4294967184, %v8343_v23  ;;  %5089 = vmatpush.xpose.msra.mxu3 %v9282_v1  ;;  %vm17719_vm10 = vcmask 917312   ;;  %v9310_v41 = vadd.s32 4294967176, %v8343_v23  ;;  %6875 = vrsqrt.f32 %v9264_v10  ;;  %vm9337_vm9 = vmor %vm2554_vm13, %vm2555_vm14 }
 0x126   : > { %v9313_v18 = vmax.f32 %v1372_v57, 1e-24  ;;  %v5830_v53 = vperm.slane %v2537_v27, %v8536_v2  ;;  %vm18024_vm15 = vcmask 458112   ;;  %v2457_v38 = vsel %vm9305_vm8, %v8880_v34, %v9203_v45  ;;  %v1381_v34 = vpop.xlane.xlu2 %1380 }
 0x127   : > { %18020 = vst [vmem:[#allocation40_spill] sm:$0xff] %v9297_v11  ;;  %v5829_v42 = vsel %vm18024_vm15, %v5828_v22, %v5827_v25  ;;  %6877 = vrsqrt.f32 %v9270_v49  ;;  %v2567_v25 = vsel %vm9288_vm7, %v9028_v30, %v2563_v51  ;;  %v2547_v27 = vsel %vm9321_vm12, %v9060_v12, %v2543_v44  ;;  %v4895_v22 = vpop.f32.mrf.mxu1 }
 0x128   : > { %18023 = vst [vmem:[#allocation41_spill] sm:$0xff] %v9310_v41  ;;  %v9344_v45 = vmax.f32 %v1378_v62, 1e-24  ;;  %6879 = vrsqrt.f32 %v9276_v63  ;;  %v9347_v30 = vpop.eup %6873  ;;  %v2557_v6 = vsel %vm9337_vm9, %v9079_v28, %v2553_v37  ;;  %v5808_v57 = vsel %vm17719_vm10, %v9176_v39, %v5804_v47  ;;  %5070 = vmatpush.xpose.msra.mxu2 %v9197_v32 }
 0x129   : > { %v18029_v12 = vsel %vm9128_vm11, %v8643_v40, %v9048_v13  ;;  %5090 = vmatpush.xpose.msra.mxu3 %v9208_v26  ;;  %vm17718_vm13 = vcmask 982912   ;;  %v5814_v61 = vperm.slane %v2457_v38, %v9310_v41  ;;  %6881 = vrsqrt.f32 %v9313_v18  ;;  %v473_v40 = vld [vmem:[%s7672_s9 + $0x6f8] sm:$0xff] }
 0x12a   : > { %v5810_v7 = vperm.slane %v18029_v12, %v9297_v11  ;;  %v9364_v28 = vmax.f32 %v1381_v34, 1e-24  ;;  %vm18030_vm6 = vcmask 523712   ;;  %v5832_v4 = vperm.slane %v2547_v27, %v8529_v20  ;;  %5118 = vmatpush.xpose.msrb.mxu1 %v473_v40 }
 0x12b   : > { %v5831_v39 = vsel %vm18030_vm6, %v5830_v53, %v5829_v42  ;;  %v4896_v60 = vadd.f32 %v4895_v22, %v4875_v52  ;;  %vm17717_vm15 = vcmask 1048512   ;;  %v9370_v13 = vpop.eup %6875  ;;  %v9373_v32 = vperm.slane %v2567_v25, %v8714_v48  ;;  %v470_v42 = vld [vmem:[%s7672_s9 + $0x6e0] sm:$0xff] }
 0x12c   : > { %v2589_v26 = vmul.f32 %v9347_v30, %v9238_v35  ;;  %v9378_v33 = vmax.f32 %v9194_v9, 1e-24  ;;  %6883 = vrsqrt.f32 %v9344_v45  ;;  %v9384_v44 = vperm.slane %v2557_v6, %v8755_v59  ;;  %5071 = vmatpush.xpose.msra.mxu2 %v9211_v43  ;;  %5099 = vmatpush.xpose.msrb.mxu0 %v470_v42  ;;  %v18033_v6 = vld [vmem:[#allocation32_spill] sm:$0xff] }
 0x12d   : > { %v9381_v51 = vpop.eup %6877  ;;  %v5812_v55 = vsel %vm17718_vm13, %v5810_v7, %v5808_v57  ;;  %v934_v3 = vmul.f32 %v9200_v21, %v9200_v21  ;;  %v935_v9 = vmul.f32 %v9214_v8, %v9214_v8  ;;  %6885 = vrsqrt.f32 %v9364_v28  ;;  %5091 = vmatpush.xpose.msra.mxu3 %v9225_v56  ;;  %v1387_v7 = vpop.xlane.xlu1 %1386 }
 0x12e   : > { %v9392_v37 = vpop.eup %6879  ;;  %v5816_v47 = vsel %vm17717_vm15, %v5814_v61, %v5812_v55  ;;  %v932_v62 = vmul.f32 %v9247_v50, %v9247_v50  ;;  %v933_v31 = vmul.f32 %v9256_v36, %v9256_v36  ;;  %vm18031_vm11 = vcmask 589312   ;;  %v1384_v36 = vpop.xlane.xlu0 %1383  ;;  %5119 = vmatpush.xpose.msrb.mxu1 %v471_v19 }
 0x12f   : > { %v9402_v21 = vsel %vm18031_vm11, %v5832_v4, %v5831_v39  ;;  %v9404_v8 = vmul.f32 %v5816_v47, %v4896_v60  ;;  %v2579_v43 = vmul.f32 %v9370_v13, %v9264_v10  ;;  %v9409_v53 = vmax.f32 %v9134_v54, 1e-24  ;;  %v9413_v52 = vpop.eup %6881  ;;  %v1390_v12 = vpop.xlane.xlu2 %1389  ;;  %v9452_v39 = vld [vmem:[%s7672_s9 + $0x6d8] sm:$0xff] }
 0x130   : > { %v2590_v50 = vmul.f32 %v9347_v30, %v2589_v26  ;;  %v2569_v56 = vmul.f32 %v9381_v51, %v9270_v49  ;;  %6887 = vrsqrt.f32 %v9378_v33  ;;  %v1532_v38 = vadd.f32 %v935_v9, %v934_v3  ;;  %5072 = vmatpush.xpose.msra.mxu2 %v9228_v29  ;;  %18035 = vst [vmem:[#allocation43_spill] sm:$0xff] %v9452_v39  ;;  %v18036_v3 = vld [vmem:[#allocation36_spill] sm:$0xff] }
 0x131   : > { %18032 = vst [vmem:[#allocation42_spill] sm:$0xff] %v9404_v8  ;;  %v2629_v25 = vmul.f32 %v9392_v37, %v9276_v63  ;;  %v1529_v54 = vadd.f32 %v933_v31, %v932_v62  ;;  %v930_v46 = vmul.f32 %v9279_v16, %v9279_v16  ;;  %v931_v27 = vmul.f32 %v9282_v1, %v9282_v1  ;;  %v18038_v62 = vld [vmem:[#allocation39_spill] sm:$0xff] }
 0x132   : > { %v9426_v22 = vpop.eup %6883  ;;  %v9430_v34 = vmul.f32 %v8776_v14, %v8776_v14  ;;  %v9434_v57 = vmul.f32 %v18033_v6, %v18033_v6  ;;  %v940_v16 = vmul.f32 %v8978_v58, %v8978_v58  ;;  %v941_v1 = vmul.f32 %v8981_v24, %v8981_v24  ;;  %1533 = vadd.xlane.f32.xlu2 %v1532_v38  ;;  %v9449_v58 = vld [vmem:[%s7672_s9 + $0x6d0] sm:$0xff] }
 0x133   : > { %vm2594_vm4 = vweird.f32 %v9238_v35  ;;  %vm2595_vm7 = vweird.f32 %v9347_v30  ;;  %v2580_v29 = vmul.f32 %v9370_v13, %v2579_v43  ;;  %v2619_v14 = vmul.f32 %v9413_v52, %v9313_v18  ;;  %1530 = vadd.xlane.f32.xlu1 %v1529_v54  ;;  %5092 = vmatpush.xpose.msra.mxu3 %v9231_v5  ;;  %18034 = vst [vmem:[#allocation32_spill] sm:$0xff] %v9449_v58  ;;  %v9454_v24 = vpop.eup %6885 }
 0x134   : > { %v9445_v61 = vmax.f32 %v1384_v36, 1e-24  ;;  %6889 = vrsqrt.f32 %v9409_v53  ;;  %v938_v4 = vmul.f32 %v9098_v0, %v9098_v0  ;;  %v939_v60 = vmul.f32 %v9101_v15, %v9101_v15  ;;  %5100 = vmatpush.xpose.msrb.mxu0 %v9449_v58  ;;  %5120 = vmatpush.xpose.msrb.mxu1 %v9452_v39  ;;  %v18037_v15 = vld [vmem:[#allocation38_spill] sm:$0xff]  ;;  %v18040_v36 = vld [vmem:[#allocation11_spill] sm:$0xff]  ;;  %vm9527_vm13 = vmor %vm2594_vm4, %vm2595_vm7 }
 0x135   : > { %v1526_v17 = vadd.f32 %v931_v27, %v930_v46  ;;  %v2591_v5 = vmul.f32 0.5, %v2590_v50  ;;  %v2570_v40 = vmul.f32 %v9381_v51, %v2569_v56  ;;  %v2639_v26 = vmul.f32 %v9426_v22, %v9344_v45  ;;  %5073 = vmatpush.xpose.msra.mxu2 %v18036_v3  ;;  %v18039_v50 = vld [vmem:[#allocation37_spill] sm:$0xff]  ;;  %v18041_v46 = vld [vmem:[#allocation22_spill] sm:$0xff] }
 0x136   : > { %v2630_v55 = vmul.f32 %v9392_v37, %v2629_v25  ;;  %v9468_v9 = vpop.eup %6887  ;;  %v9470_v0 = vmax.f32 %v1387_v7, 1e-24  ;;  %v936_v47 = vmul.f32 %v18037_v15, %v18037_v15  ;;  %v937_v31 = vmul.f32 %v18038_v62, %v18038_v62  ;;  %v18047_v15 = vld [vmem:[#allocation12_spill] sm:$0xff] }
 0x137   : > { %1527 = vadd.xlane.f32.xlu0 %v1526_v17  ;;  %v1541_v43 = vadd.f32 %v941_v1, %v940_v16  ;;  %v2581_v42 = vmul.f32 0.5, %v2580_v29  ;;  %vm2584_vm14 = vweird.f32 %v9264_v10  ;;  %vm2585_vm8 = vweird.f32 %v9370_v13  ;;  %5093 = vmatpush.xpose.msra.mxu3 %v18039_v50  ;;  %v9493_v29 = vld [vmem:[%s7672_s9 + $0x6c0] sm:$0xff] }
 0x138   : > { %v2649_v19 = vmul.f32 %v9454_v24, %v9364_v28  ;;  %6891 = vrsqrt.f32 %v9445_v61  ;;  %v2620_v56 = vmul.f32 %v9413_v52, %v2619_v14  ;;  %v946_v38 = vmul.f32 %v18040_v36, %v18040_v36  ;;  %5074 = vmatmul.f32.vlgmr.msra.gmra.mxu2 %v18041_v46  ;;  %18042 = vst [vmem:[#allocation36_spill] sm:$0xff] %v9493_v29  ;;  %v9496_v14 = vld [vmem:[%s7672_s9 + $0x6c8] sm:$0xff]  ;;  %vm9559_vm4 = vmor %vm2584_vm14, %vm2585_vm8 }
 0x139   : > { %v9485_v25 = vmax.f32 %v1390_v12, 1e-24  ;;  %v1538_v54 = vadd.f32 %v939_v60, %v938_v4  ;;  %v2592_v27 = vsub.f32 1.5, %v2591_v5  ;;  %v2571_v6 = vmul.f32 0.5, %v2570_v40  ;;  %18043 = vst [vmem:[#allocation38_spill] sm:$0xff] %v9496_v14  ;;  %v18044_v4 = vld [vmem:[#allocation35_spill] sm:$0xff]  ;;  %5101 = vmatpush.xpose.msrb.mxu0 %v9493_v29  ;;  %5121 = vmatpush.xpose.msrb.mxu1 %v9496_v14 }
 0x13a   : > { %vm2624_vm12 = vweird.f32 %v9313_v18  ;;  %v2609_v16 = vmul.f32 %v9468_v9, %v9378_v33  ;;  %v2640_v1 = vmul.f32 %v9426_v22, %v2639_v26  ;;  %v9498_v7 = vpop.eup %6889  ;;  %vm2574_vm9 = vweird.f32 %v9270_v49  ;;  %1542 = vadd.xlane.f32.xlu2 %v1541_v43  ;;  %v18045_v5 = vld [vmem:[#allocation23_spill] sm:$0xff]  ;;  %v18046_v26 = vld [vmem:[#allocation20_spill] sm:$0xff] }
 0x13b   : > { %v2631_v12 = vmul.f32 0.5, %v2630_v55  ;;  %v947_v60 = vmul.f32 %v18044_v4, %v18044_v4  ;;  %6893 = vrsqrt.f32 %v9470_v0  ;;  %v1535_v17 = vadd.f32 %v937_v31, %v936_v47  ;;  %5094 = vmatmul.f32.vlgmr.msra.gmra.mxu3 %v18045_v5  ;;  %1539 = vadd.xlane.f32.xlu1 %v1538_v54  ;;  %v1399_v47 = vpop.xlane.xlu2 %1398  ;;  %v1393_v54 = vpop.xlane.xlu0 %1392  ;;  %v18051_v5 = vld [vmem:[#allocation21_spill] sm:$0xff] }
 0x13c   : > { %vm2575_vm6 = vweird.f32 %v9381_v51  ;;  %v2650_v40 = vmul.f32 %v9454_v24, %v2649_v19  ;;  %v944_v3 = vmul.f32 %v18046_v26, %v18046_v26  ;;  %v945_v62 = vmul.f32 %v18047_v15, %v18047_v15 }
 0x13d   : > { %v2582_v55 = vsub.f32 1.5, %v2581_v42  ;;  %v2621_v50 = vmul.f32 0.5, %v2620_v56  ;;  %vm2634_vm11 = vweird.f32 %v9276_v63  ;;  %6895 = vrsqrt.f32 %v9485_v25  ;;  %v1396_v56 = vpop.xlane.xlu1 %1395  ;;  %vm9569_vm7 = vmor %vm2574_vm9, %vm2575_vm6 }
 0x13e   : > { %v9515_v31 = vpop.eup %6891  ;;  %v9518_v43 = vmul.f32 %v9347_v30, %v2592_v27  ;;  %v2572_v19 = vsub.f32 1.5, %v2571_v6  ;;  %v2599_v36 = vmul.f32 %v9498_v7, %v9409_v53  ;;  %vm2654_vm15 = vweird.f32 %v9364_v28  ;;  %v18050_v6 = vld [vmem:[#allocation13_spill] sm:$0xff] }
 0x13f   : > { %v2641_v42 = vmul.f32 0.5, %v2640_v1  ;;  %vm2644_vm10 = vweird.f32 %v9344_v45  ;;  %v2632_v27 = vsub.f32 1.5, %v2631_v12  ;;  %v942_v4 = vmul.f32 %v18050_v6, %v18050_v6  ;;  %1536 = vadd.xlane.f32.xlu0 %v1535_v17  ;;  %v18070_v45 = vld [vmem:[#allocation27_spill] sm:$0xff] }
 0x140   : > { %v943_v26 = vmul.f32 %v18051_v5, %v18051_v5  ;;  %v1550_v1 = vadd.f32 %v947_v60, %v946_v38  ;;  %vm2625_vm5 = vweird.f32 %v9413_v52  ;;  %v2610_v15 = vmul.f32 %v9468_v9, %v2609_v16 }
 0x141   : > { %v2651_v35 = vmul.f32 0.5, %v2650_v40  ;;  %v1547_v8 = vadd.f32 %v945_v62, %v944_v3  ;;  %v9538_v41 = vpop.eup %6893  ;;  %v2583_v14 = vmul.f32 %v9370_v13, %v2582_v55  ;;  %v2622_v29 = vsub.f32 1.5, %v2621_v50  ;;  %vm9582_vm14 = vmor %vm2624_vm12, %vm2625_vm5  ;;  %v18064_v3 = vld [vmem:[#allocation30_spill] sm:$0xff] }
 0x142   : > { %v2659_v12 = vmul.f32 %v9515_v31, %v9445_v61  ;;  %v9543_v6 = vmax.f32 %v1393_v54, 1e-24  ;;  %v2597_v38 = vsel %vm9527_vm13, %v9347_v30, %v9518_v43  ;;  %v2573_v60 = vmul.f32 %v9381_v51, %v2572_v19  ;;  %1551 = vadd.xlane.f32.xlu2 %v1550_v1 }
 0x143   : > { %v2600_v16 = vmul.f32 %v9498_v7, %v2599_v36  ;;  %v9551_v17 = vmax.f32 %v1396_v56, 1e-24  ;;  %v9553_v40 = vpop.eup %6895  ;;  %v2642_v62 = vsub.f32 1.5, %v2641_v42  ;;  %v2633_v55 = vmul.f32 %v9392_v37, %v2632_v27  ;;  %1548 = vadd.xlane.f32.xlu1 %v1547_v8 }
 0x144   : > { %vm2635_vm13 = vweird.f32 %v9392_v37  ;;  %v1544_v30 = vadd.f32 %v943_v26, %v942_v4  ;;  %v2611_v10 = vmul.f32 0.5, %v2610_v15  ;;  %v2652_v43 = vsub.f32 1.5, %v2651_v35  ;;  %v18060_v26 = vld [vmem:[#allocation33_spill] sm:$0xff]  ;;  %v18061_v15 = vld [vmem:[#allocation34_spill] sm:$0xff] }
 0x145   : > { %v2669_v19 = vmul.f32 %v9538_v41, %v9470_v0  ;;  %v9575_v36 = vmax.f32 %v1399_v47, 1e-24  ;;  %v2623_v42 = vmul.f32 %v9413_v52, %v2622_v29  ;;  %vm2655_vm8 = vweird.f32 %v9454_v24  ;;  %vm9596_vm9 = vmor %vm2634_vm11, %vm2635_vm13 }
 0x146   : > { %v2660_v56 = vmul.f32 %v9515_v31, %v2659_v12  ;;  %6897 = vrsqrt.f32 %v9543_v6  ;;  %v2587_v8 = vsel %vm9559_vm4, %v9370_v13, %v2583_v14  ;;  %v2601_v47 = vmul.f32 0.5, %v2600_v16  ;;  %v1408_v14 = vpop.xlane.xlu2 %1407  ;;  %vm9625_vm12 = vmor %vm2654_vm15, %vm2655_vm8  ;;  %v9632_v16 = vld [vmem:[%s7672_s9 + $0x6b0] sm:$0xff] }
 0x147   : > { %v2679_v29 = vmul.f32 %v9553_v40, %v9485_v25  ;;  %6899 = vrsqrt.f32 %v9551_v17  ;;  %v2577_v54 = vsel %vm9569_vm7, %v9381_v51, %v2573_v60  ;;  %v2643_v13 = vmul.f32 %v9426_v22, %v2642_v62  ;;  %1545 = vadd.xlane.f32.xlu0 %v1544_v30  ;;  %v1405_v51 = vpop.xlane.xlu1 %1404  ;;  %v9629_v60 = vpop.xlane.xlu0 %1401  ;;  %5102 = vmatpush.xpose.msrb.mxu0 %v9632_v16 }
 0x148   : > { %vm2645_vm5 = vweird.f32 %v9426_v22  ;;  %v2637_v63 = vsel %vm9596_vm9, %v9392_v37, %v2633_v55  ;;  %v2612_v46 = vsub.f32 1.5, %v2611_v10  ;;  %v2653_v27 = vmul.f32 %v9454_v24, %v2652_v43  ;;  %v18068_v55 = vld [vmem:[#allocation19_spill] sm:$0xff] }
 0x149   : > { %v2670_v4 = vmul.f32 %v9538_v41, %v2669_v19  ;;  %6901 = vrsqrt.f32 %v9575_v36  ;;  %v2627_v5 = vsel %vm9582_vm14, %v9413_v52, %v2623_v42  ;;  %v948_v1 = vmul.f32 %v18060_v26, %v18060_v26  ;;  %v9635_v52 = vld [vmem:[%s7672_s9 + $0x6b8] sm:$0xff]  ;;  %vm9644_vm6 = vmor %vm2644_vm10, %vm2645_vm5  ;;  %v18069_v10 = vld [vmem:[#allocation31_spill] sm:$0xff] }
 0x14a   : > { %v949_v37 = vmul.f32 %v18061_v15, %v18061_v15  ;;  %v2661_v12 = vmul.f32 0.5, %v2660_v56  ;;  %v9638_v62 = vperm.slane %v2597_v38, %v18064_v3  ;;  %v5849_v30 = vperm.slane %v2637_v63, %v18068_v55  ;;  %5122 = vmatpush.xpose.msrb.mxu1 %v9635_v52  ;;  %v7339_v63 = vld [vmem:[%s7672_s9 + $0x5f0] sm:$0xff]  ;;  %v7340_v15 = vld [vmem:[%s7672_s9 + $0x5f8] sm:$0xff] }
 0x14b   : > { %v2680_v50 = vmul.f32 %v9553_v40, %v2679_v29  ;;  %v9655_v43 = vperm.slane %v2587_v8, %v18069_v10  ;;  %v9658_v19 = vperm.slane %v2577_v54, %v18070_v45  ;;  %v2602_v42 = vsub.f32 1.5, %v2601_v47 }
 0x14c   : > { %18065 = vst [vmem:[#allocation39_spill] sm:$0xff] %v9638_v62  ;;  %v9652_v38 = vpop.eup %6897  ;;  %vm2605_vm10 = vweird.f32 %v9498_v7  ;;  %v2647_v49 = vsel %vm9644_vm6, %v9426_v22, %v2643_v13  ;;  %v5848_v18 = vperm.slane %v2627_v5, %v8343_v23  ;;  %v9668_v29 = vmul.f32 %v9468_v9, %v2612_v46  ;;  %v9679_v13 = vld [vmem:[%s7672_s9 + $0x6a0] sm:$0xff]  ;;  %v9682_v5 = vld [vmem:[%s7672_s9 + $0x6a8] sm:$0xff] }
 0x14d   : > { %v9664_v56 = vpop.eup %6899  ;;  %v2657_v8 = vsel %vm9625_vm12, %v9454_v24, %v2653_v27  ;;  %v2671_v54 = vmul.f32 0.5, %v2670_v4  ;;  %vm2604_vm15 = vweird.f32 %v9409_v53  ;;  %v2662_v47 = vsub.f32 1.5, %v2661_v12  ;;  %18071 = vst [vmem:[#allocation37_spill] sm:$0xff] %v9679_v13  ;;  %v18073_v62 = vld [vmem:[#allocation16_spill] sm:$0xff]  ;;  %5103 = vmatpush.xpose.msrb.mxu0 %v9679_v13 }
 0x14e   : > { %v952_v26 = vmul.f32 %v7339_v63, %v7339_v63  ;;  %v953_v28 = vmul.f32 %v7340_v15, %v7340_v15  ;;  %v1556_v22 = vadd.f32 %v9434_v57, %v9430_v34  ;;  %18072 = vst [vmem:[#allocation11_spill] sm:$0xff] %v9682_v5  ;;  %v5851_v35 = vperm.slane %v2647_v49, %v18073_v62  ;;  %v9761_v62 = vld [vmem:[%s7672_s9 + $0x608] sm:$0xff]  ;;  %vm9775_vm6 = vmor %vm2604_vm15, %vm2605_vm10 }
 0x14f   : > { %v9684_v46 = vpop.eup %6901  ;;  %v5850_v24 = vsel %vm17892_vm0, %v5849_v30, %v5848_v18  ;;  %v2681_v27 = vmul.f32 0.5, %v2680_v50  ;;  %v2689_v4 = vmul.f32 %v9652_v38, %v9543_v6  ;;  %5123 = vmatpush.xpose.msrb.mxu1 %v9682_v5  ;;  %v2699_v34 = vmul.f32 %v9664_v56, %v9551_v17  ;;  %v18074_v30 = vld [vmem:[#allocation18_spill] sm:$0xff]  ;;  %18081 = vst [vmem:[#allocation12_spill] sm:$0xff] %v9761_v62 }
 0x150   : > { %v9694_v57 = vmax.f32 %v1408_v14, 1e-24  ;;  %v1559_v12 = vadd.f32 %v953_v28, %v952_v26  ;;  %1557 = vadd.xlane.f32.xlu1 %v1556_v22  ;;  %v1553_v63 = vadd.f32 %v949_v37, %v948_v1  ;;  %v9697_v49 = vmul.f32 %v9498_v7, %v2602_v42  ;;  %v1417_v1 = vpop.xlane.xlu2 %1416  ;;  %v9710_v37 = vld [vmem:[%s7672_s9 + $0x620] sm:$0xff] }
 0x151   : > { %v9700_v50 = vperm.slane %v2657_v8, %v18074_v30  ;;  %vm2684_vm11 = vweird.f32 %v9485_v25  ;;  %v2672_v18 = vsub.f32 1.5, %v2671_v54  ;;  %v2663_v15 = vmul.f32 %v9515_v31, %v2662_v47  ;;  %v9716_v54 = vpop.xlane.xlu1 %1413  ;;  %v9722_v47 = vld [vmem:[%s7672_s9 + $0x698] sm:$0xff] }
 0x152   : > { %vm2665_vm4 = vweird.f32 %v9515_v31  ;;  %v2709_v14 = vmul.f32 %v9684_v46, %v9575_v36  ;;  %v9707_v26 = vmax.f32 %v1405_v51, 1e-24  ;;  %1560 = vadd.xlane.f32.xlu2 %v1559_v12  ;;  %1554 = vadd.xlane.f32.xlu0 %v1553_v63  ;;  %v5852_v42 = vsel %vm17748_vm2, %v5851_v35, %v5850_v24  ;;  %v9719_v51 = vld [vmem:[%s7672_s9 + $0x690] sm:$0xff]  ;;  %18076 = vst [vmem:[#allocation35_spill] sm:$0xff] %v9722_v47  ;;  %v9727_v35 = vpop.xlane.xlu0 %1410  ;;  %v9730_v24 = vld [vmem:[%s7672_s9 + $0x628] sm:$0xff]  ;;  %v9736_v12 = vld [vmem:[%s7672_s9 + $0x618] sm:$0xff] }
 0x153   : > { %vm2674_vm13 = vweird.f32 %v9470_v0  ;;  %vm2664_vm7 = vweird.f32 %v9445_v61  ;;  %v2690_v8 = vmul.f32 %v9652_v38, %v2689_v4  ;;  %18075 = vst [vmem:[#allocation22_spill] sm:$0xff] %v9719_v51  ;;  %v2682_v28 = vsub.f32 1.5, %v2681_v27  ;;  %v9733_v4 = vld [vmem:[%s7672_s9 + $0x610] sm:$0xff]  ;;  %5104 = vmatpush.xpose.msrb.mxu0 %v9719_v51  ;;  %5124 = vmatpush.xpose.msrb.mxu1 %v9722_v47  ;;  %v18088_v47 = vld [vmem:[#allocation15_spill] sm:$0xff] }
 0x154   : > { %vm2685_vm14 = vweird.f32 %v9553_v40  ;;  %v2700_v22 = vmul.f32 %v9664_v56, %v2699_v34  ;;  %6903 = vrsqrt.f32 %v9694_v57  ;;  %18077 = vst [vmem:[#allocation23_spill] sm:$0xff] %v9736_v12  ;;  %vm2614_vm8 = vweird.f32 %v9378_v33  ;;  %vm9748_vm12 = vmor %vm2664_vm7, %vm2665_vm4 }
 0x155   : > { %vm2615_vm9 = vweird.f32 %v9468_v9  ;;  %v2673_v27 = vmul.f32 %v9538_v41, %v2672_v18  ;;  %vm2675_vm5 = vweird.f32 %v9538_v41  ;;  %v5835_v63 = vsel %vm17891_vm3, %v9384_v44, %v9402_v21  ;;  %v9758_v18 = vld [vmem:[%s7672_s9 + $0x600] sm:$0xff]  ;;  %vm9814_vm15 = vmor %vm2684_vm11, %vm2685_vm14  ;;  %v9980_v44 = vld [vmem:[%s7672_s9 + $0x7d8] sm:$0xff] }
 0x156   : > { %v958_v30 = vmul.f32 %v9710_v37, %v9710_v37  ;;  %18080 = vst [vmem:[#allocation20_spill] sm:$0xff] %v9758_v18  ;;  %v2667_v61 = vsel %vm9748_vm12, %v9515_v31, %v2663_v15  ;;  %v2710_v3 = vmul.f32 %v9684_v46, %v2709_v14  ;;  %6905 = vrsqrt.f32 %v9707_v26  ;;  %v9789_v14 = vld [vmem:[%s7672_s9 + $0x688] sm:$0xff]  ;;  %vm9796_vm10 = vmor %vm2674_vm13, %vm2675_vm5 }
 0x157   : > { %v9769_v23 = vmax.f32 %v9629_v60, 1e-24  ;;  %v2691_v21 = vmul.f32 0.5, %v2690_v8  ;;  %v959_v34 = vmul.f32 %v9730_v24, %v9730_v24  ;;  %v956_v31 = vmul.f32 %v9733_v4, %v9733_v4  ;;  %v9786_v60 = vld [vmem:[%s7672_s9 + $0x680] sm:$0xff]  ;;  %5125 = vmatpush.xpose.msrb.mxu1 %v9789_v14  ;;  %vm9878_vm12 = vmor %vm2614_vm8, %vm2615_vm9  ;;  %18110 = vst [vmem:[#allocation44_spill] sm:$0xff] %v9980_v44 }
 0x158   : > { %v957_v15 = vmul.f32 %v9736_v12, %v9736_v12  ;;  %v2683_v53 = vmul.f32 %v9553_v40, %v2682_v28  ;;  %v2701_v55 = vmul.f32 0.5, %v2700_v22  ;;  %v954_v39 = vmul.f32 %v9758_v18, %v9758_v18  ;;  %5105 = vmatpush.xpose.msrb.mxu0 %v9786_v60  ;;  %v4935_v28 = vpop.f32.mrf.mxu3 }
 0x159   : > { %v955_v58 = vmul.f32 %v9761_v62, %v9761_v62  ;;  %v2677_v22 = vsel %vm9796_vm10, %v9538_v41, %v2673_v27  ;;  %v1568_v48 = vadd.f32 %v959_v34, %v958_v30  ;;  %v5855_v51 = vperm.slane %v2667_v61, %v18088_v47  ;;  %v9832_v41 = vld [vmem:[%s7672_s9 + $0x670] sm:$0xff]  ;;  %v505_v61 = vld [vmem:[%s7672_s9 + $0x7f8] sm:$0xff] }
 0x15a   : > { %v1565_v62 = vadd.f32 %v957_v15, %v956_v31  ;;  %v9821_v18 = vpop.eup %6903  ;;  %v2711_v0 = vmul.f32 0.5, %v2710_v3  ;;  %6907 = vrsqrt.f32 %v9769_v23  ;;  %vm18089_vm11 = vcmask 261312   ;;  %v1420_v27 = vpop.xlane.xlu0 %1419  ;;  %5158 = vmatpush.xpose.msrb.mxu3 %v505_v61  ;;  %v9888_v15 = vld [vmem:[%s7672_s9 + $0x668] sm:$0xff]  ;;  %v453_v61 = vld [vmem:[%s7672_s9 + $0x658] sm:$0xff] }
 0x15b   : > { %v1562_v25 = vadd.f32 %v955_v58, %v954_v39  ;;  %v5854_v5 = vsel %vm18089_vm11, %v9700_v50, %v5852_v42  ;;  %v5837_v13 = vsel %vm17770_vm1, %v9373_v32, %v5835_v63  ;;  %v2692_v12 = vsub.f32 1.5, %v2691_v21  ;;  %1569 = vadd.xlane.f32.xlu2 %v1568_v48  ;;  %v1426_v39 = vpop.xlane.xlu2 %1425  ;;  %v9845_v48 = vld [vmem:[%s7672_s9 + $0x678] sm:$0xff]  ;;  %v504_v63 = vld [vmem:[%s7672_s9 + $0x7f0] sm:$0xff] }
 0x15c   : > { %v9829_v8 = vmax.f32 %v1417_v1, 1e-24  ;;  %1566 = vadd.xlane.f32.xlu1 %v1565_v62  ;;  %v9834_v30 = vpop.eup %6905  ;;  %v2687_v3 = vsel %vm9814_vm15, %v9553_v40, %v2683_v53  ;;  %vm18090_vm4 = vcmask 786112   ;;  %vm2714_vm13 = vweird.f32 %v9575_v36  ;;  %5106 = vmatpush.xpose.msrb.mxu0 %v9832_v41  ;;  %v18091_v62 = vld [vmem:[#allocation17_spill] sm:$0xff]  ;;  %v18095_v53 = vld [vmem:[#allocation26_spill] sm:$0xff]  ;;  %v450_v36 = vld [vmem:[%s7672_s9 + $0x640] sm:$0xff] }
 0x15d   : > { %v9841_v58 = vsel %vm18090_vm4, %v9658_v19, %v5837_v13  ;;  %v2702_v32 = vsub.f32 1.5, %v2701_v55  ;;  %1563 = vadd.xlane.f32.xlu0 %v1562_v25  ;;  %v5857_v50 = vperm.slane %v2677_v22, %v18091_v62  ;;  %vm2715_vm7 = vweird.f32 %v9684_v46  ;;  %v1423_v55 = vpop.xlane.xlu1 %1422  ;;  %5126 = vmatpush.xpose.msrb.mxu1 %v9845_v48 }
 0x15e   : > { %v2739_v40 = vmul.f32 %v9821_v18, %v9694_v57  ;;  %v9853_v19 = vmax.f32 %v9716_v54, 1e-24  ;;  %vm18092_vm14 = vcmask 326912   ;;  %v2712_v1 = vsub.f32 1.5, %v2711_v0  ;;  %5138 = vmatpush.xpose.msrb.mxu2 %v504_v63  ;;  %v4915_v0 = vpop.f32.mrf.mxu2  ;;  %vm9896_vm8 = vmor %vm2714_vm13, %vm2715_vm7 }
 0x15f   : > { %v5856_v13 = vsel %vm18092_vm14, %v5855_v51, %v5854_v5  ;;  %vm2695_vm5 = vweird.f32 %v9652_v38  ;;  %v9859_v42 = vmax.f32 %v9727_v35, 1e-24  ;;  %v2693_v21 = vmul.f32 %v9652_v38, %v2692_v12  ;;  %v9870_v5 = vld [vmem:[%s7672_s9 + $0x660] sm:$0xff] }
 0x160   : > { %v2729_v54 = vmul.f32 %v9834_v30, %v9707_v26  ;;  %6909 = vrsqrt.f32 %v9829_v8  ;;  %v9867_v34 = vmax.f32 %v1426_v39, 1e-24  ;;  %v9872_v51 = vpop.eup %6907  ;;  %v2703_v12 = vmul.f32 %v9664_v56, %v2702_v32  ;;  %5107 = vmatpush.xpose.msrb.mxu0 %v9870_v5  ;;  %v9918_v39 = vld [vmem:[%s7672_s9 + $0x7e0] sm:$0xff] }
 0x161   : > { %vm2704_vm10 = vweird.f32 %v9551_v17  ;;  %vm2705_vm15 = vweird.f32 %v9664_v56  ;;  %v9885_v31 = vmax.f32 %v1423_v55, 1e-24  ;;  %v5859_v33 = vperm.slane %v2687_v3, %v18095_v53  ;;  %5127 = vmatpush.xpose.msrb.mxu1 %v9888_v15  ;;  %18101 = vst [vmem:[#allocation13_spill] sm:$0xff] %v9918_v39  ;;  %v18163_v35 = vld [vmem:[#allocation39_spill] sm:$0xff] }
 0x162   : > { %vm2694_vm9 = vweird.f32 %v9543_v6  ;;  %v2740_v25 = vmul.f32 %v9821_v18, %v2739_v40  ;;  %6911 = vrsqrt.f32 %v9853_v19  ;;  %vm18098_vm11 = vcmask 392512   ;;  %v503_v40 = vld [vmem:[%s7672_s9 + $0x7e8] sm:$0xff]  ;;  %vm9925_vm13 = vmor %vm2704_vm10, %vm2705_vm15  ;;  %5139 = vmatpush.xpose.msrb.mxu2 %v9918_v39 }
 0x163   : > { %v5858_v3 = vsel %vm18098_vm11, %v5857_v50, %v5856_v13  ;;  %v9906_v32 = vmul.f32 %v9684_v46, %v2712_v1  ;;  %vm9910_vm4 = vmor %vm2694_vm9, %vm2695_vm5  ;;  %6913 = vrsqrt.f32 %v9859_v42  ;;  %v9915_v6 = vmax.f32 %v1420_v27, 1e-24  ;;  %v452_v27 = vld [vmem:[%s7672_s9 + $0x650] sm:$0xff]  ;;  %5159 = vmatpush.xpose.msrb.mxu3 %v503_v40  ;;  %v451_v40 = vld [vmem:[%s7672_s9 + $0x648] sm:$0xff] }
 0x164   : > { %v2697_v55 = vsel %vm9910_vm4, %v9652_v38, %v2693_v21  ;;  %v2730_v13 = vmul.f32 %v9834_v30, %v2729_v54  ;;  %v2719_v1 = vmul.f32 %v9872_v51, %v9769_v23  ;;  %6915 = vrsqrt.f32 %v9867_v34  ;;  %5108 = vmatpush.xpose.msrb.mxu0 %v452_v27  ;;  %v448_v50 = vld [vmem:[%s7672_s9 + $0x630] sm:$0xff] }
 0x165   : > { %v9942_v38 = vadd.f32 %v4935_v28, %v4915_v0  ;;  %v2707_v63 = vsel %vm9925_vm13, %v9664_v56, %v2703_v12  ;;  %6917 = vrsqrt.f32 %v9885_v31  ;;  %vm18105_vm7 = vcmask 851712   ;;  %5128 = vmatpush.xpose.msrb.mxu1 %v453_v61  ;;  %v1432_v53 = vpop.xlane.xlu1 %1431 }
 0x166   : > { %v9949_v21 = vpop.eup %6909  ;;  %v9954_v54 = vsel %vm18105_vm7, %v9655_v43, %v9841_v58  ;;  %v18106_v56 = vsel %vm9775_vm6, %v9498_v7, %v9697_v49  ;;  %vm18108_vm14 = vcmask 458112   ;;  %v2741_v28 = vmul.f32 0.5, %v2740_v25  ;;  %v449_v7 = vld [vmem:[%s7672_s9 + $0x638] sm:$0xff]  ;;  %v9977_v49 = vld [vmem:[%s7672_s9 + $0x7d0] sm:$0xff] }
 0x167   : > { %18104 = vst [vmem:[#allocation21_spill] sm:$0xff] %v9942_v38  ;;  %v9962_v12 = vperm.slane %v18106_v56, %v9297_v11  ;;  %v5860_v0 = vsel %vm18108_vm14, %v5859_v33, %v5858_v3  ;;  %v2717_v43 = vsel %vm9896_vm8, %v9684_v46, %v9906_v32  ;;  %v5861_v58 = vperm.slane %v2697_v55, %v8536_v2  ;;  %v1429_v55 = vpop.xlane.xlu0 %1428 }
 0x168   : > { %vm2744_vm5 = vweird.f32 %v9694_v57  ;;  %6919 = vrsqrt.f32 %v9915_v6  ;;  %18109 = vst [vmem:[#allocation34_spill] sm:$0xff] %v9977_v49  ;;  %v9982_v33 = vpop.eup %6911  ;;  %v5863_v25 = vperm.slane %v2707_v63, %v8529_v20  ;;  %v2731_v3 = vmul.f32 0.5, %v2730_v13  ;;  %5140 = vmatpush.xpose.msrb.mxu2 %v9977_v49  ;;  %5160 = vmatpush.xpose.msrb.mxu3 %v9980_v44  ;;  %v1435_v13 = vpop.xlane.xlu2 %1434 }
 0x169   : > { %18107 = vst [vmem:[#allocation33_spill] sm:$0xff] %v9962_v12  ;;  %v2720_v56 = vmul.f32 %v9872_v51, %v2719_v1  ;;  %v964_v22 = vmul.f32 %v452_v27, %v452_v27  ;;  %v9987_v46 = vpop.eup %6913  ;;  %v2769_v32 = vmul.f32 %v9949_v21, %v9829_v8  ;;  %v965_v17 = vmul.f32 %v453_v61, %v453_v61 }
 0x16a   : > { %v962_v38 = vmul.f32 %v450_v36, %v450_v36  ;;  %v963_v39 = vmul.f32 %v451_v40, %v451_v40  ;;  %v9992_v2 = vpop.eup %6915  ;;  %v2742_v63 = vsub.f32 1.5, %v2741_v28  ;;  %vm2745_vm6 = vweird.f32 %v9821_v18  ;;  %5109 = vmatpush.xpose.msrb.mxu0 %v450_v36  ;;  %5129 = vmatpush.xpose.msrb.mxu1 %v451_v40 }
 0x16b   : > { %v960_v1 = vmul.f32 %v448_v50, %v448_v50  ;;  %v961_v27 = vmul.f32 %v449_v7, %v449_v7  ;;  %v9995_v49 = vpop.eup %6917  ;;  %vm18111_vm10 = vcmask 523712   ;;  %v9998_v61 = vmax.f32 %v1435_v13, 1e-24  ;;  %vm10032_vm8 = vmor %vm2744_vm5, %vm2745_vm6 }
 0x16c   : > { %v5862_v20 = vsel %vm18111_vm10, %v5861_v58, %v5860_v0  ;;  %v1577_v44 = vadd.f32 %v965_v17, %v964_v22  ;;  %v1574_v12 = vadd.f32 %v963_v39, %v962_v38  ;;  %v2732_v47 = vsub.f32 1.5, %v2731_v3  ;;  %v10011_v39 = vld [vmem:[%s7672_s9 + $0x7c0] sm:$0xff]  ;;  %v10014_v38 = vld [vmem:[%s7672_s9 + $0x7c8] sm:$0xff] }
 0x16d   : > { %v2721_v28 = vmul.f32 0.5, %v2720_v56  ;;  %v2759_v62 = vmul.f32 %v9982_v33, %v9853_v19  ;;  %v10002_v11 = vmax.f32 %v1429_v55, 1e-24  ;;  %vm2734_vm15 = vweird.f32 %v9707_v26  ;;  %18112 = vst [vmem:[#allocation45_spill] sm:$0xff] %v10011_v39  ;;  %5141 = vmatpush.xpose.msrb.mxu2 %v10011_v39  ;;  %5161 = vmatpush.xpose.msrb.mxu3 %v10014_v38 }
 0x16e   : > { %v10004_v36 = vpop.eup %6919  ;;  %v2770_v0 = vmul.f32 %v9949_v21, %v2769_v32  ;;  %v2749_v40 = vmul.f32 %v9987_v46, %v9859_v42  ;;  %1578 = vadd.xlane.f32.xlu2 %v1577_v44  ;;  %1575 = vadd.xlane.f32.xlu1 %v1574_v12  ;;  %v1571_v17 = vadd.f32 %v961_v27, %v960_v1  ;;  %v10021_v22 = vmax.f32 %v1432_v53, 1e-24  ;;  %v10052_v1 = vld [vmem:[%s7672_s9 + $0x7b0] sm:$0xff] }
 0x16f   : > { %18113 = vst [vmem:[#allocation46_spill] sm:$0xff] %v10014_v38  ;;  %v2743_v58 = vmul.f32 %v9821_v18, %v2742_v63  ;;  %v2799_v3 = vmul.f32 %v9992_v2, %v9867_v34  ;;  %v2789_v56 = vmul.f32 %v9995_v49, %v9885_v31  ;;  %v10026_v12 = vperm.slane %v2717_v43, %v8755_v59 }
 0x170   : > { %vm2735_vm9 = vweird.f32 %v9834_v30  ;;  %vm2724_vm11 = vweird.f32 %v9769_v23  ;;  %vm2725_vm4 = vweird.f32 %v9872_v51  ;;  %6921 = vrsqrt.f32 %v9998_v61  ;;  %1572 = vadd.xlane.f32.xlu0 %v1571_v17  ;;  %5110 = vmatpush.xpose.msrb.mxu0 %v448_v50  ;;  %18117 = vst [vmem:[#allocation47_spill] sm:$0xff] %v10052_v1  ;;  %v10055_v50 = vld [vmem:[%s7672_s9 + $0x7b8] sm:$0xff]  ;;  %v1444_v44 = vpop.xlane.xlu2 %1443 }
 0x171   : > { %v2733_v53 = vmul.f32 %v9834_v30, %v2732_v47  ;;  %v2722_v43 = vsub.f32 1.5, %v2721_v28  ;;  %v2779_v57 = vmul.f32 %v10004_v36, %v9915_v6  ;;  %6923 = vrsqrt.f32 %v10002_v11  ;;  %5130 = vmatpush.xpose.msrb.mxu1 %v449_v7  ;;  %18118 = vst [vmem:[#allocation48_spill] sm:$0xff] %v10055_v50  ;;  %5142 = vmatpush.xpose.msrb.mxu2 %v10052_v1  ;;  %vm10069_vm7 = vmor %vm2734_vm15, %vm2735_vm9 }
 0x172   : > { %vm18116_vm13 = vcmask 589312   ;;  %v10047_v55 = vmul.f32 0.5, %v2770_v0  ;;  %v2760_v63 = vmul.f32 %v9982_v33, %v2759_v62  ;;  %v2750_v13 = vmul.f32 %v9987_v46, %v2749_v40  ;;  %5162 = vmatpush.xpose.msrb.mxu3 %v10055_v50  ;;  %vm10115_vm15 = vmor %vm2724_vm11, %vm2725_vm4 }
 0x173   : > { %v10045_v32 = vsel %vm18116_vm13, %v5863_v25, %v5862_v20  ;;  %v2747_v47 = vsel %vm10032_vm8, %v9821_v18, %v2743_v58  ;;  %v2800_v27 = vmul.f32 %v9992_v2, %v2799_v3  ;;  %v2790_v7 = vmul.f32 %v9995_v49, %v2789_v56 }
 0x174   : > { %6925 = vrsqrt.f32 %v10021_v22  ;;  %v970_v18 = vmul.f32 %v9786_v60, %v9786_v60  ;;  %v971_v62 = vmul.f32 %v9789_v14, %v9789_v14  ;;  %v968_v25 = vmul.f32 %v9832_v41, %v9832_v41  ;;  %5111 = vmatpush.xpose.msrb.mxu0 %v9710_v37  ;;  %v1438_v37 = vpop.xlane.xlu0 %1437 }
 0x175   : > { %v969_v28 = vmul.f32 %v9845_v48, %v9845_v48  ;;  %v2737_v26 = vsel %vm10069_vm7, %v9834_v30, %v2733_v53  ;;  %v2723_v0 = vmul.f32 %v9872_v51, %v2722_v43  ;;  %v2780_v40 = vmul.f32 %v10004_v36, %v2779_v57  ;;  %5131 = vmatpush.xpose.msrb.mxu1 %v9730_v24  ;;  %v1441_v48 = vpop.xlane.xlu1 %1440 }
 0x176   : > { %v966_v60 = vmul.f32 %v9870_v5, %v9870_v5  ;;  %v10090_v14 = vpop.eup %6921  ;;  %v2751_v41 = vmul.f32 0.5, %v2750_v13  ;;  %vm2755_vm14 = vweird.f32 %v9987_v46  ;;  %v1586_v17 = vadd.f32 %v971_v62, %v970_v18  ;;  %v18123_v18 = vld [vmem:[#allocation23_spill] sm:$0xff] }
 0x177   : > { %v1583_v58 = vadd.f32 %v969_v28, %v968_v25  ;;  %v967_v30 = vmul.f32 %v9888_v15, %v9888_v15  ;;  %v10095_v3 = vpop.eup %6923  ;;  %v10098_v56 = vperm.slane %v2747_v47, %v18069_v10  ;;  %v2772_v5 = vsub.f32 1.5, %v10047_v55 }
 0x178   : > { %v10101_v24 = vmul.f32 0.5, %v2760_v63  ;;  %vm2804_vm5 = vweird.f32 %v9867_v34  ;;  %v10105_v53 = vperm.slane %v2737_v26, %v18070_v45  ;;  %vm2754_vm6 = vweird.f32 %v9859_v42  ;;  %1587 = vadd.xlane.f32.xlu2 %v1586_v17  ;;  %5112 = vmatpush.xpose.msrb.mxu0 %v9733_v4  ;;  %v1453_v55 = vpop.xlane.xlu2 %1452 }
 0x179   : > { %v2801_v43 = vmul.f32 0.5, %v2800_v27  ;;  %v2791_v57 = vmul.f32 0.5, %v2790_v7  ;;  %vm2794_vm10 = vweird.f32 %v9885_v31  ;;  %1584 = vadd.xlane.f32.xlu1 %v1583_v58  ;;  %v1580_v15 = vadd.f32 %v967_v30, %v966_v60  ;;  %5132 = vmatpush.xpose.msrb.mxu1 %v18123_v18  ;;  %v18128_v18 = vld [vmem:[#allocation20_spill] sm:$0xff] }
 0x17a   : > { %v10109_v13 = vpop.eup %6925  ;;  %v2781_v47 = vmul.f32 0.5, %v2780_v40  ;;  %v10119_v20 = vmax.f32 %v1438_v37, 1e-24  ;;  %v976_v27 = vmul.f32 %v9632_v16, %v9632_v16  ;;  %v977_v7 = vmul.f32 %v9635_v52, %v9635_v52  ;;  %v18124_v16 = vld [vmem:[#allocation37_spill] sm:$0xff]  ;;  %v18125_v52 = vld [vmem:[#allocation11_spill] sm:$0xff]  ;;  %v18126_v40 = vld [vmem:[#allocation22_spill] sm:$0xff] }
 0x17b   : > { %v2727_v23 = vsel %vm10115_vm15, %v9872_v51, %v2723_v0  ;;  %v2752_v62 = vsub.f32 1.5, %v2751_v41  ;;  %v2829_v25 = vmul.f32 %v10090_v14, %v9998_v61  ;;  %v2809_v28 = vmul.f32 %v10095_v3, %v10002_v11  ;;  %1581 = vadd.xlane.f32.xlu0 %v1580_v15  ;;  %v18127_v37 = vld [vmem:[#allocation35_spill] sm:$0xff]  ;;  %vm10191_vm15 = vmor %vm2754_vm6, %vm2755_vm14 }
 0x17c   : > { %v974_v26 = vmul.f32 %v18124_v16, %v18124_v16  ;;  %v975_v4 = vmul.f32 %v18125_v52, %v18125_v52  ;;  %v972_v60 = vmul.f32 %v18126_v40, %v18126_v40  ;;  %v973_v51 = vmul.f32 %v18127_v37, %v18127_v37  ;;  %5113 = vmatpush.xpose.msrb.mxu0 %v18128_v18  ;;  %v18129_v16 = vld [vmem:[#allocation12_spill] sm:$0xff] }
 0x17d   : > { %v2762_v0 = vsub.f32 1.5, %v10101_v24  ;;  %v2792_v41 = vsub.f32 1.5, %v2791_v57  ;;  %v2819_v17 = vmul.f32 %v10109_v13, %v10021_v22  ;;  %v10145_v58 = vmax.f32 %v1441_v48, 1e-24  ;;  %5133 = vmatpush.xpose.msrb.mxu1 %v18129_v16  ;;  %v18130_v52 = vld [vmem:[#allocation28_spill] sm:$0xff]  ;;  %v10159_v57 = vld [vmem:[%s7672_s9 + $0x7a0] sm:$0xff]  ;;  %v10177_v37 = vpop.xlane.xlu1 %1449 }
 0x17e   : > { %v2802_v30 = vsub.f32 1.5, %v2801_v43  ;;  %v2782_v15 = vsub.f32 1.5, %v2781_v47  ;;  %6927 = vrsqrt.f32 %v10119_v20  ;;  %v1595_v63 = vadd.f32 %v977_v7, %v976_v27  ;;  %v10162_v43 = vld [vmem:[%s7672_s9 + $0x7a8] sm:$0xff]  ;;  %5143 = vmatpush.xpose.msrb.mxu2 %v10159_v57 }
 0x17f   : > { %v10151_v40 = vperm.slane %v2727_v23, %v18130_v52  ;;  %v10154_v24 = vmul.f32 %v9987_v46, %v2752_v62  ;;  %vm2805_vm8 = vweird.f32 %v9992_v2  ;;  %v2810_v48 = vmul.f32 %v10095_v3, %v2809_v28  ;;  %5163 = vmatpush.xpose.msrb.mxu3 %v10162_v43  ;;  %v7344_v16 = vld [vmem:[%s7672_s9 + $0x6e8] sm:$0xff] }
 0x180   : > { %vm2764_vm9 = vweird.f32 %v9853_v19  ;;  %vm2765_vm11 = vweird.f32 %v9982_v33  ;;  %vm2795_vm4 = vweird.f32 %v9995_v49  ;;  %v2830_v47 = vmul.f32 %v10090_v14, %v2829_v25  ;;  %v1447_v25 = vpop.xlane.xlu0 %1446  ;;  %1596 = vadd.xlane.f32.xlu2 %v1595_v63  ;;  %vm10214_vm14 = vmor %vm2804_vm5, %vm2805_vm8 }
 0x181   : > { %v1592_v27 = vadd.f32 %v975_v4, %v974_v26  ;;  %v1589_v7 = vadd.f32 %v973_v51, %v972_v60  ;;  %vm2774_vm13 = vweird.f32 %v9829_v8  ;;  %vm2775_vm7 = vweird.f32 %v9949_v21  ;;  %v10179_v26 = vld [vmem:[#allocation2] sm:$0xff]  ;;  %v18154_v8 = vld [vmem:[#allocation16_spill] sm:$0xff] }
 0x182   : > { %v2793_v23 = vmul.f32 %v9995_v49, %v2792_v41  ;;  %v2820_v62 = vmul.f32 %v10109_v13, %v2819_v17  ;;  %v10174_v28 = vmax.f32 %v1444_v44, 1e-24  ;;  %6929 = vrsqrt.f32 %v10145_v58  ;;  %18131 = vst [vmem:[#allocation23_spill] sm:$0xff] %v10179_v26  ;;  %5114 = vmatmul.f32.vlgmr.msrb.gmra.mxu0 %v10179_v26  ;;  %v10584_v26 = vld [vmem:[%s7672_s9 + $0x758] sm:$0xff] }
 0x183   : > { %v10185_v4 = vmul.f32 %v9949_v21, %v2772_v5  ;;  %v10196_v60 = vmul.f32 %v9992_v2, %v2802_v30  ;;  %v2783_v51 = vmul.f32 %v10004_v36, %v2782_v15  ;;  %vm2785_vm2 = vweird.f32 %v10004_v36  ;;  %1593 = vadd.xlane.f32.xlu1 %v1592_v27  ;;  %v10200_v5 = vld [vmem:[#allocation2 + $0x8] sm:$0xff]  ;;  %1590 = vadd.xlane.f32.xlu0 %v1589_v7  ;;  %v10220_v15 = vld [vmem:[%s7672_s9 + $0x790] sm:$0xff]  ;;  %v18141_v27 = vld [vmem:[#allocation32_spill] sm:$0xff] }
 0x184   : > { %18134 = vst [vmem:[#allocation37_spill] sm:$0xff] %v10200_v5  ;;  %5134 = vmatmul.f32.vlgmr.msrb.gmra.mxu1 %v10200_v5  ;;  %v10204_v42 = vmul.f32 %v9982_v33, %v2762_v0  ;;  %v2757_v41 = vsel %vm10191_vm15, %v9987_v46, %v10154_v24  ;;  %vm2784_vm6 = vweird.f32 %v9915_v6  ;;  %v2811_v30 = vmul.f32 0.5, %v2810_v48  ;;  %v10223_v0 = vld [vmem:[%s7672_s9 + $0x798] sm:$0xff]  ;;  %v10225_v63 = vpop.eup %6927  ;;  %vm10231_vm15 = vmor %vm2794_vm10, %vm2795_vm4  ;;  %v7343_v46 = vld [vmem:[%s7672_s9 + $0x6e0] sm:$0xff]  ;;  %5144 = vmatpush.xpose.msrb.mxu2 %v10220_v15 }
 0x185   : > { %18137 = vst [vmem:[#allocation11_spill] sm:$0xff] %v10220_v15  ;;  %v982_v18 = vmul.f32 %v7343_v46, %v7343_v46  ;;  %v983_v24 = vmul.f32 %v7344_v16, %v7344_v16  ;;  %v2831_v48 = vmul.f32 0.5, %v2830_v47  ;;  %v980_v7 = vmul.f32 %v18141_v27, %v18141_v27  ;;  %5164 = vmatpush.xpose.msrb.mxu3 %v10223_v0  ;;  %vm10248_vm5 = vmor %vm2784_vm6, %vm2785_vm2  ;;  %v18144_v46 = vld [vmem:[#allocation43_spill] sm:$0xff]  ;;  %v18145_v6 = vld [vmem:[#allocation36_spill] sm:$0xff] }
 0x186   : > { %18138 = vst [vmem:[#allocation22_spill] sm:$0xff] %v10223_v0  ;;  %v2797_v31 = vsel %vm10231_vm15, %v9995_v49, %v2793_v23  ;;  %v2821_v47 = vmul.f32 0.5, %v2820_v62  ;;  %v981_v16 = vmul.f32 %v18144_v46, %v18144_v46  ;;  %6931 = vrsqrt.f32 %v10174_v28  ;;  %v18146_v46 = vld [vmem:[#allocation38_spill] sm:$0xff]  ;;  %vm10292_vm4 = vmor %vm2764_vm9, %vm2765_vm11 }
 0x187   : > { %v2807_v34 = vsel %vm10214_vm14, %v9992_v2, %v10196_v60  ;;  %v2787_v49 = vsel %vm10248_vm5, %v10004_v36, %v2783_v51  ;;  %vm2834_vm2 = vweird.f32 %v9998_v61  ;;  %v978_v23 = vmul.f32 %v18145_v6, %v18145_v6  ;;  %v18147_v2 = vld [vmem:[#allocation19_spill] sm:$0xff]  ;;  %v18148_v51 = vld [vmem:[#allocation14_spill] sm:$0xff]  ;;  %vm10305_vm14 = vmor %vm2774_vm13, %vm2775_vm7 }
 0x188   : > { %v10265_v62 = vpop.eup %6929  ;;  %v2812_v27 = vsub.f32 1.5, %v2811_v30  ;;  %v979_v10 = vmul.f32 %v18146_v46, %v18146_v46  ;;  %v2839_v52 = vmul.f32 %v10225_v63, %v10119_v20  ;;  %v10271_v17 = vmax.f32 %v1453_v55, 1e-24 }
 0x189   : > { %v5880_v60 = vperm.slane %v2797_v31, %v18147_v2  ;;  %v2832_v44 = vsub.f32 1.5, %v2831_v48  ;;  %vm2835_vm10 = vweird.f32 %v10090_v14  ;;  %v5866_v36 = vsel %vm17891_vm3, %v10026_v12, %v10045_v32  ;;  %v18170_v12 = vld [vmem:[#allocation18_spill] sm:$0xff] }
 0x18a   : > { %v5879_v6 = vperm.slane %v2787_v49, %v18148_v51  ;;  %v2822_v30 = vsub.f32 1.5, %v2821_v47  ;;  %vm2815_vm8 = vweird.f32 %v10095_v3  ;;  %v5868_v46 = vsel %vm17770_vm1, %v10151_v40, %v5866_v36  ;;  %v10299_v47 = vpop.xlane.xlu0 %1455  ;;  %vm10323_vm9 = vmor %vm2834_vm2, %vm2835_vm10  ;;  %v7345_v51 = vld [vmem:[%s7672_s9 + $0x6f0] sm:$0xff] }
 0x18b   : > { %v2849_v55 = vmul.f32 %v10265_v62, %v10145_v58  ;;  %v10284_v50 = vmax.f32 %v1447_v25, 1e-24  ;;  %v1604_v48 = vadd.f32 %v983_v24, %v982_v18  ;;  %v1601_v31 = vadd.f32 %v981_v16, %v980_v7  ;;  %v1459_v25 = vpop.xlane.xlu1 %1458 }
 0x18c   : > { %v10286_v2 = vpop.eup %6931  ;;  %v2813_v32 = vmul.f32 %v10095_v3, %v2812_v27  ;;  %v2840_v40 = vmul.f32 %v10225_v63, %v2839_v52  ;;  %6933 = vrsqrt.f32 %v10271_v17  ;;  %v1598_v18 = vadd.f32 %v979_v10, %v978_v23  ;;  %v18153_v52 = vld [vmem:[#allocation30_spill] sm:$0xff]  ;;  %v1462_v10 = vpop.xlane.xlu2 %1461 }
 0x18d   : > { %v2767_v24 = vsel %vm10292_vm4, %v9982_v33, %v10204_v42  ;;  %v5873_v7 = vperm.slane %v2757_v41, %v18153_v52  ;;  %v2833_v16 = vmul.f32 %v10090_v14, %v2832_v44  ;;  %v10316_v49 = vmax.f32 %v10177_v37, 1e-24  ;;  %1605 = vadd.xlane.f32.xlu2 %v1604_v48  ;;  %1602 = vadd.xlane.f32.xlu1 %v1601_v31  ;;  %v18160_v44 = vld [vmem:[#allocation41_spill] sm:$0xff]  ;;  %v10382_v48 = vld [vmem:[%s7672_s9 + $0x718] sm:$0xff] }
 0x18e   : > { %v5882_v23 = vperm.slane %v2807_v34, %v18154_v8  ;;  %vm2824_vm11 = vweird.f32 %v10021_v22  ;;  %vm2814_vm13 = vweird.f32 %v10002_v11  ;;  %vm18157_vm7 = vcmask 786112   ;;  %1599 = vadd.xlane.f32.xlu0 %v1598_v18 }
 0x18f   : > { %v5870_v33 = vsel %vm18157_vm7, %v10105_v53, %v5868_v46  ;;  %vm2825_vm6 = vweird.f32 %v10109_v13  ;;  %vm10334_vm15 = vmor %vm2814_vm13, %vm2815_vm8  ;;  %v2859_v61 = vmul.f32 %v10286_v2, %v10174_v28  ;;  %v2850_v42 = vmul.f32 %v10265_v62, %v2849_v55 }
 0x190   : > { %6935 = vrsqrt.f32 %v10284_v50  ;;  %v5881_v11 = vsel %vm17892_vm0, %v5880_v60, %v5879_v6  ;;  %v2823_v53 = vmul.f32 %v10109_v13, %v2822_v30  ;;  %v2817_v41 = vsel %vm10334_vm15, %v10095_v3, %v2813_v32  ;;  %vm10388_vm10 = vmor %vm2824_vm11, %vm2825_vm6 }
 0x191   : > { %v2841_v34 = vmul.f32 0.5, %v2840_v40  ;;  %v18161_v36 = vsel %vm9878_vm12, %v9468_v9, %v9668_v29  ;;  %v2837_v60 = vsel %vm10323_vm9, %v10090_v14, %v2833_v16  ;;  %vm18162_vm5 = vcmask 851712   ;;  %v18166_v14 = vld [vmem:[#allocation40_spill] sm:$0xff]  ;;  %v18173_v16 = vld [vmem:[#allocation17_spill] sm:$0xff] }
 0x192   : > { %v10353_v46 = vperm.slane %v18161_v36, %v18160_v44  ;;  %v5872_v6 = vsel %vm18162_vm5, %v10098_v56, %v5870_v33  ;;  %6937 = vrsqrt.f32 %v10316_v49  ;;  %v10361_v3 = vpop.eup %6933  ;;  %vm18164_vm2 = vcmask 917312   ;;  %v10379_v56 = vld [vmem:[%s7672_s9 + $0x710] sm:$0xff]  ;;  %v10428_v36 = vld [vmem:[%s7672_s9 + $0x780] sm:$0xff] }
 0x193   : > { %v10366_v30 = vsel %vm18164_vm2, %v18163_v35, %v9954_v54  ;;  %vm18165_vm12 = vmmov %vm18164_vm2  ;;  %v10376_v55 = vperm.slane %v2767_v24, %v18166_v14  ;;  %vm18169_vm8 = vcmask 195712   ;;  %v5884_v32 = vperm.slane %v2817_v41, %v18170_v12  ;;  %v10396_v24 = vld [vmem:[%s7672_s9 + $0x700] sm:$0xff]  ;;  %18176 = vst [vmem:[#allocation43_spill] sm:$0xff] %v10428_v36  ;;  %5145 = vmatpush.xpose.msrb.mxu2 %v10428_v36 }
 0x194   : > { %v10373_v29 = vsel %vm18165_vm12, %v5873_v7, %v5872_v6  ;;  %v5883_v31 = vsel %vm18169_vm8, %v5882_v23, %v5881_v11  ;;  %v2860_v40 = vmul.f32 %v10286_v2, %v2859_v61  ;;  %v2851_v18 = vmul.f32 0.5, %v2850_v42  ;;  %18171 = vst [vmem:[#allocation35_spill] sm:$0xff] %v10396_v24  ;;  %v10399_v7 = vld [vmem:[%s7672_s9 + $0x708] sm:$0xff]  ;;  %v18178_v35 = vld [vmem:[#allocation15_spill] sm:$0xff] }
 0x195   : > { %18172 = vst [vmem:[#allocation20_spill] sm:$0xff] %v10399_v7  ;;  %v10402_v27 = vperm.slane %v2837_v60, %v18173_v16  ;;  %v2827_v22 = vsel %vm10388_vm10, %v10109_v13, %v2823_v53  ;;  %vm2854_vm4 = vweird.f32 %v10145_v58  ;;  %v2842_v23 = vsub.f32 1.5, %v2841_v34  ;;  %v1468_v13 = vpop.xlane.xlu1 %1467  ;;  %v10421_v53 = vpop.xlane.xlu0 %1464  ;;  %v10431_v60 = vld [vmem:[%s7672_s9 + $0x788] sm:$0xff] }
 0x196   : > { %v10408_v33 = vpop.eup %6935  ;;  %v2889_v37 = vmul.f32 %v10361_v3, %v10271_v17  ;;  %v10412_v61 = vmax.f32 %v1462_v10, 1e-24  ;;  %v988_v42 = vmul.f32 %v10379_v56, %v10379_v56  ;;  %v989_v11 = vmul.f32 %v10382_v48, %v10382_v48  ;;  %18177 = vst [vmem:[#allocation36_spill] sm:$0xff] %v10431_v60  ;;  %v1471_v16 = vpop.xlane.xlu2 %1470  ;;  %5165 = vmatpush.xpose.msrb.mxu3 %v10431_v60 }
 0x197   : > { %vm2844_vm9 = vweird.f32 %v10119_v20  ;;  %v10419_v41 = vmax.f32 %v1459_v25, 1e-24  ;;  %v986_v34 = vmul.f32 %v10396_v24, %v10396_v24  ;;  %v987_v10 = vmul.f32 %v10399_v7, %v10399_v7 }
 0x198   : > { %18174 = vst [vmem:[#allocation12_spill] sm:$0xff] %v10412_v61  ;;  %v10433_v6 = vpop.eup %6937  ;;  %v5886_v54 = vperm.slane %v2827_v22, %v18178_v35  ;;  %vm18179_vm11 = vcmask 261312   ;;  %v2861_v9 = vmul.f32 0.5, %v2860_v40  ;;  %v2852_v14 = vsub.f32 1.5, %v2851_v18  ;;  %v7346_v18 = vld [vmem:[%s7672_s9 + $0x6f8] sm:$0xff] }
 0x199   : > { %18175 = vst [vmem:[#allocation32_spill] sm:$0xff] %v10419_v41  ;;  %v5885_v25 = vsel %vm18179_vm11, %v5884_v32, %v5883_v31  ;;  %v2869_v52 = vmul.f32 %v10408_v33, %v10284_v50  ;;  %v1613_v12 = vadd.f32 %v989_v11, %v988_v42  ;;  %v1610_v8 = vadd.f32 %v987_v10, %v986_v34  ;;  %v10454_v42 = vld [vmem:[%s7672_s9 + $0x770] sm:$0xff] }
 0x19a   : > { %v984_v1 = vmul.f32 %v7345_v51, %v7345_v51  ;;  %v2843_v22 = vmul.f32 %v10225_v63, %v2842_v23  ;;  %vm2845_vm13 = vweird.f32 %v10225_v63  ;;  %v2890_v31 = vmul.f32 %v10361_v3, %v2889_v37  ;;  %v10457_v23 = vld [vmem:[%s7672_s9 + $0x778] sm:$0xff]  ;;  %5146 = vmatpush.xpose.msrb.mxu2 %v10454_v42 }
 0x19b   : > { %6939 = vrsqrt.f32 %v10412_v61  ;;  %v2879_v32 = vmul.f32 %v10433_v6, %v10316_v49  ;;  %v10450_v40 = vmax.f32 %v10299_v47, 1e-24  ;;  %1614 = vadd.xlane.f32.xlu2 %v1613_v12  ;;  %1611 = vadd.xlane.f32.xlu1 %v1610_v8  ;;  %v985_v51 = vmul.f32 %v7346_v18, %v7346_v18  ;;  %vm10484_vm12 = vmor %vm2844_vm9, %vm2845_vm13 }
 0x19c   : > { %6941 = vrsqrt.f32 %v10419_v41  ;;  %vm18180_vm7 = vcmask 326912   ;;  %v2862_v11 = vsub.f32 1.5, %v2861_v9  ;;  %vm2855_vm6 = vweird.f32 %v10265_v62  ;;  %5166 = vmatpush.xpose.msrb.mxu3 %v10457_v23  ;;  %v18181_v9 = vld [vmem:[#allocation33_spill] sm:$0xff] }
 0x19d   : > { %v5887_v37 = vsel %vm18180_vm7, %v5886_v54, %v5885_v25  ;;  %v10461_v34 = vmax.f32 %v1471_v16, 1e-24  ;;  %v2853_v47 = vmul.f32 %v10265_v62, %v2852_v14  ;;  %v2870_v8 = vmul.f32 %v10408_v33, %v2869_v52  ;;  %v10491_v14 = vld [vmem:[%s7672_s9 + $0x740] sm:$0xff]  ;;  %v10509_v25 = vld [vmem:[%s7672_s9 + $0x768] sm:$0xff]  ;;  %vm10528_vm8 = vmor %vm2854_vm4, %vm2855_vm6 }
 0x19e   : > { %v10467_v12 = vmax.f32 %v1468_v13, 1e-24  ;;  %v1607_v10 = vadd.f32 %v985_v51, %v984_v1  ;;  %vm18182_vm15 = vcmask 982912   ;;  %vm2864_vm2 = vweird.f32 %v10174_v28  ;;  %v10506_v13 = vld [vmem:[%s7672_s9 + $0x760] sm:$0xff] }
 0x19f   : > { %v10472_v54 = vsel %vm18182_vm15, %v18181_v9, %v10366_v30  ;;  %vm18183_vm5 = vmmov %vm18182_vm15  ;;  %v10488_v1 = vmul.f32 0.5, %v2890_v31  ;;  %v10494_v30 = vld [vmem:[%s7672_s9 + $0x748] sm:$0xff]  ;;  %vm2865_vm10 = vweird.f32 %v10286_v2  ;;  %v2880_v20 = vmul.f32 %v10433_v6, %v2879_v32  ;;  %5147 = vmatpush.xpose.msrb.mxu2 %v10506_v13 }
 0x1a0   : > { %v10477_v16 = vsel %vm18183_vm5, %v10376_v55, %v10373_v29  ;;  %v2847_v29 = vsel %vm10484_vm12, %v10225_v63, %v2843_v22  ;;  %6943 = vrsqrt.f32 %v10450_v40  ;;  %1608 = vadd.xlane.f32.xlu0 %v1607_v10  ;;  %v10503_v55 = vld [vmem:[%s7672_s9 + $0x730] sm:$0xff]  ;;  %v18186_v18 = vsel %vm10305_vm14, %v9949_v21, %v10185_v4  ;;  %v10536_v21 = vld [vmem:[%s7672_s9 + $0x738] sm:$0xff]  ;;  %v10539_v4 = vld [vmem:[%s7672_s9 + $0x720] sm:$0xff]  ;;  %5167 = vmatpush.xpose.msrb.mxu3 %v10509_v25 }
 0x1a1   : > { %v10511_v31 = vpop.eup %6939  ;;  %v10519_v63 = vperm.slane %v18186_v18, %v18160_v44  ;;  %v10522_v22 = vmul.f32 %v10286_v2, %v2862_v11  ;;  %vm18189_vm9 = vcmask 392512   ;;  %6945 = vrsqrt.f32 %v10461_v34  ;;  %v10552_v9 = vld [vmem:[%s7672_s9 + $0x728] sm:$0xff]  ;;  %vm10558_vm14 = vmor %vm2864_vm2, %vm2865_vm10  ;;  %v1480_v18 = vpop.xlane.xlu2 %1479 }
 0x1a2   : > { %v5889_v19 = vsel %vm18189_vm9, %v10402_v27, %v5887_v37  ;;  %v10543_v51 = vpop.eup %6941  ;;  %v2857_v58 = vsel %vm10528_vm8, %v10265_v62, %v2853_v47  ;;  %v2871_v11 = vmul.f32 0.5, %v2870_v8  ;;  %6947 = vrsqrt.f32 %v10467_v12  ;;  %v1477_v27 = vpop.xlane.xlu1 %1476  ;;  %v18192_v62 = vld [vmem:[#allocation26_spill] sm:$0xff] }
 0x1a3   : > { %v1474_v37 = vpop.xlane.xlu0 %1473  ;;  %v994_v10 = vmul.f32 %v10491_v14, %v10491_v14  ;;  %v5890_v47 = vperm.slane %v2847_v29, %v18192_v62  ;;  %v2892_v8 = vsub.f32 1.5, %v10488_v1  ;;  %v995_v32 = vmul.f32 %v10494_v30, %v10494_v30  ;;  %v10575_v29 = vld [vmem:[%s7672_s9 + $0x750] sm:$0xff] }
 0x1a4   : > { %v992_v44 = vmul.f32 %v10503_v55, %v10503_v55  ;;  %v2881_v35 = vmul.f32 0.5, %v2880_v20  ;;  %v2919_v28 = vmul.f32 %v10511_v31, %v10412_v61  ;;  %v993_v38 = vmul.f32 %v10536_v21, %v10536_v21  ;;  %5148 = vmatpush.xpose.msrb.mxu2 %v10575_v29  ;;  %5168 = vmatpush.xpose.msrb.mxu3 %v10584_v26 }
 0x1a5   : > { %v990_v39 = vmul.f32 %v10539_v4, %v10539_v4  ;;  %v2909_v1 = vmul.f32 %v10543_v51, %v10419_v41  ;;  %v10579_v62 = vmax.f32 %v1474_v37, 1e-24  ;;  %v1622_v5 = vadd.f32 %v995_v32, %v994_v10  ;;  %v18193_v32 = vld [vmem:[#allocation25_spill] sm:$0xff] }
 0x1a6   : > { %v991_v20 = vmul.f32 %v10552_v9, %v10552_v9  ;;  %v10587_v7 = vpop.eup %6943  ;;  %v2867_v24 = vsel %vm10558_vm14, %v10286_v2, %v10522_v22  ;;  %vm2894_vm4 = vweird.f32 %v10271_v17  ;;  %vm2884_vm11 = vweird.f32 %v10316_v49  ;;  %v18197_v17 = vld [vmem:[#allocation24_spill] sm:$0xff] }
 0x1a7   : > { %v2872_v37 = vsub.f32 1.5, %v2871_v11  ;;  %v10596_v10 = vpop.eup %6945  ;;  %v5892_v41 = vperm.slane %v2857_v58, %v18193_v32  ;;  %vm2895_vm13 = vweird.f32 %v10361_v3  ;;  %v10600_v60 = vmax.f32 %v1480_v18, 1e-24  ;;  %1623 = vadd.xlane.f32.xlu2 %v1622_v5 }
 0x1a8   : > { %v1619_v36 = vadd.f32 %v993_v38, %v992_v44  ;;  %v10602_v61 = vpop.eup %6947  ;;  %vm18194_vm7 = vcmask 458112   ;;  %v2882_v22 = vsub.f32 1.5, %v2881_v35  ;;  %v10605_v52 = vmax.f32 %v1477_v27, 1e-24  ;;  %vm10613_vm6 = vmor %vm2894_vm4, %vm2895_vm13  ;;  %5149 = vmatpush.xpose.msrb.mxu2 %v10491_v14  ;;  %v4955_v44 = vpop.f32.mrf.mxu0  ;;  %5169 = vmatpush.xpose.msrb.mxu3 %v10494_v30 }
 0x1a9   : > { %v5891_v2 = vsel %vm18194_vm7, %v5890_v47, %v5889_v19  ;;  %v1616_v11 = vadd.f32 %v991_v20, %v990_v39  ;;  %v2893_v0 = vmul.f32 %v10361_v3, %v2892_v8  ;;  %v2920_v15 = vmul.f32 %v10511_v31, %v2919_v28  ;;  %v536_v47 = vld [vmem:[%s7672_s9 + $0x8f0] sm:$0xff]  ;;  %v537_v8 = vld [vmem:[%s7672_s9 + $0x8f8] sm:$0xff] }
 0x1aa   : > { %v2910_v58 = vmul.f32 %v10543_v51, %v2909_v1  ;;  %6949 = vrsqrt.f32 %v10579_v62  ;;  %1620 = vadd.xlane.f32.xlu1 %v1619_v36  ;;  %v2873_v5 = vmul.f32 %v10408_v33, %v2872_v37  ;;  %vm2874_vm15 = vweird.f32 %v10284_v50  ;;  %v4975_v36 = vpop.f32.mrf.mxu1  ;;  %5178 = vmatpush.xpose.msra.mxu0 %v536_v47 }
 0x1ab   : > { %vm2875_vm5 = vweird.f32 %v10408_v33  ;;  %v2899_v39 = vmul.f32 %v10587_v7, %v10450_v40  ;;  %1617 = vadd.xlane.f32.xlu0 %v1616_v11  ;;  %v5894_v35 = vperm.slane %v2867_v24, %v18197_v17  ;;  %v2949_v19 = vmul.f32 %v10596_v10, %v10461_v34  ;;  %v1486_v24 = vpop.xlane.xlu1 %1485  ;;  %5198 = vmatpush.xpose.msra.mxu1 %v537_v8  ;;  %v10692_v11 = vld [vmem:[%s7672_s9 + $0x8e0] sm:$0xff] }
 0x1ac   : > { %v2939_v27 = vmul.f32 %v10602_v61, %v10467_v12  ;;  %6951 = vrsqrt.f32 %v10600_v60  ;;  %vm18198_vm2 = vcmask 523712   ;;  %v10634_v14 = vmul.f32 %v10433_v6, %v2882_v22  ;;  %vm10650_vm8 = vmor %vm2874_vm15, %vm2875_vm5  ;;  %5150 = vmatpush.xpose.msrb.mxu2 %v10503_v55  ;;  %5170 = vmatpush.xpose.msrb.mxu3 %v10536_v21  ;;  %18209 = vst [vmem:[#allocation49_spill] sm:$0xff] %v10692_v11 }
 0x1ad   : > { %v5893_v18 = vsel %vm18198_vm2, %v5892_v41, %v5891_v2  ;;  %vm2885_vm12 = vweird.f32 %v10433_v6  ;;  %6953 = vrsqrt.f32 %v10605_v52  ;;  %vm18199_vm10 = vcmask 1048512  }
 0x1ae   : > { %v10641_v28 = vsel %vm18199_vm10, %v10353_v46, %v10472_v54  ;;  %v2897_v30 = vsel %vm10613_vm6, %v10361_v3, %v2893_v0  ;;  %v10654_v1 = vmul.f32 0.5, %v2920_v15  ;;  %v10656_v20 = vmul.f32 0.5, %v2910_v58  ;;  %v10658_v46 = vpop.xlane.xlu2 %1488  ;;  %v1483_v54 = vpop.xlane.xlu0 %1482  ;;  %vm18204_vm9 = vmmov %vm18199_vm10  ;;  %v18211_v58 = vld [vmem:[#allocation13_spill] sm:$0xff]  ;;  %5179 = vmatpush.xpose.msra.mxu0 %v10692_v11 }
 0x1af   : > { %18200 = vst [vmem:[#allocation38_spill] sm:$0xff] %v10641_v28  ;;  %v10660_v37 = vadd.f32 %v4975_v36, %v4955_v44  ;;  %v2877_v0 = vsel %vm10650_vm8, %v10408_v33, %v2873_v5  ;;  %v2900_v50 = vmul.f32 %v10587_v7, %v2899_v39  ;;  %v10667_v3 = vmax.f32 %v10421_v53, 1e-24  ;;  %vm10681_vm14 = vmor %vm2884_vm11, %vm2885_vm12  ;;  %v18212_v36 = vld [vmem:[#allocation34_spill] sm:$0xff]  ;;  %v10782_v44 = vld [vmem:[%s7672_s9 + $0x8c0] sm:$0xff] }
 0x1b0   : > { %v10670_v15 = vpop.eup %6949  ;;  %v10675_v2 = vsel %vm18204_vm9, %v10519_v63, %v10477_v16  ;;  %vm18208_vm4 = vcmask 589312   ;;  %v2950_v55 = vmul.f32 %v10596_v10, %v2949_v19  ;;  %v2940_v22 = vmul.f32 %v10602_v61, %v2939_v27  ;;  %v10695_v16 = vld [vmem:[%s7672_s9 + $0x8e8] sm:$0xff]  ;;  %5151 = vmatpush.xpose.msrb.mxu2 %v10539_v4  ;;  %5171 = vmatpush.xpose.msrb.mxu3 %v10552_v9 }
 0x1b1   : > { %18203 = vst [vmem:[#allocation39_spill] sm:$0xff] %v10660_v37  ;;  %v10686_v53 = vsel %vm18208_vm4, %v5894_v35, %v5893_v18  ;;  %v10698_v63 = vperm.slane %v2897_v30, %v18070_v45  ;;  %v10706_v38 = vmul.f32 %v18211_v58, %v18211_v58  ;;  %5199 = vmatpush.xpose.msra.mxu1 %v10695_v16  ;;  %v2922_v39 = vsub.f32 1.5, %v10654_v1  ;;  %v18223_v37 = vld [vmem:[#allocation35_spill] sm:$0xff]  ;;  %v7347_v33 = vld [vmem:[%s7672_s9 + $0x7e8] sm:$0xff] }
 0x1b2   : > { %18205 = vst [vmem:[#allocation33_spill] sm:$0xff] %v10675_v2  ;;  %v10710_v21 = vpop.eup %6951  ;;  %v10713_v5 = vperm.slane %v2877_v0, %v8755_v59  ;;  %v10719_v35 = vmul.f32 %v18212_v36, %v18212_v36  ;;  %v10723_v27 = vmul.f32 0.5, %v2900_v50  ;;  %6955 = vrsqrt.f32 %v10667_v3  ;;  %v10742_v0 = vld [vmem:[%s7672_s9 + $0x8d0] sm:$0xff]  ;;  %v18219_v2 = vld [vmem:[#allocation22_spill] sm:$0xff] }
 0x1b3   : > { %18210 = vst [vmem:[#allocation50_spill] sm:$0xff] %v10695_v16  ;;  %v10721_v19 = vpop.eup %6953  ;;  %v2959_v47 = vmul.f32 %v10670_v15, %v10579_v62  ;;  %v10728_v8 = vmax.f32 %v1483_v54, 1e-24  ;;  %v10731_v18 = vmul.f32 0.5, %v2950_v55  ;;  %vm2954_vm11 = vweird.f32 %v10461_v34  ;;  %v10745_v54 = vld [vmem:[%s7672_s9 + $0x8d8] sm:$0xff]  ;;  %5180 = vmatpush.xpose.msra.mxu0 %v10742_v0  ;;  %v10770_v58 = vpop.xlane.xlu1 %1494 }
 0x1b4   : > { %v10734_v30 = vmul.f32 0.5, %v2940_v22  ;;  %v1000_v41 = vmul.f32 %v10454_v42, %v10454_v42  ;;  %v1001_v1 = vmul.f32 %v10457_v23, %v10457_v23  ;;  %18213 = vst [vmem:[#allocation13_spill] sm:$0xff] %v10742_v0  ;;  %v998_v4 = vmul.f32 %v10506_v13, %v10506_v13  ;;  %v18215_v23 = vld [vmem:[#allocation44_spill] sm:$0xff]  ;;  %5152 = vmatpush.xpose.msrb.mxu2 %v10379_v56 }
 0x1b5   : > { %18214 = vst [vmem:[#allocation34_spill] sm:$0xff] %v10745_v54  ;;  %v999_v50 = vmul.f32 %v10509_v25, %v10509_v25  ;;  %v996_v55 = vmul.f32 %v10575_v29, %v10575_v29  ;;  %v997_v42 = vmul.f32 %v10584_v26, %v10584_v26  ;;  %vm2944_vm13 = vweird.f32 %v10467_v12  ;;  %5200 = vmatpush.xpose.msra.mxu1 %v10745_v54  ;;  %v10825_v54 = vld [vmem:[%s7672_s9 + $0x8b0] sm:$0xff]  ;;  %v18228_v0 = vld [vmem:[#allocation32_spill] sm:$0xff] }
 0x1b6   : > { %v10759_v9 = vmul.f32 %v18215_v23, %v18215_v23  ;;  %v2979_v13 = vmul.f32 %v10710_v21, %v10600_v60  ;;  %v2969_v25 = vmul.f32 %v10721_v19, %v10605_v52  ;;  %v1631_v22 = vadd.f32 %v1001_v1, %v1000_v41  ;;  %v10778_v49 = vpop.xlane.xlu2 %1497  ;;  %5172 = vmatpush.xpose.msrb.mxu3 %v10382_v48  ;;  %v18220_v48 = vld [vmem:[#allocation12_spill] sm:$0xff] }
 0x1b7   : > { %v2960_v26 = vmul.f32 %v10670_v15, %v2959_v47  ;;  %v10767_v29 = vmax.f32 %v1486_v24, 1e-24  ;;  %6957 = vrsqrt.f32 %v10728_v8  ;;  %v1628_v36 = vadd.f32 %v999_v50, %v998_v4  ;;  %v1492_v47 = vpop.xlane.xlu0 %1491  ;;  %18216 = vst [vmem:[#allocation44_spill] sm:$0xff] %v10782_v44  ;;  %v10785_v4 = vld [vmem:[%s7672_s9 + $0x8c8] sm:$0xff]  ;;  %5181 = vmatpush.xpose.msra.mxu0 %v10782_v44 }
 0x1b8   : > { %v2902_v23 = vsub.f32 1.5, %v10723_v27  ;;  %v1006_v41 = vmul.f32 %v10159_v57, %v10159_v57  ;;  %v1007_v1 = vmul.f32 %v10162_v43, %v10162_v43  ;;  %1632 = vadd.xlane.f32.xlu2 %v1631_v22  ;;  %v1625_v24 = vadd.f32 %v997_v42, %v996_v55  ;;  %18217 = vst [vmem:[#allocation51_spill] sm:$0xff] %v10785_v4  ;;  %v10787_v56 = vpop.eup %6955  ;;  %v18218_v43 = vld [vmem:[#allocation11_spill] sm:$0xff] }
 0x1b9   : > { %vm2905_vm7 = vweird.f32 %v10587_v7  ;;  %v2952_v57 = vsub.f32 1.5, %v10731_v18  ;;  %v2942_v27 = vsub.f32 1.5, %v10734_v30  ;;  %v1004_v50 = vmul.f32 %v18218_v43, %v18218_v43  ;;  %1629 = vadd.xlane.f32.xlu1 %v1628_v36  ;;  %v18221_v18 = vld [vmem:[#allocation43_spill] sm:$0xff]  ;;  %v18222_v43 = vld [vmem:[#allocation36_spill] sm:$0xff]  ;;  %5201 = vmatpush.xpose.msra.mxu1 %v10785_v4  ;;  %18226 = vst [vmem:[#allocation11_spill] sm:$0xff] %v10825_v54 }
 0x1ba   : > { %v1005_v55 = vmul.f32 %v18219_v2, %v18219_v2  ;;  %vm2924_vm6 = vweird.f32 %v18220_v48  ;;  %vm2925_vm15 = vweird.f32 %v10511_v31  ;;  %v2980_v42 = vmul.f32 %v10710_v21, %v2979_v13  ;;  %1626 = vadd.xlane.f32.xlu0 %v1625_v24  ;;  %5153 = vmatpush.xpose.msrb.mxu2 %v18223_v37  ;;  %v18229_v4 = vld [vmem:[#allocation23_spill] sm:$0xff] }
 0x1bb   : > { %v10801_v22 = vmax.f32 %v10658_v46, 1e-24  ;;  %v1002_v30 = vmul.f32 %v18221_v18, %v18221_v18  ;;  %v1003_v2 = vmul.f32 %v18222_v43, %v18222_v43  ;;  %v10809_v36 = vmul.f32 %v10511_v31, %v2922_v39  ;;  %v18225_v43 = vld [vmem:[#allocation20_spill] sm:$0xff]  ;;  %5182 = vmatpush.xpose.msra.mxu0 %v10825_v54 }
 0x1bc   : > { %vm2904_vm5 = vweird.f32 %v10450_v40  ;;  %v2970_v13 = vmul.f32 %v10721_v19, %v2969_v25  ;;  %v2961_v46 = vmul.f32 0.5, %v2960_v26  ;;  %6959 = vrsqrt.f32 %v10767_v29  ;;  %5173 = vmatpush.xpose.msrb.mxu3 %v18225_v43  ;;  %v10828_v25 = vld [vmem:[%s7672_s9 + $0x8b8] sm:$0xff] }
 0x1bd   : > { %v18224_v18 = vsub.f32 1.5, %v10656_v20  ;;  %vm2955_vm2 = vweird.f32 %v10596_v10  ;;  %v2929_v39 = vmul.f32 %v10787_v56, %v10667_v3  ;;  %v1640_v24 = vadd.f32 %v1007_v1, %v1006_v41  ;;  %18227 = vst [vmem:[#allocation22_spill] sm:$0xff] %v10828_v25  ;;  %v10830_v26 = vpop.eup %6957  ;;  %5154 = vmatmul.f32.vlgmr.msrb.gmra.mxu2 %v18229_v4  ;;  %5202 = vmatpush.xpose.msra.mxu1 %v10828_v25  ;;  %v10880_v25 = vpop.xlane.xlu1 %1503 }
 0x1be   : > { %v10833_v37 = vmul.f32 %v10587_v7, %v2902_v23  ;;  %v2953_v20 = vmul.f32 %v10596_v10, %v2952_v57  ;;  %vm2945_vm12 = vweird.f32 %v10602_v61  ;;  %vm2914_vm10 = vweird.f32 %v18228_v0  ;;  %vm10848_vm9 = vmor %vm2954_vm11, %vm2955_vm2 }
 0x1bf   : > { %v10818_v28 = vmul.f32 %v10543_v51, %v18224_v18  ;;  %v1637_v18 = vadd.f32 %v1005_v55, %v1004_v50  ;;  %vm2915_vm8 = vweird.f32 %v10543_v51  ;;  %v2943_v41 = vmul.f32 %v10602_v61, %v2942_v27  ;;  %v18232_v55 = vld [vmem:[#allocation37_spill] sm:$0xff]  ;;  %vm10868_vm11 = vmor %vm2944_vm13, %vm2945_vm12  ;;  %v10889_v44 = vpop.xlane.xlu0 %1500 }
 0x1c0   : > { %v2981_v1 = vmul.f32 0.5, %v2980_v42  ;;  %6961 = vrsqrt.f32 %v10801_v22  ;;  %v1634_v43 = vadd.f32 %v1003_v2, %v1002_v30  ;;  %vm2984_vm4 = vweird.f32 %v10600_v60  ;;  %5174 = vmatmul.f32.vlgmr.msrb.gmra.mxu3 %v18232_v55  ;;  %1641 = vadd.xlane.f32.xlu2 %v1640_v24  ;;  %v18238_v24 = vld [vmem:[#allocation48_spill] sm:$0xff]  ;;  %vm10902_vm12 = vmor %vm2904_vm5, %vm2905_vm7 }
 0x1c1   : > { %v2971_v57 = vmul.f32 0.5, %v2970_v13  ;;  %v2962_v27 = vsub.f32 1.5, %v2961_v46  ;;  %v1649_v50 = vadd.f32 %v10759_v9, %v10719_v35  ;;  %v2930_v4 = vmul.f32 %v10787_v56, %v2929_v39  ;;  %v18235_v9 = vld [vmem:[#allocation45_spill] sm:$0xff]  ;;  %v18236_v13 = vld [vmem:[#allocation46_spill] sm:$0xff]  ;;  %v18237_v39 = vld [vmem:[#allocation47_spill] sm:$0xff]  ;;  %1638 = vadd.xlane.f32.xlu1 %v1637_v18 }
 0x1c2   : > { %vm2974_vm1 = vweird.f32 %v10605_v52  ;;  %v2989_v34 = vmul.f32 %v10830_v26, %v10728_v8  ;;  %v10860_v42 = vmax.f32 %v1492_v47, 1e-24  ;;  %v10862_v30 = vpop.eup %6959  ;;  %v1010_v2 = vmul.f32 %v18235_v9, %v18235_v9  ;;  %1635 = vadd.xlane.f32.xlu0 %v1634_v43  ;;  %v18243_v43 = vld [vmem:[#allocation19_spill] sm:$0xff] }
 0x1c3   : > { %v1011_v46 = vmul.f32 %v18236_v13, %v18236_v13  ;;  %v1008_v47 = vmul.f32 %v18237_v39, %v18237_v39  ;;  %v1009_v55 = vmul.f32 %v18238_v24, %v18238_v24  ;;  %v2957_v12 = vsel %vm10848_vm9, %v10596_v10, %v2953_v20  ;;  %v1507_v13 = vpop.xlane.xlu2 %1506  ;;  %vm10917_vm9 = vmor %vm2924_vm6, %vm2925_vm15 }
 0x1c4   : > { %v2947_v9 = vsel %vm10868_vm11, %v10602_v61, %v2943_v41  ;;  %v2982_v54 = vsub.f32 1.5, %v2981_v1  ;;  %vm2985_vm13 = vweird.f32 %v10710_v21  ;;  %v2972_v39 = vsub.f32 1.5, %v2971_v57 }
 0x1c5   : > { %v2963_v24 = vmul.f32 %v10670_v15, %v2962_v27  ;;  %vm2965_vm2 = vweird.f32 %v10670_v15  ;;  %v10894_v18 = vmax.f32 %v10778_v49, 1e-24  ;;  %v2999_v20 = vmul.f32 %v10862_v30, %v10767_v29  ;;  %vm10942_vm5 = vmor %vm2984_vm4, %vm2985_vm13 }
 0x1c6   : > { %v10896_v10 = vpop.eup %6961  ;;  %v2990_v41 = vmul.f32 %v10830_v26, %v2989_v34  ;;  %v10910_v1 = vmax.f32 %v10770_v58, 1e-24  ;;  %6963 = vrsqrt.f32 %v10860_v42  ;;  %v2907_v49 = vsel %vm10902_vm12, %v10587_v7, %v10833_v37  ;;  %v18244_v58 = vld [vmem:[#allocation14_spill] sm:$0xff]  ;;  %vm10972_vm4 = vmor %vm2914_vm10, %vm2915_vm8 }
 0x1c7   : > { %v5911_v23 = vperm.slane %v2957_v12, %v18243_v43  ;;  %v10926_v57 = vmul.f32 0.5, %v2930_v4  ;;  %vm2964_vm7 = vweird.f32 %v10579_v62  ;;  %v5910_v27 = vperm.slane %v2947_v9, %v18244_v58 }
 0x1c8   : > { %v2983_v34 = vmul.f32 %v10710_v21, %v2982_v54  ;;  %vm2975_vm6 = vweird.f32 %v10721_v19  ;;  %vm10934_vm15 = vmor %vm2964_vm7, %vm2965_vm2  ;;  %v1646_v7 = vadd.f32 %v1011_v46, %v1010_v2  ;;  %v2973_v54 = vmul.f32 %v10721_v19, %v2972_v39  ;;  %1650 = vadd.xlane.f32.xlu2 %v1649_v50  ;;  %v18249_v46 = vld [vmem:[#allocation28_spill] sm:$0xff] }
 0x1c9   : > { %v2967_v37 = vsel %vm10934_vm15, %v10670_v15, %v2963_v24  ;;  %v3009_v4 = vmul.f32 %v10896_v10, %v10801_v22  ;;  %6965 = vrsqrt.f32 %v10894_v18  ;;  %v3000_v35 = vmul.f32 %v10862_v30, %v2999_v20  ;;  %v11042_v39 = vld [vmem:[%s7672_s9 + $0x808] sm:$0xff] }
 0x1ca   : > { %v2991_v2 = vmul.f32 0.5, %v2990_v41  ;;  %6967 = vrsqrt.f32 %v10910_v1  ;;  %v1643_v60 = vadd.f32 %v1009_v55, %v1008_v47  ;;  %v18250_v12 = vsel %vm10681_vm14, %v10433_v6, %v10634_v14  ;;  %1647 = vadd.xlane.f32.xlu1 %v1646_v7  ;;  %vm10994_vm14 = vmor %vm2974_vm1, %vm2975_vm6  ;;  %v18256_v41 = vld [vmem:[#allocation16_spill] sm:$0xff]  ;;  %18264 = vst [vmem:[#allocation35_spill] sm:$0xff] %v11042_v39 }
 0x1cb   : > { %v5898_v9 = vperm.slane %v18250_v12, %v18249_v46  ;;  %v5897_v15 = vsel %vm17891_vm3, %v10713_v5, %v10686_v53  ;;  %v1015_v6 = vmul.f32 %v7347_v33, %v7347_v33  ;;  %v18253_v5 = vld [vmem:[#allocation31_spill] sm:$0xff]  ;;  %v2987_v0 = vsel %vm10942_vm5, %v10710_v21, %v2983_v34  ;;  %v1513_v21 = vpop.xlane.xlu1 %1512  ;;  %v1516_v62 = vpop.xlane.xlu2 %1515  ;;  %v11034_v33 = vld [vmem:[%s7672_s9 + $0x8a8] sm:$0xff] }
 0x1cc   : > { %v10977_v14 = vpop.eup %6963  ;;  %v10984_v47 = vperm.slane %v2907_v49, %v18253_v5  ;;  %1644 = vadd.xlane.f32.xlu0 %v1643_v60  ;;  %v5912_v61 = vsel %vm17892_vm0, %v5911_v23, %v5910_v27  ;;  %v2977_v20 = vsel %vm10994_vm14, %v10721_v19, %v2973_v54  ;;  %v5913_v49 = vperm.slane %v2967_v37, %v18256_v41  ;;  %v11007_v23 = vpop.xlane.xlu0 %1509  ;;  %v18257_v19 = vld [vmem:[#allocation15_spill] sm:$0xff]  ;;  %v18283_v5 = vld [vmem:[#allocation26_spill] sm:$0xff] }
 0x1cd   : > { %v3010_v48 = vmul.f32 %v10896_v10, %v3009_v4  ;;  %v3001_v34 = vmul.f32 0.5, %v3000_v35  ;;  %vm3004_vm10 = vweird.f32 %v10767_v29  ;;  %v2992_v52 = vsub.f32 1.5, %v2991_v2  ;;  %v18258_v35 = vld [vmem:[#allocation18_spill] sm:$0xff]  ;;  %v11028_v60 = vld [vmem:[%s7672_s9 + $0x800] sm:$0xff]  ;;  %18261 = vst [vmem:[#allocation36_spill] sm:$0xff] %v11034_v33  ;;  %5203 = vmatpush.xpose.msra.mxu1 %v11034_v33 }
 0x1ce   : > { %v11005_v7 = vmax.f32 %v1507_v13, 1e-24  ;;  %v11012_v54 = vperm.slane %v2987_v0, %v18257_v19  ;;  %vm3014_vm1 = vweird.f32 %v10801_v22  ;;  %vm2994_vm8 = vweird.f32 %v10728_v8  ;;  %18259 = vst [vmem:[#allocation12_spill] sm:$0xff] %v11028_v60  ;;  %v11031_v12 = vld [vmem:[%s7672_s9 + $0x8a0] sm:$0xff]  ;;  %v7349_v19 = vld [vmem:[%s7672_s9 + $0x7f8] sm:$0xff]  ;;  %v11084_v8 = vld [vmem:[%s7672_s9 + $0x830] sm:$0xff] }
 0x1cf   : > { %v11009_v27 = vpop.eup %6965  ;;  %v3019_v37 = vmul.f32 %v10977_v14, %v10860_v42  ;;  %v11019_v13 = vmax.f32 %v10880_v25, 1e-24  ;;  %v5915_v2 = vperm.slane %v2977_v20, %v18258_v35  ;;  %vm3015_vm11 = vweird.f32 %v10896_v10  ;;  %18260 = vst [vmem:[#allocation43_spill] sm:$0xff] %v11031_v12  ;;  %5183 = vmatpush.xpose.msra.mxu0 %v11031_v12  ;;  %v11087_v12 = vld [vmem:[%s7672_s9 + $0x890] sm:$0xff]  ;;  %v11160_v22 = vld [vmem:[%s7672_s9 + $0x818] sm:$0xff] }
 0x1d0   : > { %v11021_v4 = vpop.eup %6967  ;;  %vm3005_vm13 = vweird.f32 %v10862_v30  ;;  %vm2995_vm2 = vweird.f32 %v10830_v26  ;;  %vm18262_vm12 = vcmask 195712   ;;  %v3011_v25 = vmul.f32 0.5, %v3010_v48  ;;  %18282 = vst [vmem:[#allocation37_spill] sm:$0xff] %v11160_v22 }
 0x1d1   : > { %v5914_v0 = vsel %vm18262_vm12, %v5913_v49, %v5912_v61  ;;  %vm18263_vm7 = vcmask 720512   ;;  %v11039_v20 = vmax.f32 %v10889_v44, 1e-24  ;;  %v3002_v55 = vsub.f32 1.5, %v3001_v34  ;;  %v7348_v34 = vld [vmem:[%s7672_s9 + $0x7f0] sm:$0xff]  ;;  %vm11070_vm15 = vmor %vm2994_vm8, %vm2995_vm2 }
 0x1d2   : > { %v5899_v24 = vsel %vm18263_vm7, %v5898_v9, %v5897_v15  ;;  %v2993_v53 = vmul.f32 %v10830_v26, %v2992_v52  ;;  %v3039_v61 = vmul.f32 %v11009_v27, %v10894_v18  ;;  %6969 = vrsqrt.f32 %v11005_v7  ;;  %vm11111_vm5 = vmor %vm3004_vm10, %vm3005_vm13 }
 0x1d3   : > { %v3029_v9 = vmul.f32 %v11021_v4, %v10910_v1  ;;  %v3020_v44 = vmul.f32 %v10977_v14, %v3019_v37  ;;  %6971 = vrsqrt.f32 %v11019_v13  ;;  %v1018_v15 = vmul.f32 %v11028_v60, %v11028_v60  ;;  %v11081_v33 = vpop.xlane.xlu1 %1521  ;;  %5184 = vmatpush.xpose.msra.mxu0 %v11087_v12  ;;  %vm11145_vm13 = vmor %vm3014_vm1, %vm3015_vm11 }
 0x1d4   : > { %v11056_v49 = vmax.f32 %v1516_v62, 1e-24  ;;  %v1019_v48 = vmul.f32 %v11042_v39, %v11042_v39  ;;  %v1016_v52 = vmul.f32 %v7348_v34, %v7348_v34  ;;  %v1017_v35 = vmul.f32 %v7349_v19, %v7349_v19  ;;  %v11090_v39 = vld [vmem:[%s7672_s9 + $0x898] sm:$0xff] }
 0x1d5   : > { %vm18265_vm6 = vcmask 261312   ;;  %v3012_v43 = vsub.f32 1.5, %v3011_v25  ;;  %6973 = vrsqrt.f32 %v11039_v20  ;;  %v1652_v37 = vadd.f32 %v1015_v6, %v10706_v38  ;;  %5204 = vmatpush.xpose.msra.mxu1 %v11090_v39 }
 0x1d6   : > { %v5916_v41 = vsel %vm18265_vm6, %v5915_v2, %v5914_v0  ;;  %v3003_v62 = vmul.f32 %v10862_v30, %v3002_v55  ;;  %v3040_v19 = vmul.f32 %v11009_v27, %v3039_v61  ;;  %v1658_v2 = vadd.f32 %v1019_v48, %v1018_v15  ;;  %v18268_v61 = vld [vmem:[#allocation30_spill] sm:$0xff]  ;;  %v11134_v48 = vld [vmem:[%s7672_s9 + $0x820] sm:$0xff] }
 0x1d7   : > { %v1655_v0 = vadd.f32 %v1017_v35, %v1016_v52  ;;  %v2997_v25 = vsel %vm11070_vm15, %v10830_v26, %v2993_v53  ;;  %v3030_v38 = vmul.f32 %v11021_v4, %v3029_v9  ;;  %v3021_v6 = vmul.f32 0.5, %v3020_v44  ;;  %1653 = vadd.xlane.f32.xlu0 %v1652_v37  ;;  %18276 = vst [vmem:[#allocation20_spill] sm:$0xff] %v11134_v48  ;;  %v11137_v52 = vld [vmem:[%s7672_s9 + $0x828] sm:$0xff] }
 0x1d8   : > { %v11079_v55 = vmax.f32 %v1513_v21, 1e-24  ;;  %v11092_v35 = vpop.eup %6969  ;;  %v18269_v26 = vsel %vm10972_vm4, %v10543_v51, %v10818_v28  ;;  %v18270_v21 = vsub.f32 1.5, %v10926_v57  ;;  %vm18273_vm14 = vcmask 786112   ;;  %v11118_v28 = vpop.xlane.xlu2 %1524  ;;  %1659 = vadd.xlane.f32.xlu2 %v1658_v2  ;;  %18277 = vst [vmem:[#allocation32_spill] sm:$0xff] %v11137_v52  ;;  %v11157_v2 = vld [vmem:[%s7672_s9 + $0x810] sm:$0xff] }
 0x1d9   : > { %v11100_v53 = vperm.slane %v18269_v26, %v18268_v61  ;;  %v5901_v51 = vsel %vm18273_vm14, %v10698_v63, %v5899_v24  ;;  %6975 = vrsqrt.f32 %v11056_v49  ;;  %v1519_v57 = vpop.xlane.xlu0 %1518  ;;  %1656 = vadd.xlane.f32.xlu1 %v1655_v0  ;;  %v11120_v50 = vpop.eup %6971  ;;  %vm2935_vm4 = vweird.f32 %v10787_v56  ;;  %v11131_v24 = vld [vmem:[%s7672_s9 + $0x838] sm:$0xff]  ;;  %18281 = vst [vmem:[#allocation23_spill] sm:$0xff] %v11157_v2 }
 0x1da   : > { %v11105_v9 = vmul.f32 %v10787_v56, %v18270_v21  ;;  %v3013_v29 = vmul.f32 %v10896_v10, %v3012_v43  ;;  %vm18274_vm10 = vcmask 326912   ;;  %vm18275_vm8 = vcmask 851712  }
 0x1db   : > { %v5918_v15 = vsel %vm18274_vm10, %v11012_v54, %v5916_v41  ;;  %v11128_v63 = vsel %vm18275_vm8, %v10984_v47, %v5901_v51  ;;  %v3007_v47 = vsel %vm11111_vm5, %v10862_v30, %v3003_v62  ;;  %v18280_v41 = vld [vmem:[#allocation17_spill] sm:$0xff]  ;;  %v3041_v37 = vmul.f32 0.5, %v3040_v19  ;;  %v11162_v0 = vpop.eup %6973  ;;  %v11169_v62 = vld [vmem:[%s7672_s9 + $0x880] sm:$0xff]  ;;  %v11172_v19 = vld [vmem:[%s7672_s9 + $0x888] sm:$0xff] }
 0x1dc   : > { %v5919_v54 = vperm.slane %v2997_v25, %v18280_v41  ;;  %vm3044_vm2 = vweird.f32 %v10894_v18  ;;  %v1024_v34 = vmul.f32 %v11084_v8, %v11084_v8  ;;  %vm2934_vm1 = vweird.f32 %v10667_v3  ;;  %5185 = vmatpush.xpose.msra.mxu0 %v11169_v62  ;;  %5205 = vmatpush.xpose.msra.mxu1 %v11172_v19  ;;  %v514_v18 = vld [vmem:[%s7672_s9 + $0x840] sm:$0xff] }
 0x1dd   : > { %v3031_v26 = vmul.f32 0.5, %v3030_v38  ;;  %v3022_v21 = vsub.f32 1.5, %v3021_v6  ;;  %v3069_v30 = vmul.f32 %v11092_v35, %v11005_v7  ;;  %6977 = vrsqrt.f32 %v11079_v55  ;;  %vm11244_vm8 = vmor %vm2934_vm1, %vm2935_vm4 }
 0x1de   : > { %v3059_v25 = vmul.f32 %v11120_v50, %v11019_v13  ;;  %v1025_v44 = vmul.f32 %v11131_v24, %v11131_v24  ;;  %v1022_v51 = vmul.f32 %v11134_v48, %v11134_v48  ;;  %v1023_v38 = vmul.f32 %v11137_v52, %v11137_v52 }
 0x1df   : > { %v3017_v6 = vsel %vm11145_vm13, %v10896_v10, %v3013_v29  ;;  %v11186_v41 = vmax.f32 %v11007_v23, 1e-24  ;;  %v1020_v60 = vmul.f32 %v11157_v2, %v11157_v2  ;;  %v1021_v58 = vmul.f32 %v11160_v22, %v11160_v22  ;;  %v11194_v45 = vpop.eup %6975 }
 0x1e0   : > { %v5921_v61 = vperm.slane %v3007_v47, %v18283_v5  ;;  %vm18284_vm11 = vcmask 392512   ;;  %v3049_v23 = vmul.f32 %v11162_v0, %v11039_v20  ;;  %v1667_v29 = vadd.f32 %v1025_v44, %v1024_v34  ;;  %v11205_v47 = vld [vmem:[%s7672_s9 + $0x870] sm:$0xff]  ;;  %v11215_v34 = vpop.xlane.xlu1 %1530  ;;  %v5015_v44 = vpop.f32.mrf.mxu3 }
 0x1e1   : > { %v5920_v10 = vsel %vm18284_vm11, %v5919_v54, %v5918_v15  ;;  %v3042_v43 = vsub.f32 1.5, %v3041_v37  ;;  %v3032_v2 = vsub.f32 1.5, %v3031_v26  ;;  %v3023_v52 = vmul.f32 %v10977_v14, %v3022_v21  ;;  %5186 = vmatpush.xpose.msra.mxu0 %v11205_v47  ;;  %v11222_v26 = vpop.xlane.xlu2 %1533  ;;  %v1528_v21 = vpop.xlane.xlu0 %1527 }
 0x1e2   : > { %vm3025_vm12 = vweird.f32 %v10977_v14  ;;  %v3070_v22 = vmul.f32 %v11092_v35, %v3069_v30  ;;  %v3060_v48 = vmul.f32 %v11120_v50, %v3059_v25  ;;  %1668 = vadd.xlane.f32.xlu2 %v1667_v29  ;;  %v1664_v16 = vadd.f32 %v1023_v38, %v1022_v51  ;;  %v4995_v25 = vpop.f32.mrf.mxu2 }
 0x1e3   : > { %v1661_v11 = vadd.f32 %v1021_v58, %v1020_v60  ;;  %v11207_v15 = vpop.eup %6977  ;;  %vm3034_vm7 = vweird.f32 %v10910_v1  ;;  %v3099_v54 = vmul.f32 %v11194_v45, %v11056_v49  ;;  %6979 = vrsqrt.f32 %v11186_v41 }
 0x1e4   : > { %v11213_v37 = vmax.f32 %v1519_v57, 1e-24  ;;  %v5923_v58 = vperm.slane %v3017_v6, %v18193_v32  ;;  %vm3045_vm6 = vweird.f32 %v11009_v27  ;;  %vm3024_vm15 = vweird.f32 %v10860_v42  ;;  %1665 = vadd.xlane.f32.xlu1 %v1664_v16  ;;  %v11225_v57 = vld [vmem:[%s7672_s9 + $0x878] sm:$0xff] }
 0x1e5   : > { %v3050_v60 = vmul.f32 %v11162_v0, %v3049_v23  ;;  %1662 = vadd.xlane.f32.xlu0 %v1661_v11  ;;  %vm18285_vm5 = vcmask 458112   ;;  %v3043_v51 = vmul.f32 %v11009_v27, %v3042_v43  ;;  %vm3035_vm14 = vweird.f32 %v11021_v4  ;;  %vm11232_vm10 = vmor %vm3024_vm15, %vm3025_vm12  ;;  %5206 = vmatpush.xpose.msra.mxu1 %v11225_v57  ;;  %v519_v43 = vld [vmem:[%s7672_s9 + $0x868] sm:$0xff] }
 0x1e6   : > { %v5922_v30 = vsel %vm18285_vm5, %v5921_v61, %v5920_v10  ;;  %v11237_v16 = vmax.f32 %v11081_v33, 1e-24  ;;  %v3033_v61 = vmul.f32 %v11021_v4, %v3032_v2  ;;  %v3027_v38 = vsel %vm11232_vm10, %v10977_v14, %v3023_v52  ;;  %v11253_v10 = vld [vmem:[%s7672_s9 + $0x860] sm:$0xff]  ;;  %vm11259_vm13 = vmor %vm3044_vm2, %vm3045_vm6  ;;  %v18293_v52 = vld [vmem:[#allocation40_spill] sm:$0xff] }
 0x1e7   : > { %v3071_v6 = vmul.f32 0.5, %v3070_v22  ;;  %v3061_v33 = vmul.f32 0.5, %v3060_v48  ;;  %v3100_v23 = vmul.f32 %v11194_v45, %v3099_v54  ;;  %v3089_v2 = vmul.f32 %v11207_v15, %v11079_v55  ;;  %5187 = vmatpush.xpose.msra.mxu0 %v11253_v10  ;;  %vm11297_vm2 = vmor %vm3034_vm7, %vm3035_vm14  ;;  %v11789_v11 = vld [vmem:[%s7672_s9 + $0x988] sm:$0xff] }
 0x1e8   : > { %v11267_v14 = vmax.f32 %v11118_v28, 1e-24  ;;  %6981 = vrsqrt.f32 %v11213_v37  ;;  %v11275_v48 = vadd.f32 %v5015_v44, %v4995_v25  ;;  %v18294_v22 = vsel %vm10917_vm9, %v10511_v31, %v10809_v36  ;;  %v11305_v36 = vld [vmem:[%s7672_s9 + $0x9f0] sm:$0xff] }
 0x1e9   : > { %v11283_v28 = vperm.slane %v18294_v22, %v18293_v52  ;;  %v3051_v29 = vmul.f32 0.5, %v3050_v60  ;;  %v11286_v54 = vpop.eup %6979  ;;  %vm18296_vm4 = vcmask 917312   ;;  %vm18300_vm9 = vcmask 523712   ;;  %5207 = vmatpush.xpose.msra.mxu1 %v519_v43  ;;  %18301 = vst [vmem:[#allocation48_spill] sm:$0xff] %v11305_v36  ;;  %v11308_v60 = vld [vmem:[%s7672_s9 + $0x9f8] sm:$0xff]  ;;  %5218 = vmatpush.xpose.msra.mxu2 %v11305_v36  ;;  %v11346_v22 = vld [vmem:[%s7672_s9 + $0x9e8] sm:$0xff] }
 0x1ea   : > { %18292 = vst [vmem:[#allocation45_spill] sm:$0xff] %v11275_v48  ;;  %v11291_v42 = vsel %vm18296_vm4, %v11100_v53, %v11128_v63  ;;  %v5924_v31 = vsel %vm18300_vm9, %v5923_v58, %v5922_v30  ;;  %vm3074_vm1 = vweird.f32 %v11005_v7  ;;  %6983 = vrsqrt.f32 %v11237_v16  ;;  %v516_v30 = vld [vmem:[%s7672_s9 + $0x850] sm:$0xff]  ;;  %5238 = vmatpush.xpose.msra.mxu3 %v11308_v60 }
 0x1eb   : > { %18295 = vst [vmem:[#allocation46_spill] sm:$0xff] %v11283_v28  ;;  %v3047_v53 = vsel %vm11259_vm13, %v11009_v27, %v3043_v51  ;;  %v3037_v1 = vsel %vm11297_vm2, %v11021_v4, %v3033_v61  ;;  %v5925_v63 = vperm.slane %v3027_v38, %v18197_v17  ;;  %v3072_v58 = vsub.f32 1.5, %v3071_v6  ;;  %5188 = vmatpush.xpose.msra.mxu0 %v516_v30  ;;  %v517_v61 = vld [vmem:[%s7672_s9 + $0x858] sm:$0xff]  ;;  %v515_v28 = vld [vmem:[%s7672_s9 + $0x848] sm:$0xff] }
 0x1ec   : > { %18297 = vst [vmem:[#allocation47_spill] sm:$0xff] %v11291_v42  ;;  %vm3064_vm11 = vweird.f32 %v11019_v13  ;;  %v3062_v25 = vsub.f32 1.5, %v3061_v33  ;;  %v3101_v44 = vmul.f32 0.5, %v3100_v23  ;;  %vm3104_vm12 = vweird.f32 %v11056_v49  ;;  %v11340_v23 = vpop.xlane.xlu1 %1539  ;;  %v11436_v13 = vld [vmem:[%s7672_s9 + $0x9c8] sm:$0xff] }
 0x1ed   : > { %18302 = vst [vmem:[#allocation52_spill] sm:$0xff] %v11308_v60  ;;  %v3090_v27 = vmul.f32 %v11207_v15, %v3089_v2  ;;  %6985 = vrsqrt.f32 %v11267_v14  ;;  %vm3075_vm7 = vweird.f32 %v11092_v35  ;;  %vm3065_vm6 = vweird.f32 %v11120_v50  ;;  %5208 = vmatpush.xpose.msra.mxu1 %v517_v61  ;;  %v11343_v2 = vld [vmem:[%s7672_s9 + $0x9e0] sm:$0xff]  ;;  %v11388_v60 = vld [vmem:[%s7672_s9 + $0x9d0] sm:$0xff] }
 0x1ee   : > { %v3052_v4 = vsub.f32 1.5, %v3051_v29  ;;  %v3079_v51 = vmul.f32 %v11286_v54, %v11186_v41  ;;  %v11329_v38 = vpop.eup %6981  ;;  %v11332_v6 = vperm.slane %v3047_v53, %v18249_v46  ;;  %v11335_v33 = vperm.slane %v3037_v1, %v8755_v59  ;;  %18303 = vst [vmem:[#allocation53_spill] sm:$0xff] %v11343_v2  ;;  %v11360_v1 = vpop.xlane.xlu0 %1536  ;;  %5219 = vmatpush.xpose.msra.mxu2 %v11343_v2  ;;  %vm11406_vm10 = vmor %vm3074_vm1, %vm3075_vm7 }
 0x1ef   : > { %vm3055_vm15 = vweird.f32 %v11162_v0  ;;  %v11338_v3 = vmax.f32 %v1528_v21, 1e-24  ;;  %18304 = vst [vmem:[#allocation54_spill] sm:$0xff] %v11346_v22  ;;  %vm18305_vm5 = vcmask 589312   ;;  %v11352_v40 = vmul.f32 %v11092_v35, %v3072_v58  ;;  %v11358_v21 = vpop.xlane.xlu2 %1542  ;;  %5239 = vmatpush.xpose.msra.mxu3 %v11346_v22  ;;  %5189 = vmatpush.xpose.msra.mxu0 %v514_v18  ;;  %vm11420_vm13 = vmor %vm3064_vm11, %vm3065_vm6 }
 0x1f0   : > { %v11349_v29 = vsel %vm18305_vm5, %v5925_v63, %v5924_v31  ;;  %vm3105_vm14 = vweird.f32 %v11194_v45  ;;  %v11356_v53 = vmax.f32 %v11222_v26, 1e-24  ;;  %v11365_v48 = vpop.eup %6983  ;;  %v11368_v31 = vmul.f32 %v11120_v50, %v3062_v25  ;;  %18306 = vst [vmem:[#allocation55_spill] sm:$0xff] %v11388_v60 }
 0x1f1   : > { %v3102_v63 = vsub.f32 1.5, %v3101_v44  ;;  %v11370_v58 = vmul.f32 0.5, %v3090_v27  ;;  %v11373_v26 = vmax.f32 %v11215_v34, 1e-24  ;;  %v11377_v42 = vmul.f32 %v11162_v0, %v3052_v4  ;;  %5209 = vmatpush.xpose.msra.mxu1 %v515_v28  ;;  %v11391_v4 = vld [vmem:[%s7672_s9 + $0x9d8] sm:$0xff]  ;;  %18313 = vst [vmem:[#allocation58_spill] sm:$0xff] %v11436_v13  ;;  %vm11443_vm2 = vmor %vm3104_vm12, %vm3105_vm14 }
 0x1f2   : > { %v3080_v22 = vmul.f32 %v11286_v54, %v3079_v51  ;;  %v3109_v46 = vmul.f32 %v11329_v38, %v11213_v37  ;;  %v1030_v25 = vmul.f32 %v11253_v10, %v11253_v10  ;;  %6987 = vrsqrt.f32 %v11338_v3  ;;  %18307 = vst [vmem:[#allocation56_spill] sm:$0xff] %v11391_v4  ;;  %5220 = vmatpush.xpose.msra.mxu2 %v11388_v60 }
 0x1f3   : > { %v11384_v44 = vpop.eup %6985  ;;  %v1031_v27 = vmul.f32 %v519_v43, %v519_v43  ;;  %v1028_v34 = vmul.f32 %v516_v30, %v516_v30  ;;  %v1029_v2 = vmul.f32 %v517_v61, %v517_v61  ;;  %v3119_v51 = vmul.f32 %v11365_v48, %v11237_v16  ;;  %5190 = vmatpush.xpose.msra.mxu0 %v11084_v8 }
 0x1f4   : > { %6989 = vrsqrt.f32 %v11356_v53  ;;  %v1026_v59 = vmul.f32 %v514_v18, %v514_v18  ;;  %v1027_v36 = vmul.f32 %v515_v28, %v515_v28  ;;  %v11398_v10 = vmul.f32 %v11194_v45, %v3102_v63  ;;  %5240 = vmatpush.xpose.msra.mxu3 %v11391_v4  ;;  %v18324_v4 = vld [vmem:[#allocation30_spill] sm:$0xff] }
 0x1f5   : > { %6991 = vrsqrt.f32 %v11373_v26  ;;  %v1676_v43 = vadd.f32 %v1031_v27, %v1030_v25  ;;  %v1673_v30 = vadd.f32 %v1029_v2, %v1028_v34  ;;  %v3129_v28 = vmul.f32 %v11384_v44, %v11267_v14  ;;  %5210 = vmatpush.xpose.msra.mxu1 %v11131_v24  ;;  %v18318_v27 = vld [vmem:[#allocation49_spill] sm:$0xff]  ;;  %v11473_v34 = vpop.xlane.xlu1 %1548 }
 0x1f6   : > { %v3110_v61 = vmul.f32 %v11329_v38, %v3109_v46  ;;  %v1036_v63 = vmul.f32 %v11087_v12, %v11087_v12  ;;  %v1670_v2 = vadd.f32 %v1027_v36, %v1026_v59  ;;  %v11424_v8 = vmul.f32 0.5, %v3080_v22  ;;  %v11433_v12 = vld [vmem:[%s7672_s9 + $0x9c0] sm:$0xff] }
 0x1f7   : > { %v1037_v25 = vmul.f32 %v11090_v39, %v11090_v39  ;;  %1677 = vadd.xlane.f32.xlu2 %v1676_v43  ;;  %1674 = vadd.xlane.f32.xlu1 %v1673_v30  ;;  %v1034_v59 = vmul.f32 %v11169_v62, %v11169_v62  ;;  %v1035_v46 = vmul.f32 %v11172_v19, %v11172_v19  ;;  %vm3054_vm4 = vweird.f32 %v11039_v20 }
 0x1f8   : > { %18312 = vst [vmem:[#allocation57_spill] sm:$0xff] %v11433_v12  ;;  %v3120_v36 = vmul.f32 %v11365_v48, %v3119_v51  ;;  %1671 = vadd.xlane.f32.xlu0 %v1670_v2  ;;  %v1032_v62 = vmul.f32 %v11205_v47, %v11205_v47  ;;  %v1033_v19 = vmul.f32 %v11225_v57, %v11225_v57  ;;  %v11453_v20 = vpop.eup %6987  ;;  %vm11461_vm9 = vmor %vm3054_vm4, %vm3055_vm15  ;;  %v18319_v57 = vld [vmem:[#allocation50_spill] sm:$0xff]  ;;  %v18320_v51 = vld [vmem:[#allocation20_spill] sm:$0xff]  ;;  %v3092_v30 = vsub.f32 1.5, %v11370_v58  ;;  %v11488_v2 = vpop.xlane.xlu2 %1551 }
 0x1f9   : > { %v3077_v49 = vsel %vm11406_vm10, %v11092_v35, %v11352_v40  ;;  %v11467_v47 = vmul.f32 %v18318_v27, %v18318_v27  ;;  %v11471_v24 = vmul.f32 %v18319_v57, %v18319_v57  ;;  %5191 = vmatpush.xpose.msra.mxu0 %v18320_v51  ;;  %5221 = vmatpush.xpose.msra.mxu2 %v11433_v12  ;;  %v3111_v18 = vmul.f32 0.5, %v3110_v61  ;;  %v11490_v27 = vpop.xlane.xlu0 %1545  ;;  %v11504_v58 = vld [vmem:[%s7672_s9 + $0x9b8] sm:$0xff]  ;;  %v18323_v12 = vld [vmem:[#allocation32_spill] sm:$0xff] }
 0x1fa   : > { %v11477_v35 = vpop.eup %6989  ;;  %v3067_v40 = vsel %vm11420_vm13, %v11120_v50, %v11368_v31  ;;  %v3057_v43 = vsel %vm11461_vm9, %v11162_v0, %v11377_v42  ;;  %5241 = vmatpush.xpose.msra.mxu3 %v11436_v13  ;;  %v3107_v50 = vsel %vm11443_vm2, %v11194_v45, %v11398_v10  ;;  %v3082_v31 = vsub.f32 1.5, %v11424_v8  ;;  %v11501_v42 = vld [vmem:[%s7672_s9 + $0x9b0] sm:$0xff]  ;;  %18322 = vst [vmem:[#allocation50_spill] sm:$0xff] %v11504_v58  ;;  %v18325_v45 = vld [vmem:[#allocation31_spill] sm:$0xff] }
 0x1fb   : > { %v11493_v57 = vpop.eup %6991  ;;  %v1685_v7 = vadd.f32 %v1037_v25, %v1036_v63  ;;  %v1682_v0 = vadd.f32 %v1035_v46, %v1034_v59  ;;  %18321 = vst [vmem:[#allocation49_spill] sm:$0xff] %v11501_v42  ;;  %v3130_v61 = vmul.f32 %v11384_v44, %v3129_v28  ;;  %v3121_v22 = vmul.f32 0.5, %v3120_v36  ;;  %5211 = vmatpush.xpose.msra.mxu1 %v18323_v12  ;;  %v18326_v8 = vld [vmem:[#allocation23_spill] sm:$0xff]  ;;  %v18328_v36 = vld [vmem:[#allocation14_spill] sm:$0xff] }
 0x1fc   : > { %v3139_v51 = vmul.f32 %v11453_v20, %v11338_v3  ;;  %v1679_v13 = vadd.f32 %v1033_v19, %v1032_v62  ;;  %v11511_v39 = vperm.slane %v3077_v49, %v18324_v4  ;;  %v11514_v10 = vperm.slane %v3067_v40, %v18325_v45  ;;  %v18327_v28 = vld [vmem:[#allocation27_spill] sm:$0xff] }
 0x1fd   : > { %vm3085_vm1 = vweird.f32 %v11286_v54  ;;  %v3159_v63 = vmul.f32 %v11477_v35, %v11356_v53  ;;  %5192 = vmatpush.xpose.msra.mxu0 %v18326_v8  ;;  %5222 = vmatpush.xpose.msra.mxu2 %v11501_v42  ;;  %v11522_v25 = vperm.slane %v3057_v43, %v18327_v28  ;;  %vm3084_vm11 = vweird.f32 %v11186_v41  ;;  %v18331_v8 = vld [vmem:[#allocation51_spill] sm:$0xff]  ;;  %v11575_v42 = vld [vmem:[#allocation2] sm:$0xff]  ;;  %v18344_v28 = vld [vmem:[#allocation34_spill] sm:$0xff] }
 0x1fe   : > { %vm3134_vm12 = vweird.f32 %v11267_v14  ;;  %v3112_v59 = vsub.f32 1.5, %v3111_v18  ;;  %v3149_v46 = vmul.f32 %v11493_v57, %v11373_v26  ;;  %v11529_v12 = vmax.f32 %v11360_v1, 1e-24  ;;  %5242 = vmatpush.xpose.msra.mxu3 %v11504_v58  ;;  %v18329_v18 = vld [vmem:[#allocation37_spill] sm:$0xff]  ;;  %v18335_v58 = vld [vmem:[#allocation35_spill] sm:$0xff]  ;;  %18336 = vst [vmem:[#allocation20_spill] sm:$0xff] %v11575_v42  ;;  %vm11601_vm13 = vmor %vm3084_vm11, %vm3085_vm1 }
 0x1ff   : > { %v11533_v62 = vperm.slane %v3107_v50, %v18328_v36  ;;  %v11536_v19 = vmul.f32 %v11207_v15, %v3092_v30  ;;  %vm3124_vm7 = vweird.f32 %v11237_v16  ;;  %vm3114_vm6 = vweird.f32 %v11213_v37  ;;  %1686 = vadd.xlane.f32.xlu2 %v1685_v7  ;;  %1683 = vadd.xlane.f32.xlu1 %v1682_v0  ;;  %v18330_v50 = vld [vmem:[#allocation44_spill] sm:$0xff]  ;;  %v18350_v16 = vld [vmem:[#allocation19_spill] sm:$0xff] }
 0x200   : > { %v11541_v49 = vmul.f32 %v11286_v54, %v3082_v31  ;;  %v3131_v40 = vmul.f32 0.5, %v3130_v61  ;;  %v3122_v1 = vsub.f32 1.5, %v3121_v22  ;;  %v3140_v43 = vmul.f32 %v11453_v20, %v3139_v51  ;;  %1680 = vadd.xlane.f32.xlu0 %v1679_v13  ;;  %5212 = vmatpush.xpose.msra.mxu1 %v18329_v18  ;;  %v18332_v31 = vld [vmem:[#allocation12_spill] sm:$0xff]  ;;  %v18333_v61 = vld [vmem:[#allocation11_spill] sm:$0xff]  ;;  %v11565_v51 = vpop.xlane.xlu1 %1557 }
 0x201   : > { %v1042_v30 = vmul.f32 %v18330_v50, %v18330_v50  ;;  %v1043_v4 = vmul.f32 %v18331_v8, %v18331_v8  ;;  %v3160_v36 = vmul.f32 %v11477_v35, %v3159_v63  ;;  %v11551_v7 = vmax.f32 %v11340_v23, 1e-24  ;;  %5193 = vmatpush.xpose.msra.mxu0 %v18332_v31  ;;  %v18334_v50 = vld [vmem:[#allocation22_spill] sm:$0xff]  ;;  %v11570_v8 = vpop.xlane.xlu2 %1560  ;;  %v11572_v31 = vpop.xlane.xlu0 %1554 }
 0x202   : > { %v3113_v0 = vmul.f32 %v11329_v38, %v3112_v59  ;;  %vm3115_vm15 = vweird.f32 %v11329_v38  ;;  %v3150_v13 = vmul.f32 %v11493_v57, %v3149_v46  ;;  %6993 = vrsqrt.f32 %v11529_v12 }
 0x203   : > { %vm3135_vm5 = vweird.f32 %v11384_v44  ;;  %vm3125_vm14 = vweird.f32 %v11365_v48  ;;  %v1040_v22 = vmul.f32 %v18333_v61, %v18333_v61  ;;  %v11563_v23 = vmax.f32 %v11358_v21, 1e-24  ;;  %vm11582_vm10 = vmor %vm3114_vm6, %vm3115_vm15  ;;  %v18340_v61 = vld [vmem:[#allocation36_spill] sm:$0xff] }
 0x204   : > { %v3132_v63 = vsub.f32 1.5, %v3131_v40  ;;  %v3123_v59 = vmul.f32 %v11365_v48, %v3122_v1  ;;  %v3141_v18 = vmul.f32 0.5, %v3140_v43  ;;  %v1041_v46 = vmul.f32 %v18334_v50, %v18334_v50  ;;  %5213 = vmatpush.xpose.msra.mxu1 %v18335_v58  ;;  %5194 = vmatmul.f32.vlgmr.msra.gmra.mxu0 %v11575_v42  ;;  %v18339_v1 = vld [vmem:[#allocation43_spill] sm:$0xff]  ;;  %vm11633_vm9 = vmor %vm3124_vm7, %vm3125_vm14 }
 0x205   : > { %v3161_v40 = vmul.f32 0.5, %v3160_v36  ;;  %v1038_v43 = vmul.f32 %v18339_v1, %v18339_v1  ;;  %v1039_v50 = vmul.f32 %v18340_v61, %v18340_v61  ;;  %6995 = vrsqrt.f32 %v11551_v7  ;;  %v18343_v1 = vld [vmem:[#allocation13_spill] sm:$0xff]  ;;  %vm11641_vm1 = vmor %vm3134_vm12, %vm3135_vm5 }
 0x206   : > { %v3117_v58 = vsel %vm11582_vm10, %v11329_v38, %v3113_v0  ;;  %v3151_v42 = vmul.f32 0.5, %v3150_v13  ;;  %v11595_v37 = vmax.f32 %v11488_v2, 1e-24  ;;  %v1694_v60 = vadd.f32 %v1043_v4, %v1042_v30  ;;  %v11617_v2 = vld [vmem:[#allocation2 + $0x8] sm:$0xff] }
 0x207   : > { %v11607_v61 = vmul.f32 %v18343_v1, %v18343_v1  ;;  %v11611_v38 = vmul.f32 %v18344_v28, %v18344_v28  ;;  %6997 = vrsqrt.f32 %v11563_v23  ;;  %v11615_v4 = vmax.f32 %v11473_v34, 1e-24  ;;  %18345 = vst [vmem:[#allocation32_spill] sm:$0xff] %v11617_v2  ;;  %5214 = vmatmul.f32.vlgmr.msra.gmra.mxu1 %v11617_v2 }
 0x208   : > { %v11620_v41 = vpop.eup %6993  ;;  %vm3094_vm4 = vweird.f32 %v11079_v55  ;;  %vm3095_vm2 = vweird.f32 %v11207_v15  ;;  %v3133_v30 = vmul.f32 %v11384_v44, %v3132_v63  ;;  %v3142_v0 = vsub.f32 1.5, %v3141_v18  ;;  %1695 = vadd.xlane.f32.xlu2 %v1694_v60  ;;  %v18351_v18 = vld [vmem:[#allocation16_spill] sm:$0xff] }
 0x209   : > { %v1691_v13 = vadd.f32 %v1041_v46, %v1040_v22  ;;  %v3127_v63 = vsel %vm11633_vm9, %v11365_v48, %v3123_v59  ;;  %v5942_v1 = vperm.slane %v3117_v58, %v18350_v16  ;;  %v3162_v28 = vsub.f32 1.5, %v3161_v40 }
 0x20a   : > { %v1688_v2 = vadd.f32 %v1039_v50, %v1038_v43  ;;  %vm3164_vm11 = vweird.f32 %v11356_v53  ;;  %vm3165_vm7 = vweird.f32 %v11477_v35  ;;  %v3152_v60 = vsub.f32 1.5, %v3151_v42  ;;  %v11702_v53 = vpop.xlane.xlu0 %1563 }
 0x20b   : > { %6999 = vrsqrt.f32 %v11595_v37  ;;  %1692 = vadd.xlane.f32.xlu1 %v1691_v13  ;;  %v11652_v14 = vpop.eup %6995  ;;  %v5928_v48 = vsel %vm17891_vm3, %v11335_v33, %v11349_v29  ;;  %v3169_v22 = vmul.f32 %v11620_v41, %v11529_v12  ;;  %v11661_v59 = vmax.f32 %v11490_v27, 1e-24  ;;  %v11670_v33 = vld [vmem:[%s7672_s9 + $0x9a0] sm:$0xff]  ;;  %v11673_v29 = vld [vmem:[%s7672_s9 + $0x9a8] sm:$0xff]  ;;  %vm11690_vm5 = vmor %vm3164_vm11, %vm3165_vm7 }
 0x20c   : > { %7001 = vrsqrt.f32 %v11615_v4  ;;  %1689 = vadd.xlane.f32.xlu0 %v1688_v2  ;;  %v3137_v42 = vsel %vm11641_vm1, %v11384_v44, %v3133_v30  ;;  %v5944_v46 = vperm.slane %v3127_v63, %v18351_v18  ;;  %v3143_v40 = vmul.f32 %v11453_v20, %v3142_v0  ;;  %18352 = vst [vmem:[#allocation23_spill] sm:$0xff] %v11673_v29  ;;  %v11682_v44 = vpop.xlane.xlu1 %1566  ;;  %v18356_v30 = vld [vmem:[#allocation18_spill] sm:$0xff] }
 0x20d   : > { %vm3145_vm12 = vweird.f32 %v11453_v20  ;;  %v11675_v43 = vpop.eup %6997  ;;  %v5943_v27 = vsel %vm17892_vm0, %v5942_v1, %v11533_v62  ;;  %v3163_v50 = vmul.f32 %v11477_v35, %v3162_v28  ;;  %vm3154_vm6 = vweird.f32 %v11373_v26  ;;  %5223 = vmatpush.xpose.msra.mxu2 %v11670_v33  ;;  %5243 = vmatpush.xpose.msra.mxu3 %v11673_v29  ;;  %v11700_v28 = vpop.xlane.xlu2 %1569 }
 0x20e   : > { %vm3144_vm15 = vweird.f32 %v11338_v3  ;;  %v3153_v62 = vmul.f32 %v11493_v57, %v3152_v60  ;;  %vm3155_vm14 = vweird.f32 %v11493_v57  ;;  %vm18355_vm10 = vcmask 720512  }
 0x20f   : > { %v5930_v3 = vsel %vm18355_vm10, %v11332_v6, %v5928_v48  ;;  %v3179_v2 = vmul.f32 %v11652_v14, %v11551_v7  ;;  %v5946_v34 = vperm.slane %v3137_v42, %v18356_v30  ;;  %vm11707_vm9 = vmor %vm3144_vm15, %vm3145_vm12  ;;  %vm18359_vm1 = vcmask 786112   ;;  %v7352_v48 = vld [vmem:[%s7672_s9 + $0x8f0] sm:$0xff] }
 0x210   : > { %v5932_v6 = vsel %vm18359_vm1, %v11522_v25, %v5930_v3  ;;  %v3170_v13 = vmul.f32 %v11620_v41, %v3169_v22  ;;  %7003 = vrsqrt.f32 %v11661_v59  ;;  %vm18360_vm11 = vcmask 195712   ;;  %v11725_v30 = vld [vmem:[%s7672_s9 + $0x990] sm:$0xff]  ;;  %v11728_v25 = vld [vmem:[%s7672_s9 + $0x998] sm:$0xff]  ;;  %vm11739_vm7 = vmor %vm3154_vm6, %vm3155_vm14 }
 0x211   : > { %v11715_v21 = vpop.eup %6999  ;;  %v5945_v63 = vsel %vm18360_vm11, %v5944_v46, %v5943_v27  ;;  %v3147_v1 = vsel %vm11707_vm9, %v11453_v20, %v3143_v40  ;;  %v3189_v60 = vmul.f32 %v11675_v43, %v11563_v23  ;;  %v1048_v42 = vmul.f32 %v7352_v48, %v7352_v48  ;;  %18361 = vst [vmem:[#allocation37_spill] sm:$0xff] %v11725_v30  ;;  %v7353_v46 = vld [vmem:[%s7672_s9 + $0x8f8] sm:$0xff]  ;;  %vm11760_vm6 = vmor %vm3094_vm4, %vm3095_vm2  ;;  %v11786_v48 = vld [vmem:[%s7672_s9 + $0x980] sm:$0xff] }
 0x212   : > { %18362 = vst [vmem:[#allocation44_spill] sm:$0xff] %v11728_v25  ;;  %v11730_v22 = vpop.eup %7001  ;;  %v3167_v3 = vsel %vm11690_vm5, %v11477_v35, %v3163_v50  ;;  %v1049_v40 = vmul.f32 %v7353_v46, %v7353_v46  ;;  %v1700_v27 = vadd.f32 %v11471_v24, %v11467_v47  ;;  %5224 = vmatpush.xpose.msra.mxu2 %v11725_v30  ;;  %vm18365_vm12 = vcmask 851712   ;;  %v18368_v24 = vld [vmem:[#allocation15_spill] sm:$0xff] }
 0x213   : > { %5244 = vmatpush.xpose.msra.mxu3 %v11728_v25  ;;  %v3157_v35 = vsel %vm11739_vm7, %v11493_v57, %v3153_v62  ;;  %v5934_v26 = vsel %vm18365_vm12, %v11514_v10, %v5932_v6  ;;  %v3180_v50 = vmul.f32 %v11652_v14, %v3179_v2  ;;  %v1697_v58 = vadd.f32 %v11611_v38, %v11607_v61  ;;  %v11768_v2 = vld [vmem:[%s7672_s9 + $0x920] sm:$0xff]  ;;  %v18369_v61 = vld [vmem:[#allocation41_spill] sm:$0xff] }
 0x214   : > { %v5948_v57 = vperm.slane %v3147_v1, %v18368_v24  ;;  %v3171_v62 = vmul.f32 0.5, %v3170_v13  ;;  %v3219_v10 = vmul.f32 %v11715_v21, %v11595_v37  ;;  %v1703_v0 = vadd.f32 %v1049_v40, %v1048_v42  ;;  %1701 = vadd.xlane.f32.xlu1 %v1700_v27  ;;  %v11809_v40 = vld [vmem:[%s7672_s9 + $0x928] sm:$0xff] }
 0x215   : > { %v18370_v55 = vsel %vm11244_vm8, %v10787_v56, %v11105_v9  ;;  %v3190_v13 = vmul.f32 %v11675_v43, %v3189_v60  ;;  %v3209_v1 = vmul.f32 %v11730_v22, %v11615_v4  ;;  %1698 = vadd.xlane.f32.xlu0 %v1697_v58  ;;  %v11794_v9 = vperm.slane %v3167_v3, %v18283_v5  ;;  %v18374_v3 = vld [vmem:[#allocation17_spill] sm:$0xff]  ;;  %v11841_v6 = vpop.xlane.xlu2 %1578 }
 0x216   : > { %v11776_v38 = vperm.slane %v18370_v55, %v18369_v61  ;;  %v11791_v56 = vpop.eup %7003  ;;  %vm18372_vm8 = vcmask 261312   ;;  %v18373_v60 = vsel %vm11601_vm13, %v11286_v54, %v11541_v49  ;;  %v11806_v46 = vmax.f32 %v11570_v8, 1e-24  ;;  %1704 = vadd.xlane.f32.xlu2 %v1703_v0  ;;  %5225 = vmatpush.xpose.msra.mxu2 %v11786_v48  ;;  %v11820_v49 = vld [vmem:[%s7672_s9 + $0x910] sm:$0xff]  ;;  %v11823_v8 = vld [vmem:[%s7672_s9 + $0x918] sm:$0xff] }
 0x217   : > { %v5947_v42 = vsel %vm18372_vm8, %v5946_v34, %v5945_v63  ;;  %v11803_v20 = vperm.slane %v18373_v60, %v18293_v52  ;;  %v5950_v27 = vperm.slane %v3157_v35, %v18374_v3  ;;  %vm18375_vm4 = vcmask 917312   ;;  %v11826_v63 = vld [vmem:[%s7672_s9 + $0x900] sm:$0xff]  ;;  %5245 = vmatpush.xpose.msra.mxu3 %v11789_v11 }
 0x218   : > { %18371 = vst [vmem:[#allocation51_spill] sm:$0xff] %v11776_v38  ;;  %v11815_v34 = vsel %vm18375_vm4, %v11511_v39, %v5934_v26  ;;  %v3181_v36 = vmul.f32 0.5, %v3180_v50  ;;  %v1054_v54 = vmul.f32 %v11768_v2, %v11768_v2  ;;  %vm18376_vm13 = vcmask 326912   ;;  %v11832_v26 = vpop.xlane.xlu1 %1575  ;;  %v11835_v50 = vld [vmem:[%s7672_s9 + $0x908] sm:$0xff]  ;;  %v11857_v38 = vld [vmem:[%s7672_s9 + $0x978] sm:$0xff] }
 0x219   : > { %v5949_v58 = vsel %vm18376_vm13, %v5948_v57, %v5947_v42  ;;  %v3172_v35 = vsub.f32 1.5, %v3171_v62  ;;  %vm3175_vm2 = vweird.f32 %v11620_v41  ;;  %v3220_v39 = vmul.f32 %v11715_v21, %v3219_v10  ;;  %v1573_v57 = vpop.xlane.xlu0 %1572  ;;  %v11846_v10 = vld [vmem:[%s7672_s9 + $0x970] sm:$0xff] }
 0x21a   : > { %v3191_v0 = vmul.f32 0.5, %v3190_v13  ;;  %vm3194_vm15 = vweird.f32 %v11563_v23  ;;  %v3210_v55 = vmul.f32 %v11730_v22, %v3209_v1  ;;  %v3199_v60 = vmul.f32 %v11791_v56, %v11661_v59  ;;  %5226 = vmatpush.xpose.msra.mxu2 %v11846_v10 }
 0x21b   : > { %v1055_v62 = vmul.f32 %v11809_v40, %v11809_v40  ;;  %7005 = vrsqrt.f32 %v11806_v46  ;;  %v1052_v13 = vmul.f32 %v11820_v49, %v11820_v49  ;;  %v1053_v42 = vmul.f32 %v11823_v8, %v11823_v8  ;;  %5246 = vmatpush.xpose.msra.mxu3 %v11857_v38 }
 0x21c   : > { %v1050_v1 = vmul.f32 %v11826_v63, %v11826_v63  ;;  %v3182_v5 = vsub.f32 1.5, %v3181_v36  ;;  %v11860_v52 = vmax.f32 %v11565_v51, 1e-24  ;;  %v1051_v24 = vmul.f32 %v11835_v50, %v11835_v50 }
 0x21d   : > { %v1712_v3 = vadd.f32 %v1055_v62, %v1054_v54  ;;  %v3173_v18 = vmul.f32 %v11620_v41, %v3172_v35  ;;  %v3221_v16 = vmul.f32 0.5, %v3220_v39  ;;  %v11867_v25 = vmax.f32 %v11682_v44, 1e-24  ;;  %v11877_v39 = vld [vmem:[%s7672_s9 + $0x960] sm:$0xff]  ;;  %v11880_v44 = vld [vmem:[%s7672_s9 + $0x968] sm:$0xff] }
 0x21e   : > { %v1709_v30 = vadd.f32 %v1053_v42, %v1052_v13  ;;  %vm3184_vm5 = vweird.f32 %v11551_v7  ;;  %vm3174_vm14 = vweird.f32 %v11529_v12  ;;  %v3211_v51 = vmul.f32 0.5, %v3210_v55  ;;  %5227 = vmatpush.xpose.msra.mxu2 %v11877_v39  ;;  %v11935_v42 = vpop.xlane.xlu2 %1587 }
 0x21f   : > { %v3200_v36 = vmul.f32 %v11791_v56, %v3199_v60  ;;  %vm18377_vm10 = vcmask 392512   ;;  %v3192_v62 = vsub.f32 1.5, %v3191_v0  ;;  %v11874_v29 = vmax.f32 %v11702_v53, 1e-24  ;;  %1713 = vadd.xlane.f32.xlu2 %v1712_v3  ;;  %vm11886_vm1 = vmor %vm3174_vm14, %vm3175_vm2  ;;  %5247 = vmatpush.xpose.msra.mxu3 %v11880_v44  ;;  %v12020_v0 = vld [vmem:[%s7672_s9 + $0xaf8] sm:$0xff] }
 0x220   : > { %v5951_v54 = vsel %vm18377_vm10, %v5950_v27, %v5949_v58  ;;  %1710 = vadd.xlane.f32.xlu1 %v1709_v30  ;;  %v1706_v35 = vadd.f32 %v1051_v24, %v1050_v1  ;;  %v3183_v13 = vmul.f32 %v11652_v14, %v3182_v5  ;;  %vm3185_vm9 = vweird.f32 %v11652_v14  ;;  %18398 = vst [vmem:[#allocation36_spill] sm:$0xff] %v12020_v0 }
 0x221   : > { %7007 = vrsqrt.f32 %v11860_v52  ;;  %v11892_v53 = vmax.f32 %v11700_v28, 1e-24  ;;  %v11896_v30 = vpop.eup %7005  ;;  %vm3195_vm11 = vweird.f32 %v11675_v43  ;;  %v3177_v5 = vsel %vm11886_vm1, %v11620_v41, %v3173_v18  ;;  %vm11912_vm12 = vmor %vm3184_vm5, %vm3185_vm9  ;;  %v11926_v18 = vld [vmem:[%s7672_s9 + $0x958] sm:$0xff]  ;;  %5278 = vmatpush.xpose.msrb.mxu1 %v12020_v0 }
 0x222   : > { %18380 = vst [vmem:[#allocation12_spill] sm:$0xff] %v11896_v30  ;;  %v3222_v24 = vsub.f32 1.5, %v3221_v16  ;;  %7009 = vrsqrt.f32 %v11867_v25  ;;  %1707 = vadd.xlane.f32.xlu0 %v1706_v35  ;;  %vm3224_vm7 = vweird.f32 %v11595_v37  ;;  %v3212_v28 = vsub.f32 1.5, %v3211_v51  ;;  %v11920_v16 = vpop.xlane.xlu1 %1584  ;;  %vm11958_vm13 = vmor %vm3194_vm15, %vm3195_vm11 }
 0x223   : > { %v3201_v3 = vmul.f32 0.5, %v3200_v36  ;;  %v11905_v27 = vmax.f32 %v11572_v31, 1e-24  ;;  %v3193_v58 = vmul.f32 %v11675_v43, %v3192_v62  ;;  %vm3225_vm8 = vweird.f32 %v11715_v21  ;;  %v11923_v31 = vld [vmem:[%s7672_s9 + $0x950] sm:$0xff]  ;;  %5248 = vmatpush.xpose.msra.mxu3 %v11926_v18 }
 0x224   : > { %7011 = vrsqrt.f32 %v11874_v29  ;;  %v11918_v41 = vmax.f32 %v1573_v57, 1e-24  ;;  %v3187_v7 = vsel %vm11912_vm12, %v11652_v14, %v3183_v13  ;;  %v5954_v55 = vperm.slane %v3177_v5, %v18193_v32  ;;  %v11937_v57 = vpop.xlane.xlu0 %1581  ;;  %5228 = vmatpush.xpose.msra.mxu2 %v11923_v31  ;;  %v546_v13 = vld [vmem:[%s7672_s9 + $0x940] sm:$0xff] }
 0x225   : > { %v3249_v60 = vmul.f32 %v11896_v30, %v11806_v46  ;;  %7013 = vrsqrt.f32 %v11892_v53  ;;  %vm18383_vm4 = vcmask 982912   ;;  %v18385_v14 = vsel %vm11760_vm6, %v11207_v15, %v11536_v19  ;;  %vm11970_vm6 = vmor %vm3224_vm7, %vm3225_vm8 }
 0x226   : > { %v11944_v1 = vsel %vm18383_vm4, %v11803_v20, %v11815_v34  ;;  %v11952_v51 = vperm.slane %v18385_v14, %v18369_v61  ;;  %v3223_v20 = vmul.f32 %v11715_v21, %v3222_v24  ;;  %vm3214_vm2 = vweird.f32 %v11615_v4  ;;  %v18399_v14 = vld [vmem:[#allocation29_spill] sm:$0xff] }
 0x227   : > { %18384 = vst [vmem:[#allocation11_spill] sm:$0xff] %v11944_v1  ;;  %v11964_v34 = vpop.eup %7007  ;;  %v3213_v19 = vmul.f32 %v11730_v22, %v3212_v28  ;;  %vm3215_vm15 = vweird.f32 %v11730_v22  ;;  %v3202_v23 = vsub.f32 1.5, %v3201_v3  ;;  %7015 = vrsqrt.f32 %v11905_v27  ;;  %v18395_v3 = vld [vmem:[#allocation48_spill] sm:$0xff] }
 0x228   : > { %18386 = vst [vmem:[#allocation22_spill] sm:$0xff] %v11952_v51  ;;  %v11977_v47 = vpop.eup %7009  ;;  %v5956_v62 = vperm.slane %v3187_v7, %v18197_v17  ;;  %vm18391_vm5 = vcmask 458112   ;;  %v11983_v37 = vmax.f32 %v11832_v26, 1e-24  ;;  %7017 = vrsqrt.f32 %v11918_v41  ;;  %5229 = vmatpush.xpose.msra.mxu2 %v546_v13  ;;  %vm12005_vm10 = vmor %vm3214_vm2, %vm3215_vm15  ;;  %v18406_v51 = vld [vmem:[#allocation53_spill] sm:$0xff] }
 0x229   : > { %v5953_v35 = vsel %vm18391_vm5, %v11794_v9, %v5951_v54  ;;  %v3197_v12 = vsel %vm11958_vm13, %v11675_v43, %v3193_v58  ;;  %vm18392_vm14 = vcmask 523712   ;;  %v3250_v24 = vmul.f32 %v11896_v30, %v3249_v60  ;;  %v547_v9 = vld [vmem:[%s7672_s9 + $0x948] sm:$0xff] }
 0x22a   : > { %v5955_v5 = vsel %vm18392_vm14, %v5954_v55, %v5953_v35  ;;  %v11993_v28 = vmax.f32 %v11841_v6, 1e-24  ;;  %v11996_v26 = vpop.eup %7011  ;;  %v3227_v54 = vsel %vm11970_vm6, %v11715_v21, %v3223_v20  ;;  %vm3204_vm9 = vweird.f32 %v11661_v59  ;;  %5249 = vmatpush.xpose.msra.mxu3 %v547_v9  ;;  %v12017_v21 = vld [vmem:[%s7672_s9 + $0xaf0] sm:$0xff]  ;;  %v12076_v61 = vpop.xlane.xlu1 %1593 }
 0x22b   : > { %v3239_v6 = vmul.f32 %v11964_v34, %v11860_v52  ;;  %v12014_v58 = vmul.f32 %v18395_v3, %v18395_v3  ;;  %18397 = vst [vmem:[#allocation43_spill] sm:$0xff] %v12017_v21  ;;  %v12022_v4 = vpop.eup %7013  ;;  %v3217_v7 = vsel %vm12005_vm10, %v11730_v22, %v3213_v19  ;;  %v12028_v55 = vmul.f32 %v11791_v56, %v3202_v23  ;;  %v18401_v22 = vld [vmem:[#allocation52_spill] sm:$0xff]  ;;  %v544_v19 = vld [vmem:[%s7672_s9 + $0x930] sm:$0xff]  ;;  %v18403_v3 = vld [vmem:[#allocation27_spill] sm:$0xff] }
 0x22c   : > { %vm3205_vm1 = vweird.f32 %v11791_v56  ;;  %v3269_v60 = vmul.f32 %v11977_v47, %v11867_v25  ;;  %5258 = vmatpush.xpose.msrb.mxu0 %v12017_v21  ;;  %v12036_v36 = vperm.slane %v3197_v12, %v18399_v14  ;;  %vm18400_vm11 = vcmask 589312   ;;  %5230 = vmatpush.xpose.msra.mxu2 %v544_v19  ;;  %v12089_v14 = vpop.xlane.xlu0 %1590 }
 0x22d   : > { %18396 = vst [vmem:[#allocation35_spill] sm:$0xff] %v12014_v58  ;;  %v12039_v20 = vsel %vm18400_vm11, %v5956_v62, %v5955_v5  ;;  %v12043_v15 = vmul.f32 %v18401_v22, %v18401_v22  ;;  %7019 = vrsqrt.f32 %v11983_v37  ;;  %v12047_v23 = vpop.eup %7015  ;;  %v12050_v35 = vperm.slane %v3227_v54, %v18325_v45  ;;  %v545_v62 = vld [vmem:[%s7672_s9 + $0x938] sm:$0xff]  ;;  %vm12065_vm7 = vmor %vm3204_vm9, %vm3205_vm1  ;;  %v12087_v45 = vpop.xlane.xlu2 %1596  ;;  %v12094_v54 = vld [vmem:[%s7672_s9 + $0xae0] sm:$0xff] }
 0x22e   : > { %v3251_v43 = vmul.f32 0.5, %v3250_v24  ;;  %v3259_v12 = vmul.f32 %v11996_v26, %v11874_v29  ;;  %7021 = vrsqrt.f32 %v11993_v28  ;;  %v12056_v5 = vpop.eup %7017  ;;  %v12059_v22 = vperm.slane %v3217_v7, %v18403_v3  ;;  %5250 = vmatpush.xpose.msra.mxu3 %v545_v62  ;;  %18407 = vst [vmem:[#allocation34_spill] sm:$0xff] %v12089_v14 }
 0x22f   : > { %18402 = vst [vmem:[#allocation13_spill] sm:$0xff] %v12043_v15  ;;  %v3240_v24 = vmul.f32 %v11964_v34, %v3239_v6  ;;  %v12072_v1 = vmul.f32 %v18406_v51, %v18406_v51  ;;  %v3279_v7 = vmul.f32 %v12022_v4, %v11892_v53  ;;  %v3207_v59 = vsel %vm12065_vm7, %v11791_v56, %v12028_v55  ;;  %v599_v56 = vld [vmem:[%s7672_s9 + $0xae8] sm:$0xff] }
 0x230   : > { %v3270_v3 = vmul.f32 %v11977_v47, %v3269_v60  ;;  %v1060_v6 = vmul.f32 %v11923_v31, %v11923_v31  ;;  %v1061_v51 = vmul.f32 %v11926_v18, %v11926_v18  ;;  %v3229_v0 = vmul.f32 %v12047_v23, %v11905_v27  ;;  %5259 = vmatpush.xpose.msrb.mxu0 %v12094_v54 }
 0x231   : > { %v1058_v21 = vmul.f32 %v546_v13, %v546_v13  ;;  %v1059_v32 = vmul.f32 %v547_v9, %v547_v9  ;;  %v1056_v17 = vmul.f32 %v544_v19, %v544_v19  ;;  %v3260_v55 = vmul.f32 %v11996_v26, %v3259_v12  ;;  %5279 = vmatpush.xpose.msrb.mxu1 %v599_v56 }
 0x232   : > { %v3289_v31 = vmul.f32 %v12056_v5, %v11918_v41  ;;  %v1721_v60 = vadd.f32 %v1061_v51, %v1060_v6  ;;  %v1057_v18 = vmul.f32 %v545_v62, %v545_v62  ;;  %v3252_v58 = vsub.f32 1.5, %v3251_v43  ;;  %5231 = vmatpush.xpose.msra.mxu2 %v11768_v2  ;;  %5251 = vmatpush.xpose.msra.mxu3 %v11809_v40  ;;  %v18410_v40 = vld [vmem:[#allocation54_spill] sm:$0xff] }
 0x233   : > { %v12101_v15 = vpop.eup %7019  ;;  %v12103_v14 = vmul.f32 0.5, %v3240_v24  ;;  %v3280_v13 = vmul.f32 %v12022_v4, %v3279_v7  ;;  %v1718_v9 = vadd.f32 %v1059_v32, %v1058_v21  ;;  %v3271_v12 = vmul.f32 0.5, %v3270_v3  ;;  %v12120_v21 = vld [vmem:[%s7672_s9 + $0xad0] sm:$0xff]  ;;  %v18408_v3 = vld [vmem:[#allocation28_spill] sm:$0xff] }
 0x234   : > { %v12107_v19 = vpop.eup %7021  ;;  %1722 = vadd.xlane.f32.xlu2 %v1721_v60  ;;  %v1715_v62 = vadd.f32 %v1057_v18, %v1056_v17  ;;  %v1066_v6 = vmul.f32 %v11786_v48, %v11786_v48  ;;  %v1067_v43 = vmul.f32 %v11789_v11, %v11789_v11  ;;  %v3230_v24 = vmul.f32 %v12047_v23, %v3229_v0  ;;  %v12123_v17 = vld [vmem:[%s7672_s9 + $0xad8] sm:$0xff]  ;;  %v18411_v18 = vld [vmem:[#allocation55_spill] sm:$0xff] }
 0x235   : > { %1719 = vadd.xlane.f32.xlu1 %v1718_v9  ;;  %v1064_v32 = vmul.f32 %v11846_v10, %v11846_v10  ;;  %v1065_v2 = vmul.f32 %v11857_v38, %v11857_v38  ;;  %v12126_v48 = vperm.slane %v3207_v59, %v18408_v3  ;;  %v3261_v7 = vmul.f32 0.5, %v3260_v55  ;;  %5260 = vmatpush.xpose.msrb.mxu0 %v12120_v21  ;;  %v12502_v3 = vld [vmem:[%s7672_s9 + $0xa98] sm:$0xff] }
 0x236   : > { %v3299_v11 = vmul.f32 %v12101_v15, %v11983_v37  ;;  %v3290_v0 = vmul.f32 %v12056_v5, %v3289_v31  ;;  %1716 = vadd.xlane.f32.xlu0 %v1715_v62  ;;  %v12133_v38 = vmul.f32 %v11896_v30, %v3252_v58  ;;  %v12137_v10 = vmul.f32 %v18410_v40, %v18410_v40  ;;  %v12154_v40 = vpop.xlane.xlu1 %1602 }
 0x237   : > { %v3281_v51 = vmul.f32 0.5, %v3280_v13  ;;  %v3309_v59 = vmul.f32 %v12107_v19, %v11993_v28  ;;  %5280 = vmatpush.xpose.msrb.mxu1 %v12123_v17  ;;  %5232 = vmatpush.xpose.msra.mxu2 %v11820_v49  ;;  %v3242_v56 = vsub.f32 1.5, %v12103_v14  ;;  %v3272_v55 = vsub.f32 1.5, %v3271_v12 }
 0x238   : > { %18409 = vst [vmem:[#allocation48_spill] sm:$0xff] %v12133_v38  ;;  %v1730_v31 = vadd.f32 %v1067_v43, %v1066_v6  ;;  %v1062_v58 = vmul.f32 %v11877_v39, %v11877_v39  ;;  %v12146_v60 = vmul.f32 0.5, %v3230_v24  ;;  %v12150_v9 = vmul.f32 %v18411_v18, %v18411_v18  ;;  %5252 = vmatpush.xpose.msra.mxu3 %v11823_v8  ;;  %v12159_v6 = vpop.xlane.xlu2 %1605  ;;  %v12161_v43 = vpop.xlane.xlu0 %1599  ;;  %v18478_v38 = vld [vmem:[#allocation35_spill] sm:$0xff] }
 0x239   : > { %v1727_v13 = vadd.f32 %v1065_v2, %v1064_v32  ;;  %v1063_v62 = vmul.f32 %v11880_v44, %v11880_v44  ;;  %vm3274_vm12 = vweird.f32 %v11867_v25  ;;  %v3262_v49 = vsub.f32 1.5, %v3261_v7  ;;  %v18412_v32 = vld [vmem:[#allocation49_spill] sm:$0xff] }
 0x23a   : > { %v3300_v39 = vmul.f32 %v12101_v15, %v3299_v11  ;;  %v3291_v12 = vmul.f32 0.5, %v3290_v0  ;;  %vm3235_vm8 = vweird.f32 %v12047_v23  ;;  %v3282_v24 = vsub.f32 1.5, %v3281_v51  ;;  %v18413_v11 = vld [vmem:[#allocation50_spill] sm:$0xff]  ;;  %v12176_v51 = vld [vmem:[%s7672_s9 + $0xac0] sm:$0xff] }
 0x23b   : > { %v3310_v44 = vmul.f32 %v12107_v19, %v3309_v59  ;;  %v1072_v8 = vmul.f32 %v18412_v32, %v18412_v32  ;;  %v1724_v2 = vadd.f32 %v1063_v62, %v1062_v58  ;;  %5233 = vmatpush.xpose.msra.mxu2 %v11826_v63  ;;  %v3273_v7 = vmul.f32 %v11977_v47, %v3272_v55  ;;  %v12179_v59 = vld [vmem:[%s7672_s9 + $0xac8] sm:$0xff] }
 0x23c   : > { %vm3275_vm4 = vweird.f32 %v11977_v47  ;;  %v1073_v0 = vmul.f32 %v18413_v11, %v18413_v11  ;;  %v12173_v18 = vmax.f32 %v11935_v42, 1e-24  ;;  %1731 = vadd.xlane.f32.xlu2 %v1730_v31  ;;  %18414 = vst [vmem:[#allocation52_spill] sm:$0xff] %v12179_v59  ;;  %vm3234_vm13 = vweird.f32 %v11905_v27  ;;  %v18415_v63 = vld [vmem:[#allocation56_spill] sm:$0xff]  ;;  %5261 = vmatpush.xpose.msrb.mxu0 %v12176_v51 }
 0x23d   : > { %vm3284_vm2 = vweird.f32 %v11892_v53  ;;  %vm3285_vm6 = vweird.f32 %v12022_v4  ;;  %vm3264_vm15 = vweird.f32 %v11874_v29  ;;  %v12187_v55 = vmul.f32 %v18415_v63, %v18415_v63  ;;  %1728 = vadd.xlane.f32.xlu1 %v1727_v13  ;;  %5281 = vmatpush.xpose.msrb.mxu1 %v12179_v59  ;;  %vm12200_vm10 = vmor %vm3274_vm12, %vm3275_vm4  ;;  %v18428_v11 = vld [vmem:[#allocation44_spill] sm:$0xff] }
 0x23e   : > { %v3263_v42 = vmul.f32 %v11996_v26, %v3262_v49  ;;  %vm3265_vm5 = vweird.f32 %v11996_v26  ;;  %v3301_v31 = vmul.f32 0.5, %v3300_v39  ;;  %v3292_v58 = vsub.f32 1.5, %v3291_v12  ;;  %1725 = vadd.xlane.f32.xlu0 %v1724_v2  ;;  %5253 = vmatpush.xpose.msra.mxu3 %v11835_v50  ;;  %v18418_v12 = vld [vmem:[#allocation20_spill] sm:$0xff]  ;;  %vm12213_vm9 = vmor %vm3284_vm2, %vm3285_vm6  ;;  %v18427_v2 = vld [vmem:[#allocation37_spill] sm:$0xff] }
 0x23f   : > { %vm3244_vm14 = vweird.f32 %v11860_v52  ;;  %v3232_v62 = vsub.f32 1.5, %v12146_v60  ;;  %v3283_v32 = vmul.f32 %v12022_v4, %v3282_v24  ;;  %v3311_v49 = vmul.f32 0.5, %v3310_v44  ;;  %5234 = vmatmul.f32.vlgmr.msra.gmra.mxu2 %v18418_v12  ;;  %v12224_v24 = vld [vmem:[%s7672_s9 + $0xab0] sm:$0xff]  ;;  %v12227_v44 = vld [vmem:[%s7672_s9 + $0xab8] sm:$0xff]  ;;  %vm12235_vm7 = vmor %vm3264_vm15, %vm3265_vm5 }
 0x240   : > { %v12205_v39 = vmax.f32 %v11920_v16, 1e-24  ;;  %v3277_v25 = vsel %vm12200_vm10, %v11977_v47, %v3273_v7  ;;  %v1070_v16 = vmul.f32 %v11670_v33, %v11670_v33  ;;  %7023 = vrsqrt.f32 %v12173_v18  ;;  %18421 = vst [vmem:[#allocation53_spill] sm:$0xff] %v12224_v24  ;;  %v18425_v33 = vld [vmem:[#allocation23_spill] sm:$0xff]  ;;  %5262 = vmatpush.xpose.msrb.mxu0 %v12224_v24  ;;  %v18429_v12 = vld [vmem:[#allocation32_spill] sm:$0xff]  ;;  %v1615_v53 = vpop.xlane.xlu2 %1614  ;;  %vm12281_vm5 = vmor %vm3234_vm13, %vm3235_vm8 }
 0x241   : > { %v1739_v50 = vadd.f32 %v1073_v0, %v1072_v8  ;;  %18422 = vst [vmem:[#allocation54_spill] sm:$0xff] %v12227_v44  ;;  %vm3254_vm1 = vweird.f32 %v11806_v46  ;;  %vm3255_vm11 = vweird.f32 %v11896_v30  ;;  %v1071_v47 = vmul.f32 %v18425_v33, %v18425_v33  ;;  %5254 = vmatmul.f32.vlgmr.msra.gmra.mxu3 %v18429_v12  ;;  %5282 = vmatpush.xpose.msrb.mxu1 %v12227_v44  ;;  %v1612_v33 = vpop.xlane.xlu1 %1611  ;;  %v18479_v30 = vld [vmem:[#allocation13_spill] sm:$0xff] }
 0x242   : > { %v12242_v8 = vmax.f32 %v11937_v57, 1e-24  ;;  %v1068_v7 = vmul.f32 %v18427_v2, %v18427_v2  ;;  %v1069_v0 = vmul.f32 %v18428_v11, %v18428_v11  ;;  %v3267_v29 = vsel %vm12235_vm7, %v11996_v26, %v3263_v42  ;;  %v18430_v42 = vld [vmem:[#allocation19_spill] sm:$0xff]  ;;  %v12265_v2 = vpop.xlane.xlu0 %1608 }
 0x243   : > { %v3302_v63 = vsub.f32 1.5, %v3301_v31  ;;  %v3293_v13 = vmul.f32 %v12056_v5, %v3292_v58  ;;  %vm3295_vm12 = vweird.f32 %v12056_v5  ;;  %v3233_v57 = vmul.f32 %v12047_v23, %v3232_v62  ;;  %18431 = vst [vmem:[#allocation49_spill] sm:$0xff] %v12265_v2  ;;  %v18432_v62 = vld [vmem:[#allocation14_spill] sm:$0xff] }
 0x244   : > { %18426 = vst [vmem:[#allocation55_spill] sm:$0xff] %v12242_v8  ;;  %vm3314_vm4 = vweird.f32 %v11993_v28  ;;  %vm3294_vm2 = vweird.f32 %v11918_v41  ;;  %7025 = vrsqrt.f32 %v12205_v39  ;;  %v3287_v26 = vsel %vm12213_vm9, %v12022_v4, %v3283_v32  ;;  %1740 = vadd.xlane.f32.xlu2 %v1739_v50  ;;  %v18443_v28 = vld [vmem:[#allocation18_spill] sm:$0xff] }
 0x245   : > { %v5973_v31 = vperm.slane %v3277_v25, %v18430_v42  ;;  %v3312_v58 = vsub.f32 1.5, %v3311_v49  ;;  %vm3315_vm6 = vweird.f32 %v12107_v19  ;;  %v5972_v11 = vperm.slane %v3267_v29, %v18432_v62  ;;  %vm12270_vm15 = vmor %vm3294_vm2, %vm3295_vm12  ;;  %v18456_v49 = vld [vmem:[#allocation15_spill] sm:$0xff] }
 0x246   : > { %7027 = vrsqrt.f32 %v12242_v8  ;;  %v1736_v4 = vadd.f32 %v1071_v47, %v1070_v16  ;;  %v1733_v32 = vadd.f32 %v1069_v0, %v1068_v7  ;;  %v12275_v60 = vpop.eup %7023  ;;  %v3303_v25 = vmul.f32 %v12101_v15, %v3302_v63  ;;  %v18437_v7 = vld [vmem:[#allocation16_spill] sm:$0xff]  ;;  %vm12309_vm13 = vmor %vm3314_vm4, %vm3315_vm6 }
 0x247   : > { %vm3304_vm10 = vweird.f32 %v11983_v37  ;;  %vm3305_vm9 = vweird.f32 %v12101_v15  ;;  %v3297_v16 = vsel %vm12270_vm15, %v12056_v5, %v3293_v13  ;;  %v12294_v50 = vmul.f32 %v11964_v34, %v3242_v56  ;;  %v18446_v37 = vld [vmem:[#allocation57_spill] sm:$0xff]  ;;  %vm12363_vm2 = vmor %vm3254_vm1, %vm3255_vm11 }
 0x248   : > { %vm3245_vm8 = vweird.f32 %v11964_v34  ;;  %v3237_v27 = vsel %vm12281_vm5, %v12047_v23, %v3233_v57  ;;  %v5959_v47 = vsel %vm17891_vm3, %v12036_v36, %v12039_v20  ;;  %1737 = vadd.xlane.f32.xlu1 %v1736_v4  ;;  %1734 = vadd.xlane.f32.xlu0 %v1733_v32  ;;  %v5975_v0 = vperm.slane %v3287_v26, %v18437_v7  ;;  %vm12324_vm12 = vmor %vm3304_vm10, %vm3305_vm9  ;;  %v18447_v26 = vld [vmem:[#allocation58_spill] sm:$0xff] }
 0x249   : > { %v3313_v5 = vmul.f32 %v12107_v19, %v3312_v58  ;;  %vm18440_vm7 = vcmask 720512   ;;  %v12315_v56 = vmax.f32 %v1615_v53, 1e-24  ;;  %v5974_v20 = vsel %vm17892_vm0, %v5973_v31, %v5972_v11  ;;  %vm12337_vm4 = vmor %vm3244_vm14, %vm3245_vm8  ;;  %v18449_v53 = vld [vmem:[#allocation30_spill] sm:$0xff] }
 0x24a   : > { %v5961_v23 = vsel %vm18440_vm7, %v12126_v48, %v5959_v47  ;;  %v12317_v36 = vpop.eup %7025  ;;  %v5977_v63 = vperm.slane %v3297_v16, %v18443_v28  ;;  %v3339_v13 = vmul.f32 %v12275_v60, %v12173_v18  ;;  %v12331_v48 = vmax.f32 %v1612_v33, 1e-24  ;;  %v1618_v14 = vpop.xlane.xlu0 %1617 }
 0x24b   : > { %v1074_v57 = vmul.f32 %v18446_v37, %v18446_v37  ;;  %v1075_v31 = vmul.f32 %v18447_v26, %v18447_v26  ;;  %v3307_v58 = vsel %vm12324_vm12, %v12101_v15, %v3303_v25  ;;  %7029 = vrsqrt.f32 %v12315_v56 }
 0x24c   : > { %v12349_v33 = vpop.eup %7027  ;;  %v3247_v52 = vsel %vm12337_vm4, %v11964_v34, %v12294_v50  ;;  %v5966_v11 = vperm.slane %v3237_v27, %v18449_v53  ;;  %vm18450_vm14 = vcmask 786112   ;;  %7031 = vrsqrt.f32 %v12331_v48  ;;  %v1621_v27 = vpop.xlane.xlu1 %1620  ;;  %v12499_v53 = vld [vmem:[%s7672_s9 + $0xa90] sm:$0xff] }
 0x24d   : > { %18448 = vst [vmem:[#allocation50_spill] sm:$0xff] %v12349_v33  ;;  %v5963_v41 = vsel %vm18450_vm14, %v12059_v22, %v5961_v23  ;;  %v18451_v15 = vmov 0  ;;  %v3317_v4 = vsel %vm12309_vm13, %v12107_v19, %v3313_v5  ;;  %vm18454_vm6 = vcmask 195712   ;;  %v1624_v5 = vpop.xlane.xlu2 %1623 }
 0x24e   : > { %v18452_v15 = vsel %vm12363_vm2, 4294967295, %v18451_v15  ;;  %v5976_v34 = vsel %vm18454_vm6, %v5975_v0, %v5974_v20  ;;  %v3329_v32 = vmul.f32 %v12317_v36, %v12205_v39  ;;  %v12374_v22 = vmax.f32 %v12087_v45, 1e-24  ;;  %v18460_v20 = vld [vmem:[#allocation34_spill] sm:$0xff] }
 0x24f   : > { %18453 = vst [vmem:[#allocation56_spill] sm:$0xff] %v18452_v15  ;;  %v5979_v25 = vperm.slane %v3307_v58, %v18456_v49  ;;  %vm18457_vm15 = vcmask 261312   ;;  %v3340_v16 = vmul.f32 %v12275_v60, %v3339_v13  ;;  %v12380_v50 = vmax.f32 %v12076_v61, 1e-24 }
 0x250   : > { %18455 = vst [vmem:[#allocation20_spill] sm:$0xff] %v12374_v22  ;;  %v5978_v46 = vsel %vm18457_vm15, %v5977_v63, %v5976_v34  ;;  %v3319_v19 = vmul.f32 %v12349_v33, %v12242_v8  ;;  %v1748_v47 = vadd.f32 %v12137_v10, %v12072_v1  ;;  %v1745_v45 = vadd.f32 %v12187_v55, %v12150_v9  ;;  %v18462_v10 = vld [vmem:[#allocation17_spill] sm:$0xff] }
 0x251   : > { %18458 = vst [vmem:[#allocation23_spill] sm:$0xff] %v12380_v50  ;;  %v1742_v0 = vadd.f32 %v1075_v31, %v1074_v57  ;;  %vm18459_vm1 = vcmask 851712   ;;  %v12395_v29 = vmax.f32 %v18460_v20, 1e-24  ;;  %v12397_v63 = vmax.f32 %v1624_v5, 1e-24  ;;  %v12399_v1 = vpop.eup %7029 }
 0x252   : > { %v5965_v61 = vsel %vm18459_vm1, %v12050_v35, %v5963_v41  ;;  %v5981_v9 = vperm.slane %v3317_v4, %v18462_v10  ;;  %v3330_v55 = vmul.f32 %v12317_v36, %v3329_v32  ;;  %7033 = vrsqrt.f32 %v12374_v22  ;;  %1749 = vadd.xlane.f32.xlu2 %v1748_v47  ;;  %1746 = vadd.xlane.f32.xlu1 %v1745_v45  ;;  %v12406_v12 = vpop.eup %7031  ;;  %v18466_v4 = vld [vmem:[#allocation40_spill] sm:$0xff]  ;;  %v12455_v20 = vld [vmem:[%s7672_s9 + $0xaa0] sm:$0xff] }
 0x253   : > { %18461 = vst [vmem:[#allocation37_spill] sm:$0xff] %v12395_v29  ;;  %v12404_v13 = vmax.f32 %v1621_v27, 1e-24  ;;  %vm18463_vm11 = vcmask 326912   ;;  %v3429_v37 = vmul.f32 %v12399_v1, %v12315_v56  ;;  %1743 = vadd.xlane.f32.xlu0 %v1742_v0  ;;  %7035 = vrsqrt.f32 %v12397_v63  ;;  %v12446_v47 = vld [vmem:[%s7672_s9 + $0xa08] sm:$0xff]  ;;  %5263 = vmatpush.xpose.msrb.mxu0 %v12455_v20 }
 0x254   : > { %v5980_v35 = vsel %vm18463_vm11, %v5979_v25, %v5978_v46  ;;  %v12412_v57 = vmax.f32 %v1618_v14, 1e-24  ;;  %v3341_v26 = vmul.f32 0.5, %v3340_v16  ;;  %v3320_v31 = vmul.f32 %v12349_v33, %v3319_v19  ;;  %v12427_v25 = vld [vmem:[%s7672_s9 + $0xa10] sm:$0xff]  ;;  %18472 = vst [vmem:[#allocation59_spill] sm:$0xff] %v12446_v47 }
 0x255   : > { %7037 = vrsqrt.f32 %v12380_v50  ;;  %v3419_v58 = vmul.f32 %v12406_v12, %v12331_v48  ;;  %vm18464_vm5 = vcmask 917312   ;;  %v12422_v34 = vperm.slane %v3247_v52, %v18466_v4  ;;  %v12440_v52 = vld [vmem:[%s7672_s9 + $0xa00] sm:$0xff] }
 0x256   : > { %v12419_v41 = vsel %vm18464_vm5, %v5966_v11, %v5965_v61  ;;  %7039 = vrsqrt.f32 %v12395_v29  ;;  %v3430_v32 = vmul.f32 %v12399_v1, %v3429_v37  ;;  %v12429_v46 = vmul.f32 0.5, %v3330_v55  ;;  %v12437_v11 = vld [vmem:[%s7672_s9 + $0xa18] sm:$0xff]  ;;  %18471 = vst [vmem:[#allocation34_spill] sm:$0xff] %v12440_v52 }
 0x257   : > { %18465 = vst [vmem:[#allocation44_spill] sm:$0xff] %v12419_v41  ;;  %vm18468_vm10 = vcmask 392512   ;;  %v3420_v27 = vmul.f32 %v12406_v12, %v3419_v58  ;;  %7041 = vrsqrt.f32 %v12404_v13  ;;  %vm3434_vm9 = vweird.f32 %v12315_v56  ;;  %5264 = vmatpush.xpose.msrb.mxu0 %v12499_v53 }
 0x258   : > { %18467 = vst [vmem:[#allocation32_spill] sm:$0xff] %v12422_v34  ;;  %v12432_v16 = vsel %vm18468_vm10, %v5981_v9, %v5980_v35  ;;  %v3431_v19 = vmul.f32 0.5, %v3430_v32  ;;  %vm3435_vm8 = vweird.f32 %v12399_v1  ;;  %7043 = vrsqrt.f32 %v12412_v57  ;;  %v12448_v45 = vpop.eup %7033  ;;  %v12458_v9 = vld [vmem:[%s7672_s9 + $0xaa8] sm:$0xff] }
 0x259   : > { %18469 = vst [vmem:[#allocation57_spill] sm:$0xff] %v12432_v16  ;;  %v3342_v0 = vsub.f32 1.5, %v3341_v26  ;;  %v12450_v5 = vmul.f32 0.5, %v3320_v31  ;;  %v3421_v14 = vmul.f32 0.5, %v3420_v27  ;;  %v1084_v61 = vmul.f32 %v12427_v25, %v12427_v25  ;;  %v12460_v55 = vpop.eup %7035  ;;  %5283 = vmatpush.xpose.msrb.mxu1 %v12458_v9  ;;  %vm12477_vm4 = vmor %vm3434_vm9, %vm3435_vm8 }
 0x25a   : > { %18470 = vst [vmem:[#allocation58_spill] sm:$0xff] %v12437_v11  ;;  %v3432_v35 = vsub.f32 1.5, %v3431_v19  ;;  %vm3424_vm13 = vweird.f32 %v12331_v48  ;;  %v1085_v37 = vmul.f32 %v12437_v11, %v12437_v11  ;;  %v1082_v26 = vmul.f32 %v12440_v52, %v12440_v52 }
 0x25b   : > { %18473 = vst [vmem:[#allocation60_spill] sm:$0xff] %v12448_v45  ;;  %v12469_v31 = vpop.eup %7037  ;;  %vm3344_vm7 = vweird.f32 %v12173_v18  ;;  %vm3345_vm12 = vweird.f32 %v12275_v60  ;;  %v3422_v32 = vsub.f32 1.5, %v3421_v14  ;;  %vm3425_vm14 = vweird.f32 %v12406_v12 }
 0x25c   : > { %18474 = vst [vmem:[#allocation61_spill] sm:$0xff] %v12469_v31  ;;  %v3459_v27 = vmul.f32 %v12460_v55, %v12397_v63  ;;  %v1083_v19 = vmul.f32 %v12446_v47, %v12446_v47  ;;  %v12486_v23 = vpop.eup %7039  ;;  %v3332_v34 = vsub.f32 1.5, %v12429_v46  ;;  %v3433_v56 = vmul.f32 %v12399_v1, %v3432_v35  ;;  %vm3426_vm6 = vmor %vm3424_vm13, %vm3425_vm14 }
 0x25d   : > { %18477 = vst [vmem:[#allocation62_spill] sm:$0xff] %v12486_v23  ;;  %v1757_v41 = vadd.f32 %v1085_v37, %v1084_v61  ;;  %v1751_v15 = vadd.f32 %v18479_v30, %v18478_v38  ;;  %v12492_v2 = vpop.eup %7041  ;;  %v3369_v14 = vmul.f32 %v12448_v45, %v12374_v22  ;;  %v3423_v16 = vmul.f32 %v12406_v12, %v3422_v32  ;;  %v1627_v32 = vpop.xlane.xlu0 %1626 }
 0x25e   : > { %v3460_v8 = vmul.f32 %v12460_v55, %v3459_v27  ;;  %v1754_v4 = vadd.f32 %v1083_v19, %v1082_v26  ;;  %v12504_v46 = vpop.eup %7043  ;;  %v12507_v61 = vmul.f32 %v12275_v60, %v3342_v0  ;;  %v3437_v38 = vsel %vm12477_vm4, %v12399_v1, %v3433_v56  ;;  %v1630_v1 = vpop.xlane.xlu1 %1629  ;;  %5284 = vmatpush.xpose.msrb.mxu1 %v12502_v3  ;;  %v12537_v27 = vld [vmem:[%s7672_s9 + $0xa80] sm:$0xff]  ;;  %v12540_v19 = vld [vmem:[%s7672_s9 + $0xa88] sm:$0xff]  ;;  %vm12596_vm4 = vmor %vm3344_vm7, %vm3345_vm12 }
 0x25f   : > { %v3449_v35 = vmul.f32 %v12492_v2, %v12404_v13  ;;  %1758 = vadd.xlane.f32.xlu2 %v1757_v41  ;;  %1752 = vadd.xlane.f32.xlu0 %v1751_v15  ;;  %v6004_v37 = vperm.slane %v3437_v38, %v18430_v42  ;;  %v3427_v0 = vsel %vm3426_vm6, %v12406_v12, %v3423_v16  ;;  %vm3464_vm15 = vweird.f32 %v12397_v63  ;;  %v1633_v12 = vpop.xlane.xlu2 %1632  ;;  %v12572_v63 = vld [vmem:[%s7672_s9 + $0xa48] sm:$0xff]  ;;  %v12642_v42 = vld [vmem:[%s7672_s9 + $0xbf0] sm:$0xff] }
 0x260   : > { %v3461_v26 = vmul.f32 0.5, %v3460_v8  ;;  %v3439_v58 = vmul.f32 %v12504_v46, %v12412_v57  ;;  %1755 = vadd.xlane.f32.xlu1 %v1754_v4  ;;  %v6003_v48 = vperm.slane %v3427_v0, %v18432_v62  ;;  %vm3465_vm1 = vweird.f32 %v12460_v55  ;;  %5265 = vmatpush.xpose.msrb.mxu0 %v12537_v27  ;;  %v633_v62 = vld [vmem:[%s7672_s9 + $0xbf8] sm:$0xff] }
 0x261   : > { %v3450_v15 = vmul.f32 %v12492_v2, %v3449_v35  ;;  %v12531_v8 = vmul.f32 %v12469_v31, %v12380_v50  ;;  %v12534_v16 = vmax.f32 %v1633_v12, 1e-24  ;;  %v12545_v35 = vmax.f32 %v1630_v1, 1e-24  ;;  %vm12559_vm10 = vmor %vm3464_vm15, %vm3465_vm1  ;;  %5298 = vmatpush.xpose.msrb.mxu2 %v12642_v42  ;;  %5318 = vmatpush.xpose.msrb.mxu3 %v633_v62 }
 0x262   : > { %v3462_v41 = vsub.f32 1.5, %v3461_v26  ;;  %v3440_v4 = vmul.f32 %v12504_v46, %v3439_v58  ;;  %v12543_v56 = vsel %vm17892_vm0, %v6004_v37, %v6003_v48  ;;  %v12547_v0 = vmax.f32 %v1627_v32, 1e-24  ;;  %v12575_v48 = vld [vmem:[%s7672_s9 + $0xa30] sm:$0xff]  ;;  %5285 = vmatpush.xpose.msrb.mxu1 %v12540_v19 }
 0x263   : > { %v3451_v38 = vmul.f32 0.5, %v3450_v15  ;;  %v12550_v26 = vmul.f32 %v12317_v36, %v3332_v34  ;;  %vm3334_vm11 = vweird.f32 %v12205_v39  ;;  %vm3335_vm5 = vweird.f32 %v12317_v36  ;;  %v12565_v34 = vld [vmem:[%s7672_s9 + $0xa40] sm:$0xff]  ;;  %v12578_v15 = vld [vmem:[%s7672_s9 + $0xa38] sm:$0xff] }
 0x264   : > { %v3463_v58 = vmul.f32 %v12460_v55, %v3462_v41  ;;  %v3441_v1 = vmul.f32 0.5, %v3440_v4  ;;  %7045 = vrsqrt.f32 %v12534_v16  ;;  %vm3454_vm9 = vweird.f32 %v12404_v13  ;;  %v12587_v4 = vld [vmem:[%s7672_s9 + $0xa20] sm:$0xff] }
 0x265   : > { %v3452_v32 = vsub.f32 1.5, %v3451_v38  ;;  %vm3455_vm8 = vweird.f32 %v12492_v2  ;;  %7047 = vrsqrt.f32 %v12545_v35  ;;  %v12582_v12 = vmul.f32 %v12448_v45, %v3369_v14  ;;  %v12590_v38 = vld [vmem:[%s7672_s9 + $0xa28] sm:$0xff]  ;;  %v12608_v45 = vld [vmem:[%s7672_s9 + $0xa70] sm:$0xff] }
 0x266   : > { %v3442_v41 = vsub.f32 1.5, %v3441_v1  ;;  %vm3445_vm13 = vweird.f32 %v12504_v46  ;;  %7049 = vrsqrt.f32 %v12547_v0  ;;  %v3467_v14 = vsel %vm12559_vm10, %v12460_v55, %v3463_v58  ;;  %vm12614_vm7 = vmor %vm3454_vm9, %vm3455_vm8  ;;  %5266 = vmatpush.xpose.msrb.mxu0 %v12608_v45 }
 0x267   : > { %18482 = vst [vmem:[#allocation35_spill] sm:$0xff] %v12582_v12  ;;  %v3453_v1 = vmul.f32 %v12492_v2, %v3452_v32  ;;  %vm3444_vm14 = vweird.f32 %v12412_v57  ;;  %v1090_v50 = vmul.f32 %v12565_v34, %v12565_v34  ;;  %v1091_v57 = vmul.f32 %v12572_v63, %v12572_v63  ;;  %v12626_v32 = vld [vmem:[%s7672_s9 + $0xa78] sm:$0xff]  ;;  %v1642_v30 = vpop.xlane.xlu2 %1641  ;;  %vm12703_vm10 = vmor %vm3334_vm11, %vm3335_vm5 }
 0x268   : > { %v3443_v55 = vmul.f32 %v12504_v46, %v3442_v41  ;;  %v1088_v58 = vmul.f32 %v12575_v48, %v12575_v48  ;;  %v1089_v37 = vmul.f32 %v12578_v15, %v12578_v15  ;;  %v3349_v13 = vmul.f32 %v12486_v23, %v12395_v29  ;;  %vm3446_vm12 = vmor %vm3444_vm14, %vm3445_vm13  ;;  %5286 = vmatpush.xpose.msrb.mxu1 %v12626_v32 }
 0x269   : > { %v3457_v41 = vsel %vm12614_vm7, %v12492_v2, %v3453_v1  ;;  %v1086_v22 = vmul.f32 %v12587_v4, %v12587_v4  ;;  %v1087_v12 = vmul.f32 %v12590_v38, %v12590_v38  ;;  %v1766_v1 = vadd.f32 %v1091_v57, %v1090_v50  ;;  %v12684_v57 = vld [vmem:[%s7672_s9 + $0xa68] sm:$0xff] }
 0x26a   : > { %v12645_v47 = vpop.eup %7045  ;;  %v6008_v29 = vperm.slane %v3457_v41, %v18443_v28  ;;  %v3447_v2 = vsel %vm3446_vm12, %v12504_v46, %v3443_v55  ;;  %v1763_v18 = vadd.f32 %v1089_v37, %v1088_v58  ;;  %v6010_v44 = vperm.slane %v3467_v14, %v18456_v49  ;;  %v12688_v58 = vld [vmem:[%s7672_s9 + $0xbe0] sm:$0xff]  ;;  %v631_v37 = vld [vmem:[%s7672_s9 + $0xbe8] sm:$0xff] }
 0x26b   : > { %v12650_v52 = vpop.eup %7047  ;;  %v6006_v24 = vperm.slane %v3447_v2, %v18437_v7  ;;  %v3489_v11 = vmul.f32 %v12645_v47, %v12534_v16  ;;  %v1760_v59 = vadd.f32 %v1087_v12, %v1086_v22  ;;  %v3347_v50 = vsel %vm12596_vm4, %v12275_v60, %v12507_v61  ;;  %1767 = vadd.xlane.f32.xlu2 %v1766_v1  ;;  %v1639_v22 = vpop.xlane.xlu1 %1638  ;;  %v12673_v12 = vld [vmem:[%s7672_s9 + $0xa60] sm:$0xff]  ;;  %v18498_v1 = vld [vmem:[#allocation24_spill] sm:$0xff] }
 0x26c   : > { %v12656_v41 = vpop.eup %7049  ;;  %v18487_v46 = vsub.f32 1.5, %v12450_v5  ;;  %v12668_v55 = vmax.f32 %v12159_v6, 1e-24  ;;  %v3479_v62 = vmul.f32 %v12650_v52, %v12545_v35  ;;  %1764 = vadd.xlane.f32.xlu1 %v1763_v18  ;;  %v12676_v60 = vmax.f32 %v12154_v40, 1e-24  ;;  %5267 = vmatpush.xpose.msrb.mxu0 %v12673_v12  ;;  %18492 = vst [vmem:[#allocation65_spill] sm:$0xff] %v12688_v58 }
 0x26d   : > { %vm18491_vm6 = vcmask 195712   ;;  %v3490_v61 = vmul.f32 %v12645_v47, %v3489_v11  ;;  %v3469_v6 = vmul.f32 %v12656_v41, %v12547_v0  ;;  %1761 = vadd.xlane.f32.xlu0 %v1760_v59  ;;  %v12693_v40 = vmul.f32 %v12469_v31, %v12531_v8  ;;  %v1636_v11 = vpop.xlane.xlu0 %1635  ;;  %5287 = vmatpush.xpose.msrb.mxu1 %v12684_v57 }
 0x26e   : > { %v12665_v14 = vmul.f32 %v12349_v33, %v18487_v46  ;;  %18489 = vst [vmem:[#allocation63_spill] sm:$0xff] %v12668_v55  ;;  %v6007_v5 = vsel %vm18491_vm6, %v6006_v24, %v12543_v56  ;;  %vm18494_vm15 = vcmask 261312   ;;  %vm3494_vm1 = vweird.f32 %v12534_v16  ;;  %5299 = vmatpush.xpose.msrb.mxu2 %v12688_v58  ;;  %5319 = vmatpush.xpose.msrb.mxu3 %v631_v37  ;;  %v629_v37 = vld [vmem:[%s7672_s9 + $0xbd8] sm:$0xff]  ;;  %v18504_v16 = vld [vmem:[#allocation25_spill] sm:$0xff] }
 0x26f   : > { %18490 = vst [vmem:[#allocation64_spill] sm:$0xff] %v12676_v60  ;;  %v6009_v24 = vsel %vm18494_vm15, %v6008_v29, %v6007_v5  ;;  %v3480_v59 = vmul.f32 %v12650_v52, %v3479_v62  ;;  %v3491_v8 = vmul.f32 0.5, %v3490_v61  ;;  %vm3495_vm9 = vweird.f32 %v12645_v47  ;;  %v581_v5 = vld [vmem:[%s7672_s9 + $0xa58] sm:$0xff] }
 0x270   : > { %18488 = vst [vmem:[#allocation13_spill] sm:$0xff] %v12665_v14  ;;  %vm18497_vm8 = vcmask 326912   ;;  %v3470_v2 = vmul.f32 %v12656_v41, %v3469_v6  ;;  %v12714_v18 = vperm.slane %v3347_v50, %v18498_v1  ;;  %v3337_v39 = vsel %vm12703_vm10, %v12317_v36, %v12550_v26  ;;  %v12729_v50 = vld [vmem:[%s7672_s9 + $0xbd0] sm:$0xff]  ;;  %vm12736_vm5 = vmor %vm3494_vm1, %vm3495_vm9  ;;  %v18537_v14 = vld [vmem:[#allocation27_spill] sm:$0xff] }
 0x271   : > { %18493 = vst [vmem:[#allocation66_spill] sm:$0xff] %v12693_v40  ;;  %v12709_v29 = vsel %vm18497_vm8, %v6010_v44, %v6009_v24  ;;  %v12721_v46 = vmul.f32 %v12486_v23, %v3349_v13  ;;  %v3481_v62 = vmul.f32 0.5, %v3480_v59  ;;  %v580_v44 = vld [vmem:[%s7672_s9 + $0xa50] sm:$0xff]  ;;  %v3492_v61 = vsub.f32 1.5, %v3491_v8  ;;  %5288 = vmatpush.xpose.msrb.mxu1 %v581_v5 }
 0x272   : > { %18499 = vst [vmem:[#allocation67_spill] sm:$0xff] %v12714_v18  ;;  %vm3484_vm11 = vweird.f32 %v12545_v35  ;;  %v3471_v6 = vmul.f32 0.5, %v3470_v2  ;;  %v12726_v24 = vmax.f32 %v1642_v30, 1e-24  ;;  %5268 = vmatpush.xpose.msrb.mxu0 %v580_v44  ;;  %vm3485_vm13 = vweird.f32 %v12650_v52  ;;  %5300 = vmatpush.xpose.msrb.mxu2 %v12729_v50 }
 0x273   : > { %18500 = vst [vmem:[#allocation68_spill] sm:$0xff] %v12721_v46  ;;  %v3482_v26 = vsub.f32 1.5, %v3481_v62  ;;  %v12741_v13 = vmax.f32 %v1639_v22, 1e-24  ;;  %v12743_v59 = vmax.f32 %v1636_v11, 1e-24  ;;  %v3493_v30 = vmul.f32 %v12645_v47, %v3492_v61  ;;  %5320 = vmatpush.xpose.msrb.mxu3 %v629_v37  ;;  %vm3486_vm14 = vmor %vm3484_vm11, %vm3485_vm13 }
 0x274   : > { %18501 = vst [vmem:[#allocation69_spill] sm:$0xff] %v12729_v50  ;;  %v3472_v56 = vsub.f32 1.5, %v3471_v6  ;;  %vm3475_vm4 = vweird.f32 %v12656_v41  ;;  %7051 = vrsqrt.f32 %v12726_v24  ;;  %v12750_v8 = vperm.slane %v3337_v39, %v18504_v16  ;;  %v18506_v22 = vld [vmem:[#allocation43_spill] sm:$0xff]  ;;  %v12773_v6 = vld [vmem:[%s7672_s9 + $0xbc8] sm:$0xff] }
 0x275   : > { %v12754_v11 = vmul.f32 %v18506_v22, %v18506_v22  ;;  %v3483_v2 = vmul.f32 %v12650_v52, %v3482_v26  ;;  %7053 = vrsqrt.f32 %v12741_v13  ;;  %v3497_v62 = vsel %vm12736_vm5, %v12645_v47, %v3493_v30  ;;  %v12770_v61 = vld [vmem:[%s7672_s9 + $0xbc0] sm:$0xff]  ;;  %v18507_v37 = vld [vmem:[#allocation36_spill] sm:$0xff]  ;;  %5289 = vmatpush.xpose.msrb.mxu1 %v12572_v63  ;;  %v18508_v30 = vld [vmem:[#allocation26_spill] sm:$0xff] }
 0x276   : > { %18505 = vst [vmem:[#allocation70_spill] sm:$0xff] %v12750_v8  ;;  %v3473_v39 = vmul.f32 %v12656_v41, %v3472_v56  ;;  %vm3474_vm7 = vweird.f32 %v12547_v0  ;;  %7055 = vrsqrt.f32 %v12743_v59  ;;  %5269 = vmatpush.xpose.msrb.mxu0 %v12565_v34  ;;  %v12777_v47 = vmul.f32 %v18507_v37, %v18507_v37  ;;  %v1648_v34 = vpop.xlane.xlu1 %1647  ;;  %v1651_v37 = vpop.xlane.xlu2 %1650  ;;  %5301 = vmatpush.xpose.msrb.mxu2 %v12770_v61 }
 0x277   : > { %v12781_v35 = vmul.f32 %v12094_v54, %v12094_v54  ;;  %v12785_v36 = vmul.f32 %v12120_v21, %v12120_v21  ;;  %v3487_v0 = vsel %vm3486_vm14, %v12650_v52, %v3483_v2  ;;  %vm3476_vm12 = vmor %vm3474_vm7, %vm3475_vm4  ;;  %v6016_v26 = vperm.slane %v3497_v62, %v18504_v16  ;;  %5321 = vmatpush.xpose.msrb.mxu3 %v12773_v6 }
 0x278   : > { %v6014_v56 = vperm.slane %v3487_v0, %v18508_v30  ;;  %v3477_v22 = vsel %vm3476_vm12, %v12656_v41, %v3473_v39  ;;  %v1096_v54 = vmul.f32 %v12608_v45, %v12608_v45  ;;  %v1097_v52 = vmul.f32 %v12626_v32, %v12626_v32  ;;  %v1645_v41 = vpop.xlane.xlu0 %1644 }
 0x279   : > { %v6012_v21 = vperm.slane %v3477_v22, %v18462_v10  ;;  %v1094_v63 = vmul.f32 %v12673_v12, %v12673_v12  ;;  %v1095_v2 = vmul.f32 %v12684_v57, %v12684_v57  ;;  %v1102_v62 = vmul.f32 %v12455_v20, %v12455_v20  ;;  %5290 = vmatpush.xpose.msrb.mxu1 %v12578_v15  ;;  %v12822_v20 = vld [vmem:[%s7672_s9 + $0xbb0] sm:$0xff] }
 0x27a   : > { %v12805_v45 = vpop.eup %7051  ;;  %v1103_v39 = vmul.f32 %v12458_v9, %v12458_v9  ;;  %v1092_v32 = vmul.f32 %v580_v44, %v580_v44  ;;  %v1093_v0 = vmul.f32 %v581_v5, %v581_v5  ;;  %5270 = vmatpush.xpose.msrb.mxu0 %v12575_v48  ;;  %vm18509_vm6 = vcmask 392512   ;;  %v12825_v9 = vld [vmem:[%s7672_s9 + $0xbb8] sm:$0xff]  ;;  %5302 = vmatpush.xpose.msrb.mxu2 %v12822_v20 }
 0x27b   : > { %v12812_v12 = vpop.eup %7053  ;;  %v6013_v57 = vsel %vm18509_vm6, %v6012_v21, %v12709_v29  ;;  %v3519_v22 = vmul.f32 %v12805_v45, %v12726_v24  ;;  %v1100_v18 = vmul.f32 %v12499_v53, %v12499_v53  ;;  %v1775_v8 = vadd.f32 %v1097_v52, %v1096_v54  ;;  %5322 = vmatpush.xpose.msrb.mxu3 %v12825_v9 }
 0x27c   : > { %v12827_v44 = vpop.eup %7055  ;;  %vm18510_vm15 = vcmask 458112   ;;  %v3509_v29 = vmul.f32 %v12812_v12, %v12741_v13  ;;  %v1101_v5 = vmul.f32 %v12502_v3, %v12502_v3  ;;  %v1772_v21 = vadd.f32 %v1095_v2, %v1094_v63 }
 0x27d   : > { %v6015_v48 = vsel %vm18510_vm15, %v6014_v56, %v6013_v57  ;;  %v12836_v53 = vmax.f32 %v12161_v43, 1e-24  ;;  %v3520_v15 = vmul.f32 %v12805_v45, %v3519_v22  ;;  %vm18512_vm1 = vcmask 523712   ;;  %1776 = vadd.xlane.f32.xlu2 %v1775_v8  ;;  %5291 = vmatpush.xpose.msrb.mxu1 %v12590_v38  ;;  %v12861_v57 = vld [vmem:[%s7672_s9 + $0xba0] sm:$0xff] }
 0x27e   : > { %v12840_v54 = vsel %vm18512_vm1, %v6016_v26, %v6015_v48  ;;  %v3499_v56 = vmul.f32 %v12827_v44, %v12743_v59  ;;  %v3510_v3 = vmul.f32 %v12812_v12, %v3509_v29  ;;  %1773 = vadd.xlane.f32.xlu1 %v1772_v21  ;;  %v1769_v52 = vadd.f32 %v1093_v0, %v1092_v32  ;;  %v1657_v32 = vpop.xlane.xlu1 %1656  ;;  %v1660_v48 = vpop.xlane.xlu2 %1659  ;;  %v18513_v29 = vld [vmem:[#allocation52_spill] sm:$0xff] }
 0x27f   : > { %18511 = vst [vmem:[#allocation43_spill] sm:$0xff] %v12836_v53  ;;  %v12846_v63 = vmax.f32 %v1651_v37, 1e-24  ;;  %v12848_v43 = vmax.f32 %v1648_v34, 1e-24  ;;  %5271 = vmatpush.xpose.msrb.mxu0 %v12587_v4  ;;  %v12853_v26 = vmul.f32 %v12123_v17, %v12123_v17  ;;  %vm3514_vm10 = vweird.f32 %v12741_v13  ;;  %v12864_v37 = vld [vmem:[%s7672_s9 + $0xba8] sm:$0xff]  ;;  %5303 = vmatpush.xpose.msrb.mxu2 %v12861_v57 }
 0x280   : > { %v3500_v8 = vmul.f32 %v12827_v44, %v3499_v56  ;;  %v12857_v2 = vmax.f32 %v1645_v41, 1e-24  ;;  %v3511_v34 = vmul.f32 0.5, %v3510_v3  ;;  %1770 = vadd.xlane.f32.xlu0 %v1769_v52  ;;  %v1098_v4 = vmul.f32 %v12537_v27, %v12537_v27  ;;  %5323 = vmatpush.xpose.msrb.mxu3 %v12864_v37 }
 0x281   : > { %v1099_v17 = vmul.f32 %v12540_v19, %v12540_v19  ;;  %7057 = vrsqrt.f32 %v12846_v63  ;;  %vm3515_vm9 = vweird.f32 %v12812_v12  ;;  %v1784_v38 = vadd.f32 %v1103_v39, %v1102_v62  ;;  %v1654_v62 = vpop.xlane.xlu0 %1653  ;;  %v18514_v39 = vld [vmem:[#allocation58_spill] sm:$0xff] }
 0x282   : > { %v3501_v41 = vmul.f32 0.5, %v3500_v8  ;;  %7059 = vrsqrt.f32 %v12848_v43  ;;  %v3521_v0 = vmul.f32 0.5, %v3520_v15  ;;  %v3512_v22 = vsub.f32 1.5, %v3511_v34  ;;  %5292 = vmatpush.xpose.msrb.mxu1 %v18514_v39  ;;  %vm3516_vm11 = vmor %vm3514_vm10, %vm3515_vm9 }
 0x283   : > { %7061 = vrsqrt.f32 %v12857_v2  ;;  %v1781_v27 = vadd.f32 %v1101_v5, %v1100_v18  ;;  %5272 = vmatpush.xpose.msrb.mxu0 %v12427_v25  ;;  %v1106_v19 = vmul.f32 %v12176_v51, %v12176_v51  ;;  %v1107_v21 = vmul.f32 %v18513_v29, %v18513_v29  ;;  %v18515_v25 = vld [vmem:[#allocation53_spill] sm:$0xff]  ;;  %v18516_v51 = vld [vmem:[#allocation54_spill] sm:$0xff]  ;;  %v18519_v29 = vld [vmem:[#allocation59_spill] sm:$0xff] }
 0x284   : > { %v3502_v56 = vsub.f32 1.5, %v3501_v41  ;;  %vm3505_vm8 = vweird.f32 %v12827_v44  ;;  %v3513_v15 = vmul.f32 %v12812_v12, %v3512_v22  ;;  %v1778_v3 = vadd.f32 %v1099_v17, %v1098_v4 }
 0x285   : > { %v12884_v52 = vmax.f32 %v1660_v48, 1e-24  ;;  %v12886_v18 = vmax.f32 %v1657_v32, 1e-24  ;;  %v1104_v5 = vmul.f32 %v18515_v25, %v18515_v25  ;;  %v1105_v8 = vmul.f32 %v18516_v51, %v18516_v51  ;;  %1785 = vadd.xlane.f32.xlu2 %v1784_v38  ;;  %v18517_v32 = vld [vmem:[#allocation34_spill] sm:$0xff]  ;;  %v12915_v48 = vld [vmem:[%s7672_s9 + $0xb90] sm:$0xff] }
 0x286   : > { %v3503_v34 = vmul.f32 %v12827_v44, %v3502_v56  ;;  %vm3504_vm5 = vweird.f32 %v12743_v59  ;;  %v3522_v17 = vsub.f32 1.5, %v3521_v0  ;;  %v3517_v41 = vsel %vm3516_vm11, %v12812_v12, %v3513_v15  ;;  %1782 = vadd.xlane.f32.xlu1 %v1781_v27  ;;  %v18518_v59 = vld [vmem:[#allocation29_spill] sm:$0xff]  ;;  %v12918_v27 = vld [vmem:[%s7672_s9 + $0xb98] sm:$0xff]  ;;  %5293 = vmatpush.xpose.msrb.mxu1 %v18519_v29  ;;  %v1669_v23 = vpop.xlane.xlu2 %1668 }
 0x287   : > { %v12898_v4 = vpop.eup %7057  ;;  %vm3506_vm13 = vmor %vm3504_vm5, %vm3505_vm8  ;;  %7063 = vrsqrt.f32 %v12884_v52  ;;  %v12904_v13 = vmax.f32 %v1654_v62, 1e-24  ;;  %5273 = vmatpush.xpose.msrb.mxu0 %v18517_v32  ;;  %vm3524_vm4 = vweird.f32 %v12726_v24  ;;  %v6020_v38 = vperm.slane %v3517_v41, %v18518_v59  ;;  %5304 = vmatpush.xpose.msrb.mxu2 %v12915_v48 }
 0x288   : > { %v12907_v22 = vpop.eup %7059  ;;  %v3507_v0 = vsel %vm3506_vm13, %v12827_v44, %v3503_v34  ;;  %v3549_v12 = vmul.f32 %v12898_v4, %v12846_v63  ;;  %vm3525_vm14 = vweird.f32 %v12805_v45  ;;  %1779 = vadd.xlane.f32.xlu0 %v1778_v3  ;;  %7065 = vrsqrt.f32 %v12886_v18  ;;  %v7354_v44 = vld [vmem:[%s7672_s9 + $0xae8] sm:$0xff]  ;;  %5324 = vmatpush.xpose.msrb.mxu3 %v12918_v27  ;;  %v12937_v34 = vld [vmem:[#allocation2] sm:$0xff] }
 0x289   : > { %v12921_v56 = vpop.eup %7061  ;;  %v6018_v62 = vperm.slane %v3507_v0, %v18498_v1  ;;  %v3539_v39 = vmul.f32 %v12907_v22, %v12848_v43  ;;  %7067 = vrsqrt.f32 %v12668_v55  ;;  %v12931_v15 = vmul.f32 %v7354_v44, %v7354_v44  ;;  %v12945_v0 = vld [vmem:[#allocation2 + $0x8] sm:$0xff]  ;;  %vm12952_vm12 = vmor %vm3524_vm4, %vm3525_vm14 }
 0x28a   : > { %v3550_v25 = vmul.f32 %v12898_v4, %v3549_v12  ;;  %v3529_v51 = vmul.f32 %v12921_v56, %v12857_v2  ;;  %5274 = vmatmul.f32.vlgmr.msrb.gmra.mxu0 %v12937_v34  ;;  %v3523_v3 = vmul.f32 %v12805_v45, %v3522_v17  ;;  %vm18520_vm7 = vcmask 589312   ;;  %18521 = vst [vmem:[#allocation36_spill] sm:$0xff] %v12945_v0 }
 0x28b   : > { %v6019_v41 = vsel %vm18520_vm7, %v6018_v62, %v12840_v54  ;;  %v3540_v32 = vmul.f32 %v12907_v22, %v3539_v39  ;;  %7069 = vrsqrt.f32 %v12904_v13  ;;  %5294 = vmatmul.f32.vlgmr.msrb.gmra.mxu1 %v12945_v0  ;;  %v1793_v62 = vadd.f32 %v12853_v26, %v12785_v36 }
 0x28c   : > { %v12957_v17 = vsel %vm17891_vm3, %v6020_v38, %v6019_v41  ;;  %v3551_v54 = vmul.f32 0.5, %v3550_v25  ;;  %v3530_v29 = vmul.f32 %v12921_v56, %v3529_v51  ;;  %vm3554_vm6 = vweird.f32 %v12846_v63  ;;  %v1666_v25 = vpop.xlane.xlu1 %1665  ;;  %v13016_v63 = vld [vmem:[%s7672_s9 + $0xb08] sm:$0xff] }
 0x28d   : > { %v12962_v39 = vpop.eup %7063  ;;  %v3541_v44 = vmul.f32 0.5, %v3540_v32  ;;  %v1790_v31 = vadd.f32 %v1107_v21, %v1106_v19  ;;  %v1787_v24 = vadd.f32 %v1105_v8, %v1104_v5  ;;  %vm3544_vm15 = vweird.f32 %v12848_v43  ;;  %1794 = vadd.xlane.f32.xlu2 %v1793_v62  ;;  %v1663_v32 = vpop.xlane.xlu0 %1662 }
 0x28e   : > { %v3552_v53 = vsub.f32 1.5, %v3551_v54  ;;  %v3531_v55 = vmul.f32 0.5, %v3530_v29  ;;  %v3579_v38 = vmul.f32 %v12962_v39, %v12884_v52  ;;  %v12968_v51 = vpop.eup %7065  ;;  %v3527_v36 = vsel %vm12952_vm12, %v12805_v45, %v3523_v3  ;;  %v18526_v29 = vld [vmem:[#allocation28_spill] sm:$0xff] }
 0x28f   : > { %v3542_v26 = vsub.f32 1.5, %v3541_v44  ;;  %vm3534_vm1 = vweird.f32 %v12857_v2  ;;  %1791 = vadd.xlane.f32.xlu1 %v1790_v31  ;;  %v12974_v19 = vmax.f32 %v1669_v23, 1e-24  ;;  %v12976_v21 = vpop.eup %7067  ;;  %vm3555_vm10 = vweird.f32 %v12898_v4  ;;  %v13106_v2 = vld [vmem:[%s7672_s9 + $0xb70] sm:$0xff] }
 0x290   : > { %18524 = vst [vmem:[#allocation52_spill] sm:$0xff] %v12976_v21  ;;  %v3532_v5 = vsub.f32 1.5, %v3531_v55  ;;  %v3580_v8 = vmul.f32 %v12962_v39, %v3579_v38  ;;  %v3569_v41 = vmul.f32 %v12968_v51, %v12886_v18  ;;  %vm3545_vm9 = vweird.f32 %v12907_v22  ;;  %1788 = vadd.xlane.f32.xlu0 %v1787_v24  ;;  %vm13002_vm8 = vmor %vm3554_vm6, %vm3555_vm10 }
 0x291   : > { %v12982_v54 = vpop.eup %7069  ;;  %v12987_v31 = vmul.f32 %v12642_v42, %v12642_v42  ;;  %7071 = vrsqrt.f32 %v12974_v19  ;;  %v12990_v23 = vmax.f32 %v1666_v25, 1e-24  ;;  %v3553_v55 = vmul.f32 %v12898_v4, %v3552_v53  ;;  %v13013_v25 = vld [vmem:[%s7672_s9 + $0xb00] sm:$0xff]  ;;  %vm13022_vm4 = vmor %vm3544_vm15, %vm3545_vm9 }
 0x292   : > { %v3543_v45 = vmul.f32 %v12907_v22, %v3542_v26  ;;  %v3581_v3 = vmul.f32 0.5, %v3580_v8  ;;  %v3570_v12 = vmul.f32 %v12968_v51, %v3569_v41  ;;  %v12996_v62 = vperm.slane %v3527_v36, %v18526_v29  ;;  %v13072_v36 = vld [vmem:[%s7672_s9 + $0xb88] sm:$0xff] }
 0x293   : > { %18525 = vst [vmem:[#allocation58_spill] sm:$0xff] %v12987_v31  ;;  %vm3535_vm11 = vweird.f32 %v12921_v56  ;;  %vm3584_vm5 = vweird.f32 %v12884_v52  ;;  %v3559_v53 = vmul.f32 %v12982_v54, %v12904_v13  ;;  %v3533_v44 = vmul.f32 %v12921_v56, %v3532_v5  ;;  %5325 = vmatpush.xpose.msrb.mxu3 %v13072_v36  ;;  %v18536_v52 = vld [vmem:[#allocation31_spill] sm:$0xff] }
 0x294   : > { %v3582_v24 = vsub.f32 1.5, %v3581_v3  ;;  %v3571_v38 = vmul.f32 0.5, %v3570_v12  ;;  %vm3574_vm13 = vweird.f32 %v12886_v18  ;;  %vm3585_vm14 = vweird.f32 %v12962_v39  ;;  %vm13045_vm6 = vmor %vm3534_vm1, %vm3535_vm11 }
 0x295   : > { %v3560_v26 = vmul.f32 %v12982_v54, %v3559_v53  ;;  %vm3564_vm7 = vweird.f32 %v12904_v13  ;;  %7073 = vrsqrt.f32 %v12990_v23  ;;  %v3557_v5 = vsel %vm13002_vm8, %v12898_v4, %v3553_v55  ;;  %vm13061_vm15 = vmor %vm3584_vm5, %vm3585_vm14  ;;  %v1672_v46 = vpop.xlane.xlu0 %1671 }
 0x296   : > { %v3547_v43 = vsel %vm13022_vm4, %v12907_v22, %v3543_v45  ;;  %vm3575_vm12 = vweird.f32 %v12968_v51  ;;  %v13037_v8 = vmax.f32 %v1663_v32, 1e-24  ;;  %v3583_v4 = vmul.f32 %v12962_v39, %v3582_v24  ;;  %v1678_v45 = vpop.xlane.xlu2 %1677  ;;  %v13069_v24 = vld [vmem:[%s7672_s9 + $0xb80] sm:$0xff] }
 0x297   : > { %v13039_v41 = vpop.eup %7071  ;;  %v3561_v55 = vmul.f32 0.5, %v3560_v26  ;;  %v1114_v22 = vmul.f32 %v13013_v25, %v13013_v25  ;;  %v1115_v32 = vmul.f32 %v13016_v63, %v13016_v63  ;;  %v3537_v12 = vsel %vm13045_vm6, %v12921_v56, %v3533_v44  ;;  %v18535_v26 = vld [vmem:[#allocation30_spill] sm:$0xff]  ;;  %5305 = vmatpush.xpose.msrb.mxu2 %v13069_v24  ;;  %vm13148_vm5 = vmor %vm3574_vm13, %vm3575_vm12 }
 0x298   : > { %v3572_v42 = vsub.f32 1.5, %v3571_v38  ;;  %v3609_v53 = vmul.f32 %v13039_v41, %v12974_v19  ;;  %vm3614_vm1 = vweird.f32 %v12974_v19  ;;  %v13075_v56 = vperm.slane %v3557_v5, %v18535_v26 }
 0x299   : > { %v3562_v44 = vsub.f32 1.5, %v3561_v55  ;;  %vm3565_vm10 = vweird.f32 %v12982_v54  ;;  %7075 = vrsqrt.f32 %v13037_v8  ;;  %v13082_v38 = vperm.slane %v3547_v43, %v18536_v52  ;;  %v1675_v55 = vpop.xlane.xlu1 %1674 }
 0x29a   : > { %v3610_v3 = vmul.f32 %v13039_v41, %v3609_v53  ;;  %v1802_v21 = vadd.f32 %v1115_v32, %v1114_v22  ;;  %v1799_v5 = vadd.f32 %v12777_v47, %v12754_v11  ;;  %v13090_v33 = vperm.slane %v3537_v12, %v18537_v14  ;;  %vm13122_vm11 = vmor %vm3564_vm7, %vm3565_vm10  ;;  %v13136_v53 = vld [vmem:[%s7672_s9 + $0xb38] sm:$0xff]  ;;  %v18547_v14 = vld [vmem:[#allocation40_spill] sm:$0xff] }
 0x29b   : > { %v13087_v40 = vpop.eup %7073  ;;  %v3587_v43 = vsel %vm13061_vm15, %v12962_v39, %v3583_v4  ;;  %v3563_v26 = vmul.f32 %v12982_v54, %v3562_v44  ;;  %v1796_v22 = vadd.f32 %v12931_v15, %v12781_v35  ;;  %v13099_v32 = vmul.f32 %v12968_v51, %v3572_v42  ;;  %v13109_v39 = vld [vmem:[%s7672_s9 + $0xb78] sm:$0xff]  ;;  %5306 = vmatpush.xpose.msrb.mxu2 %v13106_v2 }
 0x29c   : > { %v3611_v11 = vmul.f32 0.5, %v3610_v3  ;;  %v3599_v47 = vmul.f32 %v13087_v40, %v12990_v23  ;;  %1803 = vadd.xlane.f32.xlu2 %v1802_v21  ;;  %1800 = vadd.xlane.f32.xlu1 %v1799_v5  ;;  %v13103_v12 = vmax.f32 %v1678_v45, 1e-24  ;;  %vm3615_vm9 = vweird.f32 %v13039_v41  ;;  %v18541_v44 = vld [vmem:[#allocation14_spill] sm:$0xff]  ;;  %v13186_v21 = vld [vmem:[%s7672_s9 + $0xb60] sm:$0xff] }
 0x29d   : > { %vm3604_vm8 = vweird.f32 %v12990_v23  ;;  %1797 = vadd.xlane.f32.xlu0 %v1796_v22  ;;  %v13113_v35 = vmax.f32 %v1675_v55, 1e-24  ;;  %v13115_v15 = vmax.f32 %v1672_v46, 1e-24  ;;  %v13129_v42 = vmul.f32 %v12770_v61, %v12770_v61  ;;  %v13133_v46 = vld [vmem:[%s7672_s9 + $0xb30] sm:$0xff]  ;;  %5326 = vmatpush.xpose.msrb.mxu3 %v13109_v39  ;;  %v13164_v22 = vld [vmem:[%s7672_s9 + $0xb28] sm:$0xff]  ;;  %vm13175_vm13 = vmor %vm3614_vm1, %vm3615_vm9 }
 0x29e   : > { %v3612_v4 = vsub.f32 1.5, %v3611_v11  ;;  %v3600_v45 = vmul.f32 %v13087_v40, %v3599_v47  ;;  %7077 = vrsqrt.f32 %v13103_v12  ;;  %v13142_v3 = vperm.slane %v3587_v43, %v18541_v44  ;;  %v13161_v43 = vld [vmem:[%s7672_s9 + $0xb20] sm:$0xff]  ;;  %v13183_v47 = vld [vmem:[%s7672_s9 + $0xb10] sm:$0xff]  ;;  %v1687_v18 = vpop.xlane.xlu2 %1686  ;;  %v13198_v44 = vld [vmem:[%s7672_s9 + $0xb68] sm:$0xff] }
 0x29f   : > { %18540 = vst [vmem:[#allocation53_spill] sm:$0xff] %v13129_v42  ;;  %v13139_v13 = vpop.eup %7075  ;;  %v3567_v5 = vsel %vm13122_vm11, %v12982_v54, %v3563_v26  ;;  %v13157_v55 = vmul.f32 %v12773_v6, %v12773_v6  ;;  %7079 = vrsqrt.f32 %v13113_v35  ;;  %vm3594_vm4 = vweird.f32 %v13037_v8  ;;  %5307 = vmatpush.xpose.msrb.mxu2 %v13186_v21  ;;  %v13222_v6 = vld [vmem:[%s7672_s9 + $0xb50] sm:$0xff] }
 0x2a0   : > { %v3613_v11 = vmul.f32 %v13039_v41, %v3612_v4  ;;  %v3601_v54 = vmul.f32 0.5, %v3600_v45  ;;  %v3589_v26 = vmul.f32 %v13139_v13, %v13037_v8  ;;  %vm3605_vm14 = vweird.f32 %v13087_v40  ;;  %v13195_v45 = vld [vmem:[%s7672_s9 + $0xb18] sm:$0xff] }
 0x2a1   : > { %18544 = vst [vmem:[#allocation54_spill] sm:$0xff] %v13157_v55  ;;  %7081 = vrsqrt.f32 %v13115_v15  ;;  %v1120_v19 = vmul.f32 %v13133_v46, %v13133_v46  ;;  %v1121_v4 = vmul.f32 %v13136_v53, %v13136_v53  ;;  %v13202_v31 = vperm.slane %v3567_v5, %v18547_v14  ;;  %5327 = vmatpush.xpose.msrb.mxu3 %v13198_v44  ;;  %vm13230_vm12 = vmor %vm3604_vm8, %vm3605_vm14  ;;  %v1684_v0 = vpop.xlane.xlu1 %1683 }
 0x2a2   : > { %v3602_v52 = vsub.f32 1.5, %v3601_v54  ;;  %v3590_v29 = vmul.f32 %v13139_v13, %v3589_v26  ;;  %v1118_v16 = vmul.f32 %v13161_v43, %v13161_v43  ;;  %v3617_v59 = vsel %vm13175_vm13, %v13039_v41, %v3613_v11 }
 0x2a3   : > { %v1811_v1 = vadd.f32 %v1121_v4, %v1120_v19  ;;  %v1119_v50 = vmul.f32 %v13164_v22, %v13164_v22  ;;  %v1116_v5 = vmul.f32 %v13183_v47, %v13183_v47  ;;  %vm3644_vm7 = vweird.f32 %v13103_v12  ;;  %v13239_v19 = vld [vmem:[%s7672_s9 + $0xb58] sm:$0xff]  ;;  %5308 = vmatpush.xpose.msrb.mxu2 %v13222_v6 }
 0x2a4   : > { %v13215_v54 = vpop.eup %7077  ;;  %v3603_v26 = vmul.f32 %v13087_v40, %v3602_v52  ;;  %v3591_v14 = vmul.f32 0.5, %v3590_v29  ;;  %v1117_v58 = vmul.f32 %v13195_v45, %v13195_v45  ;;  %vm3595_vm6 = vweird.f32 %v13139_v13 }
 0x2a5   : > { %v13224_v41 = vpop.eup %7079  ;;  %v3639_v29 = vmul.f32 %v13215_v54, %v13103_v12  ;;  %vm3634_vm15 = vweird.f32 %v13113_v35  ;;  %1812 = vadd.xlane.f32.xlu2 %v1811_v1  ;;  %v1808_v52 = vadd.f32 %v1119_v50, %v1118_v16  ;;  %v6039_v4 = vperm.slane %v3617_v59, %v18443_v28  ;;  %5328 = vmatpush.xpose.msrb.mxu3 %v13239_v19  ;;  %v13260_v28 = vld [vmem:[%s7672_s9 + $0xb40] sm:$0xff]  ;;  %vm3596_vm9 = vmor %vm3594_vm4, %vm3595_vm6 }
 0x2a6   : > { %v3607_v23 = vsel %vm13230_vm12, %v13087_v40, %v3603_v26  ;;  %v3592_v55 = vsub.f32 1.5, %v3591_v14  ;;  %v3629_v42 = vmul.f32 %v13224_v41, %v13113_v35  ;;  %vm3645_vm1 = vweird.f32 %v13215_v54  ;;  %v1681_v40 = vpop.xlane.xlu0 %1680 }
 0x2a7   : > { %v13249_v1 = vpop.eup %7081  ;;  %v3640_v50 = vmul.f32 %v13215_v54, %v3639_v29  ;;  %vm3635_vm10 = vweird.f32 %v13224_v41  ;;  %1809 = vadd.xlane.f32.xlu1 %v1808_v52  ;;  %v1805_v16 = vadd.f32 %v1117_v58, %v1116_v5  ;;  %v6037_v14 = vperm.slane %v3607_v23, %v18437_v7  ;;  %v18551_v5 = vld [vmem:[#allocation41_spill] sm:$0xff]  ;;  %v13278_v23 = vld [vmem:[%s7672_s9 + $0xb48] sm:$0xff]  ;;  %5309 = vmatpush.xpose.msrb.mxu2 %v13260_v28  ;;  %vm13302_vm14 = vmor %vm3644_vm7, %vm3645_vm1 }
 0x2a8   : > { %v3593_v59 = vmul.f32 %v13139_v13, %v3592_v55  ;;  %v3630_v26 = vmul.f32 %v13224_v41, %v3629_v42  ;;  %v3619_v11 = vmul.f32 %v13249_v1, %v13115_v15  ;;  %vm18550_vm8 = vcmask 720512   ;;  %vm13329_vm7 = vmor %vm3634_vm15, %vm3635_vm10 }
 0x2a9   : > { %v3641_v29 = vmul.f32 0.5, %v3640_v50  ;;  %1806 = vadd.xlane.f32.xlu0 %v1805_v16  ;;  %v6023_v58 = vsel %vm18550_vm8, %v12996_v62, %v12957_v17  ;;  %v18552_v42 = vsel %vm13148_vm5, %v12968_v51, %v13099_v32  ;;  %v13275_v52 = vmax.f32 %v1687_v18, 1e-24  ;;  %5329 = vmatpush.xpose.msrb.mxu3 %v13278_v23  ;;  %v18554_v62 = vld [vmem:[#allocation19_spill] sm:$0xff]  ;;  %v13290_v18 = vpop.xlane.xlu2 %1695  ;;  %v1693_v35 = vpop.xlane.xlu1 %1692 }
 0x2aa   : > { %v6032_v55 = vperm.slane %v18552_v42, %v18551_v5  ;;  %v3597_v8 = vsel %vm3596_vm9, %v13139_v13, %v3593_v59  ;;  %v3631_v50 = vmul.f32 0.5, %v3630_v26  ;;  %v3620_v16 = vmul.f32 %v13249_v1, %v3619_v11 }
 0x2ab   : > { %vm18553_vm11 = vcmask 786112   ;;  %v6035_v61 = vperm.slane %v3597_v8, %v18554_v62  ;;  %v3642_v51 = vsub.f32 1.5, %v3641_v29  ;;  %vm18555_vm5 = vcmask 851712   ;;  %5310 = vmatpush.xpose.msrb.mxu2 %v13133_v46 }
 0x2ac   : > { %v6025_v17 = vsel %vm18553_vm11, %v13090_v33, %v6023_v58  ;;  %7083 = vrsqrt.f32 %v13275_v52  ;;  %v3632_v42 = vsub.f32 1.5, %v3631_v50  ;;  %v3621_v13 = vmul.f32 0.5, %v3620_v16 }
 0x2ad   : > { %v6027_v32 = vsel %vm18555_vm5, %v13082_v38, %v6025_v17  ;;  %vm3625_vm13 = vweird.f32 %v13249_v1  ;;  %vm18556_vm4 = vcmask 917312   ;;  %v6036_v33 = vsel %vm17892_vm0, %v6035_v61, %v13142_v3  ;;  %5330 = vmatpush.xpose.msrb.mxu3 %v13136_v53 }
 0x2ae   : > { %v6029_v59 = vsel %vm18556_vm4, %v13075_v56, %v6027_v32  ;;  %v3643_v26 = vmul.f32 %v13215_v54, %v3642_v51  ;;  %vm18559_vm12 = vcmask 982912   ;;  %v13308_v29 = vmax.f32 %v1684_v0, 1e-24  ;;  %v1690_v16 = vpop.xlane.xlu0 %1689 }
 0x2af   : > { %v6031_v11 = vsel %vm18559_vm12, %v13202_v31, %v6029_v59  ;;  %vm18560_vm6 = vcmask 195712   ;;  %v3633_v3 = vmul.f32 %v13224_v41, %v3632_v42  ;;  %v3622_v58 = vsub.f32 1.5, %v3621_v13  ;;  %5311 = vmatpush.xpose.msrb.mxu2 %v13161_v43 }
 0x2b0   : > { %v6038_v56 = vsel %vm18560_vm6, %v6037_v14, %v6036_v33  ;;  %vm18561_vm9 = vcmask 1048512   ;;  %v13319_v8 = vmul.f32 %v12822_v20, %v12822_v20  ;;  %v13323_v0 = vmul.f32 %v12825_v9, %v12825_v9  ;;  %v13344_v14 = vld [vmem:[%s7672_s9 + $0xcf0] sm:$0xff] }
 0x2b1   : > { %v13314_v12 = vsel %vm18561_vm9, %v6032_v55, %v6031_v11  ;;  %vm18565_vm1 = vcmask 261312   ;;  %7085 = vrsqrt.f32 %v13308_v29  ;;  %v3647_v20 = vsel %vm13302_vm14, %v13215_v54, %v3643_v26  ;;  %v13347_v55 = vld [vmem:[%s7672_s9 + $0xcf8] sm:$0xff]  ;;  %5338 = vmatpush.xpose.msra.mxu0 %v13344_v14  ;;  %5331 = vmatpush.xpose.msrb.mxu3 %v13164_v22  ;;  %v1705_v59 = vpop.xlane.xlu2 %1704 }
 0x2b2   : > { %18562 = vst [vmem:[#allocation34_spill] sm:$0xff] %v13314_v12  ;;  %v6040_v46 = vsel %vm18565_vm1, %v6039_v4, %v6038_v56  ;;  %v3637_v9 = vsel %vm13329_vm7, %v13224_v41, %v3633_v3  ;;  %v3623_v53 = vmul.f32 %v13249_v1, %v3622_v58  ;;  %vm3624_vm8 = vweird.f32 %v13115_v15  ;;  %v13349_v4 = vpop.eup %7083  ;;  %5358 = vmatpush.xpose.msra.mxu1 %v13347_v55 }
 0x2b3   : > { %vm3626_vm15 = vmor %vm3624_vm8, %vm3625_vm13  ;;  %v13355_v54 = vmul.f32 %v12861_v57, %v12861_v57  ;;  %v13359_v41 = vmul.f32 %v12864_v37, %v12864_v37  ;;  %v13363_v15 = vmul.f32 %v12915_v48, %v12915_v48  ;;  %v13365_v50 = vmax.f32 %v1681_v40, 1e-24  ;;  %5312 = vmatpush.xpose.msrb.mxu2 %v13183_v47 }
 0x2b4   : > { %7087 = vrsqrt.f32 %v12676_v60  ;;  %v6043_v57 = vperm.slane %v3637_v9, %v18462_v10  ;;  %v3627_v17 = vsel %vm3626_vm15, %v13249_v1, %v3623_v53  ;;  %v3669_v37 = vmul.f32 %v13349_v4, %v13275_v52  ;;  %v1702_v53 = vpop.xlane.xlu1 %1701  ;;  %v13796_v60 = vld [vmem:[%s7672_s9 + $0xc78] sm:$0xff] }
 0x2b5   : > { %v6045_v48 = vperm.slane %v3647_v20, %v18508_v30  ;;  %v6041_v40 = vperm.slane %v3627_v17, %v18456_v49  ;;  %7089 = vrsqrt.f32 %v13365_v50  ;;  %v1126_v43 = vmul.f32 %v13186_v21, %v13186_v21  ;;  %5332 = vmatpush.xpose.msrb.mxu3 %v13195_v45  ;;  %v13442_v17 = vld [vmem:[%s7672_s9 + $0xcd8] sm:$0xff] }
 0x2b6   : > { %v3670_v61 = vmul.f32 %v13349_v4, %v3669_v37  ;;  %v1127_v1 = vmul.f32 %v13198_v44, %v13198_v44  ;;  %v1124_v22 = vmul.f32 %v13222_v6, %v13222_v6  ;;  %v1125_v51 = vmul.f32 %v13239_v19, %v13239_v19 }
 0x2b7   : > { %v13388_v32 = vpop.eup %7085  ;;  %vm18566_vm10 = vcmask 326912   ;;  %v1133_v21 = vmul.f32 %v12918_v27, %v12918_v27  ;;  %v1122_v13 = vmul.f32 %v13260_v28, %v13260_v28  ;;  %v1123_v44 = vmul.f32 %v13278_v23, %v13278_v23  ;;  %v13405_v27 = vld [vmem:[%s7672_s9 + $0xce0] sm:$0xff]  ;;  %v13408_v28 = vld [vmem:[%s7672_s9 + $0xce8] sm:$0xff]  ;;  %5313 = vmatpush.xpose.msrb.mxu2 %v13013_v25 }
 0x2b8   : > { %v6042_v42 = vsel %vm18566_vm10, %v6041_v40, %v6040_v46  ;;  %vm18567_vm11 = vcmask 392512   ;;  %v3671_v33 = vmul.f32 0.5, %v3670_v61  ;;  %v3659_v19 = vmul.f32 %v13388_v32, %v13308_v29  ;;  %5339 = vmatpush.xpose.msra.mxu0 %v13405_v27  ;;  %5359 = vmatpush.xpose.msra.mxu1 %v13408_v28 }
 0x2b9   : > { %v6044_v6 = vsel %vm18567_vm11, %v6043_v57, %v6042_v42  ;;  %v1130_v26 = vmul.f32 %v13069_v24, %v13069_v24  ;;  %vm18568_vm5 = vcmask 458112   ;;  %v1820_v38 = vadd.f32 %v1127_v1, %v1126_v43  ;;  %v13439_v57 = vld [vmem:[%s7672_s9 + $0xcd0] sm:$0xff]  ;;  %5333 = vmatpush.xpose.msrb.mxu3 %v13016_v63 }
 0x2ba   : > { %v13411_v23 = vsel %vm18568_vm5, %v6045_v48, %v6044_v6  ;;  %v1817_v47 = vadd.f32 %v1125_v51, %v1124_v22  ;;  %v1814_v11 = vadd.f32 %v1123_v44, %v1122_v13  ;;  %v13414_v56 = vpop.eup %7087  ;;  %v3660_v3 = vmul.f32 %v13388_v32, %v3659_v19  ;;  %5314 = vmatmul.f32.vlgmr.msrb.gmra.mxu2 %v12937_v34  ;;  %v18570_v22 = vld [vmem:[#allocation36_spill] sm:$0xff]  ;;  %v7357_v51 = vld [vmem:[%s7672_s9 + $0xbf8] sm:$0xff]  ;;  %v18573_v34 = vld [vmem:[#allocation53_spill] sm:$0xff]  ;;  %v1714_v6 = vpop.xlane.xlu2 %1713 }
 0x2bb   : > { %18569 = vst [vmem:[#allocation59_spill] sm:$0xff] %v13414_v56  ;;  %v1131_v24 = vmul.f32 %v13072_v36, %v13072_v36  ;;  %v1128_v45 = vmul.f32 %v13106_v2, %v13106_v2  ;;  %v13422_v58 = vmax.f32 %v13290_v18, 1e-24  ;;  %v13425_v31 = vpop.eup %7089  ;;  %v3672_v46 = vsub.f32 1.5, %v3671_v33  ;;  %1821 = vadd.xlane.f32.xlu2 %v1820_v38  ;;  %v18574_v13 = vld [vmem:[#allocation54_spill] sm:$0xff]  ;;  %v13485_v33 = vld [vmem:[%s7672_s9 + $0xcc0] sm:$0xff] }
 0x2bc   : > { %1818 = vadd.xlane.f32.xlu1 %v1817_v47  ;;  %v1129_v20 = vmul.f32 %v13109_v39, %v13109_v39  ;;  %v13429_v9 = vmax.f32 %v1693_v35, 1e-24  ;;  %v13431_v36 = vmax.f32 %v1690_v16, 1e-24  ;;  %vm3674_vm13 = vweird.f32 %v13275_v52  ;;  %1815 = vadd.xlane.f32.xlu0 %v1814_v11  ;;  %v1699_v35 = vpop.xlane.xlu0 %1698  ;;  %v13488_v19 = vld [vmem:[%s7672_s9 + $0xcc8] sm:$0xff]  ;;  %v18575_v52 = vld [vmem:[#allocation65_spill] sm:$0xff] }
 0x2bd   : > { %v3661_v2 = vmul.f32 0.5, %v3660_v3  ;;  %vm3664_vm4 = vweird.f32 %v13308_v29  ;;  %v3649_v18 = vmul.f32 %v13425_v31, %v13365_v50  ;;  %vm3675_vm14 = vweird.f32 %v13349_v4  ;;  %5340 = vmatpush.xpose.msra.mxu0 %v13439_v57  ;;  %5360 = vmatpush.xpose.msra.mxu1 %v13442_v17 }
 0x2be   : > { %vm3665_vm12 = vweird.f32 %v13388_v32  ;;  %7091 = vrsqrt.f32 %v13422_v58  ;;  %v1829_v39 = vadd.f32 %v1133_v21, %v13363_v15  ;;  %v1826_v37 = vadd.f32 %v1131_v24, %v1130_v26  ;;  %5334 = vmatmul.f32.vlgmr.msrb.gmra.mxu3 %v18570_v22  ;;  %vm13471_vm6 = vmor %vm3674_vm13, %vm3675_vm14 }
 0x2bf   : > { %v3662_v16 = vsub.f32 1.5, %v3661_v2  ;;  %v3650_v25 = vmul.f32 %v13425_v31, %v3649_v18  ;;  %7093 = vrsqrt.f32 %v13429_v9  ;;  %v3673_v48 = vmul.f32 %v13349_v4, %v3672_v46  ;;  %vm13498_vm9 = vmor %vm3664_vm4, %vm3665_vm12  ;;  %v18579_v18 = vld [vmem:[#allocation24_spill] sm:$0xff] }
 0x2c0   : > { %7095 = vrsqrt.f32 %v13431_v36  ;;  %v1823_v15 = vadd.f32 %v1129_v20, %v1128_v45  ;;  %v13455_v40 = vmax.f32 %v1705_v59, 1e-24  ;;  %v13459_v61 = vmax.f32 %v1702_v53, 1e-24  ;;  %v7358_v20 = vld [vmem:[%s7672_s9 + $0xbe8] sm:$0xff] }
 0x2c1   : > { %v3663_v63 = vmul.f32 %v13388_v32, %v3662_v16  ;;  %v3651_v43 = vmul.f32 0.5, %v3650_v25  ;;  %v13461_v1 = vmax.f32 %v1699_v35, 1e-24  ;;  %v13465_v42 = vmul.f32 %v7357_v51, %v7357_v51  ;;  %5341 = vmatpush.xpose.msra.mxu0 %v13485_v33  ;;  %5361 = vmatpush.xpose.msra.mxu1 %v13488_v19  ;;  %v1711_v25 = vpop.xlane.xlu1 %1710 }
 0x2c2   : > { %7097 = vrsqrt.f32 %v13455_v40  ;;  %v13478_v44 = vadd.f32 %v18574_v13, %v18573_v34  ;;  %v13482_v59 = vadd.f32 %v13323_v0, %v13319_v8  ;;  %v13492_v26 = vmul.f32 %v18575_v52, %v18575_v52 }
 0x2c3   : > { %v3652_v47 = vsub.f32 1.5, %v3651_v43  ;;  %vm3655_vm7 = vweird.f32 %v13425_v31  ;;  %7099 = vrsqrt.f32 %v13459_v61  ;;  %v3667_v29 = vsel %vm13498_vm9, %v13388_v32, %v3663_v63  ;;  %1830 = vadd.xlane.f32.xlu2 %v1829_v39 }
 0x2c4   : > { %v13506_v8 = vpop.eup %7091  ;;  %vm3654_vm1 = vweird.f32 %v13365_v50  ;;  %1827 = vadd.xlane.f32.xlu1 %v1826_v37  ;;  %7101 = vrsqrt.f32 %v13461_v1  ;;  %v1832_v0 = vadd.f32 %v13359_v41, %v13355_v54  ;;  %v3677_v3 = vsel %vm13471_vm6, %v13349_v4, %v3673_v48  ;;  %1824 = vadd.xlane.f32.xlu0 %v1823_v15  ;;  %v18578_v54 = vld [vmem:[#allocation69_spill] sm:$0xff] }
 0x2c5   : > { %v13515_v11 = vpop.eup %7093  ;;  %v3653_v24 = vmul.f32 %v13425_v31, %v3652_v47  ;;  %v3699_v32 = vmul.f32 %v13506_v8, %v13422_v58  ;;  %v13523_v45 = vmax.f32 %v1714_v6, 1e-24  ;;  %v13528_v2 = vmul.f32 %v7358_v20, %v7358_v20  ;;  %vm3656_vm8 = vmor %vm3654_vm1, %vm3655_vm7  ;;  %v18580_v50 = vld [vmem:[#allocation29_spill] sm:$0xff] }
 0x2c6   : > { %v13525_v46 = vpop.eup %7095  ;;  %v13532_v41 = vmul.f32 %v18578_v54, %v18578_v54  ;;  %vm3704_vm15 = vweird.f32 %v13422_v58  ;;  %v3689_v4 = vmul.f32 %v13515_v11, %v13429_v9  ;;  %v6049_v53 = vperm.slane %v3667_v29, %v18579_v18  ;;  %v18581_v15 = vld [vmem:[#allocation25_spill] sm:$0xff]  ;;  %v13570_v29 = vld [vmem:[%s7672_s9 + $0xcb8] sm:$0xff] }
 0x2c7   : > { %v3657_v39 = vsel %vm3656_vm8, %v13425_v31, %v3653_v24  ;;  %v3700_v35 = vmul.f32 %v13506_v8, %v3699_v32  ;;  %v3679_v16 = vmul.f32 %v13525_v46, %v13431_v36  ;;  %v6051_v48 = vperm.slane %v3677_v3, %v18580_v50  ;;  %v13567_v47 = vld [vmem:[%s7672_s9 + $0xcb0] sm:$0xff]  ;;  %5362 = vmatpush.xpose.msra.mxu1 %v13570_v29 }
 0x2c8   : > { %v13546_v37 = vpop.eup %7097  ;;  %v6047_v63 = vperm.slane %v3657_v39, %v18581_v15  ;;  %v3690_v43 = vmul.f32 %v13515_v11, %v3689_v4  ;;  %7103 = vrsqrt.f32 %v13523_v45  ;;  %vm3705_vm10 = vweird.f32 %v13506_v8  ;;  %5342 = vmatpush.xpose.msra.mxu0 %v13567_v47 }
 0x2c9   : > { %v13552_v22 = vpop.eup %7099  ;;  %v3701_v31 = vmul.f32 0.5, %v3700_v35  ;;  %v3680_v51 = vmul.f32 %v13525_v46, %v3679_v16  ;;  %v3729_v21 = vmul.f32 %v13546_v37, %v13455_v40  ;;  %vm18582_vm11 = vcmask 523712   ;;  %vm13594_vm12 = vmor %vm3704_vm15, %vm3705_vm10 }
 0x2ca   : > { %v13558_v34 = vpop.eup %7101  ;;  %v6048_v13 = vsel %vm18582_vm11, %v6047_v63, %v13411_v23  ;;  %v3691_v6 = vmul.f32 0.5, %v3690_v43  ;;  %v3719_v52 = vmul.f32 %v13552_v22, %v13459_v61  ;;  %v13564_v38 = vmax.f32 %v1711_v25, 1e-24 }
 0x2cb   : > { %vm18583_vm5 = vcmask 589312   ;;  %v3702_v24 = vsub.f32 1.5, %v3701_v31  ;;  %v3681_v32 = vmul.f32 0.5, %v3680_v51  ;;  %v3730_v20 = vmul.f32 %v13546_v37, %v3729_v21  ;;  %1839 = vadd.xlane.f32.xlu2 %v13478_v44 }
 0x2cc   : > { %v6050_v3 = vsel %vm18583_vm5, %v6049_v53, %v6048_v13  ;;  %v3692_v23 = vsub.f32 1.5, %v3691_v6  ;;  %v3720_v4 = vmul.f32 %v13552_v22, %v3719_v52  ;;  %v3709_v39 = vmul.f32 %v13558_v34, %v13461_v1  ;;  %1836 = vadd.xlane.f32.xlu1 %v13482_v59  ;;  %v1708_v53 = vpop.xlane.xlu0 %1707  ;;  %1833 = vadd.xlane.f32.xlu0 %v1832_v0  ;;  %v7359_v13 = vld [vmem:[%s7672_s9 + $0xbd8] sm:$0xff] }
 0x2cd   : > { %v6052_v54 = vsel %vm17891_vm3, %v6051_v48, %v6050_v3  ;;  %vm3694_vm13 = vweird.f32 %v13429_v9  ;;  %v3682_v35 = vsub.f32 1.5, %v3681_v32  ;;  %vm3684_vm4 = vweird.f32 %v13431_v36  ;;  %v13618_v36 = vld [vmem:[%s7672_s9 + $0xca8] sm:$0xff] }
 0x2ce   : > { %vm3685_vm14 = vweird.f32 %v13525_v46  ;;  %v13585_v16 = vpop.eup %7103  ;;  %v3731_v25 = vmul.f32 0.5, %v3730_v20  ;;  %v3721_v48 = vmul.f32 0.5, %v3720_v4  ;;  %v3710_v63 = vmul.f32 %v13558_v34, %v3709_v39  ;;  %5363 = vmatpush.xpose.msra.mxu1 %v13618_v36 }
 0x2cf   : > { %7105 = vrsqrt.f32 %v13564_v38  ;;  %v3703_v44 = vmul.f32 %v13506_v8, %v3702_v24  ;;  %v3683_v0 = vmul.f32 %v13525_v46, %v3682_v35  ;;  %v3759_v43 = vmul.f32 %v13585_v16, %v13523_v45  ;;  %vm3686_vm9 = vmor %vm3684_vm4, %vm3685_vm14  ;;  %v18586_v24 = vld [vmem:[#allocation28_spill] sm:$0xff] }
 0x2d0   : > { %v13601_v31 = vmax.f32 %v1708_v53, 1e-24  ;;  %v3693_v51 = vmul.f32 %v13515_v11, %v3692_v23  ;;  %vm3695_vm6 = vweird.f32 %v13515_v11  ;;  %v3722_v58 = vsub.f32 1.5, %v3721_v48  ;;  %v13615_v23 = vld [vmem:[%s7672_s9 + $0xca0] sm:$0xff] }
 0x2d1   : > { %v3711_v21 = vmul.f32 0.5, %v3710_v63  ;;  %v1141_v6 = vmul.f32 %v7359_v13, %v7359_v13  ;;  %v3687_v52 = vsel %vm3686_vm9, %v13525_v46, %v3683_v0  ;;  %vm3734_vm7 = vweird.f32 %v13455_v40  ;;  %vm13627_vm15 = vmor %vm3694_vm13, %vm3695_vm6  ;;  %5343 = vmatpush.xpose.msra.mxu0 %v13615_v23  ;;  %v18593_v0 = vld [vmem:[#allocation58_spill] sm:$0xff]  ;;  %v13745_v40 = vld [vmem:[%s7672_s9 + $0xc00] sm:$0xff] }
 0x2d2   : > { %v3760_v3 = vmul.f32 %v13585_v16, %v3759_v43  ;;  %v6053_v32 = vperm.slane %v3687_v52, %v18586_v24  ;;  %v3732_v20 = vsub.f32 1.5, %v3731_v25  ;;  %vm3735_vm1 = vweird.f32 %v13546_v37  ;;  %v13669_v13 = vld [vmem:[%s7672_s9 + $0xc98] sm:$0xff]  ;;  %v18594_v52 = vld [vmem:[#allocation27_spill] sm:$0xff] }
 0x2d3   : > { %vm3724_vm8 = vweird.f32 %v13459_v61  ;;  %v3707_v4 = vsel %vm13594_vm12, %v13506_v8, %v3703_v44  ;;  %vm3725_vm10 = vweird.f32 %v13552_v22  ;;  %7107 = vrsqrt.f32 %v13601_v31  ;;  %v18590_v44 = vld [vmem:[#allocation31_spill] sm:$0xff]  ;;  %vm13658_vm4 = vmor %vm3734_vm7, %vm3735_vm1  ;;  %5364 = vmatpush.xpose.msra.mxu1 %v13669_v13 }
 0x2d4   : > { %v3761_v39 = vmul.f32 0.5, %v3760_v3  ;;  %v3697_v9 = vsel %vm13627_vm15, %v13515_v11, %v3693_v51  ;;  %vm18589_vm11 = vcmask 720512   ;;  %v3723_v35 = vmul.f32 %v13552_v22, %v3722_v58  ;;  %v1720_v51 = vpop.xlane.xlu1 %1719  ;;  %v1717_v58 = vpop.xlane.xlu0 %1716  ;;  %vm13678_vm12 = vmor %vm3724_vm8, %vm3725_vm10 }
 0x2d5   : > { %v13635_v53 = vpop.eup %7105  ;;  %v13641_v8 = vsel %vm18589_vm11, %v6053_v32, %v6052_v54  ;;  %v3712_v25 = vsub.f32 1.5, %v3711_v21  ;;  %vm3714_vm5 = vweird.f32 %v13461_v1  ;;  %vm3764_vm13 = vweird.f32 %v13523_v45  ;;  %v13666_v21 = vld [vmem:[%s7672_s9 + $0xc90] sm:$0xff] }
 0x2d6   : > { %v3762_v48 = vsub.f32 1.5, %v3761_v39  ;;  %v3749_v63 = vmul.f32 %v13635_v53, %v13564_v38  ;;  %v13649_v59 = vperm.slane %v3707_v4, %v18590_v44  ;;  %v13652_v11 = vmul.f32 %v13546_v37, %v3732_v20  ;;  %v1723_v20 = vpop.xlane.xlu2 %1722  ;;  %5344 = vmatpush.xpose.msra.mxu0 %v13666_v21  ;;  %v13784_v45 = vld [vmem:[%s7672_s9 + $0xc70] sm:$0xff] }
 0x2d7   : > { %vm3715_vm14 = vweird.f32 %v13558_v34  ;;  %v1847_v43 = vadd.f32 %v13465_v42, %v18593_v0  ;;  %v13672_v3 = vperm.slane %v3697_v9, %v18594_v52  ;;  %vm3765_vm6 = vweird.f32 %v13585_v16  ;;  %v13695_v9 = vld [vmem:[%s7672_s9 + $0xc20] sm:$0xff] }
 0x2d8   : > { %v3750_v42 = vmul.f32 %v13635_v53, %v3749_v63  ;;  %v1844_v32 = vadd.f32 %v13528_v2, %v13492_v26  ;;  %v3727_v4 = vsel %vm13678_vm12, %v13552_v22, %v3723_v35  ;;  %v3713_v61 = vmul.f32 %v13558_v34, %v3712_v25  ;;  %v13698_v63 = vld [vmem:[%s7672_s9 + $0xc28] sm:$0xff]  ;;  %vm13719_vm9 = vmor %vm3764_vm13, %vm3765_vm6 }
 0x2d9   : > { %1848 = vadd.xlane.f32.xlu2 %v1847_v43  ;;  %v1841_v46 = vadd.f32 %v1141_v6, %v13532_v41  ;;  %v13692_v39 = vmax.f32 %v1723_v20, 1e-24  ;;  %v13701_v26 = vpop.eup %7107  ;;  %v3763_v2 = vmul.f32 %v13585_v16, %v3762_v48  ;;  %v13704_v35 = vmax.f32 %v1720_v51, 1e-24  ;;  %v13709_v6 = vld [vmem:[%s7672_s9 + $0xc10] sm:$0xff]  ;;  %v13728_v43 = vld [vmem:[%s7672_s9 + $0xc18] sm:$0xff]  ;;  %vm13737_vm1 = vmor %vm3714_vm5, %vm3715_vm14 }
 0x2da   : > { %v3751_v22 = vmul.f32 0.5, %v3750_v42  ;;  %1845 = vadd.xlane.f32.xlu1 %v1844_v32  ;;  %v13706_v41 = vmax.f32 %v1717_v58, 1e-24  ;;  %vm3754_vm7 = vweird.f32 %v13564_v38  ;;  %v3739_v0 = vmul.f32 %v13701_v26, %v13601_v31  ;;  %v13731_v51 = vld [vmem:[%s7672_s9 + $0xc80] sm:$0xff]  ;;  %v13748_v42 = vld [vmem:[%s7672_s9 + $0xc88] sm:$0xff] }
 0x2db   : > { %1842 = vadd.xlane.f32.xlu0 %v1841_v46  ;;  %7109 = vrsqrt.f32 %v13692_v39  ;;  %vm3755_vm8 = vweird.f32 %v13635_v53  ;;  %vm3744_vm15 = vweird.f32 %v13601_v31  ;;  %5345 = vmatpush.xpose.msra.mxu0 %v13731_v51  ;;  %v18601_v32 = vld [vmem:[#allocation40_spill] sm:$0xff]  ;;  %v3717_v20 = vsel %vm13737_vm1, %v13558_v34, %v3713_v61 }
 0x2dc   : > { %v3752_v58 = vsub.f32 1.5, %v3751_v22  ;;  %7111 = vrsqrt.f32 %v13704_v35  ;;  %v6061_v1 = vperm.slane %v3727_v4, %v18601_v32  ;;  %v3740_v46 = vmul.f32 %v13701_v26, %v3739_v0  ;;  %v13758_v22 = vld [vmem:[%s7672_s9 + $0xc08] sm:$0xff]  ;;  %5365 = vmatpush.xpose.msra.mxu1 %v13748_v42  ;;  %vm13773_vm10 = vmor %vm3754_vm7, %vm3755_vm8  ;;  %v18604_v32 = vld [vmem:[#allocation30_spill] sm:$0xff] }
 0x2dd   : > { %7113 = vrsqrt.f32 %v13706_v41  ;;  %v3767_v25 = vsel %vm13719_vm9, %v13585_v16, %v3763_v2  ;;  %v1150_v4 = vmul.f32 %v13695_v9, %v13695_v9  ;;  %v1151_v34 = vmul.f32 %v13698_v63, %v13698_v63 }
 0x2de   : > { %v3753_v12 = vmul.f32 %v13635_v53, %v3752_v58  ;;  %v3741_v0 = vmul.f32 0.5, %v3740_v46  ;;  %v1148_v16 = vmul.f32 %v13709_v6, %v13709_v6  ;;  %v1149_v2 = vmul.f32 %v13728_v43, %v13728_v43 }
 0x2df   : > { %v1146_v48 = vmul.f32 %v13745_v40, %v13745_v40  ;;  %v13791_v58 = vmul.f32 %v13344_v14, %v13344_v14  ;;  %v1856_v46 = vadd.f32 %v1151_v34, %v1150_v4  ;;  %v1147_v56 = vmul.f32 %v13758_v22, %v13758_v22  ;;  %5346 = vmatpush.xpose.msra.mxu0 %v13784_v45 }
 0x2e0   : > { %v3757_v38 = vsel %vm13773_vm10, %v13635_v53, %v3753_v12  ;;  %v6059_v24 = vperm.slane %v3717_v20, %v18604_v32  ;;  %v3742_v52 = vsub.f32 1.5, %v3741_v0  ;;  %vm3745_vm11 = vweird.f32 %v13701_v26  ;;  %5366 = vmatpush.xpose.msra.mxu1 %v13796_v60  ;;  %v1729_v20 = vpop.xlane.xlu1 %1728 }
 0x2e1   : > { %v13799_v44 = vpop.eup %7109  ;;  %v1853_v12 = vadd.f32 %v1149_v2, %v1148_v16  ;;  %v6068_v53 = vperm.slane %v3767_v25, %v18437_v7  ;;  %vm3794_vm5 = vweird.f32 %v13692_v39  ;;  %1857 = vadd.xlane.f32.xlu2 %v1856_v46  ;;  %v1850_v34 = vadd.f32 %v1147_v56, %v1146_v48  ;;  %v13820_v7 = vld [vmem:[%s7672_s9 + $0xc60] sm:$0xff]  ;;  %vm3746_vm14 = vmor %vm3744_vm15, %vm3745_vm11 }
 0x2e2   : > { %v13804_v14 = vpop.eup %7111  ;;  %v3789_v4 = vmul.f32 %v13799_v44, %v13692_v39  ;;  %v6066_v0 = vperm.slane %v3757_v38, %v18554_v62  ;;  %v3743_v16 = vmul.f32 %v13701_v26, %v3742_v52  ;;  %vm18605_vm13 = vcmask 786112   ;;  %v1732_v38 = vpop.xlane.xlu2 %1731 }
 0x2e3   : > { %v13810_v61 = vpop.eup %7113  ;;  %v3779_v2 = vmul.f32 %v13804_v14, %v13704_v35  ;;  %1854 = vadd.xlane.f32.xlu1 %v1853_v12  ;;  %v6056_v25 = vsel %vm18605_vm13, %v13672_v3, %v13641_v8  ;;  %vm3795_vm12 = vweird.f32 %v13799_v44  ;;  %1851 = vadd.xlane.f32.xlu0 %v1850_v34  ;;  %vm18606_vm6 = vcmask 851712   ;;  %v13833_v8 = vld [vmem:[%s7672_s9 + $0xc68] sm:$0xff] }
 0x2e4   : > { %v3790_v56 = vmul.f32 %v13799_v44, %v3789_v4  ;;  %v3769_v52 = vmul.f32 %v13810_v61, %v13706_v41  ;;  %v6058_v48 = vsel %vm18606_vm6, %v13649_v59, %v6056_v25  ;;  %5347 = vmatpush.xpose.msra.mxu0 %v13820_v7  ;;  %v3747_v31 = vsel %vm3746_vm14, %v13701_v26, %v3743_v16  ;;  %v18609_v59 = vld [vmem:[#allocation14_spill] sm:$0xff]  ;;  %v1726_v16 = vpop.xlane.xlu0 %1725  ;;  %vm13864_vm8 = vmor %vm3794_vm5, %vm3795_vm12 }
 0x2e5   : > { %v3780_v3 = vmul.f32 %v13804_v14, %v3779_v2  ;;  %vm18607_vm9 = vcmask 917312   ;;  %v18608_v12 = vsel %vm13658_vm4, %v13546_v37, %v13652_v11  ;;  %5367 = vmatpush.xpose.msra.mxu1 %v13833_v8  ;;  %v6065_v34 = vperm.slane %v3747_v31, %v18609_v59  ;;  %v644_v37 = vld [vmem:[%s7672_s9 + $0xc50] sm:$0xff]  ;;  %v645_v31 = vld [vmem:[%s7672_s9 + $0xc58] sm:$0xff] }
 0x2e6   : > { %v6060_v46 = vsel %vm18607_vm9, %v6059_v24, %v6058_v48  ;;  %v6063_v4 = vperm.slane %v18608_v12, %v18551_v5  ;;  %v3791_v25 = vmul.f32 0.5, %v3790_v56  ;;  %v3770_v62 = vmul.f32 %v13810_v61, %v3769_v52 }
 0x2e7   : > { %vm18610_vm7 = vcmask 982912   ;;  %v3781_v2 = vmul.f32 0.5, %v3780_v3  ;;  %vm18611_vm1 = vcmask 1048512   ;;  %v13852_v54 = vmax.f32 %v1732_v38, 1e-24 }
 0x2e8   : > { %v6062_v26 = vsel %vm18610_vm7, %v6061_v1, %v6060_v46  ;;  %v13854_v48 = vmax.f32 %v1729_v20, 1e-24  ;;  %v6067_v11 = vsel %vm17892_vm0, %v6066_v0, %v6065_v34  ;;  %v3792_v12 = vsub.f32 1.5, %v3791_v25  ;;  %5348 = vmatpush.xpose.msra.mxu0 %v644_v37  ;;  %v642_v46 = vld [vmem:[%s7672_s9 + $0xc40] sm:$0xff]  ;;  %v640_v25 = vld [vmem:[%s7672_s9 + $0xc30] sm:$0xff] }
 0x2e9   : > { %v13850_v24 = vsel %vm18611_vm1, %v6063_v4, %v6062_v26  ;;  %vm3784_vm4 = vweird.f32 %v13704_v35  ;;  %v3771_v56 = vmul.f32 0.5, %v3770_v62  ;;  %v3782_v20 = vsub.f32 1.5, %v3781_v2  ;;  %5368 = vmatpush.xpose.msra.mxu1 %v645_v31  ;;  %v643_v4 = vld [vmem:[%s7672_s9 + $0xc48] sm:$0xff]  ;;  %v641_v26 = vld [vmem:[%s7672_s9 + $0xc38] sm:$0xff] }
 0x2ea   : > { %18612 = vst [vmem:[#allocation36_spill] sm:$0xff] %v13850_v24  ;;  %vm3785_vm15 = vweird.f32 %v13804_v14  ;;  %vm18615_vm10 = vcmask 195712   ;;  %7115 = vrsqrt.f32 %v13852_v54  ;;  %v3793_v62 = vmul.f32 %v13799_v44, %v3792_v12 }
 0x2eb   : > { %v6069_v0 = vsel %vm18615_vm10, %v6068_v53, %v6067_v11  ;;  %v3772_v52 = vsub.f32 1.5, %v3771_v56  ;;  %vm3775_vm11 = vweird.f32 %v13810_v61  ;;  %7117 = vrsqrt.f32 %v13854_v48  ;;  %vm3786_vm5 = vmor %vm3784_vm4, %vm3785_vm15  ;;  %v1741_v56 = vpop.xlane.xlu2 %1740 }
 0x2ec   : > { %v13876_v39 = vmul.f32 %v13347_v55, %v13347_v55  ;;  %v13880_v38 = vmul.f32 %v13405_v27, %v13405_v27  ;;  %v3783_v53 = vmul.f32 %v13804_v14, %v3782_v20  ;;  %v13883_v3 = vmax.f32 %v1726_v16, 1e-24  ;;  %v1738_v16 = vpop.xlane.xlu1 %1737  ;;  %5349 = vmatpush.xpose.msra.mxu0 %v642_v46 }
 0x2ed   : > { %v3797_v34 = vsel %vm13864_vm8, %v13799_v44, %v3793_v62  ;;  %v3773_v55 = vmul.f32 %v13810_v61, %v3772_v52  ;;  %vm3774_vm13 = vweird.f32 %v13706_v41  ;;  %v1156_v27 = vmul.f32 %v644_v37, %v644_v37  ;;  %5369 = vmatpush.xpose.msra.mxu1 %v643_v4 }
 0x2ee   : > { %v13900_v2 = vmul.f32 %v13408_v28, %v13408_v28  ;;  %v6074_v44 = vperm.slane %v3797_v34, %v18462_v10  ;;  %v3787_v11 = vsel %vm3786_vm5, %v13804_v14, %v3783_v53  ;;  %vm3776_vm14 = vmor %vm3774_vm13, %vm3775_vm11  ;;  %7119 = vrsqrt.f32 %v13883_v3  ;;  %v18616_v28 = vld [vmem:[#allocation18_spill] sm:$0xff] }
 0x2ef   : > { %v6072_v35 = vperm.slane %v3787_v11, %v18456_v49  ;;  %v3777_v41 = vsel %vm3776_vm14, %v13810_v61, %v3773_v55  ;;  %v1157_v37 = vmul.f32 %v645_v31, %v645_v31  ;;  %v1154_v12 = vmul.f32 %v642_v46, %v642_v46  ;;  %v1735_v46 = vpop.xlane.xlu0 %1734 }
 0x2f0   : > { %v13909_v1 = vpop.eup %7115  ;;  %v6070_v20 = vperm.slane %v3777_v41, %v18616_v28  ;;  %v1155_v62 = vmul.f32 %v643_v4, %v643_v4  ;;  %v1152_v52 = vmul.f32 %v640_v25, %v640_v25  ;;  %v1153_v14 = vmul.f32 %v641_v26, %v641_v26  ;;  %5350 = vmatpush.xpose.msra.mxu0 %v640_v25 }
 0x2f1   : > { %v13912_v53 = vpop.eup %7117  ;;  %v13916_v34 = vmul.f32 %v13439_v57, %v13439_v57  ;;  %v13920_v11 = vmul.f32 %v13442_v17, %v13442_v17  ;;  %v3819_v61 = vmul.f32 %v13909_v1, %v13852_v54  ;;  %v1865_v31 = vadd.f32 %v1157_v37, %v1156_v27  ;;  %5370 = vmatpush.xpose.msra.mxu1 %v641_v26 }
 0x2f2   : > { %vm18617_vm12 = vcmask 261312   ;;  %v13927_v55 = vmul.f32 %v13485_v33, %v13485_v33  ;;  %v3809_v57 = vmul.f32 %v13912_v53, %v13854_v48  ;;  %v1862_v41 = vadd.f32 %v1155_v62, %v1154_v12 }
 0x2f3   : > { %v6071_v4 = vsel %vm18617_vm12, %v6070_v20, %v6069_v0  ;;  %vm18618_vm6 = vcmask 326912   ;;  %v13934_v24 = vmul.f32 %v13488_v19, %v13488_v19  ;;  %v3820_v27 = vmul.f32 %v13909_v1, %v3819_v61  ;;  %1866 = vadd.xlane.f32.xlu2 %v1865_v31 }
 0x2f4   : > { %v6073_v17 = vsel %vm18618_vm6, %v6072_v35, %v6071_v4  ;;  %v1859_v25 = vadd.f32 %v1153_v14, %v1152_v52  ;;  %v13937_v0 = vpop.eup %7119  ;;  %v3810_v33 = vmul.f32 %v13912_v53, %v3809_v57  ;;  %vm18619_vm9 = vcmask 392512   ;;  %1863 = vadd.xlane.f32.xlu1 %v1862_v41  ;;  %5351 = vmatpush.xpose.msra.mxu0 %v13695_v9  ;;  %v1747_v52 = vpop.xlane.xlu1 %1746  ;;  %v7361_v4 = vld [vmem:[#allocation2 + $0x8] sm:$0xff] }
 0x2f5   : > { %v13941_v37 = vsel %vm18619_vm9, %v6074_v44, %v6073_v17  ;;  %v13943_v12 = vmax.f32 %v1741_v56, 1e-24  ;;  %v13945_v26 = vmax.f32 %v1738_v16, 1e-24  ;;  %v3821_v35 = vmul.f32 0.5, %v3820_v27  ;;  %5371 = vmatpush.xpose.msra.mxu1 %v13698_v63 }
 0x2f6   : > { %vm3824_vm7 = vweird.f32 %v13852_v54  ;;  %v3799_v19 = vmul.f32 %v13937_v0, %v13883_v3  ;;  %1860 = vadd.xlane.f32.xlu0 %v1859_v25  ;;  %v13950_v20 = vmax.f32 %v1735_v46, 1e-24  ;;  %v3811_v62 = vmul.f32 0.5, %v3810_v33  ;;  %v1750_v46 = vpop.xlane.xlu2 %1749 }
 0x2f7   : > { %vm3814_vm1 = vweird.f32 %v13854_v48  ;;  %v13956_v44 = vmul.f32 %v13567_v47, %v13567_v47  ;;  %7121 = vrsqrt.f32 %v13943_v12  ;;  %v3822_v16 = vsub.f32 1.5, %v3821_v35  ;;  %v1744_v41 = vpop.xlane.xlu0 %1743 }
 0x2f8   : > { %vm3825_vm4 = vweird.f32 %v13909_v1  ;;  %v3800_v56 = vmul.f32 %v13937_v0, %v3799_v19  ;;  %7123 = vrsqrt.f32 %v13945_v26  ;;  %v3812_v9 = vsub.f32 1.5, %v3811_v62  ;;  %5352 = vmatpush.xpose.msra.mxu0 %v13709_v6 }
 0x2f9   : > { %vm3815_vm8 = vweird.f32 %v13912_v53  ;;  %v1169_v14 = vmul.f32 %v13570_v29, %v13570_v29  ;;  %7125 = vrsqrt.f32 %v13950_v20  ;;  %v3823_v47 = vmul.f32 %v13909_v1, %v3822_v16  ;;  %vm13975_vm15 = vmor %vm3824_vm7, %vm3825_vm4  ;;  %5372 = vmatpush.xpose.msra.mxu1 %v13728_v43 }
 0x2fa   : > { %v3801_v61 = vmul.f32 0.5, %v3800_v56  ;;  %v1162_v63 = vmul.f32 %v13731_v51, %v13731_v51  ;;  %v1163_v31 = vmul.f32 %v13748_v42, %v13748_v42  ;;  %v3813_v29 = vmul.f32 %v13912_v53, %v3812_v9  ;;  %vm13991_vm10 = vmor %vm3814_vm1, %vm3815_vm8 }
 0x2fb   : > { %v1160_v57 = vmul.f32 %v13784_v45, %v13784_v45  ;;  %v1161_v51 = vmul.f32 %v13796_v60, %v13796_v60  ;;  %v1158_v42 = vmul.f32 %v13820_v7, %v13820_v7  ;;  %vm3805_vm11 = vweird.f32 %v13937_v0 }
 0x2fc   : > { %v3802_v54 = vsub.f32 1.5, %v3801_v61  ;;  %v1874_v45 = vadd.f32 %v1163_v31, %v1162_v63  ;;  %v1159_v60 = vmul.f32 %v13833_v8, %v13833_v8  ;;  %v3817_v7 = vsel %vm13991_vm10, %v13912_v53, %v3813_v29  ;;  %5353 = vmatpush.xpose.msra.mxu0 %v13745_v40  ;;  %v7360_v61 = vld [vmem:[#allocation2] sm:$0xff] }
 0x2fd   : > { %v13998_v17 = vpop.eup %7121  ;;  %v1166_v43 = vmul.f32 %v13615_v23, %v13615_v23  ;;  %v1871_v48 = vadd.f32 %v1161_v51, %v1160_v57  ;;  %v14005_v27 = vmax.f32 %v1750_v46, 1e-24  ;;  %v3827_v33 = vsel %vm13975_vm15, %v13909_v1, %v3823_v47  ;;  %5373 = vmatpush.xpose.msra.mxu1 %v13758_v22  ;;  %v1756_v46 = vpop.xlane.xlu1 %1755 }
 0x2fe   : > { %v14007_v25 = vpop.eup %7123  ;;  %v3803_v8 = vmul.f32 %v13937_v0, %v3802_v54  ;;  %vm3804_vm5 = vweird.f32 %v13883_v3  ;;  %v3849_v35 = vmul.f32 %v13998_v17, %v13943_v12  ;;  %1875 = vadd.xlane.f32.xlu2 %v1874_v45  ;;  %v1167_v53 = vmul.f32 %v13618_v36, %v13618_v36 }
 0x2ff   : > { %v14017_v23 = vpop.eup %7125  ;;  %vm3806_vm13 = vmor %vm3804_vm5, %vm3805_vm11  ;;  %v3839_v1 = vmul.f32 %v14007_v25, %v13945_v26  ;;  %1872 = vadd.xlane.f32.xlu1 %v1871_v48  ;;  %v1868_v19 = vadd.f32 %v1159_v60, %v1158_v42  ;;  %7127 = vrsqrt.f32 %v14005_v27  ;;  %v6078_v3 = vperm.slane %v3817_v7, %v18581_v15  ;;  %5354 = vmatmul.f32.vlgmr.msra.gmra.mxu0 %v7360_v61  ;;  %v1753_v60 = vpop.xlane.xlu0 %1752 }
 0x300   : > { %v3807_v40 = vsel %vm3806_vm13, %v13937_v0, %v3803_v8  ;;  %v3850_v62 = vmul.f32 %v13998_v17, %v3849_v35  ;;  %v3829_v16 = vmul.f32 %v14017_v23, %v13950_v20  ;;  %v6080_v36 = vperm.slane %v3827_v33, %v18579_v18  ;;  %5374 = vmatmul.f32.vlgmr.msra.gmra.mxu1 %v7361_v4 }
 0x301   : > { %v6076_v56 = vperm.slane %v3807_v40, %v18508_v30  ;;  %v3840_v9 = vmul.f32 %v14007_v25, %v3839_v1  ;;  %1869 = vadd.xlane.f32.xlu0 %v1868_v19  ;;  %v14035_v47 = vmax.f32 %v1747_v52, 1e-24  ;;  %v14038_v0 = vmax.f32 %v1744_v41, 1e-24 }
 0x302   : > { %v3851_v22 = vmul.f32 0.5, %v3850_v62  ;;  %v3830_v63 = vmul.f32 %v14017_v23, %v3829_v16  ;;  %v1883_v31 = vadd.f32 %v1169_v14, %v13956_v44  ;;  %vm18624_vm14 = vcmask 458112   ;;  %v1759_v44 = vpop.xlane.xlu2 %1758 }
 0x303   : > { %v6077_v29 = vsel %vm18624_vm14, %v6076_v56, %v13941_v37  ;;  %v1164_v57 = vmul.f32 %v13666_v21, %v13666_v21  ;;  %v1165_v52 = vmul.f32 %v13669_v13, %v13669_v13  ;;  %7129 = vrsqrt.f32 %v14035_v47 }
 0x304   : > { %vm18625_vm12 = vcmask 523712   ;;  %v3841_v42 = vmul.f32 0.5, %v3840_v9  ;;  %v3831_v6 = vmul.f32 0.5, %v3830_v63  ;;  %7131 = vrsqrt.f32 %v14038_v0 }
 0x305   : > { %v6079_v51 = vsel %vm18625_vm12, %v6078_v3, %v6077_v29  ;;  %v14050_v14 = vpop.eup %7127  ;;  %v3852_v54 = vsub.f32 1.5, %v3851_v22  ;;  %vm3854_vm6 = vweird.f32 %v13943_v12  ;;  %vm18626_vm9 = vcmask 589312   ;;  %v1765_v9 = vpop.xlane.xlu1 %1764 }
 0x306   : > { %v6081_v37 = vsel %vm18626_vm9, %v6080_v36, %v6079_v51  ;;  %v1880_v21 = vadd.f32 %v1167_v53, %v1166_v43  ;;  %vm3844_vm7 = vweird.f32 %v13945_v26  ;;  %v3832_v13 = vsub.f32 1.5, %v3831_v6  ;;  %1884 = vadd.xlane.f32.xlu2 %v1883_v31 }
 0x307   : > { %vm3835_vm1 = vweird.f32 %v14017_v23  ;;  %v3879_v45 = vmul.f32 %v14050_v14, %v14005_v27  ;;  %vm3855_vm4 = vweird.f32 %v13998_v17  ;;  %vm3834_vm8 = vweird.f32 %v13950_v20 }
 0x308   : > { %1881 = vadd.xlane.f32.xlu1 %v1880_v21  ;;  %v1877_v41 = vadd.f32 %v1165_v52, %v1164_v57  ;;  %v14060_v7 = vmax.f32 %v1759_v44, 1e-24  ;;  %v3842_v48 = vsub.f32 1.5, %v3841_v42  ;;  %v3833_v43 = vmul.f32 %v14017_v23, %v3832_v13  ;;  %vm3836_vm10 = vmor %vm3834_vm8, %vm3835_vm1  ;;  %v18634_v13 = vld [vmem:[#allocation28_spill] sm:$0xff] }
 0x309   : > { %v3880_v33 = vmul.f32 %v14050_v14, %v3879_v45  ;;  %v14064_v8 = vmax.f32 %v1756_v46, 1e-24  ;;  %v14066_v35 = vpop.eup %7129  ;;  %v3853_v53 = vmul.f32 %v13998_v17, %v3852_v54  ;;  %vm3845_vm15 = vweird.f32 %v14007_v25  ;;  %vm14081_vm11 = vmor %vm3854_vm6, %vm3855_vm4 }
 0x30a   : > { %1878 = vadd.xlane.f32.xlu0 %v1877_v41  ;;  %7133 = vrsqrt.f32 %v14060_v7  ;;  %v14073_v20 = vmax.f32 %v1753_v60, 1e-24  ;;  %v14075_v1 = vpop.eup %7131  ;;  %v3837_v3 = vsel %vm3836_vm10, %v14017_v23, %v3833_v43  ;;  %vm3884_vm5 = vweird.f32 %v14005_v27  ;;  %v1768_v57 = vpop.xlane.xlu2 %1767  ;;  %vm14122_vm6 = vmor %vm3844_vm7, %vm3845_vm15  ;;  %v697_v43 = vld [vmem:[%s7672_s9 + $0xdf8] sm:$0xff] }
 0x30b   : > { %v3881_v40 = vmul.f32 0.5, %v3880_v33  ;;  %v3869_v62 = vmul.f32 %v14066_v35, %v14035_v47  ;;  %v6082_v16 = vperm.slane %v3837_v3, %v18580_v50  ;;  %vm3885_vm13 = vweird.f32 %v14050_v14  ;;  %v14177_v3 = vld [vmem:[%s7672_s9 + $0xd10] sm:$0xff]  ;;  %5398 = vmatpush.xpose.msra.mxu3 %v697_v43 }
 0x30c   : > { %vm3874_vm14 = vweird.f32 %v14035_v47  ;;  %v3859_v12 = vmul.f32 %v14075_v1, %v14038_v0  ;;  %v3843_v36 = vmul.f32 %v14007_v25, %v3842_v48  ;;  %7135 = vrsqrt.f32 %v14064_v8  ;;  %vm14108_vm12 = vmor %vm3884_vm5, %vm3885_vm13  ;;  %v696_v48 = vld [vmem:[%s7672_s9 + $0xdf0] sm:$0xff]  ;;  %v18637_v47 = vld [vmem:[#allocation40_spill] sm:$0xff] }
 0x30d   : > { %v3882_v56 = vsub.f32 1.5, %v3881_v40  ;;  %v3870_v23 = vmul.f32 %v14066_v35, %v3869_v62  ;;  %v3857_v61 = vsel %vm14081_vm11, %v13998_v17, %v3853_v53  ;;  %v14101_v22 = vsel %vm17891_vm3, %v6082_v16, %v6081_v37  ;;  %v14180_v40 = vld [vmem:[%s7672_s9 + $0xd18] sm:$0xff]  ;;  %5378 = vmatpush.xpose.msra.mxu2 %v696_v48 }
 0x30e   : > { %v3860_v63 = vmul.f32 %v14075_v1, %v3859_v12  ;;  %7137 = vrsqrt.f32 %v14073_v20  ;;  %v1892_v29 = vadd.f32 %v13900_v2, %v13880_v38  ;;  %v1889_v17 = vadd.f32 %v13920_v11, %v13916_v34  ;;  %v18633_v2 = vld [vmem:[#allocation27_spill] sm:$0xff] }
 0x30f   : > { %v3883_v31 = vmul.f32 %v14050_v14, %v3882_v56  ;;  %v3871_v4 = vmul.f32 0.5, %v3870_v23  ;;  %v1886_v42 = vadd.f32 %v13934_v24, %v13927_v55  ;;  %v14128_v6 = vmax.f32 %v1768_v57, 1e-24  ;;  %v1762_v24 = vpop.xlane.xlu0 %1761 }
 0x310   : > { %v14116_v52 = vpop.eup %7133  ;;  %v3861_v51 = vmul.f32 0.5, %v3860_v63  ;;  %v14130_v38 = vmax.f32 %v1765_v9, 1e-24  ;;  %v14133_v34 = vperm.slane %v3857_v61, %v18633_v2  ;;  %v3847_v11 = vsel %vm14122_vm6, %v14007_v25, %v3843_v36  ;;  %1893 = vadd.xlane.f32.xlu2 %v1892_v29  ;;  %1890 = vadd.xlane.f32.xlu1 %v1889_v17  ;;  %v14196_v9 = vld [vmem:[%s7672_s9 + $0xd00] sm:$0xff]  ;;  %v14199_v61 = vld [vmem:[%s7672_s9 + $0xd08] sm:$0xff] }
 0x311   : > { %v3872_v26 = vsub.f32 1.5, %v3871_v4  ;;  %vm3864_vm9 = vweird.f32 %v14038_v0  ;;  %v3909_v44 = vmul.f32 %v14116_v52, %v14060_v7  ;;  %v3887_v55 = vsel %vm14108_vm12, %v14050_v14, %v3883_v31  ;;  %v694_v29 = vld [vmem:[%s7672_s9 + $0xde0] sm:$0xff]  ;;  %v695_v17 = vld [vmem:[%s7672_s9 + $0xde8] sm:$0xff] }
 0x312   : > { %vm3875_vm7 = vweird.f32 %v14066_v35  ;;  %vm3914_vm1 = vweird.f32 %v14060_v7  ;;  %1887 = vadd.xlane.f32.xlu0 %v1886_v42  ;;  %7139 = vrsqrt.f32 %v14128_v6  ;;  %v14147_v25 = vpop.eup %7135  ;;  %v3862_v37 = vsub.f32 1.5, %v3861_v51  ;;  %5379 = vmatpush.xpose.msra.mxu2 %v694_v29 }
 0x313   : > { %v3873_v54 = vmul.f32 %v14066_v35, %v3872_v26  ;;  %v3910_v21 = vmul.f32 %v14116_v52, %v3909_v44  ;;  %7141 = vrsqrt.f32 %v14130_v38  ;;  %v14155_v45 = vperm.slane %v3847_v11, %v18634_v13  ;;  %vm14168_vm8 = vmor %vm3874_vm14, %vm3875_vm7  ;;  %5399 = vmatpush.xpose.msra.mxu3 %v695_v17  ;;  %v698_v17 = vld [vmem:[%s7672_s9 + $0xe00] sm:$0xff] }
 0x314   : > { %v14152_v14 = vpop.eup %7137  ;;  %vm3865_vm4 = vweird.f32 %v14075_v1  ;;  %v3899_v60 = vmul.f32 %v14147_v25, %v14064_v8  ;;  %v14160_v41 = vmax.f32 %v1762_v24, 1e-24  ;;  %vm3915_vm15 = vweird.f32 %v14116_v52  ;;  %v690_v11 = vld [vmem:[%s7672_s9 + $0xdc0] sm:$0xff] }
 0x315   : > { %v3911_v53 = vmul.f32 0.5, %v3910_v21  ;;  %vm3904_vm10 = vweird.f32 %v14064_v8  ;;  %v3889_v19 = vmul.f32 %v14152_v14, %v14073_v20  ;;  %v14183_v62 = vperm.slane %v3887_v55, %v18637_v47  ;;  %vm14207_vm5 = vmor %vm3914_vm1, %vm3915_vm15 }
 0x316   : > { %v3877_v16 = vsel %vm14168_vm8, %v14066_v35, %v3873_v54  ;;  %v3900_v12 = vmul.f32 %v14147_v25, %v3899_v60  ;;  %7143 = vrsqrt.f32 %v14160_v41  ;;  %v14191_v36 = vmul.f32 %v14075_v1, %v3862_v37  ;;  %vm14232_vm6 = vmor %vm3864_vm9, %vm3865_vm4 }
 0x317   : > { %v3912_v56 = vsub.f32 1.5, %v3911_v53  ;;  %v3890_v23 = vmul.f32 %v14152_v14, %v3889_v19  ;;  %vm3944_vm11 = vweird.f32 %v14128_v6  ;;  %vm3905_vm13 = vweird.f32 %v14147_v25  ;;  %v692_v53 = vld [vmem:[%s7672_s9 + $0xdd0] sm:$0xff]  ;;  %v18642_v19 = vld [vmem:[#allocation19_spill] sm:$0xff] }
 0x318   : > { %v14201_v63 = vpop.eup %7139  ;;  %v3901_v31 = vmul.f32 0.5, %v3900_v12  ;;  %vm3934_vm14 = vweird.f32 %v14130_v38  ;;  %v1180_v46 = vmul.f32 %v14177_v3, %v14177_v3  ;;  %v1181_v4 = vmul.f32 %v14180_v40, %v14180_v40  ;;  %vm3906_vm7 = vmor %vm3904_vm10, %vm3905_vm13  ;;  %5380 = vmatpush.xpose.msra.mxu2 %v692_v53  ;;  %v14301_v53 = vld [vmem:[%s7672_s9 + $0xd38] sm:$0xff] }
 0x319   : > { %v14219_v57 = vpop.eup %7141  ;;  %v14222_v7 = vperm.slane %v3877_v16, %v18604_v32  ;;  %v3913_v27 = vmul.f32 %v14116_v52, %v3912_v56  ;;  %v3891_v51 = vmul.f32 0.5, %v3890_v23  ;;  %vm3895_vm12 = vweird.f32 %v14152_v14  ;;  %v1777_v56 = vpop.xlane.xlu2 %1776 }
 0x31a   : > { %v3939_v42 = vmul.f32 %v14201_v63, %v14128_v6  ;;  %v3902_v26 = vsub.f32 1.5, %v3901_v31  ;;  %v3929_v44 = vmul.f32 %v14219_v57, %v14130_v38  ;;  %v1901_v24 = vadd.f32 %v1181_v4, %v1180_v46  ;;  %v1774_v23 = vpop.xlane.xlu1 %1773  ;;  %v1771_v31 = vpop.xlane.xlu0 %1770 }
 0x31b   : > { %v1178_v55 = vmul.f32 %v14196_v9, %v14196_v9  ;;  %v3867_v54 = vsel %vm14232_vm6, %v14075_v1, %v14191_v36  ;;  %v3917_v0 = vsel %vm14207_vm5, %v14116_v52, %v3913_v27  ;;  %vm3894_vm9 = vweird.f32 %v14073_v20  ;;  %v693_v52 = vld [vmem:[%s7672_s9 + $0xdd8] sm:$0xff] }
 0x31c   : > { %v3940_v37 = vmul.f32 %v14201_v63, %v3939_v42  ;;  %v1179_v21 = vmul.f32 %v14199_v61, %v14199_v61  ;;  %v14251_v60 = vpop.eup %7143  ;;  %v3903_v48 = vmul.f32 %v14147_v25, %v3902_v26  ;;  %v3892_v43 = vsub.f32 1.5, %v3891_v51  ;;  %1902 = vadd.xlane.f32.xlu2 %v1901_v24  ;;  %5400 = vmatpush.xpose.msra.mxu3 %v693_v52  ;;  %v691_v26 = vld [vmem:[%s7672_s9 + $0xdc8] sm:$0xff]  ;;  %v14304_v52 = vld [vmem:[%s7672_s9 + $0xd20] sm:$0xff]  ;;  %vm14327_vm13 = vmor %vm3894_vm9, %vm3895_vm12 }
 0x31d   : > { %v3930_v33 = vmul.f32 %v14219_v57, %v3929_v44  ;;  %v1895_v1 = vadd.f32 %v13876_v39, %v13791_v58  ;;  %v6097_v16 = vperm.slane %v3917_v0, %v18642_v19  ;;  %vm3945_vm1 = vweird.f32 %v14201_v63  ;;  %v18645_v44 = vld [vmem:[#allocation50_spill] sm:$0xff]  ;;  %5381 = vmatpush.xpose.msra.mxu2 %v690_v11 }
 0x31e   : > { %v3941_v12 = vmul.f32 0.5, %v3940_v37  ;;  %v3919_v36 = vmul.f32 %v14251_v60, %v14160_v41  ;;  %v3907_v58 = vsel %vm3906_vm7, %v14147_v25, %v3903_v48  ;;  %v1898_v35 = vadd.f32 %v1179_v21, %v1178_v55  ;;  %vm14279_vm8 = vmor %vm3944_vm11, %vm3945_vm1  ;;  %v699_v37 = vld [vmem:[%s7672_s9 + $0xe08] sm:$0xff]  ;;  %v14295_v21 = vld [vmem:[%s7672_s9 + $0xd30] sm:$0xff] }
 0x31f   : > { %v3931_v39 = vmul.f32 0.5, %v3930_v33  ;;  %1896 = vadd.xlane.f32.xlu0 %v1895_v1  ;;  %v14268_v8 = vmax.f32 %v1777_v56, 1e-24  ;;  %v6096_v46 = vperm.slane %v3907_v58, %v18609_v59  ;;  %vm3935_vm4 = vweird.f32 %v14219_v57  ;;  %v18646_v48 = vld [vmem:[#allocation31_spill] sm:$0xff]  ;;  %v14321_v56 = vld [vmem:[%s7672_s9 + $0xd28] sm:$0xff] }
 0x320   : > { %v3942_v4 = vsub.f32 1.5, %v3941_v12  ;;  %v3920_v29 = vmul.f32 %v14251_v60, %v3919_v36  ;;  %v3893_v25 = vmul.f32 %v14152_v14, %v3892_v43  ;;  %1899 = vadd.xlane.f32.xlu1 %v1898_v35  ;;  %v14284_v42 = vmax.f32 %v1774_v23, 1e-24  ;;  %5401 = vmatpush.xpose.msra.mxu3 %v691_v26  ;;  %vm14314_vm11 = vmor %vm3934_vm14, %vm3935_vm4  ;;  %v689_v35 = vld [vmem:[%s7672_s9 + $0xdb8] sm:$0xff] }
 0x321   : > { %v3932_v51 = vsub.f32 1.5, %v3931_v39  ;;  %7145 = vrsqrt.f32 %v14268_v8  ;;  %vm3325_vm15 = vweird.f32 %v18645_v44  ;;  %v6098_v24 = vsel %vm17892_vm0, %v6097_v16, %v6096_v46  ;;  %v18647_v16 = vld [vmem:[#allocation55_spill] sm:$0xff]  ;;  %v688_v39 = vld [vmem:[%s7672_s9 + $0xdb0] sm:$0xff] }
 0x322   : > { %v3943_v6 = vmul.f32 %v14201_v63, %v3942_v4  ;;  %v3921_v55 = vmul.f32 0.5, %v3920_v29  ;;  %v14291_v0 = vmax.f32 %v1771_v31, 1e-24  ;;  %v6088_v43 = vperm.slane %v3867_v54, %v18646_v48  ;;  %5382 = vmatpush.xpose.msra.mxu2 %v688_v39 }
 0x323   : > { %v3933_v33 = vmul.f32 %v14219_v57, %v3932_v51  ;;  %7147 = vrsqrt.f32 %v14284_v42  ;;  %v1210_v1 = vmul.f32 %v698_v17, %v698_v17  ;;  %vm3324_vm10 = vweird.f32 %v18647_v16 }
 0x324   : > { %v3947_v12 = vsel %vm14279_vm8, %v14201_v63, %v3943_v6  ;;  %v3922_v36 = vsub.f32 1.5, %v3921_v55  ;;  %vm3925_vm5 = vweird.f32 %v14251_v60  ;;  %7149 = vrsqrt.f32 %v14291_v0  ;;  %5402 = vmatpush.xpose.msra.mxu3 %v689_v35  ;;  %v18653_v6 = vld [vmem:[#allocation16_spill] sm:$0xff] }
 0x325   : > { %v3937_v38 = vsel %vm14314_vm11, %v14219_v57, %v3933_v33  ;;  %vm3924_vm14 = vweird.f32 %v14160_v41  ;;  %v1211_v23 = vmul.f32 %v699_v37, %v699_v37  ;;  %v1184_v58 = vmul.f32 %v14295_v21, %v14295_v21 }
 0x326   : > { %v3897_v20 = vsel %vm14327_vm13, %v14152_v14, %v3893_v25  ;;  %v3923_v31 = vmul.f32 %v14251_v60, %v3922_v36  ;;  %v1185_v46 = vmul.f32 %v14301_v53, %v14301_v53  ;;  %v1182_v57 = vmul.f32 %v14304_v52, %v14304_v52  ;;  %vm3926_vm12 = vmor %vm3924_vm14, %vm3925_vm5 }
 0x327   : > { %v14347_v41 = vpop.eup %7145  ;;  %v6103_v4 = vperm.slane %v3947_v12, %v18456_v49  ;;  %v1946_v29 = vadd.f32 %v1211_v23, %v1210_v1  ;;  %v1183_v14 = vmul.f32 %v14321_v56, %v14321_v56  ;;  %vm18652_vm6 = vcmask 720512   ;;  %v14371_v1 = vld [vmem:[%s7672_s9 + $0xda8] sm:$0xff]  ;;  %v18657_v12 = vld [vmem:[#allocation35_spill] sm:$0xff]  ;;  %vm14398_vm13 = vmor %vm3324_vm10, %vm3325_vm15 }
 0x328   : > { %v6085_v17 = vsel %vm18652_vm6, %v14155_v45, %v14101_v22  ;;  %v6101_v25 = vperm.slane %v3937_v38, %v18616_v28  ;;  %v3927_v27 = vsel %vm3926_vm12, %v14251_v60, %v3923_v31  ;;  %v3969_v51 = vmul.f32 %v14347_v41, %v14268_v8  ;;  %v14368_v45 = vld [vmem:[%s7672_s9 + $0xda0] sm:$0xff]  ;;  %18656 = vst [vmem:[#allocation54_spill] sm:$0xff] %v14371_v1 }
 0x329   : > { %v1907_v11 = vadd.f32 %v1185_v46, %v1184_v58  ;;  %v14361_v26 = vpop.eup %7147  ;;  %v6099_v55 = vperm.slane %v3927_v27, %v18653_v6  ;;  %1947 = vadd.xlane.f32.xlu2 %v1946_v29  ;;  %v1904_v37 = vadd.f32 %v1183_v14, %v1182_v57  ;;  %vm18654_vm9 = vcmask 786112   ;;  %18655 = vst [vmem:[#allocation53_spill] sm:$0xff] %v14368_v45  ;;  %v18669_v14 = vld [vmem:[#allocation13_spill] sm:$0xff] }
 0x32a   : > { %v6087_v33 = vsel %vm18654_vm9, %v14133_v34, %v6085_v17  ;;  %v6094_v22 = vperm.slane %v3897_v20, %v18551_v5  ;;  %v14373_v60 = vpop.eup %7149  ;;  %v14376_v54 = vmul.f32 0.5, %v18657_v12  ;;  %v3970_v36 = vmul.f32 %v14347_v41, %v3969_v51  ;;  %v1783_v34 = vpop.xlane.xlu1 %1782  ;;  %5383 = vmatpush.xpose.msra.mxu2 %v14368_v45  ;;  %5403 = vmatpush.xpose.msra.mxu3 %v14371_v1  ;;  %v18670_v17 = vld [vmem:[#allocation66_spill] sm:$0xff]  ;;  %v702_v12 = vld [vmem:[%s7672_s9 + $0xe20] sm:$0xff]  ;;  %v14557_v1 = vld [vmem:[%s7672_s9 + $0xd68] sm:$0xff] }
 0x32b   : > { %v3959_v63 = vmul.f32 %v14361_v26, %v14284_v42  ;;  %1908 = vadd.xlane.f32.xlu1 %v1907_v11  ;;  %vm18659_vm7 = vcmask 851712   ;;  %vm18660_vm1 = vcmask 195712   ;;  %vm3974_vm4 = vweird.f32 %v14268_v8  ;;  %1905 = vadd.xlane.f32.xlu0 %v1904_v37  ;;  %v703_v8 = vld [vmem:[%s7672_s9 + $0xe28] sm:$0xff] }
 0x32c   : > { %18658 = vst [vmem:[#allocation65_spill] sm:$0xff] %v14376_v54  ;;  %v6089_v38 = vsel %vm18659_vm7, %v6088_v43, %v6087_v33  ;;  %v6100_v23 = vsel %vm18660_vm1, %v6099_v55, %v6098_v24  ;;  %v3949_v58 = vmul.f32 %v14373_v60, %v14291_v0  ;;  %vm18661_vm8 = vcmask 917312   ;;  %v1786_v24 = vpop.xlane.xlu2 %1785 }
 0x32d   : > { %v6091_v39 = vsel %vm18661_vm8, %v14222_v7, %v6089_v38  ;;  %vm18662_vm11 = vcmask 261312   ;;  %v3971_v20 = vmul.f32 0.5, %v3970_v36  ;;  %v3960_v43 = vmul.f32 %v14361_v26, %v3959_v63  ;;  %v14438_v38 = vld [vmem:[%s7672_s9 + $0xd40] sm:$0xff] }
 0x32e   : > { %v6102_v35 = vsel %vm18662_vm11, %v6101_v25, %v6100_v23  ;;  %vm18663_vm5 = vcmask 982912   ;;  %vm3975_vm14 = vweird.f32 %v14347_v41  ;;  %vm18666_vm12 = vcmask 326912   ;;  %v18680_v23 = vld [vmem:[#allocation57_spill] sm:$0xff] }
 0x32f   : > { %v6093_v31 = vsel %vm18663_vm5, %v14183_v62, %v6091_v39  ;;  %v14404_v7 = vsel %vm18666_vm12, %v6103_v4, %v6102_v35  ;;  %v3950_v57 = vmul.f32 %v14373_v60, %v3949_v58  ;;  %vm18667_vm6 = vcmask 1048512   ;;  %v1780_v62 = vpop.xlane.xlu0 %1779  ;;  %vm14425_vm10 = vmor %vm3974_vm4, %vm3975_vm14  ;;  %v18674_v58 = vld [vmem:[#allocation68_spill] sm:$0xff] }
 0x330   : > { %v14408_v29 = vsel %vm18667_vm6, %v6094_v22, %v6093_v31  ;;  %v3327_v16 = vsel %vm14398_vm13, %v18645_v44, %v18669_v14  ;;  %v14415_v25 = vmul.f32 0.5, %v18670_v17  ;;  %v3972_v27 = vsub.f32 1.5, %v3971_v20  ;;  %v700_v20 = vld [vmem:[%s7672_s9 + $0xe10] sm:$0xff]  ;;  %v14454_v31 = vld [vmem:[%s7672_s9 + $0xd98] sm:$0xff] }
 0x331   : > { %18668 = vst [vmem:[#allocation69_spill] sm:$0xff] %v14408_v29  ;;  %v3961_v51 = vmul.f32 0.5, %v3960_v43  ;;  %vm3964_vm15 = vweird.f32 %v14284_v42  ;;  %v3951_v4 = vmul.f32 0.5, %v3950_v57  ;;  %v14418_v11 = vmax.f32 %v1786_v24, 1e-24  ;;  %v14451_v43 = vld [vmem:[%s7672_s9 + $0xd90] sm:$0xff]  ;;  %5404 = vmatpush.xpose.msra.mxu3 %v14454_v31 }
 0x332   : > { %18671 = vst [vmem:[#allocation58_spill] sm:$0xff] %v14415_v25  ;;  %v14420_v55 = vmax.f32 %v1783_v34, 1e-24  ;;  %v3973_v37 = vmul.f32 %v14347_v41, %v3972_v27  ;;  %vm3965_vm9 = vweird.f32 %v14361_v26  ;;  %v14430_v22 = vmax.f32 %v1780_v62, 1e-24  ;;  %v14441_v34 = vld [vmem:[%s7672_s9 + $0xd48] sm:$0xff]  ;;  %5384 = vmatpush.xpose.msra.mxu2 %v14451_v43 }
 0x333   : > { %v3962_v33 = vsub.f32 1.5, %v3961_v51  ;;  %v5983_v36 = vperm.slane %v3327_v16, %v18508_v30  ;;  %v3952_v63 = vsub.f32 1.5, %v3951_v4  ;;  %vm3955_vm7 = vweird.f32 %v14373_v60  ;;  %vm3966_vm1 = vmor %vm3964_vm15, %vm3965_vm9  ;;  %v701_v57 = vld [vmem:[%s7672_s9 + $0xe18] sm:$0xff] }
 0x334   : > { %7151 = vrsqrt.f32 %v14418_v11  ;;  %v14445_v39 = vmul.f32 0.5, %v18674_v58  ;;  %v3977_v24 = vsel %vm14425_vm10, %v14347_v41, %v3973_v37  ;;  %vm3954_vm4 = vweird.f32 %v14291_v0  ;;  %v1792_v0 = vpop.xlane.xlu1 %1791  ;;  %v18675_v58 = vld [vmem:[#allocation63_spill] sm:$0xff] }
 0x335   : > { %v3963_v35 = vmul.f32 %v14361_v26, %v3962_v33  ;;  %7153 = vrsqrt.f32 %v14420_v55  ;;  %v3953_v46 = vmul.f32 %v14373_v60, %v3952_v63  ;;  %vm3956_vm8 = vmor %vm3954_vm4, %vm3955_vm7  ;;  %v1214_v42 = vmul.f32 %v702_v12, %v702_v12  ;;  %v1795_v33 = vpop.xlane.xlu2 %1794  ;;  %v14481_v12 = vld [vmem:[%s7672_s9 + $0xd80] sm:$0xff]  ;;  %v14484_v63 = vld [vmem:[%s7672_s9 + $0xd88] sm:$0xff] }
 0x336   : > { %7155 = vrsqrt.f32 %v14430_v22  ;;  %v1215_v41 = vmul.f32 %v703_v8, %v703_v8  ;;  %v1186_v14 = vmul.f32 %v14438_v38, %v14438_v38  ;;  %v1187_v27 = vmul.f32 %v14441_v34, %v14441_v34  ;;  %5385 = vmatpush.xpose.msra.mxu2 %v14481_v12  ;;  %5405 = vmatpush.xpose.msra.mxu3 %v14484_v63 }
 0x337   : > { %v3967_v62 = vsel %vm3966_vm1, %v14361_v26, %v3963_v35  ;;  %v3957_v17 = vsel %vm3956_vm8, %v14373_v60, %v3953_v46  ;;  %v1212_v51 = vmul.f32 %v700_v20, %v700_v20  ;;  %v6109_v26 = vperm.slane %v3977_v24, %v18581_v15  ;;  %v18676_v35 = vld [vmem:[#allocation52_spill] sm:$0xff] }
 0x338   : > { %v6107_v16 = vperm.slane %v3967_v62, %v18508_v30  ;;  %v6105_v4 = vperm.slane %v3957_v17, %v18462_v10  ;;  %v1952_v37 = vadd.f32 %v1215_v41, %v1214_v42  ;;  %v1213_v44 = vmul.f32 %v701_v57, %v701_v57  ;;  %v18677_v57 = vld [vmem:[#allocation43_spill] sm:$0xff]  ;;  %v14528_v17 = vld [vmem:[%s7672_s9 + $0xd78] sm:$0xff] }
 0x339   : > { %v14490_v60 = vmul.f32 %v18676_v35, %v18675_v58  ;;  %v1910_v46 = vadd.f32 %v1187_v27, %v1186_v14  ;;  %v14492_v62 = vmax.f32 %v1795_v33, 1e-24  ;;  %v14494_v20 = vmax.f32 %v1792_v0, 1e-24  ;;  %v705_v58 = vld [vmem:[%s7672_s9 + $0xe38] sm:$0xff] }
 0x33a   : > { %v14486_v8 = vpop.eup %7151  ;;  %7157 = vrsqrt.f32 %v18677_v57  ;;  %vm18678_vm11 = vcmask 392512   ;;  %1953 = vadd.xlane.f32.xlu2 %v1952_v37  ;;  %v1949_v14 = vadd.f32 %v1213_v44, %v1212_v51  ;;  %vm18679_vm5 = vcmask 458112   ;;  %5406 = vmatpush.xpose.msra.mxu3 %v14528_v17 }
 0x33b   : > { %v14498_v24 = vpop.eup %7153  ;;  %v6106_v42 = vsel %vm18678_vm11, %v6105_v4, %v14404_v7  ;;  %v3999_v41 = vmul.f32 %v14486_v8, %v14418_v11  ;;  %1911 = vadd.xlane.f32.xlu1 %v1910_v46  ;;  %7159 = vrsqrt.f32 %v14492_v62  ;;  %v1789_v7 = vpop.xlane.xlu0 %1788  ;;  %v730_v4 = vld [vmem:[%s7672_s9 + $0xf00] sm:$0xff]  ;;  %vm18681_vm13 = vmmov %vm18679_vm5  ;;  %vm18683_vm14 = vcmask 523712   ;;  %v731_v46 = vld [vmem:[%s7672_s9 + $0xf08] sm:$0xff] }
 0x33c   : > { %v14505_v0 = vpop.eup %7155  ;;  %v6108_v27 = vsel %vm18679_vm5, %v6107_v16, %v6106_v42  ;;  %v3989_v33 = vmul.f32 %v14498_v24, %v14420_v55  ;;  %v14515_v37 = vsel %vm18681_vm13, %v5983_v36, %v18680_v23  ;;  %1950 = vadd.xlane.f32.xlu0 %v1949_v14  ;;  %v14525_v42 = vld [vmem:[%s7672_s9 + $0xd70] sm:$0xff]  ;;  %v18684_v36 = vld [vmem:[#allocation64_spill] sm:$0xff]  ;;  %v18685_v23 = vld [vmem:[#allocation59_spill] sm:$0xff]  ;;  %7161 = vrsqrt.f32 %v14494_v20 }
 0x33d   : > { %18682 = vst [vmem:[#allocation27_spill] sm:$0xff] %v14515_v37  ;;  %v4000_v51 = vmul.f32 %v14486_v8, %v3999_v41  ;;  %v14519_v44 = vsel %vm18683_vm14, %v6109_v26, %v6108_v27  ;;  %v3979_v16 = vmul.f32 %v14505_v0, %v14430_v22  ;;  %v14533_v41 = vmul.f32 %v18685_v23, %v18684_v36  ;;  %v704_v37 = vld [vmem:[%s7672_s9 + $0xe30] sm:$0xff] }
 0x33e   : > { %v3990_v26 = vmul.f32 %v14498_v24, %v3989_v33  ;;  %5386 = vmatpush.xpose.msra.mxu2 %v14525_v42  ;;  %vm4004_vm12 = vweird.f32 %v14418_v11  ;;  %v14541_v29 = vmax.f32 %v1789_v7, 1e-24  ;;  %vm3994_vm6 = vweird.f32 %v14420_v55  ;;  %v676_v36 = vld [vmem:[%s7672_s9 + $0xd50] sm:$0xff]  ;;  %v14554_v7 = vld [vmem:[%s7672_s9 + $0xd60] sm:$0xff]  ;;  %5407 = vmatpush.xpose.msra.mxu3 %v14557_v1 }
 0x33f   : > { %v4001_v14 = vmul.f32 0.5, %v4000_v51  ;;  %v3980_v27 = vmul.f32 %v14505_v0, %v3979_v16  ;;  %v1242_v33 = vmul.f32 %v730_v4, %v730_v4  ;;  %v1243_v54 = vmul.f32 %v731_v46, %v731_v46  ;;  %v677_v16 = vld [vmem:[%s7672_s9 + $0xd58] sm:$0xff] }
 0x340   : > { %v3991_v25 = vmul.f32 0.5, %v3990_v26  ;;  %v14547_v15 = vpop.eup %7157  ;;  %vm3995_vm15 = vweird.f32 %v14498_v24  ;;  %vm3984_vm10 = vweird.f32 %v14430_v22  ;;  %7163 = vrsqrt.f32 %v14541_v29 }
 0x341   : > { %18686 = vst [vmem:[#allocation28_spill] sm:$0xff] %v14547_v15  ;;  %v3981_v51 = vmul.f32 0.5, %v3980_v27  ;;  %v14559_v26 = vpop.eup %7159  ;;  %v1994_v4 = vadd.f32 %v1243_v54, %v1242_v33  ;;  %v1216_v46 = vmul.f32 %v704_v37, %v704_v37  ;;  %v1217_v10 = vmul.f32 %v705_v58, %v705_v58  ;;  %v1801_v58 = vpop.xlane.xlu1 %1800  ;;  %vm3996_vm1 = vmor %vm3994_vm6, %vm3995_vm15 }
 0x342   : > { %v3992_v49 = vsub.f32 1.5, %v3991_v25  ;;  %5387 = vmatpush.xpose.msra.mxu2 %v14554_v7  ;;  %v4002_v27 = vsub.f32 1.5, %v4001_v14  ;;  %vm3985_vm9 = vweird.f32 %v14505_v0  ;;  %v4029_v45 = vmul.f32 %v14559_v26, %v14492_v62  ;;  %v14566_v15 = vpop.eup %7161  ;;  %5408 = vmatpush.xpose.msra.mxu3 %v677_v16 }
 0x343   : > { %v3982_v30 = vsub.f32 1.5, %v3981_v51  ;;  %1995 = vadd.xlane.f32.xlu2 %v1994_v4  ;;  %v1955_v25 = vadd.f32 %v1217_v10, %v1216_v46  ;;  %v1188_v54 = vmul.f32 %v676_v36, %v676_v36  ;;  %v1189_v37 = vmul.f32 %v677_v16, %v677_v16  ;;  %vm3986_vm4 = vmor %vm3984_vm10, %vm3985_vm9  ;;  %v1798_v46 = vpop.xlane.xlu0 %1797 }
 0x344   : > { %v3993_v57 = vmul.f32 %v14498_v24, %v3992_v49  ;;  %vm4005_vm7 = vweird.f32 %v14486_v8  ;;  %v4030_v33 = vmul.f32 %v14559_v26, %v4029_v45  ;;  %v4019_v51 = vmul.f32 %v14566_v15, %v14494_v20 }
 0x345   : > { %v3983_v14 = vmul.f32 %v14505_v0, %v3982_v30  ;;  %vm4034_vm8 = vweird.f32 %v14492_v62  ;;  %vm4024_vm11 = vweird.f32 %v14494_v20  ;;  %1956 = vadd.xlane.f32.xlu1 %v1955_v25  ;;  %v1913_v10 = vadd.f32 %v1189_v37, %v1188_v54  ;;  %vm14602_vm14 = vmor %vm4004_vm12, %vm4005_vm7 }
 0x346   : > { %v3997_v49 = vsel %vm3996_vm1, %v14498_v24, %v3993_v57  ;;  %5388 = vmatpush.xpose.msra.mxu2 %v676_v36  ;;  %v14585_v30 = vpop.eup %7163  ;;  %v4031_v4 = vmul.f32 0.5, %v4030_v33  ;;  %v4020_v24 = vmul.f32 %v14566_v15, %v4019_v51  ;;  %v1804_v57 = vpop.xlane.xlu2 %1803  ;;  %v4003_v22 = vmul.f32 %v14486_v8, %v4002_v27  ;;  %5409 = vmatpush.xpose.msra.mxu3 %v14441_v34  ;;  %v18698_v34 = vld [vmem:[#allocation49_spill] sm:$0xff] }
 0x347   : > { %v6113_v45 = vperm.slane %v3997_v49, %v18580_v50  ;;  %v3987_v55 = vsel %vm3986_vm4, %v14505_v0, %v3983_v14  ;;  %vm4035_vm5 = vweird.f32 %v14559_v26  ;;  %v4009_v36 = vmul.f32 %v14585_v30, %v14541_v29  ;;  %1914 = vadd.xlane.f32.xlu0 %v1913_v10 }
 0x348   : > { %v6111_v5 = vperm.slane %v3987_v55, %v18579_v18  ;;  %v4032_v25 = vsub.f32 1.5, %v4031_v4  ;;  %v4021_v54 = vmul.f32 0.5, %v4020_v24  ;;  %vm4025_vm13 = vweird.f32 %v14566_v15  ;;  %vm14622_vm12 = vmor %vm4034_vm8, %vm4035_vm5  ;;  %v707_v55 = vld [vmem:[%s7672_s9 + $0xe48] sm:$0xff] }
 0x349   : > { %v14596_v0 = vmax.f32 %v1804_v57, 1e-24  ;;  %vm18689_vm6 = vcmask 589312   ;;  %v4010_v37 = vmul.f32 %v14585_v30, %v4009_v36  ;;  %v14609_v14 = vmax.f32 %v1801_v58, 1e-24  ;;  %v18693_v58 = vld [vmem:[#allocation62_spill] sm:$0xff]  ;;  %vm14662_vm15 = vmor %vm4024_vm11, %vm4025_vm13 }
 0x34a   : > { %v6112_v27 = vsel %vm18689_vm6, %v6111_v5, %v14519_v44  ;;  %v14611_v33 = vmax.f32 %v1798_v46, 1e-24  ;;  %5389 = vmatpush.xpose.msra.mxu2 %v14438_v38  ;;  %v4033_v11 = vmul.f32 %v14559_v26, %v4032_v25  ;;  %v4022_v44 = vsub.f32 1.5, %v4021_v54  ;;  %v732_v57 = vld [vmem:[%s7672_s9 + $0xf10] sm:$0xff]  ;;  %v733_v25 = vld [vmem:[%s7672_s9 + $0xf18] sm:$0xff]  ;;  %v1810_v54 = vpop.xlane.xlu1 %1809  ;;  %5410 = vmatpush.xpose.msra.mxu3 %v14301_v53 }
 0x34b   : > { %v14615_v51 = vsel %vm17891_vm3, %v6113_v45, %v6112_v27  ;;  %7165 = vrsqrt.f32 %v14596_v0  ;;  %v18692_v38 = vsub.f32 1.5, %v14445_v39  ;;  %v14635_v10 = vmul.f32 %v18676_v35, %v14490_v60  ;;  %v14639_v45 = vld [vmem:[%s7672_s9 + $0xe40] sm:$0xff] }
 0x34c   : > { %v4011_v62 = vmul.f32 0.5, %v4010_v37  ;;  %7167 = vrsqrt.f32 %v14609_v14  ;;  %18696 = vst [vmem:[#allocation31_spill] sm:$0xff] %v14639_v45  ;;  %v14644_v4 = vmul.f32 %v18685_v23, %v14533_v41  ;;  %v14647_v39 = vmax.f32 %v18698_v34, 1e-24  ;;  %v18734_v23 = vld [vmem:[#allocation17_spill] sm:$0xff] }
 0x34d   : > { %v14631_v49 = vmul.f32 %v18693_v58, %v18692_v38  ;;  %18695 = vst [vmem:[#allocation50_spill] sm:$0xff] %v14635_v10  ;;  %v4023_v24 = vmul.f32 %v14566_v15, %v4022_v44  ;;  %7169 = vrsqrt.f32 %v14611_v33  ;;  %v4007_v60 = vsel %vm14602_vm14, %v14486_v8, %v4003_v22  ;;  %v15037_v10 = vld [vmem:[%s7672_s9 + $0xe88] sm:$0xff] }
 0x34e   : > { %18697 = vst [vmem:[#allocation55_spill] sm:$0xff] %v14644_v4  ;;  %v4037_v46 = vsel %vm14622_vm12, %v14559_v26, %v4033_v11  ;;  %v4012_v36 = vsub.f32 1.5, %v4011_v62  ;;  %vm4014_vm10 = vweird.f32 %v14541_v29  ;;  %5390 = vmatpush.xpose.msra.mxu2 %v14295_v21  ;;  %v1218_v26 = vmul.f32 %v14639_v45, %v14639_v45  ;;  %5411 = vmatpush.xpose.msra.mxu3 %v14321_v56 }
 0x34f   : > { %18694 = vst [vmem:[#allocation40_spill] sm:$0xff] %v14631_v49  ;;  %v4027_v8 = vsel %vm14662_vm15, %v14566_v15, %v4023_v24  ;;  %v1219_v22 = vmul.f32 %v707_v55, %v707_v55  ;;  %v1190_v20 = vmul.f32 %v14554_v7, %v14554_v7  ;;  %vm4015_vm9 = vweird.f32 %v14585_v30  ;;  %v1813_v7 = vpop.xlane.xlu2 %1812  ;;  %v1807_v55 = vpop.xlane.xlu0 %1806 }
 0x350   : > { %18699 = vst [vmem:[#allocation35_spill] sm:$0xff] %v14647_v39  ;;  %v4013_v16 = vmul.f32 %v14585_v30, %v4012_v36  ;;  %v1191_v21 = vmul.f32 %v14557_v1, %v14557_v1  ;;  %v1244_v27 = vmul.f32 %v732_v57, %v732_v57  ;;  %v14684_v15 = vperm.slane %v4007_v60, %v18634_v13  ;;  %vm14704_vm1 = vmor %vm4014_vm10, %vm4015_vm9 }
 0x351   : > { %v14681_v37 = vpop.eup %7165  ;;  %vm4064_vm7 = vweird.f32 %v14596_v0  ;;  %v1958_v11 = vadd.f32 %v1219_v22, %v1218_v26  ;;  %v1245_v5 = vmul.f32 %v733_v25, %v733_v25  ;;  %v14690_v53 = vperm.slane %v4037_v46, %v18604_v32  ;;  %v14738_v22 = vld [vmem:[%s7672_s9 + $0xe50] sm:$0xff] }
 0x352   : > { %v14687_v44 = vpop.eup %7167  ;;  %v14693_v38 = vperm.slane %v4027_v8, %v18646_v48  ;;  %v4059_v1 = vmul.f32 %v14681_v37, %v14596_v0  ;;  %v1916_v62 = vadd.f32 %v1191_v21, %v1190_v20  ;;  %5391 = vmatpush.xpose.msra.mxu2 %v14304_v52  ;;  %vm4054_vm4 = vweird.f32 %v14609_v14  ;;  %v14741_v20 = vld [vmem:[%s7672_s9 + $0xe58] sm:$0xff]  ;;  %5412 = vmatpush.xpose.msra.mxu3 %v14180_v40 }
 0x353   : > { %v14698_v34 = vpop.eup %7169  ;;  %v4049_v57 = vmul.f32 %v14687_v44, %v14609_v14  ;;  %1959 = vadd.xlane.f32.xlu2 %v1958_v11  ;;  %v1997_v60 = vadd.f32 %v1245_v5, %v1244_v27  ;;  %v14713_v52 = vmul.f32 %v14451_v43, %v14451_v43  ;;  %v4017_v29 = vsel %vm14704_vm1, %v14585_v30, %v4013_v16  ;;  %v734_v16 = vld [vmem:[%s7672_s9 + $0xf20] sm:$0xff]  ;;  %v735_v11 = vld [vmem:[%s7672_s9 + $0xf28] sm:$0xff]  ;;  %v1819_v5 = vpop.xlane.xlu1 %1818 }
 0x354   : > { %v4060_v46 = vmul.f32 %v14681_v37, %v4059_v1  ;;  %v4039_v41 = vmul.f32 %v14698_v34, %v14611_v33  ;;  %1917 = vadd.xlane.f32.xlu1 %v1916_v62  ;;  %v14722_v36 = vmax.f32 %v1813_v7, 1e-24  ;;  %v14727_v56 = vmul.f32 %v14454_v31, %v14454_v31 }
 0x355   : > { %v4050_v25 = vmul.f32 %v14687_v44, %v4049_v57  ;;  %1998 = vadd.xlane.f32.xlu0 %v1997_v60  ;;  %v14729_v43 = vmax.f32 %v1810_v54, 1e-24  ;;  %v14731_v30 = vmax.f32 %v1807_v55, 1e-24  ;;  %vm4065_vm8 = vweird.f32 %v14681_v37 }
 0x356   : > { %v4061_v8 = vmul.f32 0.5, %v4060_v46  ;;  %v4040_v26 = vmul.f32 %v14698_v34, %v4039_v41  ;;  %vm4044_vm11 = vweird.f32 %v14611_v33  ;;  %7171 = vrsqrt.f32 %v14722_v36  ;;  %5392 = vmatpush.xpose.msra.mxu2 %v14177_v3  ;;  %vm14758_vm14 = vmor %vm4064_vm7, %vm4065_vm8  ;;  %5413 = vmatpush.xpose.msra.mxu3 %v14199_v61 }
 0x357   : > { %v14745_v31 = vperm.slane %v4017_v29, %v18633_v2  ;;  %v4051_v54 = vmul.f32 0.5, %v4050_v25  ;;  %vm4055_vm5 = vweird.f32 %v14687_v44  ;;  %7173 = vrsqrt.f32 %v14729_v43  ;;  %v1822_v25 = vpop.xlane.xlu2 %1821 }
 0x358   : > { %v4062_v21 = vsub.f32 1.5, %v4061_v8  ;;  %v4041_v27 = vmul.f32 0.5, %v4040_v26  ;;  %vm4045_vm13 = vweird.f32 %v14698_v34  ;;  %7175 = vrsqrt.f32 %v14731_v30  ;;  %vm14804_vm12 = vmor %vm4054_vm4, %vm4055_vm5 }
 0x359   : > { %v4052_v7 = vsub.f32 1.5, %v4051_v54  ;;  %v1220_v40 = vmul.f32 %v14738_v22, %v14738_v22  ;;  %v1221_v1 = vmul.f32 %v14741_v20, %v14741_v20  ;;  %v1192_v62 = vmul.f32 %v14525_v42, %v14525_v42  ;;  %v1816_v54 = vpop.xlane.xlu0 %1815  ;;  %vm14819_vm10 = vmor %vm4044_vm11, %vm4045_vm13 }
 0x35a   : > { %v4063_v55 = vmul.f32 %v14681_v37, %v4062_v21  ;;  %v4042_v24 = vsub.f32 1.5, %v4041_v27  ;;  %v1193_v0 = vmul.f32 %v14528_v17, %v14528_v17  ;;  %v1246_v57 = vmul.f32 %v734_v16, %v734_v16  ;;  %5393 = vmatpush.xpose.msra.mxu2 %v14196_v9 }
 0x35b   : > { %v14773_v60 = vmul.f32 %v14687_v44, %v4052_v7  ;;  %v1194_v29 = vmul.f32 %v14481_v12, %v14481_v12  ;;  %v1961_v46 = vadd.f32 %v1221_v1, %v1220_v40  ;;  %v1247_v41 = vmul.f32 %v735_v11, %v735_v11  ;;  %v7363_v7 = vld [vmem:[#allocation2 + $0x8] sm:$0xff]  ;;  %v14889_v40 = vld [vmem:[%s7672_s9 + $0xff0] sm:$0xff] }
 0x35c   : > { %v14778_v42 = vpop.eup %7171  ;;  %v4067_v17 = vsel %vm14758_vm14, %v14681_v37, %v4063_v55  ;;  %v4043_v8 = vmul.f32 %v14698_v34, %v4042_v24  ;;  %v1919_v9 = vadd.f32 %v1193_v0, %v1192_v62  ;;  %v14784_v26 = vmax.f32 %v1822_v25, 1e-24  ;;  %v7362_v37 = vld [vmem:[#allocation2] sm:$0xff]  ;;  %5414 = vmatmul.f32.vlgmr.msra.gmra.mxu3 %v7363_v7  ;;  %v14828_v55 = vld [vmem:[%s7672_s9 + $0xe60] sm:$0xff]  ;;  %v14831_v24 = vld [vmem:[%s7672_s9 + $0xe68] sm:$0xff] }
 0x35d   : > { %v14786_v16 = vpop.eup %7173  ;;  %v4089_v12 = vmul.f32 %v14778_v42, %v14722_v36  ;;  %vm4094_vm6 = vweird.f32 %v14722_v36  ;;  %v1195_v61 = vmul.f32 %v14484_v63, %v14484_v63  ;;  %1962 = vadd.xlane.f32.xlu2 %v1961_v46  ;;  %v14793_v21 = vmax.f32 %v1819_v5, 1e-24  ;;  %5394 = vmatmul.f32.vlgmr.msra.gmra.mxu2 %v7362_v37  ;;  %v14844_v25 = vld [vmem:[%s7672_s9 + $0xf30] sm:$0xff]  ;;  %v14853_v37 = vpop.xlane.xlu1 %1827 }
 0x35e   : > { %v14795_v27 = vpop.eup %7175  ;;  %v14798_v11 = vperm.slane %v4067_v17, %v18609_v59  ;;  %v4079_v63 = vmul.f32 %v14786_v16, %v14729_v43  ;;  %vm4084_vm15 = vweird.f32 %v14729_v43  ;;  %1920 = vadd.xlane.f32.xlu1 %v1919_v9  ;;  %v2000_v5 = vadd.f32 %v1247_v41, %v1246_v57  ;;  %18710 = vst [vmem:[#allocation13_spill] sm:$0xff] %v14844_v25  ;;  %v14847_v17 = vld [vmem:[%s7672_s9 + $0xf38] sm:$0xff] }
 0x35f   : > { %v4090_v1 = vmul.f32 %v14778_v42, %v4089_v12  ;;  %vm4095_vm9 = vweird.f32 %v14778_v42  ;;  %v4069_v62 = vmul.f32 %v14795_v27, %v14731_v30  ;;  %v4047_v33 = vsel %vm14819_vm10, %v14698_v34, %v4043_v8  ;;  %18711 = vst [vmem:[#allocation66_spill] sm:$0xff] %v14847_v17  ;;  %5458 = vmatpush.xpose.msrb.mxu2 %v14889_v40 }
 0x360   : > { %v4080_v0 = vmul.f32 %v14786_v16, %v4079_v63  ;;  %vm4085_vm7 = vweird.f32 %v14786_v16  ;;  %2001 = vadd.xlane.f32.xlu0 %v2000_v5  ;;  %7177 = vrsqrt.f32 %v14784_v26  ;;  %v14841_v41 = vmax.f32 %v1816_v54, 1e-24  ;;  %vm14861_vm1 = vmor %vm4094_vm6, %vm4095_vm9 }
 0x361   : > { %v4091_v57 = vmul.f32 0.5, %v4090_v1  ;;  %v4070_v46 = vmul.f32 %v14795_v27, %v4069_v62  ;;  %7179 = vrsqrt.f32 %v14793_v21  ;;  %v1222_v8 = vmul.f32 %v14828_v55, %v14828_v55  ;;  %v14870_v62 = vld [vmem:[%s7672_s9 + $0xef0] sm:$0xff]  ;;  %vm4086_vm13 = vmor %vm4084_vm15, %vm4085_vm7 }
 0x362   : > { %v4081_v34 = vmul.f32 0.5, %v4080_v0  ;;  %v1223_v9 = vmul.f32 %v14831_v24, %v14831_v24  ;;  %v1922_v12 = vadd.f32 %v1195_v61, %v1194_v29  ;;  %v6123_v63 = vperm.slane %v4047_v33, %v18637_v47  ;;  %v14873_v33 = vld [vmem:[%s7672_s9 + $0xef8] sm:$0xff]  ;;  %5418 = vmatpush.xpose.msrb.mxu0 %v14870_v62 }
 0x363   : > { %v4092_v54 = vsub.f32 1.5, %v4091_v57  ;;  %v4071_v5 = vmul.f32 0.5, %v4070_v46  ;;  %7181 = vrsqrt.f32 %v14841_v41  ;;  %v1248_v29 = vmul.f32 %v14844_v25, %v14844_v25  ;;  %v1831_v46 = vpop.xlane.xlu2 %1830  ;;  %5438 = vmatpush.xpose.msrb.mxu1 %v14873_v33 }
 0x364   : > { %v4082_v14 = vsub.f32 1.5, %v4081_v34  ;;  %v1964_v1 = vadd.f32 %v1223_v9, %v1222_v8  ;;  %v1249_v61 = vmul.f32 %v14847_v17, %v14847_v17  ;;  %vm4075_vm4 = vweird.f32 %v14795_v27  ;;  %v15144_v17 = vld [vmem:[%s7672_s9 + $0xeb8] sm:$0xff] }
 0x365   : > { %v4093_v0 = vmul.f32 %v14778_v42, %v4092_v54  ;;  %v4072_v36 = vsub.f32 1.5, %v4071_v5  ;;  %vm18714_vm8 = vcmask 720512   ;;  %vm4074_vm11 = vweird.f32 %v14731_v30  ;;  %v1825_v5 = vpop.xlane.xlu0 %1824 }
 0x366   : > { %v6116_v57 = vsel %vm18714_vm8, %v14684_v15, %v14615_v51  ;;  %v14882_v34 = vpop.eup %7177  ;;  %v4083_v8 = vmul.f32 %v14786_v16, %v4082_v14  ;;  %1965 = vadd.xlane.f32.xlu2 %v1964_v1  ;;  %1923 = vadd.xlane.f32.xlu1 %v1922_v12  ;;  %v2003_v9 = vadd.f32 %v1249_v61, %v1248_v29  ;;  %vm18715_vm5 = vcmask 786112   ;;  %v14892_v51 = vld [vmem:[%s7672_s9 + $0xff8] sm:$0xff]  ;;  %vm4076_vm14 = vmor %vm4074_vm11, %vm4075_vm4 }
 0x367   : > { %v6118_v54 = vsel %vm18715_vm5, %v14745_v31, %v6116_v57  ;;  %v14894_v15 = vpop.eup %7179  ;;  %v4097_v35 = vsel %vm14861_vm1, %v14778_v42, %v4093_v0  ;;  %v4073_v12 = vmul.f32 %v14795_v27, %v4072_v36  ;;  %v4119_v31 = vmul.f32 %v14882_v34, %v14784_v26  ;;  %5478 = vmatpush.xpose.msrb.mxu3 %v14892_v51 }
 0x368   : > { %v14906_v14 = vmax.f32 %v1831_v46, 1e-24  ;;  %v4087_v1 = vsel %vm4086_vm13, %v14786_v16, %v4083_v8  ;;  %vm4124_vm6 = vweird.f32 %v14784_v26  ;;  %vm4125_vm15 = vweird.f32 %v14882_v34  ;;  %2004 = vadd.xlane.f32.xlu0 %v2003_v9 }
 0x369   : > { %v4109_v43 = vmul.f32 %v14894_v15, %v14793_v21  ;;  %v14919_v42 = vpop.eup %7181  ;;  %v6130_v7 = vperm.slane %v4087_v1, %v18653_v6  ;;  %v4077_v16 = vsel %vm4076_vm14, %v14795_v27, %v4073_v12  ;;  %v4120_v29 = vmul.f32 %v14882_v34, %v4119_v31  ;;  %v18718_v27 = vld [vmem:[#allocation41_spill] sm:$0xff]  ;;  %vm14959_vm8 = vmor %vm4124_vm6, %vm4125_vm15 }
 0x36a   : > { %vm18716_vm10 = vcmask 851712   ;;  %v6132_v61 = vperm.slane %v4097_v35, %v18616_v28  ;;  %v6128_v0 = vperm.slane %v4077_v16, %v18642_v19  ;;  %v4099_v57 = vmul.f32 %v14919_v42, %v14841_v41  ;;  %v14945_v1 = vld [vmem:[%s7672_s9 + $0xe70] sm:$0xff] }
 0x36b   : > { %v6120_v30 = vsel %vm18716_vm10, %v14693_v38, %v6118_v54  ;;  %v4110_v36 = vmul.f32 %v14894_v15, %v4109_v43  ;;  %v4121_v46 = vmul.f32 0.5, %v4120_v29  ;;  %vm18717_vm9 = vcmask 917312   ;;  %v7368_v19 = vld [vmem:[%s7672_s9 + $0xdd0] sm:$0xff] }
 0x36c   : > { %v6122_v8 = vsel %vm18717_vm9, %v14690_v53, %v6120_v30  ;;  %v18719_v38 = vsel %vm14804_vm12, %v14687_v44, %v14773_v60  ;;  %7183 = vrsqrt.f32 %v14906_v14  ;;  %v6129_v35 = vsel %vm17892_vm0, %v6128_v0, %v14798_v11  ;;  %v1837_v53 = vpop.xlane.xlu1 %1836  ;;  %v14953_v60 = vld [vmem:[%s7672_s9 + $0xe78] sm:$0xff]  ;;  %v15015_v11 = vld [vmem:[%s7672_s9 + $0xfe0] sm:$0xff] }
 0x36d   : > { %v6125_v9 = vperm.slane %v18719_v38, %v18718_v27  ;;  %v4111_v54 = vmul.f32 0.5, %v4110_v36  ;;  %v4100_v12 = vmul.f32 %v14919_v42, %v4099_v57  ;;  %vm18720_vm7 = vcmask 982912   ;;  %v1840_v36 = vpop.xlane.xlu2 %1839  ;;  %v14978_v38 = vld [vmem:[%s7672_s9 + $0xee0] sm:$0xff]  ;;  %5459 = vmatpush.xpose.msrb.mxu2 %v15015_v11 }
 0x36e   : > { %v6124_v31 = vsel %vm18720_vm7, %v6123_v63, %v6122_v8  ;;  %vm18721_vm1 = vcmask 195712   ;;  %v4122_v3 = vsub.f32 1.5, %v4121_v46  ;;  %vm4114_vm4 = vweird.f32 %v14793_v21  ;;  %v1834_v8 = vpop.xlane.xlu0 %1833  ;;  %5419 = vmatpush.xpose.msrb.mxu0 %v14978_v38  ;;  %v15012_v21 = vld [vmem:[%s7672_s9 + $0xf48] sm:$0xff] }
 0x36f   : > { %v6131_v43 = vsel %vm18721_vm1, %v6130_v7, %v6129_v35  ;;  %vm18722_vm12 = vcmask 1048512   ;;  %v4112_v63 = vsub.f32 1.5, %v4111_v54  ;;  %vm4115_vm11 = vweird.f32 %v14894_v15  ;;  %v18728_v35 = vld [vmem:[#allocation28_spill] sm:$0xff] }
 0x370   : > { %v14950_v44 = vsel %vm18722_vm12, %v6125_v9, %v6124_v31  ;;  %vm18726_vm5 = vcmask 261312   ;;  %v4101_v16 = vmul.f32 0.5, %v4100_v12  ;;  %v4123_v29 = vmul.f32 %v14882_v34, %v4122_v3  ;;  %v18727_v9 = vld [vmem:[#allocation43_spill] sm:$0xff]  ;;  %v18730_v12 = vld [vmem:[#allocation53_spill] sm:$0xff]  ;;  %vm4116_vm14 = vmor %vm4114_vm4, %vm4115_vm11 }
 0x371   : > { %18723 = vst [vmem:[#allocation68_spill] sm:$0xff] %v14950_v44  ;;  %v6133_v7 = vsel %vm18726_vm5, %v6132_v61, %v6131_v43  ;;  %v14967_v30 = vmax.f32 %v14853_v37, 1e-24  ;;  %v14969_v0 = vmax.f32 %v1825_v5, 1e-24  ;;  %v1224_v26 = vmul.f32 %v14945_v1, %v14945_v1  ;;  %v14981_v37 = vld [vmem:[%s7672_s9 + $0xee8] sm:$0xff] }
 0x372   : > { %v4113_v57 = vmul.f32 %v14894_v15, %v4112_v63  ;;  %v4102_v46 = vsub.f32 1.5, %v4101_v16  ;;  %vm4105_vm13 = vweird.f32 %v14919_v42  ;;  %v1225_v61 = vmul.f32 %v14953_v60, %v14953_v60  ;;  %v14983_v5 = vpop.eup %7183  ;;  %v15002_v3 = vld [vmem:[%s7672_s9 + $0xf40] sm:$0xff]  ;;  %5439 = vmatpush.xpose.msrb.mxu1 %v14981_v37  ;;  %18732 = vst [vmem:[#allocation53_spill] sm:$0xff] %v15012_v21 }
 0x373   : > { %v14987_v54 = vmul.f32 %v18728_v35, %v18727_v9  ;;  %v14991_v31 = vmul.f32 %v18730_v12, %v18730_v12  ;;  %v4127_v43 = vsel %vm14959_vm8, %v14882_v34, %v4123_v29  ;;  %7185 = vrsqrt.f32 %v14967_v30  ;;  %18731 = vst [vmem:[#allocation49_spill] sm:$0xff] %v15002_v3  ;;  %v15018_v29 = vld [vmem:[%s7672_s9 + $0xfe8] sm:$0xff]  ;;  %v18733_v12 = vld [vmem:[#allocation26_spill] sm:$0xff]  ;;  %v18736_v9 = vld [vmem:[#allocation15_spill] sm:$0xff] }
 0x374   : > { %v4117_v63 = vsel %vm4116_vm14, %v14894_v15, %v4113_v57  ;;  %v4103_v16 = vmul.f32 %v14919_v42, %v4102_v46  ;;  %vm4104_vm6 = vweird.f32 %v14841_v41  ;;  %v4149_v34 = vmul.f32 %v14983_v5, %v14906_v14  ;;  %v15026_v57 = vld [vmem:[%s7672_s9 + $0xe80] sm:$0xff]  ;;  %5479 = vmatpush.xpose.msrb.mxu3 %v15018_v29 }
 0x375   : > { %18729 = vst [vmem:[#allocation57_spill] sm:$0xff] %v14987_v54  ;;  %v6138_v44 = vperm.slane %v4127_v43, %v18733_v12  ;;  %v6136_v15 = vperm.slane %v4117_v63, %v18734_v23  ;;  %vm4106_vm15 = vmor %vm4104_vm6, %vm4105_vm13  ;;  %7187 = vrsqrt.f32 %v14969_v0  ;;  %v1967_v41 = vadd.f32 %v1225_v61, %v1224_v26  ;;  %v15040_v26 = vld [vmem:[%s7672_s9 + $0xed0] sm:$0xff]  ;;  %v15043_v61 = vld [vmem:[%s7672_s9 + $0xed8] sm:$0xff] }
 0x376   : > { %v4107_v46 = vsel %vm4106_vm15, %v14919_v42, %v4103_v16  ;;  %v4150_v49 = vmul.f32 %v14983_v5, %v4149_v34  ;;  %v1925_v43 = vadd.f32 %v14727_v56, %v14713_v52  ;;  %v1250_v63 = vmul.f32 %v15002_v3, %v15002_v3  ;;  %18735 = vst [vmem:[#allocation71_spill] sm:$0xff] %v15043_v61  ;;  %v18737_v56 = vld [vmem:[#allocation54_spill] sm:$0xff]  ;;  %v15121_v23 = vld [vmem:[%s7672_s9 + $0xfc8] sm:$0xff]  ;;  %v7372_v3 = vld [vmem:[%s7672_s9 + $0xdb0] sm:$0xff] }
 0x377   : > { %v6134_v58 = vperm.slane %v4107_v46, %v18736_v9  ;;  %1968 = vadd.xlane.f32.xlu2 %v1967_v41  ;;  %v1251_v42 = vmul.f32 %v15012_v21, %v15012_v21  ;;  %v15048_v16 = vmax.f32 %v1840_v36, 1e-24  ;;  %v15050_v52 = vmax.f32 %v1837_v53, 1e-24  ;;  %5420 = vmatpush.xpose.msrb.mxu0 %v15040_v26  ;;  %v1846_v46 = vpop.xlane.xlu1 %1845  ;;  %v15061_v53 = vld [vmem:[%s7672_s9 + $0xfd0] sm:$0xff]  ;;  %v15064_v36 = vld [vmem:[%s7672_s9 + $0xfd8] sm:$0xff] }
 0x378   : > { %v1199_v34 = vmul.f32 %v18737_v56, %v18737_v56  ;;  %v4151_v4 = vmul.f32 0.5, %v4150_v49  ;;  %1926 = vadd.xlane.f32.xlu1 %v1925_v43  ;;  %v15055_v39 = vmax.f32 %v1834_v8, 1e-24  ;;  %v1226_v41 = vmul.f32 %v15026_v57, %v15026_v57  ;;  %5440 = vmatpush.xpose.msrb.mxu1 %v15043_v61  ;;  %18738 = vst [vmem:[#allocation54_spill] sm:$0xff] %v15061_v53  ;;  %v7364_v56 = vld [vmem:[%s7672_s9 + $0xdf0] sm:$0xff]  ;;  %v7365_v12 = vld [vmem:[%s7672_s9 + $0xdf8] sm:$0xff] }
 0x379   : > { %18739 = vst [vmem:[#allocation72_spill] sm:$0xff] %v15064_v36  ;;  %v15066_v35 = vpop.eup %7185  ;;  %vm18740_vm10 = vcmask 326912   ;;  %v2006_v43 = vadd.f32 %v1251_v42, %v1250_v63  ;;  %7189 = vrsqrt.f32 %v15048_v16  ;;  %v1227_v8 = vmul.f32 %v15037_v10, %v15037_v10  ;;  %5460 = vmatpush.xpose.msrb.mxu2 %v15061_v53  ;;  %5480 = vmatpush.xpose.msrb.mxu3 %v15064_v36  ;;  %v15084_v63 = vld [vmem:[%s7672_s9 + $0xf50] sm:$0xff]  ;;  %v7366_v53 = vld [vmem:[%s7672_s9 + $0xde0] sm:$0xff]  ;;  %v7367_v9 = vld [vmem:[%s7672_s9 + $0xde8] sm:$0xff] }
 0x37a   : > { %v6135_v49 = vsel %vm18740_vm10, %v6134_v58, %v6133_v7  ;;  %v15075_v54 = vmul.f32 %v7364_v56, %v7364_v56  ;;  %v15078_v28 = vmul.f32 %v7365_v12, %v7365_v12  ;;  %vm18743_vm9 = vcmask 392512   ;;  %18744 = vst [vmem:[#allocation75_spill] sm:$0xff] %v15084_v63  ;;  %v15099_v12 = vld [vmem:[%s7672_s9 + $0xf58] sm:$0xff] }
 0x37b   : > { %v6137_v58 = vsel %vm18743_vm9, %v6136_v15, %v6135_v49  ;;  %v4139_v7 = vmul.f32 %v15066_v35, %v14967_v30  ;;  %v15086_v42 = vpop.eup %7187  ;;  %v15089_v36 = vmul.f32 %v7366_v53, %v7366_v53  ;;  %v15092_v56 = vmul.f32 %v7367_v9, %v7367_v9  ;;  %2007 = vadd.xlane.f32.xlu0 %v2006_v43  ;;  %v1849_v15 = vpop.xlane.xlu2 %1848  ;;  %v15102_v49 = vld [vmem:[%s7672_s9 + $0xec0] sm:$0xff] }
 0x37c   : > { %18741 = vst [vmem:[#allocation73_spill] sm:$0xff] %v15075_v54  ;;  %vm18747_vm7 = vcmask 458112   ;;  %7191 = vrsqrt.f32 %v15050_v52  ;;  %v4152_v53 = vsub.f32 1.5, %v4151_v4  ;;  %vm4154_vm1 = vweird.f32 %v14906_v14  ;;  %v1843_v43 = vpop.xlane.xlu0 %1842  ;;  %5421 = vmatpush.xpose.msrb.mxu0 %v15102_v49  ;;  %v15166_v14 = vld [vmem:[%s7672_s9 + $0xfb8] sm:$0xff] }
 0x37d   : > { %18742 = vst [vmem:[#allocation74_spill] sm:$0xff] %v15078_v28  ;;  %v15095_v54 = vsel %vm18747_vm7, %v6138_v44, %v6137_v58  ;;  %v15105_v28 = vld [vmem:[%s7672_s9 + $0xec8] sm:$0xff]  ;;  %v4140_v9 = vmul.f32 %v15066_v35, %v4139_v7  ;;  %v4129_v44 = vmul.f32 %v15086_v42, %v14969_v0  ;;  %7193 = vrsqrt.f32 %v15055_v39  ;;  %5481 = vmatpush.xpose.msrb.mxu3 %v15121_v23 }
 0x37e   : > { %18745 = vst [vmem:[#allocation76_spill] sm:$0xff] %v15089_v36  ;;  %5441 = vmatpush.xpose.msrb.mxu1 %v15105_v28  ;;  %v1970_v58 = vadd.f32 %v1227_v8, %v1226_v41  ;;  %v1252_v4 = vmul.f32 %v15084_v63, %v15084_v63  ;;  %v15118_v36 = vld [vmem:[%s7672_s9 + $0xfc0] sm:$0xff]  ;;  %vm4155_vm4 = vweird.f32 %v14983_v5  ;;  %vm4144_vm12 = vweird.f32 %v14967_v30 }
 0x37f   : > { %18746 = vst [vmem:[#allocation77_spill] sm:$0xff] %v15092_v56  ;;  %v1928_v56 = vadd.f32 %v1199_v34, %v14991_v31  ;;  %v4141_v7 = vmul.f32 0.5, %v4140_v9  ;;  %v4130_v61 = vmul.f32 %v15086_v42, %v4129_v44  ;;  %5461 = vmatpush.xpose.msrb.mxu2 %v15118_v36  ;;  %v15129_v31 = vpop.eup %7189  ;;  %vm4145_vm8 = vweird.f32 %v15066_v35  ;;  %vm15152_vm11 = vmor %vm4154_vm1, %vm4155_vm4 }
 0x380   : > { %18748 = vst [vmem:[#allocation78_spill] sm:$0xff] %v15099_v12  ;;  %1971 = vadd.xlane.f32.xlu2 %v1970_v58  ;;  %v15133_v34 = vmax.f32 %v1849_v15, 1e-24  ;;  %v15135_v41 = vmax.f32 %v1846_v46, 1e-24  ;;  %v4153_v8 = vmul.f32 %v14983_v5, %v4152_v53  ;;  %vm4135_vm5 = vweird.f32 %v15086_v42  ;;  %v15163_v15 = vld [vmem:[%s7672_s9 + $0xfb0] sm:$0xff]  ;;  %vm15188_vm13 = vmor %vm4144_vm12, %vm4145_vm8 }
 0x381   : > { %18749 = vst [vmem:[#allocation79_spill] sm:$0xff] %v15102_v49  ;;  %v4142_v9 = vsub.f32 1.5, %v4141_v7  ;;  %v4131_v44 = vmul.f32 0.5, %v4130_v61  ;;  %1929 = vadd.xlane.f32.xlu1 %v1928_v56  ;;  %v15158_v56 = vmax.f32 %v1843_v43, 1e-24  ;;  %5482 = vmatpush.xpose.msrb.mxu3 %v15166_v14  ;;  %v15179_v25 = vmul.f32 %v7368_v19, %v7368_v19  ;;  %v717_v49 = vld [vmem:[%s7672_s9 + $0xe98] sm:$0xff] }
 0x382   : > { %18750 = vst [vmem:[#allocation80_spill] sm:$0xff] %v15105_v28  ;;  %v1253_v28 = vmul.f32 %v15099_v12, %v15099_v12  ;;  %v15146_v59 = vpop.eup %7191  ;;  %7195 = vrsqrt.f32 %v15133_v34  ;;  %5442 = vmatpush.xpose.msrb.mxu1 %v15144_v17  ;;  %vm4134_vm14 = vweird.f32 %v14969_v0  ;;  %v4157_v19 = vsel %vm15152_vm11, %v14983_v5, %v4153_v8  ;;  %v15206_v0 = vld [vmem:[%s7672_s9 + $0xea8] sm:$0xff] }
 0x383   : > { %18751 = vst [vmem:[#allocation81_spill] sm:$0xff] %v15118_v36  ;;  %v15141_v36 = vld [vmem:[%s7672_s9 + $0xeb0] sm:$0xff]  ;;  %v4143_v53 = vmul.f32 %v15066_v35, %v4142_v9  ;;  %v4132_v58 = vsub.f32 1.5, %v4131_v44  ;;  %5462 = vmatpush.xpose.msrb.mxu2 %v15163_v15  ;;  %v15176_v43 = vpop.eup %7193  ;;  %v7369_v9 = vld [vmem:[%s7672_s9 + $0xdd8] sm:$0xff]  ;;  %7197 = vrsqrt.f32 %v15135_v41  ;;  %vm15213_vm6 = vmor %vm4134_vm14, %vm4135_vm5  ;;  %v15220_v46 = vpop.xlane.xlu2 %1857  ;;  %v1200_v12 = vmul.f32 %v7372_v3, %v7372_v3 }
 0x384   : > { %18752 = vst [vmem:[#allocation82_spill] sm:$0xff] %v15121_v23  ;;  %v4179_v23 = vmul.f32 %v15129_v31, %v15048_v16  ;;  %v2009_v61 = vadd.f32 %v1253_v28, %v1252_v4  ;;  %5422 = vmatpush.xpose.msrb.mxu0 %v15141_v36  ;;  %v4169_v28 = vmul.f32 %v15146_v59, %v15050_v52  ;;  %v15172_v4 = vpop.xlane.xlu1 %1854  ;;  %7199 = vrsqrt.f32 %v15158_v56  ;;  %v15232_v21 = vpop.xlane.xlu0 %1851 }
 0x385   : > { %18755 = vst [vmem:[#allocation83_spill] sm:$0xff] %v15163_v15  ;;  %v15182_v44 = vmul.f32 %v7369_v9, %v7369_v9  ;;  %v4147_v9 = vsel %vm15188_vm13, %v15066_v35, %v4143_v53  ;;  %v4133_v30 = vmul.f32 %v15086_v42, %v4132_v58  ;;  %v15203_v15 = vld [vmem:[%s7672_s9 + $0xea0] sm:$0xff]  ;;  %v4159_v8 = vmul.f32 %v15176_v43, %v15055_v39  ;;  %v7371_v53 = vld [vmem:[%s7672_s9 + $0xdc8] sm:$0xff] }
 0x386   : > { %18756 = vst [vmem:[#allocation84_spill] sm:$0xff] %v15166_v14  ;;  %v4180_v7 = vmul.f32 %v15129_v31, %v4179_v23  ;;  %2010 = vadd.xlane.f32.xlu0 %v2009_v61  ;;  %v4170_v14 = vmul.f32 %v15146_v59, %v4169_v28  ;;  %v7370_v61 = vld [vmem:[%s7672_s9 + $0xdc0] sm:$0xff]  ;;  %5443 = vmatpush.xpose.msrb.mxu1 %v15206_v0  ;;  %vm4184_vm15 = vweird.f32 %v15048_v16  ;;  %vm4185_vm10 = vweird.f32 %v15129_v31 }
 0x387   : > { %18757 = vst [vmem:[#allocation85_spill] sm:$0xff] %v15179_v25  ;;  %v15209_v6 = vmul.f32 %v7370_v61, %v7370_v61  ;;  %v15225_v58 = vmul.f32 %v7371_v53, %v7371_v53  ;;  %v4137_v28 = vsel %vm15213_vm6, %v15086_v42, %v4133_v30  ;;  %v716_v61 = vld [vmem:[%s7672_s9 + $0xe90] sm:$0xff]  ;;  %v4160_v53 = vmul.f32 %v15176_v43, %v4159_v8  ;;  %v7373_v42 = vld [vmem:[%s7672_s9 + $0xdb8] sm:$0xff]  ;;  %vm15284_vm11 = vmor %vm4184_vm15, %vm4185_vm10 }
 0x388   : > { %18758 = vst [vmem:[#allocation86_spill] sm:$0xff] %v15182_v44  ;;  %v4181_v35 = vmul.f32 0.5, %v4180_v7  ;;  %5423 = vmatpush.xpose.msrb.mxu0 %v15203_v15  ;;  %v6142_v7 = vperm.slane %v4147_v9, %v18579_v18  ;;  %v4171_v23 = vmul.f32 0.5, %v4170_v14  ;;  %v15234_v27 = vpop.eup %7195  ;;  %v6144_v44 = vperm.slane %v4157_v19, %v18580_v50  ;;  %v18763_v25 = vld [vmem:[#allocation25_spill] sm:$0xff]  ;;  %v15242_v9 = vld [vmem:[%s7672_s9 + $0xfa0] sm:$0xff]  ;;  %v15245_v18 = vld [vmem:[%s7672_s9 + $0xfa8] sm:$0xff] }
 0x389   : > { %v6140_v63 = vperm.slane %v4137_v28, %v18763_v25  ;;  %18764 = vst [vmem:[#allocation87_spill] sm:$0xff] %v15242_v9  ;;  %v1201_v14 = vmul.f32 %v7373_v42, %v7373_v42  ;;  %v4209_v3 = vmul.f32 %v15234_v27, %v15133_v34  ;;  %5463 = vmatpush.xpose.msrb.mxu2 %v15242_v9  ;;  %v15254_v19 = vpop.eup %7197  ;;  %vm18766_vm9 = vcmask 523712  }
 0x38a   : > { %18765 = vst [vmem:[#allocation88_spill] sm:$0xff] %v15245_v18  ;;  %5483 = vmatpush.xpose.msrb.mxu3 %v15245_v18  ;;  %v4182_v5 = vsub.f32 1.5, %v4181_v35  ;;  %v4172_v8 = vsub.f32 1.5, %v4171_v23  ;;  %v4161_v28 = vmul.f32 0.5, %v4160_v53  ;;  %5444 = vmatpush.xpose.msrb.mxu1 %v717_v49  ;;  %vm18767_vm7 = vcmask 589312   ;;  %v15260_v32 = vpop.eup %7199 }
 0x38b   : > { %v6141_v30 = vsel %vm18766_vm9, %v6140_v63, %v15095_v54  ;;  %v4210_v50 = vmul.f32 %v15234_v27, %v4209_v3  ;;  %v1228_v25 = vmul.f32 %v716_v61, %v716_v61  ;;  %v1229_v9 = vmul.f32 %v717_v49, %v717_v49  ;;  %v15272_v49 = vld [vmem:[%s7672_s9 + $0xf60] sm:$0xff] }
 0x38c   : > { %5424 = vmatpush.xpose.msrb.mxu0 %v716_v61  ;;  %v6143_v42 = vsel %vm18767_vm7, %v6142_v7, %v6141_v30  ;;  %v4162_v45 = vsub.f32 1.5, %v4161_v28  ;;  %vm4165_vm1 = vweird.f32 %v15176_v43  ;;  %v4199_v54 = vmul.f32 %v15254_v19, %v15135_v41  ;;  %v15277_v35 = vpop.xlane.xlu1 %1863  ;;  %v15297_v28 = vld [vmem:[%s7672_s9 + $0xf90] sm:$0xff] }
 0x38d   : > { %v6145_v18 = vsel %vm17891_vm3, %v6144_v44, %v6143_v42  ;;  %vm4174_vm4 = vweird.f32 %v15050_v52  ;;  %vm4175_vm12 = vweird.f32 %v15146_v59  ;;  %vm4164_vm8 = vweird.f32 %v15055_v39  ;;  %v15275_v44 = vld [vmem:[%s7672_s9 + $0xf68] sm:$0xff]  ;;  %v15300_v42 = vld [vmem:[%s7672_s9 + $0xf98] sm:$0xff]  ;;  %5464 = vmatpush.xpose.msrb.mxu2 %v15297_v28 }
 0x38e   : > { %v4189_v63 = vmul.f32 %v15260_v32, %v15158_v56  ;;  %v4183_v7 = vmul.f32 %v15129_v31, %v4182_v5  ;;  %v4163_v39 = vmul.f32 %v15176_v43, %v4162_v45  ;;  %v4211_v61 = vmul.f32 0.5, %v4210_v50  ;;  %5445 = vmatpush.xpose.msrb.mxu1 %v15037_v10  ;;  %vm4166_vm5 = vmor %vm4164_vm8, %vm4165_vm1  ;;  %5484 = vmatpush.xpose.msrb.mxu3 %v15300_v42 }
 0x38f   : > { %v4200_v53 = vmul.f32 %v15254_v19, %v4199_v54  ;;  %v4173_v3 = vmul.f32 %v15146_v59, %v4172_v8  ;;  %v1973_v30 = vadd.f32 %v1229_v9, %v1228_v25  ;;  %v1931_v5 = vadd.f32 %v1201_v14, %v1200_v12  ;;  %v15307_v8 = vpop.xlane.xlu2 %1866  ;;  %vm15326_vm15 = vmor %vm4174_vm4, %vm4175_vm12 }
 0x390   : > { %5425 = vmatpush.xpose.msrb.mxu0 %v15026_v57  ;;  %v4190_v16 = vmul.f32 %v15260_v32, %v4189_v63  ;;  %v4167_v50 = vsel %vm4166_vm5, %v15176_v43, %v4163_v39  ;;  %v1254_v57 = vmul.f32 %v15272_v49, %v15272_v49  ;;  %v1255_v10 = vmul.f32 %v15275_v44, %v15275_v44  ;;  %v15314_v43 = vpop.xlane.xlu0 %1860 }
 0x391   : > { %v4201_v45 = vmul.f32 0.5, %v4200_v53  ;;  %v6146_v25 = vperm.slane %v4167_v50, %v18634_v13  ;;  %vm4214_vm13 = vweird.f32 %v15133_v34  ;;  %vm4204_vm14 = vweird.f32 %v15135_v41  ;;  %1974 = vadd.xlane.f32.xlu2 %v1973_v30  ;;  %1932 = vadd.xlane.f32.xlu1 %v1931_v5 }
 0x392   : > { %v4191_v12 = vmul.f32 0.5, %v4190_v16  ;;  %v4187_v9 = vsel %vm15284_vm11, %v15129_v31, %v4183_v7  ;;  %v4212_v14 = vsub.f32 1.5, %v4211_v61  ;;  %vm4194_vm6 = vweird.f32 %v15158_v56  ;;  %5446 = vmatpush.xpose.msrb.mxu1 %v14953_v60  ;;  %v15342_v60 = vld [vmem:[%s7672_s9 + $0xf88] sm:$0xff] }
 0x393   : > { %v4202_v54 = vsub.f32 1.5, %v4201_v45  ;;  %v2012_v63 = vadd.f32 %v1255_v10, %v1254_v57  ;;  %vm18772_vm10 = vcmask 720512   ;;  %vm4215_vm9 = vweird.f32 %v15234_v27  ;;  %5485 = vmatpush.xpose.msrb.mxu3 %v15342_v60 }
 0x394   : > { %5426 = vmatpush.xpose.msrb.mxu0 %v14945_v1  ;;  %v15331_v23 = vsel %vm18772_vm10, %v6146_v25, %v6145_v18  ;;  %v4192_v31 = vsub.f32 1.5, %v4191_v12  ;;  %v15336_v7 = vmul.f32 %v14870_v62, %v14870_v62  ;;  %v15339_v1 = vld [vmem:[%s7672_s9 + $0xf80] sm:$0xff]  ;;  %v4177_v52 = vsel %vm15326_vm15, %v15146_v59, %v4173_v3  ;;  %v745_v3 = vld [vmem:[%s7672_s9 + $0xf78] sm:$0xff]  ;;  %vm15390_vm1 = vmor %vm4214_vm13, %vm4215_vm9 }
 0x395   : > { %2013 = vadd.xlane.f32.xlu0 %v2012_v63  ;;  %v15348_v18 = vmax.f32 %v15220_v46, 1e-24  ;;  %v15351_v61 = vmax.f32 %v15172_v4, 1e-24  ;;  %v15354_v62 = vmax.f32 %v15232_v21, 1e-24  ;;  %5465 = vmatpush.xpose.msrb.mxu2 %v15339_v1  ;;  %v15358_v53 = vperm.slane %v4187_v9, %v18646_v48 }
 0x396   : > { %v15362_v16 = vmul.f32 %v14873_v33, %v14873_v33  ;;  %v15366_v59 = vmul.f32 %v14889_v40, %v14889_v40  ;;  %v15370_v4 = vmul.f32 %v14892_v51, %v14892_v51  ;;  %v15374_v21 = vmul.f32 %v15234_v27, %v4212_v14  ;;  %v744_v33 = vld [vmem:[%s7672_s9 + $0xf70] sm:$0xff]  ;;  %5447 = vmatpush.xpose.msrb.mxu1 %v14831_v24 }
 0x397   : > { %v4203_v46 = vmul.f32 %v15254_v19, %v4202_v54  ;;  %vm4205_vm7 = vweird.f32 %v15254_v19  ;;  %7201 = vrsqrt.f32 %v15348_v18  ;;  %v15384_v40 = vperm.slane %v4177_v52, %v18633_v2  ;;  %5486 = vmatpush.xpose.msrb.mxu3 %v745_v3  ;;  %v18781_v52 = vld [vmem:[#allocation79_spill] sm:$0xff] }
 0x398   : > { %5427 = vmatpush.xpose.msrb.mxu0 %v14828_v55  ;;  %vm4195_vm4 = vweird.f32 %v15260_v32  ;;  %v15397_v30 = vmul.f32 %v14978_v38, %v14978_v38  ;;  %7203 = vrsqrt.f32 %v15351_v61  ;;  %v15400_v55 = vpop.xlane.xlu1 %1872  ;;  %v4193_v24 = vmul.f32 %v15260_v32, %v4192_v31  ;;  %vm15414_vm12 = vmor %vm4204_vm14, %vm4205_vm7  ;;  %v15454_v12 = vpop.xlane.xlu0 %1869  ;;  %v7374_v31 = vld [vmem:[%s7672_s9 + $0xe48] sm:$0xff]  ;;  %v18783_v38 = vld [vmem:[#allocation85_spill] sm:$0xff] }
 0x399   : > { %v15405_v5 = vmul.f32 %v14981_v37, %v14981_v37  ;;  %7205 = vrsqrt.f32 %v15354_v62  ;;  %v1230_v34 = vmul.f32 %v15203_v15, %v15203_v15  ;;  %5466 = vmatpush.xpose.msrb.mxu2 %v744_v33  ;;  %v1231_v50 = vmul.f32 %v15206_v0, %v15206_v0  ;;  %vm15444_vm8 = vmor %vm4194_vm6, %vm4195_vm4 }
 0x39a   : > { %v1934_v37 = vadd.f32 %v15225_v58, %v15209_v6  ;;  %v1256_v45 = vmul.f32 %v744_v33, %v744_v33  ;;  %v1257_v57 = vmul.f32 %v745_v3, %v745_v3  ;;  %v4217_v15 = vsel %vm15390_vm1, %v15234_v27, %v15374_v21  ;;  %v15437_v6 = vpop.xlane.xlu2 %1875  ;;  %5448 = vmatpush.xpose.msrb.mxu1 %v14741_v20  ;;  %v18782_v3 = vld [vmem:[#allocation75_spill] sm:$0xff] }
 0x39b   : > { %v4207_v41 = vsel %vm15414_vm12, %v15254_v19, %v4203_v46  ;;  %v15431_v10 = vmul.f32 %v15015_v11, %v15015_v11  ;;  %v15435_v0 = vmul.f32 %v15018_v29, %v15018_v29  ;;  %v1976_v19 = vadd.f32 %v1231_v50, %v1230_v34  ;;  %5487 = vmatpush.xpose.msrb.mxu3 %v15275_v44  ;;  %v18784_v50 = vld [vmem:[#allocation86_spill] sm:$0xff] }
 0x39c   : > { %5428 = vmatpush.xpose.msrb.mxu0 %v14738_v22  ;;  %1935 = vadd.xlane.f32.xlu1 %v1934_v37  ;;  %v2015_v11 = vadd.f32 %v1257_v57, %v1256_v45  ;;  %v15449_v25 = vmax.f32 %v15307_v8, 1e-24  ;;  %v15452_v29 = vmax.f32 %v15277_v35, 1e-24  ;;  %v4197_v56 = vsel %vm15444_vm8, %v15260_v32, %v4193_v24 }
 0x39d   : > { %v15457_v22 = vpop.eup %7201  ;;  %v15463_v9 = vmax.f32 %v15314_v43, 1e-24  ;;  %v1232_v8 = vmul.f32 %v15141_v36, %v15141_v36  ;;  %v1233_v35 = vmul.f32 %v15144_v17, %v15144_v17  ;;  %5467 = vmatpush.xpose.msrb.mxu2 %v15272_v49  ;;  %vm4244_vm11 = vweird.f32 %v15348_v18  ;;  %1977 = vadd.xlane.f32.xlu2 %v1976_v19  ;;  %v18780_v43 = vld [vmem:[#allocation30_spill] sm:$0xff] }
 0x39e   : > { %v15470_v14 = vpop.eup %7203  ;;  %v4239_v20 = vmul.f32 %v15457_v22, %v15348_v18  ;;  %v15477_v32 = vmul.f32 %v15040_v26, %v15040_v26  ;;  %2016 = vadd.xlane.f32.xlu0 %v2015_v11  ;;  %7207 = vrsqrt.f32 %v15449_v25  ;;  %v15483_v17 = vperm.slane %v4207_v41, %v18637_v47  ;;  %v18779_v26 = vld [vmem:[#allocation31_spill] sm:$0xff]  ;;  %5449 = vmatpush.xpose.msrb.mxu1 %v7374_v31  ;;  %v18786_v11 = vld [vmem:[#allocation78_spill] sm:$0xff] }
 0x39f   : > { %v15480_v36 = vpop.eup %7205  ;;  %v4229_v49 = vmul.f32 %v15470_v14, %v15351_v61  ;;  %vm4234_vm5 = vweird.f32 %v15351_v61  ;;  %7209 = vrsqrt.f32 %v15452_v29  ;;  %v6152_v54 = vperm.slane %v4197_v56, %v18780_v43  ;;  %5488 = vmatpush.xpose.msrb.mxu3 %v18786_v11  ;;  %v7375_v56 = vld [vmem:[%s7672_s9 + $0xe30] sm:$0xff] }
 0x3a0   : > { %5429 = vmatpush.xpose.msrb.mxu0 %v18779_v26  ;;  %v4240_v63 = vmul.f32 %v15457_v22, %v4239_v20  ;;  %v4219_v39 = vmul.f32 %v15480_v36, %v15354_v62  ;;  %vm4224_vm13 = vweird.f32 %v15354_v62  ;;  %7211 = vrsqrt.f32 %v15463_v9  ;;  %v15510_v57 = vpop.xlane.xlu1 %1881  ;;  %v18795_v11 = vld [vmem:[#allocation13_spill] sm:$0xff] }
 0x3a1   : > { %vm4245_vm14 = vweird.f32 %v15457_v22  ;;  %v4230_v44 = vmul.f32 %v15470_v14, %v4229_v49  ;;  %v15502_v46 = vmul.f32 %v18781_v52, %v18781_v52  ;;  %v1979_v33 = vadd.f32 %v1233_v35, %v1232_v8  ;;  %5468 = vmatpush.xpose.msrb.mxu2 %v18782_v3  ;;  %v7376_v49 = vld [vmem:[%s7672_s9 + $0xe38] sm:$0xff]  ;;  %v18791_v3 = vld [vmem:[#allocation41_spill] sm:$0xff] }
 0x3a2   : > { %v4241_v24 = vmul.f32 0.5, %v4240_v63  ;;  %v4220_v34 = vmul.f32 %v15480_v36, %v4219_v39  ;;  %v1937_v37 = vadd.f32 %v18784_v50, %v18783_v38  ;;  %v1258_v45 = vmul.f32 %v15339_v1, %v15339_v1  ;;  %5450 = vmatpush.xpose.msrb.mxu1 %v7376_v49  ;;  %vm15532_vm7 = vmor %vm4244_vm11, %vm4245_vm14  ;;  %v18790_v39 = vld [vmem:[#allocation49_spill] sm:$0xff]  ;;  %v18798_v49 = vld [vmem:[#allocation14_spill] sm:$0xff] }
 0x3a3   : > { %v4231_v41 = vmul.f32 0.5, %v4230_v44  ;;  %vm4274_vm6 = vweird.f32 %v15449_v25  ;;  %v1259_v58 = vmul.f32 %v15342_v60, %v15342_v60  ;;  %vm18785_vm15 = vcmask 786112  }
 0x3a4   : > { %v6149_v19 = vsel %vm18785_vm15, %v15384_v40, %v15331_v23  ;;  %5430 = vmatpush.xpose.msrb.mxu0 %v7375_v56  ;;  %v15520_v8 = vpop.eup %7207  ;;  %v4242_v35 = vsub.f32 1.5, %v4241_v24  ;;  %vm4235_vm10 = vweird.f32 %v15470_v14  ;;  %v4221_v1 = vmul.f32 0.5, %v4220_v34  ;;  %1938 = vadd.xlane.f32.xlu1 %v1937_v37  ;;  %v15553_v34 = vpop.xlane.xlu0 %1878  ;;  %v7378_v56 = vld [vmem:[%s7672_s9 + $0xe28] sm:$0xff] }
 0x3a5   : > { %vm18787_vm9 = vcmask 851712   ;;  %v15526_v60 = vpop.eup %7209  ;;  %v4232_v40 = vsub.f32 1.5, %v4231_v41  ;;  %vm4225_vm4 = vweird.f32 %v15480_v36  ;;  %v4269_v26 = vmul.f32 %v15520_v8, %v15449_v25  ;;  %5469 = vmatpush.xpose.msrb.mxu2 %v18790_v39  ;;  %1980 = vadd.xlane.f32.xlu2 %v1979_v33  ;;  %v18792_v33 = vld [vmem:[#allocation53_spill] sm:$0xff]  ;;  %vm4236_vm1 = vmor %vm4234_vm5, %vm4235_vm10  ;;  %v18794_v41 = vld [vmem:[#allocation16_spill] sm:$0xff] }
 0x3a6   : > { %v6151_v20 = vsel %vm18787_vm9, %v15358_v53, %v6149_v19  ;;  %v2018_v63 = vadd.f32 %v1259_v58, %v1258_v45  ;;  %v15539_v53 = vpop.xlane.xlu2 %1884  ;;  %v15542_v31 = vpop.eup %7211  ;;  %v4243_v44 = vmul.f32 %v15457_v22, %v4242_v35  ;;  %v4222_v18 = vsub.f32 1.5, %v4221_v1  ;;  %5489 = vmatpush.xpose.msrb.mxu3 %v18792_v33  ;;  %v7377_v45 = vld [vmem:[%s7672_s9 + $0xe20] sm:$0xff]  ;;  %vm4226_vm11 = vmor %vm4224_vm13, %vm4225_vm4  ;;  %5451 = vmatpush.xpose.msrb.mxu1 %v7378_v56 }
 0x3a7   : > { %v4259_v52 = vmul.f32 %v15526_v60, %v15452_v29  ;;  %v6156_v24 = vperm.slane %v4217_v15, %v18791_v3  ;;  %v4233_v38 = vmul.f32 %v15470_v14, %v4232_v40  ;;  %v4270_v50 = vmul.f32 %v15520_v8, %v4269_v26  ;;  %v18796_v35 = vld [vmem:[#allocation19_spill] sm:$0xff] }
 0x3a8   : > { %vm4275_vm12 = vweird.f32 %v15520_v8  ;;  %v4249_v37 = vmul.f32 %v15542_v31, %v15463_v9  ;;  %2019 = vadd.xlane.f32.xlu0 %v2018_v63  ;;  %v4247_v27 = vsel %vm15532_vm7, %v15457_v22, %v4243_v44  ;;  %v4223_v21 = vmul.f32 %v15480_v36, %v4222_v18  ;;  %5431 = vmatpush.xpose.msrb.mxu0 %v7377_v45  ;;  %v18801_v63 = vld [vmem:[#allocation66_spill] sm:$0xff]  ;;  %v15601_v39 = vpop.xlane.xlu1 %1890  ;;  %v7379_v44 = vld [vmem:[%s7672_s9 + $0xe10] sm:$0xff] }
 0x3a9   : > { %v4260_v51 = vmul.f32 %v15526_v60, %v4259_v52  ;;  %vm18793_vm8 = vcmask 917312   ;;  %v6161_v58 = vperm.slane %v4247_v27, %v18794_v41  ;;  %v4237_v19 = vsel %vm4236_vm1, %v15470_v14, %v4233_v38  ;;  %5470 = vmatpush.xpose.msrb.mxu2 %v18795_v11  ;;  %vm15594_vm14 = vmor %vm4274_vm6, %vm4275_vm12  ;;  %v7380_v38 = vld [vmem:[%s7672_s9 + $0xf20] sm:$0xff] }
 0x3aa   : > { %v6153_v15 = vsel %vm18793_vm8, %v6152_v54, %v6151_v20  ;;  %v4271_v22 = vmul.f32 0.5, %v4270_v50  ;;  %v4250_v61 = vmul.f32 %v15542_v31, %v4249_v37  ;;  %v6159_v54 = vperm.slane %v4237_v19, %v18796_v35  ;;  %5490 = vmatpush.xpose.msrb.mxu3 %v18801_v63  ;;  %v7381_v50 = vld [vmem:[%s7672_s9 + $0xe18] sm:$0xff]  ;;  %v18804_v37 = vld [vmem:[#allocation80_spill] sm:$0xff]  ;;  %v18808_v11 = vld [vmem:[#allocation15_spill] sm:$0xff] }
 0x3ab   : > { %v4227_v1 = vsel %vm4226_vm11, %v15480_v36, %v4223_v21  ;;  %v4261_v20 = vmul.f32 0.5, %v4260_v51  ;;  %vm18797_vm5 = vcmask 982912   ;;  %vm18799_vm13 = vcmask 1048512   ;;  %5452 = vmatpush.xpose.msrb.mxu1 %v7381_v50  ;;  %v18810_v36 = vld [vmem:[#allocation76_spill] sm:$0xff] }
 0x3ac   : > { %v6155_v14 = vsel %vm18797_vm5, %v15483_v17, %v6153_v15  ;;  %v6158_v23 = vperm.slane %v4227_v1, %v18798_v49  ;;  %v4272_v62 = vsub.f32 1.5, %v4271_v22  ;;  %v4251_v40 = vmul.f32 0.5, %v4250_v61  ;;  %5432 = vmatpush.xpose.msrb.mxu0 %v7379_v44  ;;  %v18812_v44 = vld [vmem:[#allocation54_spill] sm:$0xff] }
 0x3ad   : > { %v15587_v26 = vsel %vm18799_vm13, %v6156_v24, %v6155_v14  ;;  %v4262_v17 = vsub.f32 1.5, %v4261_v20  ;;  %vm4264_vm15 = vweird.f32 %v15452_v29  ;;  %vm4265_vm10 = vweird.f32 %v15526_v60  ;;  %5471 = vmatpush.xpose.msrb.mxu2 %v7380_v38  ;;  %v1888_v29 = vpop.xlane.xlu0 %1887  ;;  %v7385_v14 = vld [vmem:[%s7672_s9 + $0xe08] sm:$0xff] }
 0x3ae   : > { %18800 = vst [vmem:[#allocation31_spill] sm:$0xff] %v15587_v26  ;;  %vm4255_vm9 = vweird.f32 %v15542_v31  ;;  %v6160_v18 = vsel %vm17892_vm0, %v6159_v54, %v6158_v23  ;;  %v4273_v52 = vmul.f32 %v15520_v8, %v4272_v62  ;;  %v4252_v25 = vsub.f32 1.5, %v4251_v40  ;;  %vm4266_vm7 = vmor %vm4264_vm15, %vm4265_vm10  ;;  %v1894_v45 = vpop.xlane.xlu2 %1893  ;;  %v18809_v23 = vld [vmem:[#allocation18_spill] sm:$0xff] }
 0x3af   : > { %v15607_v24 = vmax.f32 %v15437_v6, 1e-24  ;;  %v1235_v33 = vmul.f32 %v18804_v37, %v18804_v37  ;;  %v4263_v27 = vmul.f32 %v15526_v60, %v4262_v17  ;;  %vm18805_vm6 = vcmask 195712   ;;  %5453 = vmatpush.xpose.msrb.mxu1 %v7385_v14  ;;  %v18811_v17 = vld [vmem:[#allocation77_spill] sm:$0xff]  ;;  %v18821_v14 = vld [vmem:[#allocation83_spill] sm:$0xff] }
 0x3b0   : > { %v6162_v21 = vsel %vm18805_vm6, %v6161_v58, %v6160_v18  ;;  %v15616_v51 = vmax.f32 %v15400_v55, 1e-24  ;;  %v4277_v6 = vsel %vm15594_vm14, %v15520_v8, %v4273_v52  ;;  %v4253_v15 = vmul.f32 %v15542_v31, %v4252_v25  ;;  %v7382_v58 = vld [vmem:[%s7672_s9 + $0xf28] sm:$0xff]  ;;  %v18806_v55 = vld [vmem:[#allocation71_spill] sm:$0xff]  ;;  %v18807_v8 = vld [vmem:[#allocation17_spill] sm:$0xff] }
 0x3b1   : > { %vm4254_vm4 = vweird.f32 %v15463_v9  ;;  %7213 = vrsqrt.f32 %v15607_v24  ;;  %5491 = vmatpush.xpose.msrb.mxu3 %v7382_v58  ;;  %v1237_v19 = vmul.f32 %v18806_v55, %v18806_v55  ;;  %v6167_v22 = vperm.slane %v4277_v6, %v18807_v8  ;;  %v7383_v9 = vld [vmem:[%s7672_s9 + $0xe00] sm:$0xff]  ;;  %v7386_v52 = vld [vmem:[%s7672_s9 + $0xf18] sm:$0xff]  ;;  %v18818_v55 = vld [vmem:[#allocation88_spill] sm:$0xff] }
 0x3b2   : > { %v4267_v61 = vsel %vm4266_vm7, %v15526_v60, %v4263_v27  ;;  %vm4256_vm12 = vmor %vm4254_vm4, %vm4255_vm9  ;;  %7215 = vrsqrt.f32 %v15616_v51  ;;  %5433 = vmatpush.xpose.msrb.mxu0 %v7383_v9  ;;  %v15640_v1 = vmax.f32 %v15454_v12, 1e-24  ;;  %v1260_v20 = vmul.f32 %v15297_v28, %v15297_v28  ;;  %v7384_v60 = vld [vmem:[%s7672_s9 + $0xf10] sm:$0xff]  ;;  %v18817_v6 = vld [vmem:[#allocation87_spill] sm:$0xff] }
 0x3b3   : > { %v6165_v56 = vperm.slane %v4267_v61, %v18808_v11  ;;  %v4257_v54 = vsel %vm4256_vm12, %v15542_v31, %v4253_v15  ;;  %5472 = vmatpush.xpose.msrb.mxu2 %v7384_v60  ;;  %v1261_v40 = vmul.f32 %v15300_v42, %v15300_v42  ;;  %v1982_v63 = vadd.f32 %v1235_v33, %v15502_v46  ;;  %v7387_v42 = vld [vmem:[#allocation2] sm:$0xff]  ;;  %v18813_v46 = vld [vmem:[#allocation72_spill] sm:$0xff]  ;;  %v7389_v58 = vld [vmem:[#allocation2 + $0x8] sm:$0xff] }
 0x3b4   : > { %v6163_v62 = vperm.slane %v4257_v54, %v18809_v23  ;;  %v1940_v31 = vadd.f32 %v18811_v17, %v18810_v36  ;;  %v15654_v12 = vmul.f32 %v18812_v44, %v18812_v44  ;;  %7217 = vrsqrt.f32 %v15640_v1  ;;  %5454 = vmatmul.f32.vlgmr.msrb.gmra.mxu1 %v7389_v58  ;;  %v15693_v54 = vpop.xlane.xlu1 %1899  ;;  %v18822_v17 = vld [vmem:[#allocation73_spill] sm:$0xff] }
 0x3b5   : > { %v15658_v28 = vmax.f32 %v15539_v53, 1e-24  ;;  %v15661_v18 = vmax.f32 %v15510_v57, 1e-24  ;;  %5492 = vmatpush.xpose.msrb.mxu3 %v7386_v52  ;;  %5434 = vmatmul.f32.vlgmr.msrb.gmra.mxu0 %v7387_v42  ;;  %v15666_v25 = vmul.f32 %v18813_v46, %v18813_v46  ;;  %vm18814_vm1 = vcmask 261312   ;;  %v18815_v57 = vld [vmem:[#allocation81_spill] sm:$0xff] }
 0x3b6   : > { %v6164_v38 = vsel %vm18814_vm1, %v6163_v62, %v6162_v21  ;;  %1983 = vadd.xlane.f32.xlu2 %v1982_v63  ;;  %1941 = vadd.xlane.f32.xlu1 %v1940_v31  ;;  %v2021_v50 = vadd.f32 %v1261_v40, %v1260_v20  ;;  %v15670_v53 = vmax.f32 %v15553_v34, 1e-24  ;;  %v15676_v33 = vmul.f32 %v18815_v57, %v18815_v57  ;;  %v7388_v21 = vld [vmem:[%s7672_s9 + $0xf00] sm:$0xff]  ;;  %v18820_v20 = vld [vmem:[#allocation82_spill] sm:$0xff] }
 0x3b7   : > { %v15672_v37 = vpop.eup %7213  ;;  %vm18816_vm8 = vcmask 326912   ;;  %v1262_v15 = vmul.f32 %v18817_v6, %v18817_v6  ;;  %7219 = vrsqrt.f32 %v15658_v28  ;;  %5473 = vmatpush.xpose.msrb.mxu2 %v7388_v21  ;;  %v1263_v61 = vmul.f32 %v18818_v55, %v18818_v55  ;;  %v18823_v31 = vld [vmem:[#allocation74_spill] sm:$0xff]  ;;  %v15723_v6 = vpop.xlane.xlu2 %1902 }
 0x3b8   : > { %v6166_v27 = vsel %vm18816_vm8, %v6165_v56, %v6164_v38  ;;  %v15683_v34 = vpop.eup %7215  ;;  %v4299_v9 = vmul.f32 %v15672_v37, %v15607_v24  ;;  %vm18819_vm11 = vcmask 392512   ;;  %2022 = vadd.xlane.f32.xlu0 %v2021_v50  ;;  %7221 = vrsqrt.f32 %v15661_v18 }
 0x3b9   : > { %v15690_v56 = vsel %vm18819_vm11, %v6167_v22, %v6166_v27  ;;  %v15697_v60 = vmul.f32 %v18820_v20, %v18820_v20  ;;  %v15701_v62 = vmul.f32 %v18821_v14, %v18821_v14  ;;  %v4289_v40 = vmul.f32 %v15683_v34, %v15616_v51  ;;  %v7390_v22 = vld [vmem:[%s7672_s9 + $0xf08] sm:$0xff] }
 0x3ba   : > { %7223 = vrsqrt.f32 %v15670_v53  ;;  %5493 = vmatpush.xpose.msrb.mxu3 %v7390_v22  ;;  %v4300_v63 = vmul.f32 %v15672_v37, %v4299_v9  ;;  %v1985_v36 = vadd.f32 %v1237_v19, %v15477_v32  ;;  %v1943_v44 = vadd.f32 %v18823_v31, %v18822_v17  ;;  %5474 = vmatmul.f32.vlgmr.msrb.gmra.mxu2 %v7387_v42  ;;  %v15713_v46 = vpop.eup %7217  ;;  %v15728_v42 = vpop.xlane.xlu0 %1896  ;;  %v18824_v22 = vld [vmem:[#allocation84_spill] sm:$0xff] }
 0x3bb   : > { %v15711_v52 = vmax.f32 %v1894_v45, 1e-24  ;;  %v4290_v38 = vmul.f32 %v15683_v34, %v4289_v40  ;;  %v15717_v50 = vmax.f32 %v15601_v39, 1e-24  ;;  %v15719_v57 = vmax.f32 %v1888_v29, 1e-24 }
 0x3bc   : > { %v1988_v27 = vadd.f32 %v15405_v5, %v15397_v30  ;;  %v4301_v32 = vmul.f32 0.5, %v4300_v63  ;;  %v4279_v45 = vmul.f32 %v15713_v46, %v15640_v1  ;;  %v2024_v19 = vadd.f32 %v1263_v61, %v1262_v15 }
 0x3bd   : > { %7225 = vrsqrt.f32 %v15711_v52  ;;  %5494 = vmatmul.f32.vlgmr.msrb.gmra.mxu3 %v7389_v58  ;;  %v15730_v21 = vpop.eup %7219  ;;  %vm4304_vm5 = vweird.f32 %v15607_v24  ;;  %v4291_v39 = vmul.f32 0.5, %v4290_v38  ;;  %vm4294_vm13 = vweird.f32 %v15616_v51 }
 0x3be   : > { %7227 = vrsqrt.f32 %v15717_v50  ;;  %v15735_v30 = vpop.eup %7221  ;;  %v4302_v5 = vsub.f32 1.5, %v4301_v32  ;;  %vm4305_vm14 = vweird.f32 %v15672_v37  ;;  %v4280_v29 = vmul.f32 %v15713_v46, %v4279_v45  ;;  %1986 = vadd.xlane.f32.xlu2 %v1985_v36  ;;  %1944 = vadd.xlane.f32.xlu1 %v1943_v44 }
 0x3bf   : > { %v4329_v15 = vmul.f32 %v15730_v21, %v15658_v28  ;;  %v4292_v55 = vsub.f32 1.5, %v4291_v39  ;;  %vm4295_vm15 = vweird.f32 %v15683_v34  ;;  %v4319_v61 = vmul.f32 %v15735_v30, %v15661_v18  ;;  %vm15757_vm10 = vmor %vm4304_vm5, %vm4305_vm14 }
 0x3c0   : > { %v15741_v58 = vpop.eup %7223  ;;  %7229 = vrsqrt.f32 %v15719_v57  ;;  %v4303_v9 = vmul.f32 %v15672_v37, %v4302_v5  ;;  %v4281_v20 = vmul.f32 0.5, %v4280_v29  ;;  %2025 = vadd.xlane.f32.xlu0 %v2024_v19  ;;  %v1265_v63 = vmul.f32 %v18824_v22, %v18824_v22  ;;  %vm15768_vm6 = vmor %vm4294_vm13, %vm4295_vm15  ;;  %v15774_v19 = vpop.xlane.xlu1 %1908 }
 0x3c1   : > { %v4330_v14 = vmul.f32 %v15730_v21, %v4329_v15  ;;  %v4309_v40 = vmul.f32 %v15741_v58, %v15670_v53  ;;  %v4293_v17 = vmul.f32 %v15683_v34, %v4292_v55  ;;  %vm4284_vm9 = vweird.f32 %v15640_v1  ;;  %v18830_v1 = vld [vmem:[#allocation24_spill] sm:$0xff] }
 0x3c2   : > { %v4320_v31 = vmul.f32 %v15735_v30, %v4319_v61  ;;  %v4282_v32 = vsub.f32 1.5, %v4281_v20  ;;  %vm4285_vm7 = vweird.f32 %v15713_v46  ;;  %vm4334_vm4 = vweird.f32 %v15658_v28 }
 0x3c3   : > { %v15764_v44 = vpop.eup %7225  ;;  %v4331_v24 = vmul.f32 0.5, %v4330_v14  ;;  %v4310_v45 = vmul.f32 %v15741_v58, %v4309_v40  ;;  %v4297_v5 = vsel %vm15768_vm6, %v15683_v34, %v4293_v17  ;;  %vm4314_vm12 = vweird.f32 %v15670_v53  ;;  %vm4286_vm8 = vmor %vm4284_vm9, %vm4285_vm7  ;;  %v18829_v14 = vld [vmem:[#allocation25_spill] sm:$0xff] }
 0x3c4   : > { %v15776_v39 = vpop.eup %7227  ;;  %v4359_v51 = vmul.f32 %v15764_v44, %v15711_v52  ;;  %v4307_v29 = vsel %vm15757_vm10, %v15672_v37, %v4303_v9  ;;  %v4283_v15 = vmul.f32 %v15713_v46, %v4282_v32  ;;  %v4321_v55 = vmul.f32 0.5, %v4320_v31  ;;  %v1948_v9 = vpop.xlane.xlu2 %1947  ;;  %v18831_v32 = vld [vmem:[#allocation26_spill] sm:$0xff] }
 0x3c5   : > { %vm4324_vm1 = vweird.f32 %v15661_v18  ;;  %v4311_v61 = vmul.f32 0.5, %v4310_v45  ;;  %vm4315_vm11 = vweird.f32 %v15741_v58  ;;  %vm4364_vm5 = vweird.f32 %v15711_v52  ;;  %v1906_v31 = vpop.xlane.xlu0 %1905 }
 0x3c6   : > { %v15790_v20 = vpop.eup %7229  ;;  %v4360_v34 = vmul.f32 %v15764_v44, %v4359_v51  ;;  %v4349_v37 = vmul.f32 %v15776_v39, %v15717_v50  ;;  %v6171_v40 = vperm.slane %v4297_v5, %v18829_v14  ;;  %v4287_v22 = vsel %vm4286_vm8, %v15713_v46, %v4283_v15  ;;  %1989 = vadd.xlane.f32.xlu1 %v1988_v27  ;;  %vm4316_vm10 = vmor %vm4314_vm12, %vm4315_vm11 }
 0x3c7   : > { %v4332_v36 = vsub.f32 1.5, %v4331_v24  ;;  %v4312_v17 = vsub.f32 1.5, %v4311_v61  ;;  %v6173_v38 = vperm.slane %v4307_v29, %v18830_v1  ;;  %v6169_v45 = vperm.slane %v4287_v22, %v18831_v32 }
 0x3c8   : > { %v4361_v26 = vmul.f32 0.5, %v4360_v34  ;;  %v4350_v51 = vmul.f32 %v15776_v39, %v4349_v37  ;;  %vm4335_vm13 = vweird.f32 %v15730_v21  ;;  %v4322_v8 = vsub.f32 1.5, %v4321_v55  ;;  %v18837_v55 = vld [vmem:[#allocation29_spill] sm:$0xff] }
 0x3c9   : > { %v4313_v11 = vmul.f32 %v15741_v58, %v4312_v17  ;;  %v4339_v5 = vmul.f32 %v15790_v20, %v15719_v57  ;;  %vm18832_vm14 = vcmask 458112   ;;  %vm4325_vm15 = vweird.f32 %v15735_v30  ;;  %vm15824_vm8 = vmor %vm4334_vm4, %vm4335_vm13 }
 0x3ca   : > { %v6170_v46 = vsel %vm18832_vm14, %v6169_v45, %v15690_v56  ;;  %vm4365_vm9 = vweird.f32 %v15764_v44  ;;  %vm4354_vm6 = vweird.f32 %v15717_v50  ;;  %vm18833_vm7 = vcmask 523712   ;;  %vm15854_vm11 = vmor %vm4324_vm1, %vm4325_vm15 }
 0x3cb   : > { %v6172_v27 = vsel %vm18833_vm7, %v6171_v40, %v6170_v46  ;;  %v4333_v24 = vmul.f32 %v15730_v21, %v4332_v36  ;;  %v4317_v29 = vsel %vm4316_vm10, %v15741_v58, %v4313_v11  ;;  %v4351_v15 = vmul.f32 0.5, %v4350_v51  ;;  %v1912_v58 = vpop.xlane.xlu1 %1911  ;;  %vm15867_vm13 = vmor %vm4364_vm5, %vm4365_vm9 }
 0x3cc   : > { %vm18836_vm14 = vcmask 589312   ;;  %v6175_v61 = vperm.slane %v4317_v29, %v18837_v55  ;;  %v4362_v34 = vsub.f32 1.5, %v4361_v26  ;;  %v4340_v37 = vmul.f32 %v15790_v20, %v4339_v5 }
 0x3cd   : > { %v6174_v53 = vsel %vm18836_vm14, %v6173_v38, %v6172_v27  ;;  %v4323_v40 = vmul.f32 %v15735_v30, %v4322_v8  ;;  %v2027_v22 = vadd.f32 %v1265_v63, %v15701_v62  ;;  %v2030_v11 = vadd.f32 %v15697_v60, %v15676_v33  ;;  %v1951_v45 = vpop.xlane.xlu0 %1950 }
 0x3ce   : > { %v15836_v28 = vmax.f32 %v15723_v6, 1e-24  ;;  %v15839_v36 = vsel %vm17891_vm3, %v6175_v61, %v6174_v53  ;;  %v4352_v17 = vsub.f32 1.5, %v4351_v15  ;;  %v4341_v38 = vmul.f32 0.5, %v4340_v37  ;;  %v1954_v6 = vpop.xlane.xlu2 %1953 }
 0x3cf   : > { %v15842_v26 = vmax.f32 %v15693_v54, 1e-24  ;;  %v4337_v8 = vsel %vm15824_vm8, %v15730_v21, %v4333_v24  ;;  %vm4355_vm4 = vweird.f32 %v15776_v39  ;;  %vm4344_vm12 = vweird.f32 %v15719_v57  ;;  %2028 = vadd.xlane.f32.xlu0 %v2027_v22  ;;  %2031 = vadd.xlane.f32.xlu2 %v2030_v11 }
 0x3d0   : > { %7231 = vrsqrt.f32 %v15836_v28  ;;  %v4363_v54 = vmul.f32 %v15764_v44, %v4362_v34  ;;  %v4342_v60 = vsub.f32 1.5, %v4341_v38  ;;  %v15861_v62 = vmax.f32 %v15728_v42, 1e-24  ;;  %vm15919_vm15 = vmor %vm4354_vm6, %vm4355_vm4 }
 0x3d1   : > { %7233 = vrsqrt.f32 %v15842_v26  ;;  %vm4345_vm1 = vweird.f32 %v15790_v20  ;;  %v2033_v18 = vadd.f32 %v15666_v25, %v15654_v12  ;;  %v1991_v63 = vadd.f32 %v15362_v16, %v15336_v7 }
 0x3d2   : > { %v2036_v42 = vadd.f32 %v15435_v0, %v15431_v10  ;;  %v4327_v52 = vsel %vm15854_vm11, %v15735_v30, %v4323_v40  ;;  %v4353_v51 = vmul.f32 %v15776_v39, %v4352_v17  ;;  %v4343_v5 = vmul.f32 %v15790_v20, %v4342_v60  ;;  %v18842_v10 = vld [vmem:[#allocation57_spill] sm:$0xff]  ;;  %v18843_v0 = vld [vmem:[#allocation28_spill] sm:$0xff]  ;;  %v18844_v30 = vld [vmem:[#allocation35_spill] sm:$0xff] }
 0x3d3   : > { %7235 = vrsqrt.f32 %v15861_v62  ;;  %2034 = vadd.xlane.f32.xlu1 %v2033_v18  ;;  %v15884_v46 = vmax.f32 %v1948_v9, 1e-24  ;;  %v15887_v12 = vmax.f32 %v15774_v19, 1e-24  ;;  %v15889_v7 = vmax.f32 %v1906_v31, 1e-24  ;;  %vm15905_vm5 = vmor %vm4344_vm12, %vm4345_vm1 }
 0x3d4   : > { %v2039_v16 = vadd.f32 %v15370_v4, %v15366_v59  ;;  %v15895_v25 = vmul.f32 %v18843_v0, %v18842_v10  ;;  %7237 = vrsqrt.f32 %v18844_v30  ;;  %v4367_v27 = vsel %vm15867_vm13, %v15764_v44, %v4363_v54 }
 0x3d5   : > { %v15909_v9 = vmax.f32 %v1954_v6, 1e-24  ;;  %v6179_v4 = vperm.slane %v4337_v8, %v18633_v2  ;;  %v6177_v31 = vperm.slane %v4327_v52, %v18634_v13  ;;  %v4347_v57 = vsel %vm15905_vm5, %v15790_v20, %v4343_v5  ;;  %v15974_v21 = vpop.xlane.xlu0 %1914 }
 0x3d6   : > { %v15911_v59 = vpop.eup %7231  ;;  %7239 = vrsqrt.f32 %v15884_v46  ;;  %v4357_v29 = vsel %vm15919_vm15, %v15776_v39, %v4353_v51  ;;  %v15935_v50 = vmax.f32 %v1912_v58, 1e-24  ;;  %v15938_v56 = vperm.slane %v4367_v27, %v18637_v47  ;;  %v15944_v39 = vpop.xlane.xlu1 %1956  ;;  %v18866_v51 = vld [vmem:[#allocation15_spill] sm:$0xff] }
 0x3d7   : > { %v15927_v24 = vpop.eup %7233  ;;  %v4389_v15 = vmul.f32 %v15911_v59, %v15836_v28  ;;  %7241 = vrsqrt.f32 %v15887_v12  ;;  %vm4394_vm10 = vweird.f32 %v15836_v28  ;;  %1992 = vadd.xlane.f32.xlu0 %v1991_v63  ;;  %2037 = vadd.xlane.f32.xlu2 %v2036_v42  ;;  %v6181_v61 = vperm.slane %v4347_v57, %v18646_v48  ;;  %v15966_v8 = vpop.xlane.xlu2 %1995 }
 0x3d8   : > { %v4379_v20 = vmul.f32 %v15927_v24, %v15842_v26  ;;  %7243 = vrsqrt.f32 %v15889_v7  ;;  %v15951_v37 = vmax.f32 %v1951_v45, 1e-24  ;;  %v15954_v40 = vperm.slane %v4357_v29, %v18780_v43 }
 0x3d9   : > { %v15946_v53 = vpop.eup %7235  ;;  %v4390_v34 = vmul.f32 %v15911_v59, %v4389_v15  ;;  %7245 = vrsqrt.f32 %v15909_v9  ;;  %vm4384_vm9 = vweird.f32 %v15842_v26  ;;  %vm4395_vm6 = vweird.f32 %v15911_v59 }
 0x3da   : > { %v4380_v22 = vmul.f32 %v15927_v24, %v4379_v20  ;;  %v4369_v11 = vmul.f32 %v15946_v53, %v15861_v62  ;;  %v15960_v58 = vpop.eup %7237  ;;  %7247 = vrsqrt.f32 %v15935_v50  ;;  %vm18849_vm7 = vcmask 720512   ;;  %vm15988_vm11 = vmor %vm4394_vm10, %vm4395_vm6 }
 0x3db   : > { %v4391_v17 = vmul.f32 0.5, %v4390_v34  ;;  %v6178_v38 = vsel %vm18849_vm7, %v6177_v31, %v15839_v36  ;;  %vm4374_vm8 = vweird.f32 %v15861_v62  ;;  %vm4414_vm14 = vweird.f32 %v15887_v12  ;;  %2040 = vadd.xlane.f32.xlu1 %v2039_v16 }
 0x3dc   : > { %v15968_v33 = vpop.eup %7239  ;;  %v4381_v54 = vmul.f32 0.5, %v4380_v22  ;;  %v4370_v60 = vmul.f32 %v15946_v53, %v4369_v11  ;;  %vm18850_vm4 = vcmask 786112   ;;  %7249 = vrsqrt.f32 %v15951_v37 }
 0x3dd   : > { %v6180_v6 = vsel %vm18850_vm4, %v6179_v4, %v6178_v38  ;;  %v15976_v18 = vpop.eup %7241  ;;  %v4392_v63 = vsub.f32 1.5, %v4391_v17  ;;  %v4539_v36 = vmul.f32 %v15968_v33, %v15884_v46  ;;  %vm18851_vm12 = vcmask 851712  }
 0x3de   : > { %v6182_v42 = vsel %vm18851_vm12, %v6181_v61, %v6180_v6  ;;  %v7542_v45 = vmov 0   ;;  %v15982_v52 = vpop.eup %7243  ;;  %v4382_v5 = vsub.f32 1.5, %v4381_v54  ;;  %vm4385_vm13 = vweird.f32 %v15927_v24 }
 0x3df   : > { %6818 = vset.pattern.permute.xlu0 %v7542_v45  ;;  %v4371_v16 = vmul.f32 0.5, %v4370_v60  ;;  %vm4544_vm1 = vweird.f32 %v15884_v46  ;;  %v4409_v10 = vmul.f32 %v15976_v18, %v15887_v12  ;;  %v15996_v27 = vpop.eup %7245  ;;  %v4393_v19 = vmul.f32 %v15911_v59, %v4392_v63  ;;  %vm4386_vm6 = vmor %vm4384_vm9, %vm4385_vm13 }
 0x3e0   : > { %vm4375_vm5 = vweird.f32 %v15946_v53  ;;  %v4540_v28 = vmul.f32 %v15968_v33, %v4539_v36  ;;  %v4399_v4 = vmul.f32 %v15982_v52, %v15889_v7  ;;  %vm4404_vm15 = vweird.f32 %v15889_v7  ;;  %v16009_v15 = vpop.eup %7247 }
 0x3e1   : > { %vm4564_vm10 = vweird.f32 %v15909_v9  ;;  %v4383_v31 = vmul.f32 %v15927_v24, %v4382_v5  ;;  %v4372_v44 = vsub.f32 1.5, %v4371_v16  ;;  %v4410_v57 = vmul.f32 %v15976_v18, %v4409_v10  ;;  %v1960_v10 = vpop.xlane.xlu2 %1959 }
 0x3e2   : > { %v4559_v29 = vmul.f32 %v15996_v27, %v15909_v9  ;;  %v4397_v20 = vsel %vm15988_vm11, %v15911_v59, %v4393_v19  ;;  %v4541_v61 = vmul.f32 0.5, %v4540_v28  ;;  %vm4545_vm7 = vweird.f32 %v15968_v33  ;;  %v16024_v59 = vpop.xlane.xlu1 %1917  ;;  %v16026_v54 = vpop.eup %7249  ;;  %vm16039_vm11 = vmor %vm4374_vm8, %vm4375_vm5 }
 0x3e3   : > { %v4400_v34 = vmul.f32 %v15982_v52, %v4399_v4  ;;  %v6190_v22 = vperm.slane %v4397_v20, %v18796_v35  ;;  %v4387_v11 = vsel %vm4386_vm6, %v15927_v24, %v4383_v31  ;;  %v4373_v17 = vmul.f32 %v15946_v53, %v4372_v44  ;;  %v1999_v31 = vpop.xlane.xlu0 %1998 }
 0x3e4   : > { %v4411_v38 = vmul.f32 0.5, %v4410_v57  ;;  %vm4424_vm4 = vweird.f32 %v15935_v50  ;;  %v6189_v26 = vperm.slane %v4387_v11, %v18798_v49  ;;  %vm4415_vm9 = vweird.f32 %v15976_v18 }
 0x3e5   : > { %v4401_v60 = vmul.f32 0.5, %v4400_v34  ;;  %v4560_v6 = vmul.f32 %v15996_v27, %v4559_v29  ;;  %v4542_v63 = vsub.f32 1.5, %v4541_v61  ;;  %vm4405_vm12 = vweird.f32 %v15982_v52  ;;  %vm4416_vm8 = vmor %vm4414_vm14, %vm4415_vm9 }
 0x3e6   : > { %v4412_v36 = vsub.f32 1.5, %v4411_v38  ;;  %v4419_v24 = vmul.f32 %v16009_v15, %v15935_v50  ;;  %v6191_v45 = vsel %vm17892_vm0, %v6190_v22, %v6189_v26  ;;  %vm4565_vm13 = vweird.f32 %v15996_v27  ;;  %vm16070_vm14 = vmor %vm4544_vm1, %vm4545_vm7  ;;  %v6448_v50 = vld [vmem:[%s17668_s2] sm:$0xff] }
 0x3e7   : > { %v4402_v5 = vsub.f32 1.5, %v4401_v60  ;;  %v4561_v16 = vmul.f32 0.5, %v4560_v6  ;;  %v4377_v19 = vsel %vm16039_vm11, %v15946_v53, %v4373_v17  ;;  %v4549_v62 = vmul.f32 %v16026_v54, %v15951_v37  ;;  %vm4406_vm11 = vmor %vm4404_vm15, %vm4405_vm12 }
 0x3e8   : > { %v4413_v28 = vmul.f32 %v15976_v18, %v4412_v36  ;;  %v4420_v4 = vmul.f32 %v16009_v15, %v4419_v24  ;;  %vm4425_vm5 = vweird.f32 %v16009_v15  ;;  %vm18856_vm6 = vcmask 917312   ;;  %vm16084_vm15 = vmor %vm4564_vm10, %vm4565_vm13 }
 0x3e9   : > { %v4403_v44 = vmul.f32 %v15982_v52, %v4402_v5  ;;  %v4562_v57 = vsub.f32 1.5, %v4561_v16  ;;  %v6184_v53 = vsel %vm18856_vm6, %v15954_v40, %v6182_v42  ;;  %v4543_v29 = vmul.f32 %v15968_v33, %v4542_v63  ;;  %vm4426_vm7 = vmor %vm4424_vm4, %vm4425_vm5 }
 0x3ea   : > { %v4417_v20 = vsel %vm4416_vm8, %v15976_v18, %v4413_v28  ;;  %v4421_v61 = vmul.f32 0.5, %v4420_v4  ;;  %v4550_v12 = vmul.f32 %v16026_v54, %v4549_v62  ;;  %vm18859_vm9 = vcmask 982912   ;;  %v1921_v36 = vpop.xlane.xlu1 %1920 }
 0x3eb   : > { %v6194_v40 = vperm.slane %v4417_v20, %v18809_v23  ;;  %v4407_v18 = vsel %vm4406_vm11, %v15982_v52, %v4403_v44  ;;  %v4563_v42 = vmul.f32 %v15996_v27, %v4562_v57  ;;  %v6186_v7 = vsel %vm18859_vm9, %v15938_v56, %v6184_v53  ;;  %v2002_v4 = vpop.xlane.xlu0 %2001 }
 0x3ec   : > { %v6192_v22 = vperm.slane %v4407_v18, %v18794_v41  ;;  %v4422_v11 = vsub.f32 1.5, %v4421_v61  ;;  %v4551_v17 = vmul.f32 0.5, %v4550_v12  ;;  %v6187_v52 = vperm.slane %v4377_v19, %v18791_v3 }
 0x3ed   : > { %vm4555_vm1 = vweird.f32 %v16026_v54  ;;  %v16091_v38 = vmax.f32 %v15966_v8, 1e-24  ;;  %v16094_v56 = vmax.f32 %v15944_v39, 1e-24  ;;  %v16097_v26 = vmax.f32 %v15974_v21, 1e-24 }
 0x3ee   : > { %v4547_v9 = vsel %vm16070_vm14, %v15968_v33, %v4543_v29  ;;  %vm18862_vm10 = vcmask 195712   ;;  %v4423_v6 = vmul.f32 %v16009_v15, %v4422_v11  ;;  %v4552_v63 = vsub.f32 1.5, %v4551_v17  ;;  %v18868_v29 = vld [vmem:[#allocation55_spill] sm:$0xff] }
 0x3ef   : > { %v6193_v60 = vsel %vm18862_vm10, %v6192_v22, %v6191_v45  ;;  %v4567_v8 = vsel %vm16084_vm15, %v15996_v27, %v4563_v42  ;;  %vm18863_vm12 = vcmask 261312   ;;  %vm18864_vm13 = vcmask 1048512   ;;  %vm18869_vm6 = vmmov %vm18862_vm10 }
 0x3f0   : > { %v6195_v39 = vsel %vm18863_vm12, %v6194_v40, %v6193_v60  ;;  %v16113_v21 = vsel %vm18864_vm13, %v6187_v52, %v6186_v7  ;;  %7251 = vrsqrt.f32 %v16091_v38  ;;  %v4427_v33 = vsel %vm4426_vm7, %v16009_v15, %v4423_v6  ;;  %v1963_v15 = vpop.xlane.xlu2 %1962 }
 0x3f1   : > { %18865 = vst [vmem:[#allocation30_spill] sm:$0xff] %v16113_v21  ;;  %v4553_v24 = vmul.f32 %v16026_v54, %v4552_v63  ;;  %vm4554_vm8 = vweird.f32 %v15951_v37  ;;  %7253 = vrsqrt.f32 %v16094_v56  ;;  %v3409_v27 = vmul.f32 %v15960_v58, %v18844_v30 }
 0x3f2   : > { %v6220_v45 = vperm.slane %v4547_v9, %v18798_v49  ;;  %v6196_v5 = vperm.slane %v4427_v33, %v18866_v51  ;;  %vm4556_vm4 = vmor %vm4554_vm8, %vm4555_vm1  ;;  %7255 = vrsqrt.f32 %v16097_v26  ;;  %v6223_v37 = vperm.slane %v4567_v8, %v18794_v41  ;;  %v1924_v11 = vpop.xlane.xlu1 %1923 }
 0x3f3   : > { %v4557_v16 = vsel %vm4556_vm4, %v16026_v54, %v4553_v24  ;;  %v6465_v19 = vstv %s6732_s0  ;;  %v16133_v28 = vmax.f32 %v1960_v10, 1e-24  ;;  %vm18867_vm5 = vcmask 326912  }
 0x3f4   : > { %v16136_v62 = vsel %vm18867_vm5, %v6196_v5, %v6195_v39  ;;  %v6221_v44 = vperm.slane %v4557_v16, %v18796_v35  ;;  %v6466_v57 = vsub.s32 %v6448_v50, %v6465_v19  ;;  %v16140_v53 = vmax.f32 %v16024_v59, 1e-24 }
 0x3f5   : > { %v16143_v20 = vmul.f32 0.5, %v18868_v29  ;;  %7257 = vrsqrt.f32 %v16133_v28  ;;  %v16146_v61 = vmax.f32 %v1999_v31, 1e-24  ;;  %v16148_v54 = vmax.f32 %v1963_v15, 1e-24 }
 0x3f6   : > { %v16150_v10 = vpop.eup %7251  ;;  %v16153_v12 = vmul.f32 0.5, %v15895_v25  ;;  %v16156_v34 = vmul.f32 %v15960_v58, %v3409_v27  ;;  %v6222_v59 = vsel %vm17892_vm0, %v6221_v44, %v6220_v45  ;;  %6468 = vperm.xlu0 %6818, %v6466_v57   ;;  %7259 = vrsqrt.f32 %v16140_v53  ;;  %v16205_v45 = vpop.xlane.xlu0 %2004 }
 0x3f7   : > { %v16160_v40 = vpop.eup %7253  ;;  %v4699_v31 = vmul.f32 %v16150_v10, %v16091_v38  ;;  %v16165_v18 = vsel %vm18869_vm6, %v6223_v37, %v6222_v59  ;;  %7261 = vrsqrt.f32 %v16146_v61  ;;  %v16168_v25 = vmax.f32 %v1921_v36, 1e-24 }
 0x3f8   : > { %v16170_v42 = vpop.eup %7255  ;;  %vm4704_vm11 = vweird.f32 %v16091_v38  ;;  %v4569_v7 = vmul.f32 %v16160_v40, %v16094_v56  ;;  %vm4574_vm14 = vweird.f32 %v16094_v56  ;;  %7263 = vrsqrt.f32 %v16148_v54  ;;  %v16218_v57 = vpop.xlane.xlu2 %1965  ;;  %v18875_v56 = vld [vmem:[#allocation20_spill] sm:$0xff] }
 0x3f9   : > { %v4700_v22 = vmul.f32 %v16150_v10, %v4699_v31  ;;  %v4429_v46 = vmul.f32 %v16170_v42, %v16097_v26  ;;  %vm4434_vm9 = vweird.f32 %v16097_v26  ;;  %vm4584_vm15 = vweird.f32 %v16133_v28 }
 0x3fa   : > { %vm4705_vm1 = vweird.f32 %v16150_v10  ;;  %v4570_v17 = vmul.f32 %v16160_v40, %v4569_v7  ;;  %vm4575_vm10 = vweird.f32 %v16160_v40  ;;  %vm4444_vm7 = vweird.f32 %v16140_v53 }
 0x3fb   : > { %v16186_v52 = vmax.f32 %v2002_v4, 1e-24  ;;  %v16188_v9 = vpop.eup %7257  ;;  %v4701_v60 = vmul.f32 0.5, %v4700_v22  ;;  %v4430_v6 = vmul.f32 %v16170_v42, %v4429_v46  ;;  %vm4435_vm12 = vweird.f32 %v16170_v42  ;;  %vm16224_vm6 = vmor %vm4704_vm11, %vm4705_vm1  ;;  %v18872_v46 = vld [vmem:[#allocation62_spill] sm:$0xff] }
 0x3fc   : > { %7265 = vrsqrt.f32 %v16168_v25  ;;  %v16193_v63 = vpop.eup %7259  ;;  %v4571_v36 = vmul.f32 0.5, %v4570_v17  ;;  %v4579_v8 = vmul.f32 %v16188_v9, %v16133_v28  ;;  %vm4594_vm13 = vweird.f32 %v16148_v54  ;;  %vm4576_vm11 = vmor %vm4574_vm14, %vm4575_vm10 }
 0x3fd   : > { %v16198_v39 = vmax.f32 %v1924_v11, 1e-24  ;;  %v16200_v33 = vpop.eup %7261  ;;  %v4702_v24 = vsub.f32 1.5, %v4701_v60  ;;  %v4431_v50 = vmul.f32 0.5, %v4430_v6  ;;  %vm4585_vm8 = vweird.f32 %v16188_v9  ;;  %vm16246_vm1 = vmor %vm4434_vm9, %vm4435_vm12 }
 0x3fe   : > { %v4439_v27 = vmul.f32 %v16193_v63, %v16140_v53  ;;  %v16207_v5 = vpop.eup %7263  ;;  %v4572_v15 = vsub.f32 1.5, %v4571_v36  ;;  %v4580_v37 = vmul.f32 %v16188_v9, %v4579_v8  ;;  %v4709_v16 = vmul.f32 %v16200_v33, %v16146_v61  ;;  %vm16263_vm9 = vmor %vm4584_vm15, %vm4585_vm8 }
 0x3ff   : > { %7267 = vrsqrt.f32 %v16186_v52  ;;  %v4432_v19 = vsub.f32 1.5, %v4431_v50  ;;  %vm4445_vm5 = vweird.f32 %v16193_v63  ;;  %v4589_v44 = vmul.f32 %v16207_v5, %v16148_v54  ;;  %v18876_v50 = vld [vmem:[#allocation60_spill] sm:$0xff] }
 0x400   : > { %v4440_v4 = vmul.f32 %v16193_v63, %v4439_v27  ;;  %v4573_v59 = vmul.f32 %v16160_v40, %v4572_v15  ;;  %v4581_v31 = vmul.f32 0.5, %v4580_v37  ;;  %v4710_v7 = vmul.f32 %v16200_v33, %v4709_v16  ;;  %v18877_v27 = vld [vmem:[#allocation37_spill] sm:$0xff]  ;;  %vm4446_vm8 = vmor %vm4444_vm7, %vm4445_vm5 }
 0x401   : > { %vm4715_vm3 = vweird.f32 %v16200_v33  ;;  %v4703_v11 = vmul.f32 %v16150_v10, %v4702_v24  ;;  %v4433_v38 = vmul.f32 %v16170_v42, %v4432_v19  ;;  %v4590_v60 = vmul.f32 %v16207_v5, %v4589_v44  ;;  %v16267_v19 = vpop.xlane.xlu1 %1926  ;;  %v18880_v44 = vld [vmem:[#allocation23_spill] sm:$0xff] }
 0x402   : > { %v16231_v22 = vpop.eup %7265  ;;  %v4441_v17 = vmul.f32 0.5, %v4440_v4  ;;  %v4577_v6 = vsel %vm4576_vm11, %v16160_v40, %v4573_v59  ;;  %v4582_v8 = vsub.f32 1.5, %v4581_v31  ;;  %v4711_v24 = vmul.f32 0.5, %v4710_v7  ;;  %v18881_v59 = vld [vmem:[#allocation61_spill] sm:$0xff] }
 0x403   : > { %vm4595_vm0 = vweird.f32 %v16207_v5  ;;  %vm4454_vm14 = vweird.f32 %v16168_v25  ;;  %vm3375_vm4 = vweird.f32 %v18876_v50  ;;  %vm3354_vm11 = vweird.f32 %v18877_v27  ;;  %v18882_v31 = vld [vmem:[#allocation17_spill] sm:$0xff] }
 0x404   : > { %v6225_v40 = vperm.slane %v4577_v6, %v18809_v23  ;;  %v4437_v26 = vsel %vm16246_vm1, %v16170_v42, %v4433_v38  ;;  %v4442_v37 = vsub.f32 1.5, %v4441_v17  ;;  %v4591_v16 = vmul.f32 0.5, %v4590_v60 }
 0x405   : > { %v16269_v4 = vpop.eup %7267  ;;  %vm3364_vm12 = vweird.f32 %v18880_v44  ;;  %vm3365_vm10 = vweird.f32 %v18881_v59  ;;  %v6198_v42 = vperm.slane %v4437_v26, %v18882_v31  ;;  %v4583_v7 = vmul.f32 %v16188_v9, %v4582_v8 }
 0x406   : > { %v4712_v38 = vsub.f32 1.5, %v4711_v24  ;;  %v4449_v28 = vmul.f32 %v16231_v22, %v16168_v25  ;;  %v4707_v17 = vsel %vm16224_vm6, %v16150_v10, %v4703_v11  ;;  %vm18883_vm15 = vcmask 261312   ;;  %vm16297_vm6 = vmor %vm4594_vm13, %vm4595_vm0  ;;  %v16311_v11 = vpop.xlane.xlu0 %2007  ;;  %v18906_v25 = vld [vmem:[#allocation40_spill] sm:$0xff] }
 0x407   : > { %v6226_v60 = vsel %vm18883_vm15, %v6225_v40, %v16165_v18  ;;  %v4443_v6 = vmul.f32 %v16193_v63, %v4442_v37  ;;  %v4592_v36 = vsub.f32 1.5, %v4591_v16  ;;  %vm18884_vm1 = vcmask 392512  }
 0x408   : > { %v6199_v8 = vsel %vm18884_vm1, %v6198_v42, %v16136_v62  ;;  %v4587_v24 = vsel %vm16263_vm9, %v16188_v9, %v4583_v7  ;;  %v4713_v10 = vmul.f32 %v16200_v33, %v4712_v38  ;;  %v4450_v53 = vmul.f32 %v16231_v22, %v4449_v28  ;;  %v16322_v7 = vpop.xlane.xlu2 %1968  ;;  %v18889_v38 = vld [vmem:[#allocation64_spill] sm:$0xff]  ;;  %v18890_v28 = vld [vmem:[#allocation43_spill] sm:$0xff] }
 0x409   : > { %v6227_v29 = vperm.slane %v4587_v24, %v18866_v51  ;;  %v4447_v62 = vsel %vm4446_vm8, %v16193_v63, %v4443_v6  ;;  %vm18887_vm7 = vweird.f32 %v16146_v61  ;;  %v4593_v9 = vmul.f32 %v16207_v5, %v4592_v36 }
 0x40a   : > { %vm4716_vm5 = vmor %vm18887_vm7, %vm4715_vm3  ;;  %v4719_v54 = vmul.f32 %v16269_v4, %v16186_v52  ;;  %v6251_v40 = vperm.slane %v4707_v17, %v18798_v49  ;;  %v6200_v26 = vperm.slane %v4447_v62, %v18831_v32  ;;  %v4451_v37 = vmul.f32 0.5, %v4450_v53 }
 0x40b   : > { %v4717_v15 = vsel %vm4716_vm5, %v16200_v33, %v4713_v10  ;;  %vm18888_vm0 = vcmask 326912   ;;  %v4597_v61 = vsel %vm16297_vm6, %v16207_v5, %v4593_v9  ;;  %vm3394_vm3 = vweird.f32 %v18889_v38  ;;  %v18894_v5 = vld [vmem:[#allocation58_spill] sm:$0xff] }
 0x40c   : > { %v6228_v63 = vsel %vm18888_vm0, %v6227_v29, %v6226_v60  ;;  %v6252_v16 = vperm.slane %v4717_v15, %v18796_v35  ;;  %v4720_v42 = vmul.f32 %v16269_v4, %v4719_v54  ;;  %vm3384_vm13 = vweird.f32 %v18890_v28  ;;  %v18892_v35 = vld [vmem:[#allocation65_spill] sm:$0xff]  ;;  %v18900_v29 = vld [vmem:[#allocation63_spill] sm:$0xff] }
 0x40d   : > { %vm18891_vm9 = vcmask 458112   ;;  %v6229_v33 = vperm.slane %v4597_v61, %v18882_v31  ;;  %v4452_v6 = vsub.f32 1.5, %v4451_v37  ;;  %vm4455_vm15 = vweird.f32 %v16231_v22  ;;  %v16358_v37 = vpop.xlane.xlu1 %1929 }
 0x40e   : > { %v6201_v17 = vsel %vm18891_vm9, %v6200_v26, %v6199_v8  ;;  %v18893_v60 = vsub.f32 1.5, %v18892_v35  ;;  %v18895_v24 = vsub.f32 1.5, %v18894_v5  ;;  %vm18896_vm8 = vcmask 130112   ;;  %vm4456_vm0 = vmor %vm4454_vm14, %vm4455_vm15 }
 0x40f   : > { %v6253_v18 = vsel %vm18896_vm8, %v6252_v16, %v6251_v40  ;;  %v4721_v53 = vmul.f32 0.5, %v4720_v42  ;;  %vm18897_vm1 = vweird.f32 %v18872_v46  ;;  %vm3404_vm7 = vweird.f32 %v18900_v29  ;;  %v18902_v40 = vld [vmem:[#allocation50_spill] sm:$0xff]  ;;  %vm16383_vm14 = vmor %vm3364_vm12, %vm3365_vm10 }
 0x410   : > { %v3373_v36 = vmul.f32 %v18876_v50, %v18893_v60  ;;  %v3363_v10 = vmul.f32 %v18881_v59, %v18895_v24  ;;  %vm16340_vm6 = vmor %vm3354_vm11, %vm18897_vm1  ;;  %v3382_v62 = vsub.f32 1.5, %v16153_v12  ;;  %vm18901_vm5 = vcmask 392512   ;;  %v16360_v12 = vpop.f32.mrf.mxu0  ;;  %v1972_v16 = vpop.xlane.xlu2 %1971 }
 0x411   : > { %v16347_v9 = vsel %vm18901_vm5, %v6229_v33, %v6228_v63  ;;  %v4453_v54 = vmul.f32 %v16231_v22, %v4452_v6  ;;  %7269 = vrsqrt.f32 %v16198_v39  ;;  %v3401_v26 = vmul.f32 0.5, %v18902_v40  ;;  %v16362_v63 = vpop.f32.mrf.mxu1 }
 0x412   : > { %v4722_v27 = vsub.f32 1.5, %v4721_v53  ;;  %vm4725_vm11 = vweird.f32 %v16269_v4  ;;  %v16356_v15 = vmax.f32 %v16205_v45, 1e-24  ;;  %vm18903_vm9 = vweird.f32 %v18875_v56 }
 0x413   : > { %vm16368_vm8 = vmor %vm18903_vm9, %vm3375_vm4  ;;  %v3357_v45 = vsel %vm16340_vm6, %v18872_v46, %v18906_v25  ;;  %v3392_v61 = vsub.f32 1.5, %v16143_v20  ;;  %v3411_v42 = vmul.f32 0.5, %v16156_v34  ;;  %v4457_v33 = vsel %vm4456_vm0, %v16231_v22, %v4453_v54  ;;  %v16391_v20 = vpop.f32.mrf.mxu2  ;;  %v18909_v34 = vld [vmem:[#allocation27_spill] sm:$0xff]  ;;  %v18910_v22 = vld [vmem:[#allocation70_spill] sm:$0xff]  ;;  %v16410_v54 = vpop.xlane.xlu0 %2010 }
 0x414   : > { %v6202_v6 = vperm.slane %v4457_v33, %v18829_v14  ;;  %v4723_v35 = vmul.f32 %v16269_v4, %v4722_v27  ;;  %vm4724_vm4 = vweird.f32 %v16186_v52  ;;  %7271 = vrsqrt.f32 %v16356_v15  ;;  %v16403_v52 = vpop.f32.mrf.mxu3  ;;  %v18916_v25 = vld [vmem:[#allocation52_spill] sm:$0xff] }
 0x415   : > { %vm18911_vm15 = vcmask 523712   ;;  %v3367_v44 = vsel %vm16383_vm14, %v18881_v59, %v3363_v10  ;;  %v3383_v60 = vmul.f32 %v18843_v0, %v3382_v62  ;;  %vm3385_vm10 = vweird.f32 %v18843_v0  ;;  %vm4726_vm12 = vmor %vm4724_vm4, %vm4725_vm11  ;;  %v18913_v62 = vld [vmem:[#allocation59_spill] sm:$0xff] }
 0x416   : > { %v5986_v46 = vsel %vm18911_vm15, %v18910_v22, %v18909_v34  ;;  %v5989_v5 = vperm.slane %v3357_v45, %v18837_v55  ;;  %v3402_v24 = vsub.f32 1.5, %v3401_v26  ;;  %vm18912_vm1 = vmmov %vm18911_vm15  ;;  %v4727_v8 = vsel %vm4726_vm12, %v16269_v4, %v4723_v35  ;;  %v18914_v26 = vld [vmem:[#allocation67_spill] sm:$0xff] }
 0x417   : > { %v16407_v53 = vsel %vm18912_vm1, %v6202_v6, %v6201_v17  ;;  %v16412_v59 = vpop.eup %7269  ;;  %v3377_v10 = vsel %vm16368_vm8, %v18876_v50, %v3373_v36  ;;  %v3393_v40 = vmul.f32 %v18913_v62, %v3392_v61  ;;  %vm3395_vm6 = vweird.f32 %v18913_v62  ;;  %vm16427_vm11 = vmor %vm3384_vm13, %vm3385_vm10 }
 0x418   : > { %v6254_v27 = vperm.slane %v4727_v8, %v18794_v41  ;;  %vm18915_vm5 = vcmask 589312   ;;  %vm3405_vm0 = vweird.f32 %v18916_v25  ;;  %v3412_v50 = vsub.f32 1.5, %v3411_v42  ;;  %vm16452_vm8 = vmor %vm3394_vm3, %vm3395_vm6  ;;  %v16462_v35 = vpop.f32.mrf.mxu0 }
 0x419   : > { %v5988_v17 = vsel %vm18915_vm5, %v18914_v26, %v5986_v46  ;;  %v4459_v36 = vmul.f32 %v16412_v59, %v16198_v39  ;;  %v5991_v41 = vperm.slane %v3367_v44, %v18634_v13  ;;  %v3387_v45 = vsel %vm16427_vm11, %v18843_v0, %v3383_v60  ;;  %v16464_v34 = vpop.f32.mrf.mxu1  ;;  %vm16472_vm3 = vmor %vm3404_vm7, %vm3405_vm0 }
 0x41a   : > { %vm18919_vm9 = vcmask 195712   ;;  %v16441_v28 = vmax.f32 %v16218_v57, 1e-24  ;;  %v16443_v33 = vpop.eup %7271  ;;  %v5993_v42 = vperm.slane %v3377_v10, %v18633_v2  ;;  %vm18920_vm13 = vcmask 654912  }
 0x41b   : > { %v16438_v61 = vsel %vm18919_vm9, %v6254_v27, %v6253_v18  ;;  %v5990_v56 = vsel %vm18920_vm13, %v5989_v5, %v5988_v17  ;;  %v3403_v6 = vmul.f32 %v18916_v25, %v3402_v24  ;;  %v4460_v18 = vmul.f32 %v16412_v59, %v4459_v36  ;;  %v16481_v24 = vpop.xlane.xlu1 %1932  ;;  %v5155_v10 = vpop.f32.mrf.mxu2 }
 0x41c   : > { %v3397_v57 = vsel %vm16452_vm8, %v18913_v62, %v3393_v40  ;;  %vm3414_vm14 = vweird.f32 %v18844_v30  ;;  %vm3415_vm4 = vweird.f32 %v15960_v58  ;;  %v4729_v38 = vmul.f32 %v16443_v33, %v16356_v15  ;;  %v5175_v40 = vpop.f32.mrf.mxu3  ;;  %v16514_v36 = vpop.xlane.xlu0 %2013 }
 0x41d   : > { %v5995_v46 = vperm.slane %v3387_v45, %v18646_v48  ;;  %v3413_v44 = vmul.f32 %v15960_v58, %v3412_v50  ;;  %v4461_v60 = vmul.f32 0.5, %v4460_v18  ;;  %v16479_v5 = vmax.f32 %v16322_v7, 1e-24  ;;  %vm16502_vm12 = vmor %vm3414_vm14, %vm3415_vm4  ;;  %v18932_v45 = vld [vmem:[#allocation48_spill] sm:$0xff]  ;;  %v16528_v18 = vpop.xlane.xlu2 %1974 }
 0x41e   : > { %vm18925_vm15 = vcmask 720512   ;;  %7273 = vrsqrt.f32 %v16441_v28  ;;  %v4730_v29 = vmul.f32 %v16443_v33, %v4729_v38  ;;  %v16487_v62 = vmax.f32 %v16267_v19, 1e-24 }
 0x41f   : > { %v5992_v8 = vsel %vm18925_vm15, %v5991_v41, %v5990_v56  ;;  %v4462_v27 = vsub.f32 1.5, %v4461_v60  ;;  %vm4464_vm7 = vweird.f32 %v16198_v39  ;;  %vm4465_vm10 = vweird.f32 %v16412_v59  ;;  %v18934_v60 = vld [vmem:[#allocation47_spill] sm:$0xff] }
 0x420   : > { %v16492_v7 = vmax.f32 %v16311_v11, 1e-24  ;;  %v3407_v26 = vsel %vm16472_vm3, %v18916_v25, %v3403_v6  ;;  %v5997_v17 = vperm.slane %v3397_v57, %v18780_v43  ;;  %v4731_v39 = vmul.f32 0.5, %v4730_v29  ;;  %vm4466_vm5 = vmor %vm4464_vm7, %vm4465_vm10  ;;  %v5195_v38 = vpop.f32.mrf.mxu0  ;;  %v18937_v29 = vld [vmem:[#allocation44_spill] sm:$0xff] }
 0x421   : > { %v16506_v4 = vmax.f32 %v1972_v16, 1e-24  ;;  %v3417_v11 = vsel %vm16502_vm12, %v15960_v58, %v3413_v44  ;;  %vm18928_vm1 = vcmask 786112   ;;  %v4463_v25 = vmul.f32 %v16412_v59, %v4462_v27  ;;  %v18931_v58 = vld [vmem:[#allocation12_spill] sm:$0xff]  ;;  %v5215_v22 = vpop.f32.mrf.mxu1 }
 0x422   : > { %v5994_v50 = vsel %vm18928_vm1, %v5993_v42, %v5992_v8  ;;  %7275 = vrsqrt.f32 %v16479_v5  ;;  %vm18929_vm6 = vcmask 851712   ;;  %v4732_v41 = vsub.f32 1.5, %v4731_v39  ;;  %v18935_v8 = vld [vmem:[#allocation46_spill] sm:$0xff]  ;;  %v18938_v27 = vld [vmem:[#allocation32_spill] sm:$0xff] }
 0x423   : > { %v5996_v30 = vsel %vm18929_vm6, %v5995_v46, %v5994_v50  ;;  %vm4735_vm0 = vweird.f32 %v16443_v33  ;;  %7277 = vrsqrt.f32 %v16487_v62  ;;  %v18933_v42 = vsel %vm12363_vm2, %v18931_v58, %v18932_v45  ;;  %v18941_v50 = vld [vmem:[#allocation51_spill] sm:$0xff] }
 0x424   : > { %v5970_v56 = vperm.slane %v18933_v42, %v18791_v3  ;;  %v5999_v6 = vperm.slane %v3407_v26, %v18637_v47  ;;  %v4467_v0 = vsel %vm4466_vm5, %v16412_v59, %v4463_v25  ;;  %7279 = vrsqrt.f32 %v16492_v7  ;;  %v16530_v57 = vpop.eup %7273  ;;  %v5235_v25 = vpop.f32.mrf.mxu2 }
 0x425   : > { %v6204_v46 = vperm.slane %v4467_v0, %v18830_v1  ;;  %v4733_v44 = vmul.f32 %v16443_v33, %v4732_v41  ;;  %vm4734_vm11 = vweird.f32 %v16356_v15  ;;  %7281 = vrsqrt.f32 %v16506_v4  ;;  %v5255_v0 = vpop.f32.mrf.mxu3 }
 0x426   : > { %vm18936_vm2 = vcmask 982912   ;;  %vm18940_vm13 = vcmask 917312   ;;  %v6001_v39 = vperm.slane %v3417_v11, %v18791_v3  ;;  %vm4736_vm8 = vmor %vm4734_vm11, %vm4735_vm0  ;;  %vm18942_vm14 = vcmask 1048512   ;;  %v18944_v11 = vld [vmem:[#allocation11_spill] sm:$0xff] }
 0x427   : > { %v5907_v59 = vsel %vm18936_vm2, %v18935_v8, %v18934_v60  ;;  %vm18939_vm9 = vmmov %vm18936_vm2  ;;  %v5998_v19 = vsel %vm18940_vm13, %v5997_v17, %v5996_v30  ;;  %vm18943_vm4 = vcmask 589312   ;;  %v4737_v16 = vsel %vm4736_vm8, %v16443_v33, %v4733_v44  ;;  %v18945_v30 = vld [vmem:[#allocation22_spill] sm:$0xff] }
 0x428   : > { %v5969_v26 = vsel %vm18939_vm9, %v18938_v27, %v18937_v29  ;;  %v5909_v15 = vsel %vm18942_vm14, %v18941_v50, %v5907_v59  ;;  %v16550_v41 = vsel %vm18943_vm4, %v6204_v46, %v16407_v53  ;;  %v16554_v58 = vmax.f32 %v16358_v37, 1e-24  ;;  %v16556_v45 = vpop.eup %7275  ;;  %vm18946_vm3 = vmmov %vm18942_vm14  ;;  %v16566_v46 = vpop.xlane.xlu1 %1935 }
 0x429   : > { %v5056_v17 = vadd.f32 %v16362_v63, %v16360_v12  ;;  %v5940_v42 = vsel %vm18946_vm3, %v18945_v30, %v18944_v11  ;;  %v4599_v60 = vmul.f32 %v16530_v57, %v16441_v28  ;;  %v6256_v53 = vperm.slane %v4737_v16, %v18809_v23  ;;  %v16568_v33 = vpop.eup %7277  ;;  %vm18947_vm15 = vmmov %vm18946_vm3  ;;  %v5295_v16 = vpop.f32.mrf.mxu1 }
 0x42a   : > { %v5096_v37 = vadd.f32 %v16403_v52, %v16391_v20  ;;  %v5971_v44 = vsel %vm18947_vm15, %v5970_v56, %v5969_v26  ;;  %v5136_v12 = vadd.f32 %v16464_v34, %v16462_v35  ;;  %vm18948_vm7 = vmmov %vm18936_vm2  ;;  %v16576_v8 = vpop.eup %7279  ;;  %v5176_v29 = vadd.f32 %v5175_v40, %v5155_v10  ;;  %v18951_v34 = vld [vmem:[#allocation21_spill] sm:$0xff]  ;;  %v18953_v10 = vld [vmem:[#allocation39_spill] sm:$0xff] }
 0x42b   : > { %v6000_v63 = vsel %vm18948_vm7, %v5999_v6, %v5998_v19  ;;  %vm18949_vm10 = vmmov %vm18946_vm3  ;;  %vm18950_vm12 = vcmask 261312   ;;  %v16584_v27 = vmax.f32 %v16410_v54, 1e-24  ;;  %v16586_v20 = vpop.eup %7281  ;;  %v5216_v52 = vadd.f32 %v5215_v22, %v5195_v38  ;;  %v18952_v6 = vld [vmem:[#allocation38_spill] sm:$0xff]  ;;  %v18954_v40 = vld [vmem:[#allocation33_spill] sm:$0xff]  ;;  %v16603_v38 = vpop.xlane.xlu0 %2016 }
 0x42c   : > { %v6002_v59 = vsel %vm18949_vm10, %v6001_v39, %v6000_v63  ;;  %v16581_v23 = vsel %vm18950_vm12, %v6256_v53, %v16438_v61  ;;  %v5256_v56 = vadd.f32 %v5255_v0, %v5235_v25  ;;  %v4609_v35 = vmul.f32 %v16556_v45, %v16479_v5  ;;  %v18955_v19 = vld [vmem:[#allocation45_spill] sm:$0xff]  ;;  %v5275_v25 = vpop.f32.mrf.mxu0  ;;  %v5315_v21 = vpop.f32.mrf.mxu2 }
 0x42d   : > { %7283 = vrsqrt.f32 %v16554_v58  ;;  %v16593_v26 = vmul.f32 %v18952_v6, %v18951_v34  ;;  %v16597_v61 = vmul.f32 %v18954_v40, %v18953_v10  ;;  %v16600_v54 = vmul.f32 %v5909_v15, %v18955_v19  ;;  %v18958_v15 = vld [vmem:[#allocation34_spill] sm:$0xff]  ;;  %v18963_v34 = vld [vmem:[#allocation69_spill] sm:$0xff] }
 0x42e   : > { %v4600_v39 = vmul.f32 %v16530_v57, %v4599_v60  ;;  %v16605_v22 = vmul.f32 %v5940_v42, %v5056_v17  ;;  %v16607_v50 = vmul.f32 %v5971_v44, %v5096_v37  ;;  %v4469_v11 = vmul.f32 %v16568_v33, %v16487_v62  ;;  %v1978_v17 = vpop.xlane.xlu2 %1977  ;;  %v18960_v42 = vld [vmem:[#allocation42_spill] sm:$0xff]  ;;  %v18961_v44 = vld [vmem:[#allocation36_spill] sm:$0xff] }
 0x42f   : > { %v4739_v30 = vmul.f32 %v16576_v8, %v16492_v7  ;;  %v16613_v0 = vmul.f32 %v6002_v59, %v5136_v12  ;;  %v16616_v53 = vmul.f32 %v18958_v15, %v5176_v29  ;;  %v4619_v60 = vmul.f32 %v16586_v20, %v16506_v4  ;;  %v5335_v29 = vpop.f32.mrf.mxu3 }
 0x430   : > { %18956 = vst [vmem:[#allocation79_spill] sm:$0xff] %v16607_v50  ;;  %7285 = vrsqrt.f32 %v16584_v27  ;;  %v16623_v63 = vmul.f32 %v18961_v44, %v5216_v52  ;;  %v16626_v6 = vmul.f32 %v18963_v34, %v5256_v56  ;;  %v4610_v12 = vmul.f32 %v16556_v45, %v4609_v35  ;;  %v18965_v44 = vld [vmem:[#allocation68_spill] sm:$0xff] }
 0x431   : > { %18957 = vst [vmem:[#allocation75_spill] sm:$0xff] %v16613_v0  ;;  %v5296_v10 = vadd.f32 %v5295_v16, %v5275_v25  ;;  %v4601_v40 = vmul.f32 0.5, %v4600_v39  ;;  %v4470_v52 = vmul.f32 %v16568_v33, %v4469_v11  ;;  %v4740_v56 = vmul.f32 %v16576_v8, %v4739_v30  ;;  %v16641_v25 = vpop.xlane.xlu1 %1938 }
 0x432   : > { %18959 = vst [vmem:[#allocation85_spill] sm:$0xff] %v16616_v53  ;;  %v4620_v39 = vmul.f32 %v16586_v20, %v4619_v60  ;;  %v4611_v15 = vmul.f32 0.5, %v4610_v12  ;;  %v16646_v11 = vmax.f32 %v16528_v18, 1e-24  ;;  %v16656_v60 = vmax.f32 %v16481_v24, 1e-24 }
 0x433   : > { %18962 = vst [vmem:[#allocation86_spill] sm:$0xff] %v16623_v63  ;;  %v16631_v19 = vpop.eup %7283  ;;  %v16651_v59 = vmul.f32 %v18965_v44, %v5296_v10  ;;  %v4602_v35 = vsub.f32 1.5, %v4601_v40  ;;  %v5336_v53 = vadd.f32 %v5335_v29, %v5315_v21  ;;  %v4471_v16 = vmul.f32 0.5, %v4470_v52  ;;  %v16665_v40 = vpop.xlane.xlu0 %2019 }
 0x434   : > { %18964 = vst [vmem:[#allocation78_spill] sm:$0xff] %v16626_v6  ;;  %v4479_v34 = vmul.f32 %v16631_v19, %v16554_v58  ;;  %v4741_v63 = vmul.f32 0.5, %v4740_v56  ;;  %v16659_v12 = vmax.f32 %v16514_v36, 1e-24  ;;  %vm4604_vm1 = vweird.f32 %v16441_v28 }
 0x435   : > { %18966 = vst [vmem:[#allocation49_spill] sm:$0xff] %v16651_v59  ;;  %vm4614_vm6 = vweird.f32 %v16479_v5  ;;  %v4621_v18 = vmul.f32 0.5, %v4620_v39  ;;  %v16663_v10 = vmax.f32 %v1978_v17, 1e-24  ;;  %vm4605_vm5 = vweird.f32 %v16530_v57 }
 0x436   : > { %v16648_v30 = vpop.eup %7285  ;;  %v4612_v44 = vsub.f32 1.5, %v4611_v15  ;;  %7287 = vrsqrt.f32 %v16646_v11  ;;  %v4603_v24 = vmul.f32 %v16530_v57, %v4602_v35  ;;  %vm4615_vm0 = vweird.f32 %v16556_v45  ;;  %v1981_v17 = vpop.xlane.xlu2 %1980  ;;  %vm16681_vm11 = vmor %vm4604_vm1, %vm4605_vm5 }
 0x437   : > { %v4749_v21 = vmul.f32 %v16648_v30, %v16584_v27  ;;  %v4480_v36 = vmul.f32 %v16631_v19, %v4479_v34  ;;  %7289 = vrsqrt.f32 %v16656_v60  ;;  %v4472_v29 = vsub.f32 1.5, %v4471_v16  ;;  %vm16699_vm13 = vmor %vm4614_vm6, %vm4615_vm0 }
 0x438   : > { %v4742_v52 = vsub.f32 1.5, %v4741_v63  ;;  %7291 = vrsqrt.f32 %v16659_v12  ;;  %v16677_v15 = vmax.f32 %v16566_v46, 1e-24  ;;  %vm4474_vm2 = vweird.f32 %v16487_v62 }
 0x439   : > { %v4622_v35 = vsub.f32 1.5, %v4621_v18  ;;  %7293 = vrsqrt.f32 %v16663_v10  ;;  %v16688_v34 = vmax.f32 %v16603_v38, 1e-24  ;;  %v4613_v63 = vmul.f32 %v16556_v45, %v4612_v44  ;;  %v16706_v16 = vpop.xlane.xlu1 %1941  ;;  %v5355_v44 = vpop.f32.mrf.mxu0 }
 0x43a   : > { %vm4475_vm9 = vweird.f32 %v16568_v33  ;;  %v4750_v46 = vmul.f32 %v16648_v30, %v4749_v21  ;;  %v16693_v39 = vmax.f32 %v1981_v17, 1e-24  ;;  %vm4745_vm8 = vweird.f32 %v16576_v8  ;;  %v5375_v21 = vpop.f32.mrf.mxu1 }
 0x43b   : > { %vm4624_vm14 = vweird.f32 %v16506_v4  ;;  %vm4625_vm4 = vweird.f32 %v16586_v20  ;;  %v4481_v38 = vmul.f32 0.5, %v4480_v36  ;;  %v4607_v5 = vsel %vm16681_vm11, %v16530_v57, %v4603_v24  ;;  %vm16723_vm3 = vmor %vm4474_vm2, %vm4475_vm9  ;;  %v16761_v28 = vpop.xlane.xlu0 %2022 }
 0x43c   : > { %v16708_v18 = vpop.eup %7287  ;;  %v4473_v17 = vmul.f32 %v16568_v33, %v4472_v29  ;;  %v4743_v37 = vmul.f32 %v16576_v8, %v4742_v52  ;;  %7295 = vrsqrt.f32 %v16677_v15  ;;  %vm4744_vm15 = vweird.f32 %v16492_v7  ;;  %vm16739_vm7 = vmor %vm4624_vm14, %vm4625_vm4 }
 0x43d   : > { %v16716_v6 = vpop.eup %7289  ;;  %v4623_v57 = vmul.f32 %v16586_v20, %v4622_v35  ;;  %7297 = vrsqrt.f32 %v16688_v34  ;;  %v4617_v29 = vsel %vm16699_vm13, %v16556_v45, %v4613_v63  ;;  %v4751_v52 = vmul.f32 0.5, %v4750_v46  ;;  %v18975_v35 = vld [vmem:[#allocation31_spill] sm:$0xff]  ;;  %vm16757_vm10 = vmor %vm4744_vm15, %vm4745_vm8 }
 0x43e   : > { %v16730_v24 = vpop.eup %7291  ;;  %7299 = vrsqrt.f32 %v16693_v39  ;;  %v16745_v7 = vmax.f32 %v16641_v25, 1e-24  ;;  %v16750_v36 = vmul.f32 %v18975_v35, %v5336_v53  ;;  %v16752_v45 = vadd.f32 %v5375_v21, %v5355_v44 }
 0x43f   : > { %v16747_v56 = vpop.eup %7293  ;;  %v6231_v63 = vperm.slane %v4607_v5, %v18831_v32  ;;  %v4482_v46 = vsub.f32 1.5, %v4481_v38  ;;  %v4477_v25 = vsel %vm16723_vm3, %v16568_v33, %v4473_v17  ;;  %v4747_v53 = vsel %vm16757_vm10, %v16576_v8, %v4743_v37 }
 0x440   : > { %18976 = vst [vmem:[#allocation41_spill] sm:$0xff] %v16750_v36  ;;  %v4629_v44 = vmul.f32 %v16708_v18, %v16646_v11  ;;  %v4489_v21 = vmul.f32 %v16716_v6, %v16656_v60  ;;  %v6233_v5 = vperm.slane %v4617_v29, %v18829_v14  ;;  %v4627_v38 = vsel %vm16739_vm7, %v16586_v20, %v4623_v57  ;;  %v1984_v36 = vpop.xlane.xlu2 %1983 }
 0x441   : > { %18977 = vst [vmem:[#allocation53_spill] sm:$0xff] %v16752_v45  ;;  %vm4484_vm12 = vweird.f32 %v16554_v58  ;;  %v4759_v33 = vmul.f32 %v16730_v24, %v16659_v12  ;;  %v4752_v8 = vsub.f32 1.5, %v4751_v52  ;;  %vm4754_vm1 = vweird.f32 %v16584_v27  ;;  %v16806_v45 = vpop.xlane.xlu1 %1944 }
 0x442   : > { %v16780_v0 = vpop.eup %7295  ;;  %v4639_v37 = vmul.f32 %v16747_v56, %v16663_v10  ;;  %7301 = vrsqrt.f32 %v16745_v7  ;;  %v6206_v29 = vperm.slane %v4477_v25, %v18837_v55  ;;  %v6258_v20 = vperm.slane %v4747_v53, %v18866_v51 }
 0x443   : > { %v16786_v17 = vpop.eup %7297  ;;  %v4483_v57 = vmul.f32 %v16631_v19, %v4482_v46  ;;  %vm4485_vm6 = vweird.f32 %v16631_v19  ;;  %vm18980_vm5 = vcmask 458112   ;;  %v6235_v35 = vperm.slane %v4627_v38, %v18830_v1 }
 0x444   : > { %v16792_v62 = vpop.eup %7299  ;;  %v6232_v52 = vsel %vm18980_vm5, %v6231_v63, %v16347_v9  ;;  %v4630_v4 = vmul.f32 %v16708_v18, %v4629_v44  ;;  %v4490_v59 = vmul.f32 %v16716_v6, %v4489_v21  ;;  %vm18981_vm0 = vcmask 523712   ;;  %vm16810_vm11 = vmor %vm4484_vm12, %vm4485_vm6 }
 0x445   : > { %v6234_v25 = vsel %vm18981_vm0, %v6233_v5, %v6232_v52  ;;  %v4760_v51 = vmul.f32 %v16730_v24, %v4759_v33  ;;  %v4499_v46 = vmul.f32 %v16780_v0, %v16677_v15  ;;  %v16804_v53 = vmax.f32 %v16665_v40, 1e-24 }
 0x446   : > { %v4753_v63 = vmul.f32 %v16648_v30, %v4752_v8  ;;  %vm4755_vm2 = vweird.f32 %v16648_v30  ;;  %v4640_v44 = vmul.f32 %v16747_v56, %v4639_v37  ;;  %v4769_v21 = vmul.f32 %v16786_v17, %v16688_v34 }
 0x447   : > { %vm18984_vm9 = vcmask 654912   ;;  %vm18985_vm13 = vcmask 326912   ;;  %v4487_v5 = vsel %vm16810_vm11, %v16631_v19, %v4483_v57  ;;  %v4649_v38 = vmul.f32 %v16792_v62, %v16693_v39  ;;  %vm16840_vm4 = vmor %vm4754_vm1, %vm4755_vm2 }
 0x448   : > { %v16821_v40 = vsel %vm18984_vm9, %v6206_v29, %v16550_v41  ;;  %v16825_v58 = vsel %vm18985_vm13, %v6258_v20, %v16581_v23  ;;  %v16832_v33 = vpop.eup %7301  ;;  %vm18986_vm8 = vcmask 589312   ;;  %v4631_v37 = vmul.f32 0.5, %v4630_v4  ;;  %v2026_v20 = vpop.xlane.xlu0 %2025 }
 0x449   : > { %v16835_v8 = vsel %vm18986_vm8, %v6235_v35, %v6234_v25  ;;  %vm4634_vm14 = vweird.f32 %v16646_v11  ;;  %v4491_v41 = vmul.f32 0.5, %v4490_v59  ;;  %vm4494_vm3 = vweird.f32 %v16656_v60 }
 0x44a   : > { %v4761_v19 = vmul.f32 0.5, %v4760_v51  ;;  %v4500_v29 = vmul.f32 %v16780_v0, %v4499_v46  ;;  %7303 = vrsqrt.f32 %v16804_v53  ;;  %v16848_v57 = vperm.slane %v4487_v5, %v18634_v13 }
 0x44b   : > { %v4757_v59 = vsel %vm16840_vm4, %v16648_v30, %v4753_v63  ;;  %v4641_v27 = vmul.f32 0.5, %v4640_v44  ;;  %v4770_v52 = vmul.f32 %v16786_v17, %v4769_v21  ;;  %vm4635_vm15 = vweird.f32 %v16708_v18 }
 0x44c   : > { %vm4764_vm7 = vweird.f32 %v16659_v12  ;;  %vm4644_vm10 = vweird.f32 %v16663_v10  ;;  %v4650_v35 = vmul.f32 %v16792_v62, %v4649_v38  ;;  %v4509_v4 = vmul.f32 %v16832_v33, %v16745_v7  ;;  %vm16887_vm2 = vmor %vm4634_vm14, %vm4635_vm15 }
 0x44d   : > { %v4632_v25 = vsub.f32 1.5, %v4631_v37  ;;  %v4492_v51 = vsub.f32 1.5, %v4491_v41  ;;  %vm4495_vm12 = vweird.f32 %v16716_v6  ;;  %vm4504_vm1 = vweird.f32 %v16677_v15  ;;  %v1987_v37 = vpop.xlane.xlu2 %1986 }
 0x44e   : > { %v16862_v30 = vmax.f32 %v1984_v36, 1e-24  ;;  %v6260_v46 = vperm.slane %v4757_v59, %v18882_v31  ;;  %v4762_v9 = vsub.f32 1.5, %v4761_v19  ;;  %v4501_v63 = vmul.f32 0.5, %v4500_v29  ;;  %v1990_v19 = vpop.xlane.xlu1 %1989  ;;  %vm16899_vm9 = vmor %vm4494_vm3, %vm4495_vm12 }
 0x44f   : > { %vm4654_vm6 = vweird.f32 %v16693_v39  ;;  %v16867_v44 = vmax.f32 %v16706_v16, 1e-24  ;;  %vm4765_vm5 = vweird.f32 %v16730_v24  ;;  %v4642_v21 = vsub.f32 1.5, %v4641_v27 }
 0x450   : > { %v4771_v5 = vmul.f32 0.5, %v4770_v52  ;;  %v16871_v38 = vmax.f32 %v16761_v28, 1e-24  ;;  %v16873_v41 = vpop.eup %7303  ;;  %vm4645_vm0 = vweird.f32 %v16747_v56  ;;  %v4651_v31 = vmul.f32 0.5, %v4650_v35  ;;  %vm16926_vm8 = vmor %vm4764_vm7, %vm4765_vm5 }
 0x451   : > { %v4510_v36 = vmul.f32 %v16832_v33, %v4509_v4  ;;  %v16877_v23 = vmax.f32 %v2026_v20, 1e-24  ;;  %v4633_v16 = vmul.f32 %v16708_v18, %v4632_v25  ;;  %v4493_v29 = vmul.f32 %v16716_v6, %v4492_v51  ;;  %vm16911_vm13 = vmor %vm4644_vm10, %vm4645_vm0 }
 0x452   : > { %vm4505_vm11 = vweird.f32 %v16780_v0  ;;  %7305 = vrsqrt.f32 %v16862_v30  ;;  %v4763_v20 = vmul.f32 %v16730_v24, %v4762_v9  ;;  %v4502_v59 = vsub.f32 1.5, %v4501_v63  ;;  %v2029_v63 = vpop.xlane.xlu0 %2028 }
 0x453   : > { %7307 = vrsqrt.f32 %v16867_v44  ;;  %v16893_v27 = vmax.f32 %v1987_v37, 1e-24  ;;  %v4643_v11 = vmul.f32 %v16747_v56, %v4642_v21  ;;  %v4772_v35 = vsub.f32 1.5, %v4771_v5  ;;  %vm16957_vm3 = vmor %vm4504_vm1, %vm4505_vm11 }
 0x454   : > { %v4779_v4 = vmul.f32 %v16873_v41, %v16804_v53  ;;  %7309 = vrsqrt.f32 %v16871_v38  ;;  %v4652_v60 = vsub.f32 1.5, %v4651_v31  ;;  %v4511_v51 = vmul.f32 0.5, %v4510_v36 }
 0x455   : > { %v16916_v9 = vmax.f32 %v16806_v45, 1e-24  ;;  %7311 = vrsqrt.f32 %v16877_v23  ;;  %v4637_v21 = vsel %vm16887_vm2, %v16708_v18, %v4633_v16  ;;  %vm4775_vm14 = vweird.f32 %v16786_v17  ;;  %v2032_v52 = vpop.xlane.xlu2 %2031 }
 0x456   : > { %vm4655_vm4 = vweird.f32 %v16792_v62  ;;  %v16932_v45 = vmax.f32 %v1990_v19, 1e-24  ;;  %v4497_v5 = vsel %vm16899_vm9, %v16716_v6, %v4493_v29  ;;  %v4767_v18 = vsel %vm16926_vm8, %v16730_v24, %v4763_v20 }
 0x457   : > { %v4503_v12 = vmul.f32 %v16780_v0, %v4502_v59  ;;  %7313 = vrsqrt.f32 %v16893_v27  ;;  %v4647_v31 = vsel %vm16911_vm13, %v16747_v56, %v4643_v11  ;;  %v4773_v36 = vmul.f32 %v16786_v17, %v4772_v35  ;;  %vm16977_vm12 = vmor %vm4654_vm6, %vm4655_vm4  ;;  %v2035_v35 = vpop.xlane.xlu1 %2034 }
 0x458   : > { %v16942_v37 = vpop.eup %7305  ;;  %v4780_v19 = vmul.f32 %v16873_v41, %v4779_v4  ;;  %v16949_v16 = vmax.f32 %v2029_v63, 1e-24  ;;  %vm4774_vm15 = vweird.f32 %v16688_v34  ;;  %v4653_v56 = vmul.f32 %v16792_v62, %v4652_v60 }
 0x459   : > { %v16951_v6 = vpop.eup %7307  ;;  %v4512_v29 = vsub.f32 1.5, %v4511_v51  ;;  %7315 = vrsqrt.f32 %v16916_v9  ;;  %vm18999_vm7 = vcmask 720512   ;;  %vm19000_vm10 = vcmask 392512   ;;  %vm16995_vm6 = vmor %vm4774_vm15, %vm4775_vm14 }
 0x45a   : > { %v16964_v28 = vpop.eup %7309  ;;  %v16969_v20 = vsel %vm18999_vm7, %v16848_v57, %v16821_v40  ;;  %v6261_v15 = vsel %vm19000_vm10, %v6260_v46, %v16825_v58  ;;  %vm4514_vm1 = vweird.f32 %v16745_v7  ;;  %7317 = vrsqrt.f32 %v16932_v45  ;;  %vm19007_vm2 = vmmov %vm18999_vm7 }
 0x45b   : > { %v16983_v11 = vpop.eup %7311  ;;  %v6237_v40 = vperm.slane %v4637_v21, %v18837_v55  ;;  %v16987_v57 = vperm.slane %v4497_v5, %v18633_v2  ;;  %v6262_v58 = vperm.slane %v4767_v18, %v18831_v32  ;;  %v6239_v39 = vperm.slane %v4647_v31, %v18634_v13 }
 0x45c   : > { %v4507_v4 = vsel %vm16957_vm3, %v16780_v0, %v4503_v12  ;;  %v4777_v25 = vsel %vm16995_vm6, %v16786_v17, %v4773_v36  ;;  %v4781_v32 = vmul.f32 0.5, %v4780_v19  ;;  %7319 = vrsqrt.f32 %v16949_v16 }
 0x45d   : > { %v17006_v60 = vpop.eup %7313  ;;  %v4657_v34 = vsel %vm16977_vm12, %v16792_v62, %v4653_v56  ;;  %v4513_v51 = vmul.f32 %v16832_v33, %v4512_v29  ;;  %vm4515_vm5 = vweird.f32 %v16832_v33  ;;  %v4789_v0 = vmul.f32 %v16964_v28, %v16871_v38 }
 0x45e   : > { %v4659_v63 = vmul.f32 %v16942_v37, %v16862_v30  ;;  %v4519_v17 = vmul.f32 %v16951_v6, %v16867_v44  ;;  %v4799_v21 = vmul.f32 %v16983_v11, %v16877_v23  ;;  %v17021_v10 = vmax.f32 %v2032_v52, 1e-24  ;;  %vm17042_vm9 = vmor %vm4514_vm1, %vm4515_vm5 }
 0x45f   : > { %v17023_v5 = vpop.eup %7315  ;;  %vm19005_vm0 = vcmask 654912   ;;  %vm19006_vm11 = vcmask 458112   ;;  %v17029_v12 = vperm.slane %v4507_v4, %v18646_v48  ;;  %v6264_v31 = vperm.slane %v4777_v25, %v18829_v14  ;;  %v1993_v25 = vpop.xlane.xlu0 %1992 }
 0x460   : > { %v6238_v62 = vsel %vm19005_vm0, %v6237_v40, %v16835_v8  ;;  %v6263_v18 = vsel %vm19006_vm11, %v6262_v58, %v6261_v15  ;;  %v17032_v36 = vpop.eup %7317  ;;  %v17038_v24 = vperm.slane %v4657_v34, %v18633_v2  ;;  %v4782_v8 = vsub.f32 1.5, %v4781_v32  ;;  %v5395_v58 = vpop.f32.mrf.mxu2 }
 0x461   : > { %v17035_v19 = vsel %vm19007_vm2, %v6239_v39, %v6238_v62  ;;  %v4669_v29 = vmul.f32 %v17006_v60, %v16893_v27  ;;  %v4517_v14 = vsel %vm17042_vm9, %v16832_v33, %v4513_v51  ;;  %vm4784_vm13 = vweird.f32 %v16804_v53  ;;  %v5415_v39 = vpop.f32.mrf.mxu3 }
 0x462   : > { %vm4785_vm8 = vweird.f32 %v16873_v41  ;;  %v4790_v15 = vmul.f32 %v16964_v28, %v4789_v0  ;;  %v17054_v59 = vpop.eup %7319  ;;  %v4660_v7 = vmul.f32 %v16942_v37, %v4659_v63  ;;  %v4520_v52 = vmul.f32 %v16951_v6, %v4519_v17  ;;  %v2038_v0 = vpop.xlane.xlu2 %2037 }
 0x463   : > { %v4800_v40 = vmul.f32 %v16983_v11, %v4799_v21  ;;  %7321 = vrsqrt.f32 %v17021_v10  ;;  %vm19010_vm14 = vcmask 523712   ;;  %vm4664_vm4 = vweird.f32 %v16862_v30  ;;  %vm17087_vm7 = vmor %vm4784_vm13, %vm4785_vm8 }
 0x464   : > { %v17061_v33 = vsel %vm19010_vm14, %v6264_v31, %v6263_v18  ;;  %v4529_v46 = vmul.f32 %v17023_v5, %v16916_v9  ;;  %v4679_v4 = vmul.f32 %v17032_v36, %v16932_v45  ;;  %v4783_v32 = vmul.f32 %v16873_v41, %v4782_v8  ;;  %v2041_v18 = vpop.xlane.xlu1 %2040 }
 0x465   : > { %vm4524_vm3 = vweird.f32 %v16867_v44  ;;  %v4670_v34 = vmul.f32 %v17006_v60, %v4669_v29  ;;  %v17071_v51 = vmax.f32 %v2035_v35, 1e-24  ;;  %v17074_v63 = vperm.slane %v4517_v14, %v18780_v43 }
 0x466   : > { %v4791_v17 = vmul.f32 0.5, %v4790_v15  ;;  %v4809_v21 = vmul.f32 %v17054_v59, %v16949_v16  ;;  %v17078_v62 = vadd.f32 %v5415_v39, %v5395_v58  ;;  %v4661_v31 = vmul.f32 0.5, %v4660_v7 }
 0x467   : > { %v4521_v56 = vmul.f32 0.5, %v4520_v52  ;;  %vm4794_vm15 = vweird.f32 %v16871_v38  ;;  %v4801_v8 = vmul.f32 0.5, %v4800_v40  ;;  %v17081_v50 = vmax.f32 %v1993_v25, 1e-24 }
 0x468   : > { %vm4674_vm10 = vweird.f32 %v16893_v27  ;;  %v4530_v29 = vmul.f32 %v17023_v5, %v4529_v46  ;;  %v4680_v14 = vmul.f32 %v17032_v36, %v4679_v4  ;;  %v17094_v15 = vmax.f32 %v2038_v0, 1e-24 }
 0x469   : > { %v17096_v7 = vpop.eup %7321  ;;  %v4787_v52 = vsel %vm17087_vm7, %v16873_v41, %v4783_v32  ;;  %v4671_v40 = vmul.f32 0.5, %v4670_v34  ;;  %7323 = vrsqrt.f32 %v17071_v51  ;;  %v17102_v53 = vmax.f32 %v2041_v18, 1e-24 }
 0x46a   : > { %vm4665_vm12 = vweird.f32 %v16942_v37  ;;  %vm4525_vm1 = vweird.f32 %v16951_v6  ;;  %v4792_v58 = vsub.f32 1.5, %v4791_v17  ;;  %v4810_v39 = vmul.f32 %v17054_v59, %v4809_v21 }
 0x46b   : > { %v4662_v46 = vsub.f32 1.5, %v4661_v31  ;;  %v4522_v4 = vsub.f32 1.5, %v4521_v56  ;;  %v4802_v25 = vsub.f32 1.5, %v4801_v8  ;;  %7325 = vrsqrt.f32 %v17081_v50  ;;  %vm17118_vm5 = vmor %vm4664_vm4, %vm4665_vm12 }
 0x46c   : > { %v4531_v0 = vmul.f32 0.5, %v4530_v29  ;;  %v4681_v35 = vmul.f32 0.5, %v4680_v14  ;;  %v4819_v41 = vmul.f32 %v17096_v7, %v17021_v10  ;;  %7327 = vrsqrt.f32 %v17094_v15  ;;  %vm17133_vm2 = vmor %vm4524_vm3, %vm4525_vm1 }
 0x46d   : > { %v6266_v32 = vperm.slane %v4787_v52, %v18830_v1  ;;  %vm4795_vm6 = vweird.f32 %v16964_v28  ;;  %v4672_v34 = vsub.f32 1.5, %v4671_v40  ;;  %7329 = vrsqrt.f32 %v17102_v53 }
 0x46e   : > { %v4793_v21 = vmul.f32 %v16964_v28, %v4792_v58  ;;  %vm4675_vm0 = vweird.f32 %v17006_v60  ;;  %vm4534_vm11 = vweird.f32 %v16916_v9  ;;  %v4811_v1 = vmul.f32 0.5, %v4810_v39  ;;  %vm17141_vm13 = vmor %vm4794_vm15, %vm4795_vm6 }
 0x46f   : > { %v17125_v18 = vpop.eup %7323  ;;  %v4663_v31 = vmul.f32 %v16942_v37, %v4662_v46  ;;  %v4523_v56 = vmul.f32 %v16951_v6, %v4522_v4  ;;  %v4803_v8 = vmul.f32 %v16983_v11, %v4802_v25  ;;  %vm4805_vm9 = vweird.f32 %v16983_v11  ;;  %vm17156_vm4 = vmor %vm4674_vm10, %vm4675_vm0 }
 0x470   : > { %v4532_v14 = vsub.f32 1.5, %v4531_v0  ;;  %vm4804_vm8 = vweird.f32 %v16877_v23  ;;  %v4682_v52 = vsub.f32 1.5, %v4681_v35  ;;  %v4820_v44 = vmul.f32 %v17096_v7, %v4819_v41 }
 0x471   : > { %v17147_v40 = vpop.eup %7325  ;;  %vm19019_vm14 = vcmask 589312   ;;  %v4673_v39 = vmul.f32 %v17006_v60, %v4672_v34  ;;  %vm4684_vm3 = vweird.f32 %v16932_v45  ;;  %vm4814_vm15 = vweird.f32 %v16949_v16  ;;  %vm17170_vm12 = vmor %vm4804_vm8, %vm4805_vm9 }
 0x472   : > { %v6267_v58 = vsel %vm19019_vm14, %v6266_v32, %v17061_v33  ;;  %v17162_v23 = vpop.eup %7327  ;;  %v4797_v33 = vsel %vm17141_vm13, %v16964_v28, %v4793_v21  ;;  %vm4535_vm7 = vweird.f32 %v17023_v5  ;;  %v4812_v46 = vsub.f32 1.5, %v4811_v1 }
 0x473   : > { %v4829_v4 = vmul.f32 %v17125_v18, %v17071_v51  ;;  %v17176_v25 = vpop.eup %7329  ;;  %v4667_v0 = vsel %vm17118_vm5, %v16942_v37, %v4663_v31  ;;  %v4527_v28 = vsel %vm17133_vm2, %v16951_v6, %v4523_v56  ;;  %v4807_v35 = vsel %vm17170_vm12, %v16983_v11, %v4803_v8  ;;  %vm17227_vm0 = vmor %vm4534_vm11, %vm4535_vm7 }
 0x474   : > { %vm4685_vm10 = vweird.f32 %v17032_v36  ;;  %v4533_v41 = vmul.f32 %v17023_v5, %v4532_v14  ;;  %v4683_v32 = vmul.f32 %v17032_v36, %v4682_v52  ;;  %v4821_v34 = vmul.f32 0.5, %v4820_v44  ;;  %v17235_v44 = vpop.permute.xlu0 %6468 }
 0x475   : > { %v4689_v21 = vmul.f32 %v17147_v40, %v17081_v50  ;;  %v6268_v37 = vperm.slane %v4797_v33, %v18837_v55  ;;  %v4677_v6 = vsel %vm17156_vm4, %v17006_v60, %v4673_v39  ;;  %vm4815_vm1 = vweird.f32 %v17054_v59  ;;  %vm17212_vm6 = vmor %vm4684_vm3, %vm4685_vm10 }
 0x476   : > { %v4839_v11 = vmul.f32 %v17162_v23, %v17094_v15  ;;  %v6270_v17 = vperm.slane %v4807_v35, %v18634_v13  ;;  %v4813_v1 = vmul.f32 %v17054_v59, %v4812_v46  ;;  %v4830_v31 = vmul.f32 %v17125_v18, %v4829_v4  ;;  %vm17245_vm11 = vmor %vm4814_vm15, %vm4815_vm1 }
 0x477   : > { %v4849_v56 = vmul.f32 %v17176_v25, %v17102_v53  ;;  %v6243_v55 = vperm.slane %v4667_v0, %v18646_v48  ;;  %v17206_v30 = vperm.slane %v4527_v28, %v18637_v47  ;;  %vm4824_vm5 = vweird.f32 %v17021_v10 }
 0x478   : > { %v17218_v13 = vadd.s32 128, %v18798_v49  ;;  %v17221_v8 = vperm.slane %v4677_v6, %v18780_v43  ;;  %v4687_v45 = vsel %vm17212_vm6, %v17032_v36, %v4683_v32  ;;  %v4822_v14 = vsub.f32 1.5, %v4821_v34 }
 0x479   : > { %v4690_v52 = vmul.f32 %v17147_v40, %v4689_v21  ;;  %vm19028_vm2 = vcmask 654912   ;;  %v4537_v38 = vsel %vm17227_vm0, %v17023_v5, %v4533_v41  ;;  %vm4825_vm9 = vweird.f32 %v17096_v7 }
 0x47a   : > { %v6269_v39 = vsel %vm19028_vm2, %v6268_v37, %v6267_v58  ;;  %v4840_v36 = vmul.f32 %v17162_v23, %v4839_v11  ;;  %vm19031_vm13 = vcmask 720512   ;;  %v4817_v58 = vsel %vm17245_vm11, %v17054_v59, %v4813_v1  ;;  %vm17279_vm7 = vmor %vm4824_vm5, %vm4825_vm9 }
 0x47b   : > { %v17252_v33 = vsel %vm19031_vm13, %v6270_v17, %v6269_v39  ;;  %v4831_v5 = vmul.f32 0.5, %v4830_v31  ;;  %vm4834_vm8 = vweird.f32 %v17071_v51  ;;  %v4850_v16 = vmul.f32 %v17176_v25, %v4849_v56 }
 0x47c   : > { %v17260_v27 = vperm.slane %v4687_v45, %v18637_v47  ;;  %v17263_v46 = vadd.s32 256, %v18798_v49  ;;  %vm6470_vm14 = vcmp.eq.s32.totalorder %v18798_v49, %v17235_v44  ;;  %vm6471_vm4 = vcmp.eq.s32.totalorder %v17218_v13, %v17235_v44 }
 0x47d   : > { %v4823_v4 = vmul.f32 %v17096_v7, %v4822_v14  ;;  %v4691_v59 = vmul.f32 0.5, %v4690_v52  ;;  %vm4844_vm3 = vweird.f32 %v17094_v15  ;;  %vm19032_vm15 = vcmask 786112   ;;  %v19071_v15 = vld [vmem:[#allocation78_spill] sm:$0xff] }
 0x47e   : > { %v6211_v0 = vsel %vm19032_vm15, %v16987_v57, %v16969_v20  ;;  %v6272_v28 = vperm.slane %v4817_v58, %v18633_v2  ;;  %v4841_v41 = vmul.f32 0.5, %v4840_v36  ;;  %vm19035_vm12 = vcmask 851712   ;;  %vm19039_vm0 = vmmov %vm19032_vm15 }
 0x47f   : > { %v6213_v32 = vsel %vm19035_vm12, %v17029_v12, %v6211_v0  ;;  %v17286_v34 = vadd.s32 384, %v18798_v49  ;;  %v4832_v21 = vsub.f32 1.5, %v4831_v5  ;;  %vm4694_vm10 = vweird.f32 %v17081_v50 }
 0x480   : > { %v4851_v20 = vmul.f32 0.5, %v4850_v16  ;;  %v19036_v2 = vclamps-f32 %v18960_v42, 64.0  ;;  %v19037_v10 = vclamps-f32 %v16593_v26, 64.0  ;;  %vm19038_vm1 = vcmask 917312  }
 0x481   : > { %v6215_v12 = vsel %vm19038_vm1, %v17074_v63, %v6213_v32  ;;  %v17302_v6 = vperm.slane %v4537_v38, %v18791_v3  ;;  %v17305_v11 = vadd.s32 512, %v18798_v49  ;;  %vm6472_vm6 = vcmp.eq.s32.totalorder %v17263_v46, %v17235_v44 }
 0x482   : > { %v6486_v57 = vsel %vm6470_vm14, %v19036_v2, 0.0  ;;  %v6487_v37 = vsel %vm6471_vm4, %v19037_v10, 0.0  ;;  %v4827_v17 = vsel %vm17279_vm7, %v17096_v7, %v4823_v4  ;;  %vm4835_vm5 = vweird.f32 %v17125_v18  ;;  %vm19041_vm7 = vmmov %vm19035_vm12 }
 0x483   : > { %v4692_v1 = vsub.f32 1.5, %v4691_v59  ;;  %v6242_v63 = vsel %vm19039_vm0, %v17038_v24, %v17035_v19  ;;  %v4842_v31 = vsub.f32 1.5, %v4841_v41  ;;  %v17317_v56 = vadd.s32 640, %v18798_v49  ;;  %vm17346_vm12 = vmor %vm4834_vm8, %vm4835_vm5 }
 0x484   : > { %vm6473_vm2 = vcmp.eq.s32.totalorder %v17286_v34, %v17235_v44  ;;  %v6502_v60 = vadd.f32 %v6487_v37, %v6486_v57  ;;  %v4833_v29 = vmul.f32 %v17125_v18, %v4832_v21  ;;  %v4852_v45 = vsub.f32 1.5, %v4851_v20  ;;  %v19051_v21 = vld [vmem:[#allocation79_spill] sm:$0xff] }
 0x485   : > { %vm4854_vm11 = vweird.f32 %v17102_v53  ;;  %v19040_v7 = vclamps-f32 %v16597_v61, 64.0  ;;  %vm4845_vm9 = vweird.f32 %v17162_v23  ;;  %v17330_v19 = vadd.s32 768, %v18798_v49  ;;  %v19057_v37 = vld [vmem:[#allocation75_spill] sm:$0xff] }
 0x486   : > { %vm6474_vm13 = vcmp.eq.s32.totalorder %v17305_v11, %v17235_v44  ;;  %v4693_v52 = vmul.f32 %v17147_v40, %v4692_v1  ;;  %vm4695_vm15 = vweird.f32 %v17147_v40  ;;  %v6244_v39 = vsel %vm19041_vm7, %v6243_v55, %v6242_v63  ;;  %vm17361_vm0 = vmor %vm4844_vm3, %vm4845_vm9  ;;  %v5435_v1 = vpop.f32.mrf.mxu0  ;;  %v5455_v63 = vpop.f32.mrf.mxu1 }
 0x487   : > { %v6488_v14 = vsel %vm6472_vm6, %v19040_v7, 0.0  ;;  %v19042_v38 = vclamps-f32 %v16600_v54, 64.0  ;;  %v4843_v58 = vmul.f32 %v17162_v23, %v4842_v31  ;;  %v17352_v5 = vadd.s32 896, %v18798_v49  ;;  %vm17375_vm5 = vmor %vm4694_vm10, %vm4695_vm15 }
 0x488   : > { %v6503_v24 = vadd.f32 %v6502_v60, %v6488_v14  ;;  %vm6475_vm1 = vcmp.eq.s32.totalorder %v17317_v56, %v17235_v44  ;;  %v4837_v16 = vsel %vm17346_vm12, %v17125_v18, %v4833_v29  ;;  %v4853_v4 = vmul.f32 %v17176_v25, %v4852_v45  ;;  %v19060_v29 = vld [vmem:[#allocation85_spill] sm:$0xff]  ;;  %v5475_v14 = vpop.f32.mrf.mxu2 }
 0x489   : > { %v6489_v9 = vsel %vm6473_vm2, %v19042_v38, 0.0  ;;  %vm4855_vm8 = vweird.f32 %v17176_v25  ;;  %v19047_v59 = vclamps-f32 %v16605_v22, 64.0  ;;  %v6274_v35 = vperm.slane %v4827_v17, %v18646_v48 }
 0x48a   : > { %v6504_v55 = vadd.f32 %v6503_v24, %v6489_v9  ;;  %v17380_v18 = vadd.s32 1024, %v18798_v49  ;;  %vm6476_vm3 = vcmp.eq.s32.totalorder %v17330_v19, %v17235_v44  ;;  %v4697_v32 = vsel %vm17375_vm5, %v17147_v40, %v4693_v52  ;;  %vm17403_vm10 = vmor %vm4854_vm11, %vm4855_vm8  ;;  %v5495_v24 = vpop.f32.mrf.mxu3 }
 0x48b   : > { %v6490_v0 = vsel %vm6474_vm13, %v19047_v59, 0.0  ;;  %vm19050_vm9 = vcmask 786112   ;;  %v17390_v50 = vadd.s32 1152, %v18798_v49  ;;  %v19052_v20 = vclamps-f32 %v19051_v21, 64.0  ;;  %v19069_v59 = vld [vmem:[#allocation30_spill] sm:$0xff] }
 0x48c   : > { %v6505_v41 = vadd.f32 %v6504_v55, %v6490_v0  ;;  %v6273_v48 = vsel %vm19050_vm9, %v6272_v28, %v17252_v33  ;;  %v6276_v57 = vperm.slane %v4837_v16, %v18780_v43  ;;  %v4847_v10 = vsel %vm17361_vm0, %v17162_v23, %v4843_v58  ;;  %v19065_v58 = vld [vmem:[#allocation86_spill] sm:$0xff] }
 0x48d   : > { %v6491_v2 = vsel %vm6475_vm1, %v19052_v20, 0.0  ;;  %vm6477_vm15 = vcmp.eq.s32.totalorder %v17352_v5, %v17235_v44  ;;  %vm19055_vm7 = vcmask 982912   ;;  %v4857_v43 = vsel %vm17403_vm10, %v17176_v25, %v4853_v4 }
 0x48e   : > { %v6506_v33 = vadd.f32 %v6505_v41, %v6491_v2  ;;  %v6217_v28 = vsel %vm19055_vm7, %v17206_v30, %v6215_v12  ;;  %vm19056_vm12 = vcmask 917312   ;;  %v19058_v53 = vclamps-f32 %v19057_v37, 64.0  ;;  %vm19064_vm10 = vmmov %vm19055_vm7 }
 0x48f   : > { %v6246_v23 = vsel %vm19056_vm12, %v17221_v8, %v6244_v39  ;;  %v6249_v31 = vperm.slane %v4697_v32, %v18791_v3  ;;  %v17423_v60 = vadd.s32 1280, %v18798_v49  ;;  %vm6478_vm11 = vcmp.eq.s32.totalorder %v17380_v18, %v17235_v44  ;;  %vm19062_vm8 = vmmov %vm19056_vm12 }
 0x490   : > { %v6492_v17 = vsel %vm6476_vm3, %v19058_v53, 0.0  ;;  %v6278_v30 = vperm.slane %v4847_v10, %v18637_v47  ;;  %vm19059_vm0 = vcmask 851712   ;;  %v17430_v12 = vadd.s32 1408, %v18798_v49 }
 0x491   : > { %v6507_v25 = vadd.f32 %v6506_v33, %v6492_v17  ;;  %v6275_v8 = vsel %vm19059_vm0, %v6274_v35, %v6273_v48  ;;  %v19061_v45 = vclamps-f32 %v19060_v29, 64.0  ;;  %v6280_v39 = vperm.slane %v4857_v43, %v18791_v3  ;;  %vm19070_vm0 = vmmov %vm19064_vm10 }
 0x492   : > { %v6277_v52 = vsel %vm19062_vm8, %v6276_v57, %v6275_v8  ;;  %vm6479_vm5 = vcmp.eq.s32.totalorder %v17390_v50, %v17235_v44  ;;  %vm19063_vm9 = vcmask 1048512   ;;  %v5456_v9 = vadd.f32 %v5455_v63, %v5435_v1  ;;  %v19074_v57 = vld [vmem:[#allocation41_spill] sm:$0xff] }
 0x493   : > { %v6493_v7 = vsel %vm6477_vm15, %v19061_v45, 0.0  ;;  %v6219_v38 = vsel %vm19063_vm9, %v17302_v6, %v6217_v28  ;;  %v6248_v36 = vsel %vm19064_vm10, %v17260_v27, %v6246_v23  ;;  %v19066_v55 = vclamps-f32 %v19065_v58, 64.0  ;;  %vm19067_vm7 = vmmov %vm19063_vm9  ;;  %v19068_v6 = vld [vmem:[#allocation53_spill] sm:$0xff] }
 0x494   : > { %v6508_v47 = vadd.f32 %v6507_v25, %v6493_v7  ;;  %v6250_v51 = vsel %vm19067_vm7, %v6249_v31, %v6248_v36  ;;  %v17452_v3 = vadd.s32 1536, %v18798_v49  ;;  %vm6480_vm12 = vcmp.eq.s32.totalorder %v17423_v60, %v17235_v44  ;;  %vm19073_vm8 = vmmov %vm19067_vm7  ;;  %v19075_v28 = vld [vmem:[#allocation49_spill] sm:$0xff] }
 0x495   : > { %v6494_v16 = vsel %vm6478_vm11, %v19066_v55, 0.0  ;;  %v17458_v0 = vmul.f32 %v19069_v59, %v19068_v6  ;;  %v5496_v27 = vadd.f32 %v5495_v24, %v5475_v14  ;;  %v6279_v35 = vsel %vm19070_vm0, %v6278_v30, %v6277_v52 }
 0x496   : > { %v6509_v4 = vadd.f32 %v6508_v47, %v6494_v16  ;;  %v19072_v41 = vclamps-f32 %v19071_v15, 64.0  ;;  %v6281_v48 = vsel %vm19073_vm8, %v6280_v39, %v6279_v35  ;;  %v17468_v20 = vadd.s32 1664, %v18798_v49 }
 0x497   : > { %vm6481_vm9 = vcmp.eq.s32.totalorder %v17430_v12, %v17235_v44  ;;  %v6727_v10 = vclamps-f32 %v19074_v57, 64.0  ;;  %v17474_v40 = vmul.f32 %v6219_v38, %v17078_v62  ;;  %v17476_v33 = vmul.f32 %v6250_v51, %v5456_v9 }
 0x498   : > { %v6495_v32 = vsel %vm6479_vm5, %v19072_v41, 0.0  ;;  %v19076_v43 = vclamps-f32 %v19075_v28, 64.0  ;;  %vm6482_vm10 = vcmp.eq.s32.totalorder %v17452_v3, %v17235_v44  ;;  %v6728_v17 = vclamps-f32 %v17458_v0, 64.0 }
 0x499   : > { %v6510_v2 = vadd.f32 %v6509_v4, %v6495_v32  ;;  %v17486_v1 = vmul.f32 %v6281_v48, %v5496_v27  ;;  %v6497_v62 = vsel %vm6481_vm9, %v6727_v10, 0.0  ;;  %v17494_v63 = vadd.s32 1792, %v18798_v49 }
 0x49a   : > { %v6496_v23 = vsel %vm6480_vm12, %v19076_v43, 0.0  ;;  %vm17908_vm7 = vcmp.eq.s32.totalorder %v17468_v20, %v17235_v44  ;;  %v6729_v25 = vclamps-f32 %v17474_v40, 64.0  ;;  %v6730_v30 = vclamps-f32 %v17476_v33, 64.0 }
 0x49b   : > { %v6511_v53 = vadd.f32 %v6510_v2, %v6496_v23  ;;  %v6498_v8 = vsel %vm6482_vm10, %v6728_v17, 0.0  ;;  %v17506_v45 = vadd.s32 1920, %v18798_v49  ;;  %v6731_v14 = vclamps-f32 %v17486_v1, 64.0 }
 0x49c   : > { %v6499_v24 = vsel %vm17908_vm7, %v6729_v25, 0.0  ;;  %vm17906_vm0 = vcmp.eq.s32.totalorder %v17494_v63, %v17235_v44  ;;  %v19081_v49 = vclamps-f32 %v16605_v22, 64.0  ;;  %v19083_v13 = vclamps-f32 %v19057_v37, 64.0 }
 0x49d   : > { %v6512_v31 = vadd.f32 %v6511_v53, %v6497_v62  ;;  %v6500_v39 = vsel %vm17906_vm0, %v6730_v30, 0.0  ;;  %vm17907_vm8 = vcmp.eq.s32.totalorder %v17506_v45, %v17235_v44  ;;  %v19084_v46 = vclamps-f32 %v19060_v29, 64.0 }
 0x49e   : > { %v6501_v38 = vsel %vm17907_vm8, %v6731_v14, 0.0  ;;  %v19085_v11 = vclamps-f32 %v19065_v58, 64.0  ;;  %v19086_v19 = vclamps-f32 %v19071_v15, 64.0  ;;  %v19087_v5 = vclamps-f32 %v19075_v28, 64.0 }
 0x49f   : > { %v6513_v7 = vadd.f32 %v6512_v31, %v6498_v8 }
 0x4a1   : > { %v6514_v52 = vadd.f32 %v6513_v7, %v6499_v24  ;;  %v19077_v24 = vclamps-f32 %v18960_v42, 64.0 }
 0x4a3   : > { %v6515_v47 = vadd.f32 %v6514_v52, %v6500_v39  ;;  %v19078_v39 = vclamps-f32 %v16593_v26, 64.0 }
 0x4a5   : > { %v6516_v9 = vadd.f32 %v6515_v47, %v6501_v38  ;;  %v19079_v38 = vclamps-f32 %v16597_v61, 64.0  ;;  %v19082_v61 = vclamps-f32 %v19051_v21, 64.0 }
 0x4a7   : > { %6517 = vadd.xlane.f32.xlu2 %v6516_v9 }
 0x51a   : > { %v6518_v36 = vpop.xlane.xlu2 %6517 }
 0x51b   : > { %v6519_v55 = vmul.f32 %v6518_v36, %v6518_v36  ;;  %v6535_v53 = vmul.f32 0.87758255, %v6518_v36  ;;  %v6733_v8 = vadd.f32 -15.341618, %v6518_v36  ;;  %vm6538_vm7 = vcmp.ge.f32.partialorder %v6518_v36, -56.165283 }
 0x51c   : > { %v19080_v36 = vclamps-f32 %v16600_v54, 64.0 }
 0x51d   : > { %v6520_v16 = vsub.f32 4096.0, %v6519_v55 }
 0x51f   : > { %v6521_v51 = vmax.f32 %v6520_v16, 0.0 }
 0x521   : > { %v6522_v4 = vmin.f32 %v6521_v51, 64.0 }
 0x523   : > { %7331 = vrsqrt.f32 %v6522_v4  ;;  %vm6530_vm0 = vcmp.eq.f32.partialorder %v6522_v4, inf  ;;  %v6533_v2 = vand.u32 2147483648, %v6522_v4  ;;  %vm6532_vm8 = vcmp.eq.f32.partialorder %v6522_v4, 0.0 }
 0x529   : > { %v7332_v6 = vpop.eup %7331 }
 0x52a   : > { %v6524_v59 = vmul.f32 %v7332_v6, %v6522_v4 }
 0x52c   : > { %v6525_v27 = vmul.f32 %v7332_v6, %v6524_v59 }
 0x52e   : > { %v6526_v35 = vmul.f32 0.5, %v6525_v27 }
 0x530   : > { %v6527_v41 = vsub.f32 1.5, %v6526_v35 }
 0x532   : > { %v6528_v32 = vmul.f32 %v7332_v6, %v6527_v41 }
 0x534   : > { %v6529_v48 = vmul.f32 %v6528_v32, %v6522_v4 }
 0x536   : > { %v6531_v43 = vsel %vm6530_vm0, %v6522_v4, %v6529_v48 }
 0x537   : > { %v6534_v23 = vsel %vm6532_vm8, %v6533_v2, %v6531_v43 }
 0x538   : > { %v6536_v62 = vmul.f32 0.47942555, %v6534_v23 }
 0x53a   : > { %v6537_v31 = vsub.f32 %v6535_v53, %v6536_v62 }
 0x53c   : > { %v6540_v7 = vsel %vm6538_vm7, %v6537_v31, %v6733_v8 }
 0x53d   : > { %v6541_v52 = vsel %vm6470_vm14, %v6540_v7, %v19077_v24  ;;  %v6542_v47 = vsel %vm6471_vm4, %v6540_v7, %v19078_v39  ;;  %v6543_v9 = vsel %vm6472_vm6, %v6540_v7, %v19079_v38  ;;  %v6544_v42 = vsel %vm6473_vm2, %v6540_v7, %v19080_v36 }
 0x53e   : > { %6557 = vst [vmem:[%s17549_s5] sm:$0xff] %v6541_v52  ;;  %v6545_v26 = vsel %vm6474_vm13, %v6540_v7, %v19081_v49  ;;  %v6546_v54 = vsel %vm6475_vm1, %v6540_v7, %v19082_v61  ;;  %v6547_v22 = vsel %vm6476_vm3, %v6540_v7, %v19083_v13  ;;  %v6548_v34 = vsel %vm6477_vm15, %v6540_v7, %v19084_v46 }
 0x53f   : > { %6558 = vst [vmem:[%s17549_s5 + $0x8] sm:$0xff] %v6542_v47  ;;  %v6549_v56 = vsel %vm6478_vm11, %v6540_v7, %v19085_v11  ;;  %v6550_v21 = vsel %vm6479_vm5, %v6540_v7, %v19086_v19  ;;  %v6551_v37 = vsel %vm6480_vm12, %v6540_v7, %v19087_v5  ;;  %v6552_v18 = vsel %vm6481_vm9, %v6540_v7, %v6727_v10 }
 0x540   : > { %6559 = vst [vmem:[%s17549_s5 + $0x10] sm:$0xff] %v6543_v9  ;;  %v6553_v50 = vsel %vm6482_vm10, %v6540_v7, %v6728_v17  ;;  %vm19088_vm14 = vcmp.eq.s32.totalorder %v17468_v20, %v17235_v44  ;;  %vm19089_vm4 = vcmp.eq.s32.totalorder %v17494_v63, %v17235_v44  ;;  %vm19090_vm6 = vcmp.eq.s32.totalorder %v17506_v45, %v17235_v44 }
 0x541   : > { %6560 = vst [vmem:[%s17549_s5 + $0x18] sm:$0xff] %v6544_v42  ;;  %v6554_v60 = vsel %vm19088_vm14, %v6540_v7, %v6729_v25  ;;  %v6555_v12 = vsel %vm19089_vm4, %v6540_v7, %v6730_v30  ;;  %v6556_v29 = vsel %vm19090_vm6, %v6540_v7, %v6731_v14 }
 0x542   : > { %6561 = vst [vmem:[%s17549_s5 + $0x20] sm:$0xff] %v6545_v26 }
 0x543   : > { %6562 = vst [vmem:[%s17549_s5 + $0x28] sm:$0xff] %v6546_v54 }
 0x544   : > { %6563 = vst [vmem:[%s17549_s5 + $0x30] sm:$0xff] %v6547_v22 }
 0x545   : > { %6564 = vst [vmem:[%s17549_s5 + $0x38] sm:$0xff] %v6548_v34 }
 0x546   : > { %6565 = vst [vmem:[%s17549_s5 + $0x40] sm:$0xff] %v6549_v56 }
 0x547   : > { %6566 = vst [vmem:[%s17549_s5 + $0x48] sm:$0xff] %v6550_v21 }
 0x548   : > { %6567 = vst [vmem:[%s17549_s5 + $0x50] sm:$0xff] %v6551_v37 }
 0x549   : > { %6568 = vst [vmem:[%s17549_s5 + $0x58] sm:$0xff] %v6552_v18 }
 0x54a   : > { %6569 = vst [vmem:[%s17549_s5 + $0x60] sm:$0xff] %v6553_v50 }
 0x54b   : > { %6570 = vst [vmem:[%s17549_s5 + $0x68] sm:$0xff] %v6554_v60 }
 0x54c   : > { %6571 = vst [vmem:[%s17549_s5 + $0x70] sm:$0xff] %v6555_v12 }
 0x54d   : > { %6572 = vst [vmem:[%s17549_s5 + $0x78] sm:$0xff] %v6556_v29 }
 0x54e   : > { %7478 = shalt.err (!%p7475_p1)
}
 0x54f   : > { %6748 = dma.vmem_to_hbm [thread:$0]  (%p7615_p8), %s6590_s19, 2048, %s6592_s22, %s6574_s26  }
 0x550 PF: > { %s6603_s20 = sand.u32 1, %s7517_s12   ;;  %p6759_p2 = pnand %p6707_p13, %p7619_p9 }
 0x551   : > { %s6604_s21 = scalar_lea.sflag [#allocation4], %s6603_s20 }
 0x552   : > { %p6760_p4 = pneg %p6759_p2 }
 0x554   : > { %7512 = dma.done.wait (%p6760_p4), %s6604_s21, 2048  }
 0x555   : > { %7514 = vsyncadd (%p6760_p4), %s6604_s21, 4294965248  ;;  %s20_s17 = sadd.s32 1, %s7537_s17   ;;  %s19091_s12 = smov %s7521_s13 }
 0x556   : > { %p17_p6 = scmp.ge.s32.totalorder %s20_s17, 4   ;;  %s19092_s13 = smov %s7525_s14 }
 0x557   : > { %s19093_s14 = smov %s7657_s27  ;;  %s19094_s15 = smov %s7533_s16 }
 0x558   : > { %s19095_s16 = smov %s19097_s6  ;;  %19 = sbr.rel (!%p17_p6) target bundleno = 9 (0x9), region = 86 }
 0x55d   :  { %6610 = vsyncpa [#allocation3], 1 }
 0x55e   :  { %6612 = vsyncpa [#allocation3 + $0x1], 1 }
 0x55f   :  { %6613 = vsyncpa [#allocation6], 1 }
 0x560   :  { %6615 = vsyncpa [#allocation6 + $0x1], 1 }
 0x561   :  { %6616 = vsyncpa [#allocation4], 1 }
 0x562   :  { %6618 = vsyncpa [#allocation4 + $0x1], 1 }

</bundles_post_ra>
